<compile_context>
chip_gen: v6e
topology: v6e:2x2x1
jax: 0.10.0
libtpu: 0.0.40
codegen_flags: <defaults>
</compile_context>

<pallas_src>
import jax
import jax.numpy as jnp
import numpy as np
from jax.experimental import pallas as pl
from jax.experimental.pallas import tpu as pltpu


# ---------------------------------------------------------------------------
# Fused Pallas kernel: num_layers x LSTM (unrolled time loop) + FC head
# ---------------------------------------------------------------------------
def _make_fused_lstm_fc_kernel(num_layers, hidden_p, seq_len, batch):
    Hp = hidden_p
    T = seq_len
    B = batch
    n_deep = num_layers - 1

    def kernel(*refs):
        # ---- unpack refs: (inputs..., output) -----------------------------
        xf_ref = refs[0]                        # (T*B, I)
        wih0_ref = refs[1]                      # (I, 4Hp)
        whh0_ref = refs[2]                      # (Hp, 4Hp)
        b0_ref = refs[3]                        # (1, 4Hp)
        deep_refs = refs[4:4 + 3 * n_deep]      # per deep layer: Wih, Whh, b
        wfc_ref = refs[4 + 3 * n_deep]          # (Hp, Kp)
        bfc_ref = refs[5 + 3 * n_deep]          # (1, Kp)
        out_ref = refs[6 + 3 * n_deep]          # (B, Kp)

        # ---- layer-0 input projection: ONE matmul for all timesteps -------
        # Independent of the recurrence; kept as a value and statically
        # row-sliced per timestep below (no scratch stores/loads).
        xproj = (
            jnp.dot(xf_ref[...], wih0_ref[...],
                    preferred_element_type=jnp.float32)
            + b0_ref[...]
        )                                        # (T*B, 4Hp)

        def gate_math(gates, c_prev):
            # PyTorch gate order along 4Hp: [i, f, g, o]; each block is a
            # full lane tile (Hp = 128), so these slices are aligned views.
            i_g = jax.nn.sigmoid(gates[:, 0 * Hp:1 * Hp])
            f_g = jax.nn.sigmoid(gates[:, 1 * Hp:2 * Hp])
            g_g = jnp.tanh(gates[:, 2 * Hp:3 * Hp])
            o_g = jax.nn.sigmoid(gates[:, 3 * Hp:4 * Hp])
            c_new = f_g * c_prev + i_g * g_g
            h_new = o_g * jnp.tanh(c_new)
            return h_new, c_new

        zero = jnp.zeros((B, Hp), jnp.float32)
        hs = [zero] * num_layers
        cs = [zero] * num_layers

        # Fully-unrolled static time loop: single basic block, LLO scheduler
        # can overlap layer0[t+1]'s recurrent matmul with layer1[t]'s
        # EUP/VPU gate math (they only depend on h0[t]).
        for t in range(T):
            # Layer 0: only the h-dependent matmul on the serial path.
            gates0 = xproj[t * B:(t + 1) * B, :] + jnp.dot(
                hs[0], whh0_ref[...], preferred_element_type=jnp.float32)
            h_new, c_new = gate_math(gates0, cs[0])
            hs[0], cs[0] = h_new, c_new
            inp = h_new
            # Deeper layers: two small dots (no lane-unaligned concat).
            for k in range(n_deep):
                wih_ref = deep_refs[3 * k]
                whh_ref = deep_refs[3 * k + 1]
                b_ref = deep_refs[3 * k + 2]
                gates = (
                    jnp.dot(inp, wih_ref[...],
                            preferred_element_type=jnp.float32)
                    + jnp.dot(hs[k + 1], whh_ref[...],
                              preferred_element_type=jnp.float32)
                    + b_ref[...]
                )
                h_new, c_new = gate_math(gates, cs[k + 1])
                hs[k + 1], cs[k + 1] = h_new, c_new
                inp = h_new

        # Fused FC head on the last layer's final hidden state (lane-dense).
        out_ref[...] = (
            jnp.dot(hs[-1], wfc_ref[...], preferred_element_type=jnp.float32)
            + bfc_ref[...]
        )

    return kernel


# ---------------------------------------------------------------------------
# Wrapper: weight padding (numerically exact) + one pallas_call
# ---------------------------------------------------------------------------
def _pad_gate_lanes(m, H, Hp):
    """(rows, 4H) -> (rows, 4Hp): zero-pad each gate block [i|f|g|o] H->Hp."""
    if Hp == H:
        return m
    rows = m.shape[0]
    blocks = m.reshape(rows, 4, H)
    blocks = jnp.pad(blocks, ((0, 0), (0, 0), (0, Hp - H)))
    return blocks.reshape(rows, 4 * Hp)


def _forward_impl(params, x):
    """x: (B, T, input_size) batch-first, like the PyTorch module."""
    x_tbi = jnp.transpose(x, (1, 0, 2)).astype(jnp.float32)      # (T, B, I)
    T, B, I = x_tbi.shape
    x_flat = x_tbi.reshape(T * B, I)                             # (T*B, I)

    lstm_params = params["lstm"]
    w_fc, b_fc = params["fc"]
    num_layers = len(lstm_params)
    H = lstm_params[0][1].shape[0]
    K = w_fc.shape[1]
    Hp = ((H + 127) // 128) * 128                                # lane-tile H
    Kp = ((K + 127) // 128) * 128                                # lane-dense out

    wih0, whh0, b0 = lstm_params[0]
    wih0_p = _pad_gate_lanes(wih0, H, Hp)                                  # (I, 4Hp)
    whh0_p = jnp.pad(_pad_gate_lanes(whh0, H, Hp), ((0, Hp - H), (0, 0)))  # (Hp, 4Hp)
    b0_p = _pad_gate_lanes(b0, H, Hp)                                      # (1, 4Hp)

    deep_args = []
    for (w_ih, w_hh, b) in lstm_params[1:]:
        deep_args.append(
            jnp.pad(_pad_gate_lanes(w_ih, H, Hp), ((0, Hp - H), (0, 0))))  # (Hp, 4Hp)
        deep_args.append(
            jnp.pad(_pad_gate_lanes(w_hh, H, Hp), ((0, Hp - H), (0, 0))))  # (Hp, 4Hp)
        deep_args.append(_pad_gate_lanes(b, H, Hp))                        # (1, 4Hp)

    w_fc_p = jnp.pad(w_fc, ((0, Hp - H), (0, Kp - K)))                     # (Hp, Kp)
    b_fc_p = jnp.pad(b_fc, ((0, 0), (0, Kp - K)))                          # (1, Kp)

    out_p = pl.pallas_call(
        _make_fused_lstm_fc_kernel(num_layers, Hp, T, B),
        out_shape=jax.ShapeDtypeStruct((B, Kp), jnp.float32),
        # No grid, no scratch: single invocation, <1 MiB resident in VMEM.
    )(x_flat, wih0_p, whh0_p, b0_p, *deep_args, w_fc_p, b_fc_p)

    return out_p[:, :K]                                          # (B, num_keys)


forward = jax.jit(_forward_impl)


# ---------------------------------------------------------------------------
# Parameters (mirrors nn.LSTM + nn.Linear init ranges; bias = b_ih + b_hh)
# ---------------------------------------------------------------------------
def init_params(key, input_size, hidden_size, num_layers, num_keys):
    params = {"lstm": [], "fc": None}
    k_lstm = 1.0 / np.sqrt(hidden_size)
    for layer in range(num_layers):
        in_sz = input_size if layer == 0 else hidden_size
        key, k1, k2, k3, k4 = jax.random.split(key, 5)
        w_ih = jax.random.uniform(
            k1, (in_sz, 4 * hidden_size), jnp.float32, -k_lstm, k_lstm)
        w_hh = jax.random.uniform(
            k2, (hidden_size, 4 * hidden_size), jnp.float32, -k_lstm, k_lstm)
        b_ih = jax.random.uniform(
            k3, (1, 4 * hidden_size), jnp.float32, -k_lstm, k_lstm)
        b_hh = jax.random.uniform(
            k4, (1, 4 * hidden_size), jnp.float32, -k_lstm, k_lstm)
        params["lstm"].append((w_ih, w_hh, b_ih + b_hh))
    k_fc = 1.0 / np.sqrt(hidden_size)
    key, k1, k2 = jax.random.split(key, 3)
    w_fc = jax.random.uniform(
        k1, (hidden_size, num_keys), jnp.float32, -k_fc, k_fc)
    b_fc = jax.random.uniform(k2, (1, num_keys), jnp.float32, -k_fc, k_fc)
    params["fc"] = (w_fc, b_fc)
    return params


# ---------------------------------------------------------------------------
# Pure-JAX reference (correctness check only)
# ---------------------------------------------------------------------------
def forward_ref(params, x):
    x_tbi = jnp.transpose(x, (1, 0, 2)).astype(jnp.float32)
    for (w_ih, w_hh, b) in params["lstm"]:
        T, B, _ = x_tbi.shape
        H = w_hh.shape[0]

        def step(carry, x_t):
            h, c = carry
            gates = x_t @ w_ih + h @ w_hh + b
            i_g = jax.nn.sigmoid(gates[:, 0 * H:1 * H])
            f_g = jax.nn.sigmoid(gates[:, 1 * H:2 * H])
            g_g = jnp.tanh(gates[:, 2 * H:3 * H])
            o_g = jax.nn.sigmoid(gates[:, 3 * H:4 * H])
            c_new = f_g * c + i_g * g_g
            h_new = o_g * jnp.tanh(c_new)
            return (h_new, c_new), h_new

        h0 = jnp.zeros((B, H), jnp.float32)
        c0 = jnp.zeros((B, H), jnp.float32)
        _, x_tbi = jax.lax.scan(step, (h0, c0), x_tbi)
    w_fc, b_fc = params["fc"]
    return x_tbi[-1] @ w_fc + b_fc


# ---------------------------------------------------------------------------
if __name__ == "__main__":
    batch, seq_len = 2, 8
    input_size, hidden_size, num_layers, num_keys = 16, 32, 2, 10

    key = jax.random.PRNGKey(0)
    key, k_x, k_p = jax.random.split(key, 3)
    x = jax.random.normal(k_x, (batch, seq_len, input_size), jnp.float32)
    params = init_params(k_p, input_size, hidden_size, num_layers, num_keys)

    out = jax.block_until_ready(forward(params, x))
    ref = jax.block_until_ready(forward_ref(params, x))

    assert out.shape == (batch, num_keys), out.shape
    np.testing.assert_allclose(np.asarray(out), np.asarray(ref),
                               rtol=1e-4, atol=1e-5)

    print("KERNEL_OK")
</pallas_src>

<mosaic_0001>
module attributes {stable_mosaic.version = 11 : i64} {
  func.func @kernel(%arg0: memref<16x16xf32, #tpu.memory_space<vmem>>, %arg1: memref<16x512xf32, #tpu.memory_space<vmem>>, %arg2: memref<128x512xf32, #tpu.memory_space<vmem>>, %arg3: memref<1x512xf32, #tpu.memory_space<vmem>>, %arg4: memref<128x512xf32, #tpu.memory_space<vmem>>, %arg5: memref<128x512xf32, #tpu.memory_space<vmem>>, %arg6: memref<1x512xf32, #tpu.memory_space<vmem>>, %arg7: memref<128x128xf32, #tpu.memory_space<vmem>>, %arg8: memref<1x128xf32, #tpu.memory_space<vmem>>, %arg9: memref<2x128xf32, #tpu.memory_space<vmem>>) attributes {dimension_semantics = [], scalar_prefetch = 0 : i64, scratch_operands = 0 : i64, tpu.core_type = #tpu.core_type<tc>} {
    %c0 = arith.constant 0 : index
    %c0_0 = arith.constant 0 : index
    %0 = vector.load %arg0[%c0, %c0_0] : memref<16x16xf32, #tpu.memory_space<vmem>>, vector<16x16xf32>
    %c0_1 = arith.constant 0 : index
    %c0_2 = arith.constant 0 : index
    %1 = vector.load %arg1[%c0_1, %c0_2] : memref<16x512xf32, #tpu.memory_space<vmem>>, vector<16x512xf32>
    %cst = arith.constant dense<0.000000e+00> : vector<16x512xf32>
    %2 = tpu.matmul %0, %1, %cst {dimension_numbers = #tpu.dot_dimension_numbers<[1], [0], [0], [1], [0, 0, 1, 1], [], []>} : vector<16x16xf32>, vector<16x512xf32>, vector<16x512xf32> -> vector<16x512xf32>
    %c0_3 = arith.constant 0 : index
    %c0_4 = arith.constant 0 : index
    %3 = vector.load %arg3[%c0_3, %c0_4] : memref<1x512xf32, #tpu.memory_space<vmem>>, vector<1x512xf32>
    %4 = vector.broadcast %3 : vector<1x512xf32> to vector<16x512xf32>
    %5 = arith.addf %2, %4 : vector<16x512xf32>
    %cst_5 = arith.constant 0.000000e+00 : f32
    %6 = vector.broadcast %cst_5 : f32 to vector<2x128xf32>
    %7 = vector.extract_strided_slice %5 {offsets = [0, 0], sizes = [2, 512], strides = [1, 1]} : vector<16x512xf32> to vector<2x512xf32>
    %c0_6 = arith.constant 0 : index
    %c0_7 = arith.constant 0 : index
    %8 = vector.load %arg2[%c0_6, %c0_7] : memref<128x512xf32, #tpu.memory_space<vmem>>, vector<128x512xf32>
    %cst_8 = arith.constant dense<0.000000e+00> : vector<2x512xf32>
    %9 = tpu.matmul %6, %8, %cst_8 {dimension_numbers = #tpu.dot_dimension_numbers<[1], [0], [0], [1], [0, 0, 1, 1], [], []>} : vector<2x128xf32>, vector<128x512xf32>, vector<2x512xf32> -> vector<2x512xf32>
    %10 = arith.addf %7, %9 : vector<2x512xf32>
    %11 = vector.extract_strided_slice %10 {offsets = [0, 0], sizes = [2, 128], strides = [1, 1]} : vector<2x512xf32> to vector<2x128xf32>
    %12 = arith.negf %11 : vector<2x128xf32>
    %13 = math.exp %12 : vector<2x128xf32>
    %cst_9 = arith.constant 1.000000e+00 : f32
    %14 = vector.broadcast %cst_9 : f32 to vector<2x128xf32>
    %15 = arith.addf %14, %13 : vector<2x128xf32>
    %16 = arith.divf %14, %15 : vector<2x128xf32>
    %17 = vector.extract_strided_slice %10 {offsets = [0, 128], sizes = [2, 128], strides = [1, 1]} : vector<2x512xf32> to vector<2x128xf32>
    %18 = arith.negf %17 : vector<2x128xf32>
    %19 = math.exp %18 : vector<2x128xf32>
    %cst_10 = arith.constant 1.000000e+00 : f32
    %20 = vector.broadcast %cst_10 : f32 to vector<2x128xf32>
    %21 = arith.addf %20, %19 : vector<2x128xf32>
    %22 = arith.divf %20, %21 : vector<2x128xf32>
    %23 = vector.extract_strided_slice %10 {offsets = [0, 256], sizes = [2, 128], strides = [1, 1]} : vector<2x512xf32> to vector<2x128xf32>
    %24 = math.tanh %23 : vector<2x128xf32>
    %25 = vector.extract_strided_slice %10 {offsets = [0, 384], sizes = [2, 128], strides = [1, 1]} : vector<2x512xf32> to vector<2x128xf32>
    %26 = arith.negf %25 : vector<2x128xf32>
    %27 = math.exp %26 : vector<2x128xf32>
    %cst_11 = arith.constant 1.000000e+00 : f32
    %28 = vector.broadcast %cst_11 : f32 to vector<2x128xf32>
    %29 = arith.addf %28, %27 : vector<2x128xf32>
    %30 = arith.divf %28, %29 : vector<2x128xf32>
    %31 = arith.mulf %22, %6 : vector<2x128xf32>
    %32 = arith.mulf %16, %24 : vector<2x128xf32>
    %33 = arith.addf %31, %32 : vector<2x128xf32>
    %34 = math.tanh %33 : vector<2x128xf32>
    %35 = arith.mulf %30, %34 : vector<2x128xf32>
    %c0_12 = arith.constant 0 : index
    %c0_13 = arith.constant 0 : index
    %36 = vector.load %arg4[%c0_12, %c0_13] : memref<128x512xf32, #tpu.memory_space<vmem>>, vector<128x512xf32>
    %cst_14 = arith.constant dense<0.000000e+00> : vector<2x512xf32>
    %37 = tpu.matmul %35, %36, %cst_14 {dimension_numbers = #tpu.dot_dimension_numbers<[1], [0], [0], [1], [0, 0, 1, 1], [], []>} : vector<2x128xf32>, vector<128x512xf32>, vector<2x512xf32> -> vector<2x512xf32>
    %c0_15 = arith.constant 0 : index
    %c0_16 = arith.constant 0 : index
    %38 = vector.load %arg5[%c0_15, %c0_16] : memref<128x512xf32, #tpu.memory_space<vmem>>, vector<128x512xf32>
    %cst_17 = arith.constant dense<0.000000e+00> : vector<2x512xf32>
    %39 = tpu.matmul %6, %38, %cst_17 {dimension_numbers = #tpu.dot_dimension_numbers<[1], [0], [0], [1], [0, 0, 1, 1], [], []>} : vector<2x128xf32>, vector<128x512xf32>, vector<2x512xf32> -> vector<2x512xf32>
    %40 = arith.addf %37, %39 : vector<2x512xf32>
    %c0_18 = arith.constant 0 : index
    %c0_19 = arith.constant 0 : index
    %41 = vector.load %arg6[%c0_18, %c0_19] : memref<1x512xf32, #tpu.memory_space<vmem>>, vector<1x512xf32>
    %42 = vector.broadcast %41 : vector<1x512xf32> to vector<2x512xf32>
    %43 = arith.addf %40, %42 : vector<2x512xf32>
    %44 = vector.extract_strided_slice %43 {offsets = [0, 0], sizes = [2, 128], strides = [1, 1]} : vector<2x512xf32> to vector<2x128xf32>
    %45 = arith.negf %44 : vector<2x128xf32>
    %46 = math.exp %45 : vector<2x128xf32>
    %cst_20 = arith.constant 1.000000e+00 : f32
    %47 = vector.broadcast %cst_20 : f32 to vector<2x128xf32>
    %48 = arith.addf %47, %46 : vector<2x128xf32>
    %49 = arith.divf %47, %48 : vector<2x128xf32>
    %50 = vector.extract_strided_slice %43 {offsets = [0, 128], sizes = [2, 128], strides = [1, 1]} : vector<2x512xf32> to vector<2x128xf32>
    %51 = arith.negf %50 : vector<2x128xf32>
    %52 = math.exp %51 : vector<2x128xf32>
    %cst_21 = arith.constant 1.000000e+00 : f32
    %53 = vector.broadcast %cst_21 : f32 to vector<2x128xf32>
    %54 = arith.addf %53, %52 : vector<2x128xf32>
    %55 = arith.divf %53, %54 : vector<2x128xf32>
    %56 = vector.extract_strided_slice %43 {offsets = [0, 256], sizes = [2, 128], strides = [1, 1]} : vector<2x512xf32> to vector<2x128xf32>
    %57 = math.tanh %56 : vector<2x128xf32>
    %58 = vector.extract_strided_slice %43 {offsets = [0, 384], sizes = [2, 128], strides = [1, 1]} : vector<2x512xf32> to vector<2x128xf32>
    %59 = arith.negf %58 : vector<2x128xf32>
    %60 = math.exp %59 : vector<2x128xf32>
    %cst_22 = arith.constant 1.000000e+00 : f32
    %61 = vector.broadcast %cst_22 : f32 to vector<2x128xf32>
    %62 = arith.addf %61, %60 : vector<2x128xf32>
    %63 = arith.divf %61, %62 : vector<2x128xf32>
    %64 = arith.mulf %55, %6 : vector<2x128xf32>
    %65 = arith.mulf %49, %57 : vector<2x128xf32>
    %66 = arith.addf %64, %65 : vector<2x128xf32>
    %67 = math.tanh %66 : vector<2x128xf32>
    %68 = arith.mulf %63, %67 : vector<2x128xf32>
    %69 = vector.extract_strided_slice %5 {offsets = [2, 0], sizes = [2, 512], strides = [1, 1]} : vector<16x512xf32> to vector<2x512xf32>
    %c0_23 = arith.constant 0 : index
    %c0_24 = arith.constant 0 : index
    %70 = vector.load %arg2[%c0_23, %c0_24] : memref<128x512xf32, #tpu.memory_space<vmem>>, vector<128x512xf32>
    %cst_25 = arith.constant dense<0.000000e+00> : vector<2x512xf32>
    %71 = tpu.matmul %35, %70, %cst_25 {dimension_numbers = #tpu.dot_dimension_numbers<[1], [0], [0], [1], [0, 0, 1, 1], [], []>} : vector<2x128xf32>, vector<128x512xf32>, vector<2x512xf32> -> vector<2x512xf32>
    %72 = arith.addf %69, %71 : vector<2x512xf32>
    %73 = vector.extract_strided_slice %72 {offsets = [0, 0], sizes = [2, 128], strides = [1, 1]} : vector<2x512xf32> to vector<2x128xf32>
    %74 = arith.negf %73 : vector<2x128xf32>
    %75 = math.exp %74 : vector<2x128xf32>
    %cst_26 = arith.constant 1.000000e+00 : f32
    %76 = vector.broadcast %cst_26 : f32 to vector<2x128xf32>
    %77 = arith.addf %76, %75 : vector<2x128xf32>
    %78 = arith.divf %76, %77 : vector<2x128xf32>
    %79 = vector.extract_strided_slice %72 {offsets = [0, 128], sizes = [2, 128], strides = [1, 1]} : vector<2x512xf32> to vector<2x128xf32>
    %80 = arith.negf %79 : vector<2x128xf32>
    %81 = math.exp %80 : vector<2x128xf32>
    %cst_27 = arith.constant 1.000000e+00 : f32
    %82 = vector.broadcast %cst_27 : f32 to vector<2x128xf32>
    %83 = arith.addf %82, %81 : vector<2x128xf32>
    %84 = arith.divf %82, %83 : vector<2x128xf32>
    %85 = vector.extract_strided_slice %72 {offsets = [0, 256], sizes = [2, 128], strides = [1, 1]} : vector<2x512xf32> to vector<2x128xf32>
    %86 = math.tanh %85 : vector<2x128xf32>
    %87 = vector.extract_strided_slice %72 {offsets = [0, 384], sizes = [2, 128], strides = [1, 1]} : vector<2x512xf32> to vector<2x128xf32>
    %88 = arith.negf %87 : vector<2x128xf32>
    %89 = math.exp %88 : vector<2x128xf32>
    %cst_28 = arith.constant 1.000000e+00 : f32
    %90 = vector.broadcast %cst_28 : f32 to vector<2x128xf32>
    %91 = arith.addf %90, %89 : vector<2x128xf32>
    %92 = arith.divf %90, %91 : vector<2x128xf32>
    %93 = arith.mulf %84, %33 : vector<2x128xf32>
    %94 = arith.mulf %78, %86 : vector<2x128xf32>
    %95 = arith.addf %93, %94 : vector<2x128xf32>
    %96 = math.tanh %95 : vector<2x128xf32>
    %97 = arith.mulf %92, %96 : vector<2x128xf32>
    %c0_29 = arith.constant 0 : index
    %c0_30 = arith.constant 0 : index
    %98 = vector.load %arg4[%c0_29, %c0_30] : memref<128x512xf32, #tpu.memory_space<vmem>>, vector<128x512xf32>
    %cst_31 = arith.constant dense<0.000000e+00> : vector<2x512xf32>
    %99 = tpu.matmul %97, %98, %cst_31 {dimension_numbers = #tpu.dot_dimension_numbers<[1], [0], [0], [1], [0, 0, 1, 1], [], []>} : vector<2x128xf32>, vector<128x512xf32>, vector<2x512xf32> -> vector<2x512xf32>
    %c0_32 = arith.constant 0 : index
    %c0_33 = arith.constant 0 : index
    %100 = vector.load %arg5[%c0_32, %c0_33] : memref<128x512xf32, #tpu.memory_space<vmem>>, vector<128x512xf32>
    %cst_34 = arith.constant dense<0.000000e+00> : vector<2x512xf32>
    %101 = tpu.matmul %68, %100, %cst_34 {dimension_numbers = #tpu.dot_dimension_numbers<[1], [0], [0], [1], [0, 0, 1, 1], [], []>} : vector<2x128xf32>, vector<128x512xf32>, vector<2x512xf32> -> vector<2x512xf32>
    %102 = arith.addf %99, %101 : vector<2x512xf32>
    %c0_35 = arith.constant 0 : index
    %c0_36 = arith.constant 0 : index
    %103 = vector.load %arg6[%c0_35, %c0_36] : memref<1x512xf32, #tpu.memory_space<vmem>>, vector<1x512xf32>
    %104 = vector.broadcast %103 : vector<1x512xf32> to vector<2x512xf32>
    %105 = arith.addf %102, %104 : vector<2x512xf32>
    %106 = vector.extract_strided_slice %105 {offsets = [0, 0], sizes = [2, 128], strides = [1, 1]} : vector<2x512xf32> to vector<2x128xf32>
    %107 = arith.negf %106 : vector<2x128xf32>
    %108 = math.exp %107 : vector<2x128xf32>
    %cst_37 = arith.constant 1.000000e+00 : f32
    %109 = vector.broadcast %cst_37 : f32 to vector<2x128xf32>
    %110 = arith.addf %109, %108 : vector<2x128xf32>
    %111 = arith.divf %109, %110 : vector<2x128xf32>
    %112 = vector.extract_strided_slice %105 {offsets = [0, 128], sizes = [2, 128], strides = [1, 1]} : vector<2x512xf32> to vector<2x128xf32>
    %113 = arith.negf %112 : vector<2x128xf32>
    %114 = math.exp %113 : vector<2x128xf32>
    %cst_38 = arith.constant 1.000000e+00 : f32
    %115 = vector.broadcast %cst_38 : f32 to vector<2x128xf32>
    %116 = arith.addf %115, %114 : vector<2x128xf32>
    %117 = arith.divf %115, %116 : vector<2x128xf32>
    %118 = vector.extract_strided_slice %105 {offsets = [0, 256], sizes = [2, 128], strides = [1, 1]} : vector<2x512xf32> to vector<2x128xf32>
    %119 = math.tanh %118 : vector<2x128xf32>
    %120 = vector.extract_strided_slice %105 {offsets = [0, 384], sizes = [2, 128], strides = [1, 1]} : vector<2x512xf32> to vector<2x128xf32>
    %121 = arith.negf %120 : vector<2x128xf32>
    %122 = math.exp %121 : vector<2x128xf32>
    %cst_39 = arith.constant 1.000000e+00 : f32
    %123 = vector.broadcast %cst_39 : f32 to vector<2x128xf32>
    %124 = arith.addf %123, %122 : vector<2x128xf32>
    %125 = arith.divf %123, %124 : vector<2x128xf32>
    %126 = arith.mulf %117, %66 : vector<2x128xf32>
    %127 = arith.mulf %111, %119 : vector<2x128xf32>
    %128 = arith.addf %126, %127 : vector<2x128xf32>
    %129 = math.tanh %128 : vector<2x128xf32>
    %130 = arith.mulf %125, %129 : vector<2x128xf32>
    %131 = vector.extract_strided_slice %5 {offsets = [4, 0], sizes = [2, 512], strides = [1, 1]} : vector<16x512xf32> to vector<2x512xf32>
    %c0_40 = arith.constant 0 : index
    %c0_41 = arith.constant 0 : index
    %132 = vector.load %arg2[%c0_40, %c0_41] : memref<128x512xf32, #tpu.memory_space<vmem>>, vector<128x512xf32>
    %cst_42 = arith.constant dense<0.000000e+00> : vector<2x512xf32>
    %133 = tpu.matmul %97, %132, %cst_42 {dimension_numbers = #tpu.dot_dimension_numbers<[1], [0], [0], [1], [0, 0, 1, 1], [], []>} : vector<2x128xf32>, vector<128x512xf32>, vector<2x512xf32> -> vector<2x512xf32>
    %134 = arith.addf %131, %133 : vector<2x512xf32>
    %135 = vector.extract_strided_slice %134 {offsets = [0, 0], sizes = [2, 128], strides = [1, 1]} : vector<2x512xf32> to vector<2x128xf32>
    %136 = arith.negf %135 : vector<2x128xf32>
    %137 = math.exp %136 : vector<2x128xf32>
    %cst_43 = arith.constant 1.000000e+00 : f32
    %138 = vector.broadcast %cst_43 : f32 to vector<2x128xf32>
    %139 = arith.addf %138, %137 : vector<2x128xf32>
    %140 = arith.divf %138, %139 : vector<2x128xf32>
    %141 = vector.extract_strided_slice %134 {offsets = [0, 128], sizes = [2, 128], strides = [1, 1]} : vector<2x512xf32> to vector<2x128xf32>
    %142 = arith.negf %141 : vector<2x128xf32>
    %143 = math.exp %142 : vector<2x128xf32>
    %cst_44 = arith.constant 1.000000e+00 : f32
    %144 = vector.broadcast %cst_44 : f32 to vector<2x128xf32>
    %145 = arith.addf %144, %143 : vector<2x128xf32>
    %146 = arith.divf %144, %145 : vector<2x128xf32>
    %147 = vector.extract_strided_slice %134 {offsets = [0, 256], sizes = [2, 128], strides = [1, 1]} : vector<2x512xf32> to vector<2x128xf32>
    %148 = math.tanh %147 : vector<2x128xf32>
    %149 = vector.extract_strided_slice %134 {offsets = [0, 384], sizes = [2, 128], strides = [1, 1]} : vector<2x512xf32> to vector<2x128xf32>
    %150 = arith.negf %149 : vector<2x128xf32>
    %151 = math.exp %150 : vector<2x128xf32>
    %cst_45 = arith.constant 1.000000e+00 : f32
    %152 = vector.broadcast %cst_45 : f32 to vector<2x128xf32>
    %153 = arith.addf %152, %151 : vector<2x128xf32>
    %154 = arith.divf %152, %153 : vector<2x128xf32>
    %155 = arith.mulf %146, %95 : vector<2x128xf32>
    %156 = arith.mulf %140, %148 : vector<2x128xf32>
    %157 = arith.addf %155, %156 : vector<2x128xf32>
    %158 = math.tanh %157 : vector<2x128xf32>
    %159 = arith.mulf %154, %158 : vector<2x128xf32>
    %c0_46 = arith.constant 0 : index
    %c0_47 = arith.constant 0 : index
    %160 = vector.load %arg4[%c0_46, %c0_47] : memref<128x512xf32, #tpu.memory_space<vmem>>, vector<128x512xf32>
    %cst_48 = arith.constant dense<0.000000e+00> : vector<2x512xf32>
    %161 = tpu.matmul %159, %160, %cst_48 {dimension_numbers = #tpu.dot_dimension_numbers<[1], [0], [0], [1], [0, 0, 1, 1], [], []>} : vector<2x128xf32>, vector<128x512xf32>, vector<2x512xf32> -> vector<2x512xf32>
    %c0_49 = arith.constant 0 : index
    %c0_50 = arith.constant 0 : index
    %162 = vector.load %arg5[%c0_49, %c0_50] : memref<128x512xf32, #tpu.memory_space<vmem>>, vector<128x512xf32>
    %cst_51 = arith.constant dense<0.000000e+00> : vector<2x512xf32>
    %163 = tpu.matmul %130, %162, %cst_51 {dimension_numbers = #tpu.dot_dimension_numbers<[1], [0], [0], [1], [0, 0, 1, 1], [], []>} : vector<2x128xf32>, vector<128x512xf32>, vector<2x512xf32> -> vector<2x512xf32>
    %164 = arith.addf %161, %163 : vector<2x512xf32>
    %c0_52 = arith.constant 0 : index
    %c0_53 = arith.constant 0 : index
    %165 = vector.load %arg6[%c0_52, %c0_53] : memref<1x512xf32, #tpu.memory_space<vmem>>, vector<1x512xf32>
    %166 = vector.broadcast %165 : vector<1x512xf32> to vector<2x512xf32>
    %167 = arith.addf %164, %166 : vector<2x512xf32>
    %168 = vector.extract_strided_slice %167 {offsets = [0, 0], sizes = [2, 128], strides = [1, 1]} : vector<2x512xf32> to vector<2x128xf32>
    %169 = arith.negf %168 : vector<2x128xf32>
    %170 = math.exp %169 : vector<2x128xf32>
    %cst_54 = arith.constant 1.000000e+00 : f32
    %171 = vector.broadcast %cst_54 : f32 to vector<2x128xf32>
    %172 = arith.addf %171, %170 : vector<2x128xf32>
    %173 = arith.divf %171, %172 : vector<2x128xf32>
    %174 = vector.extract_strided_slice %167 {offsets = [0, 128], sizes = [2, 128], strides = [1, 1]} : vector<2x512xf32> to vector<2x128xf32>
    %175 = arith.negf %174 : vector<2x128xf32>
    %176 = math.exp %175 : vector<2x128xf32>
    %cst_55 = arith.constant 1.000000e+00 : f32
    %177 = vector.broadcast %cst_55 : f32 to vector<2x128xf32>
    %178 = arith.addf %177, %176 : vector<2x128xf32>
    %179 = arith.divf %177, %178 : vector<2x128xf32>
    %180 = vector.extract_strided_slice %167 {offsets = [0, 256], sizes = [2, 128], strides = [1, 1]} : vector<2x512xf32> to vector<2x128xf32>
    %181 = math.tanh %180 : vector<2x128xf32>
    %182 = vector.extract_strided_slice %167 {offsets = [0, 384], sizes = [2, 128], strides = [1, 1]} : vector<2x512xf32> to vector<2x128xf32>
    %183 = arith.negf %182 : vector<2x128xf32>
    %184 = math.exp %183 : vector<2x128xf32>
    %cst_56 = arith.constant 1.000000e+00 : f32
    %185 = vector.broadcast %cst_56 : f32 to vector<2x128xf32>
    %186 = arith.addf %185, %184 : vector<2x128xf32>
    %187 = arith.divf %185, %186 : vector<2x128xf32>
    %188 = arith.mulf %179, %128 : vector<2x128xf32>
    %189 = arith.mulf %173, %181 : vector<2x128xf32>
    %190 = arith.addf %188, %189 : vector<2x128xf32>
    %191 = math.tanh %190 : vector<2x128xf32>
    %192 = arith.mulf %187, %191 : vector<2x128xf32>
    %193 = vector.extract_strided_slice %5 {offsets = [6, 0], sizes = [2, 512], strides = [1, 1]} : vector<16x512xf32> to vector<2x512xf32>
    %c0_57 = arith.constant 0 : index
    %c0_58 = arith.constant 0 : index
    %194 = vector.load %arg2[%c0_57, %c0_58] : memref<128x512xf32, #tpu.memory_space<vmem>>, vector<128x512xf32>
    %cst_59 = arith.constant dense<0.000000e+00> : vector<2x512xf32>
    %195 = tpu.matmul %159, %194, %cst_59 {dimension_numbers = #tpu.dot_dimension_numbers<[1], [0], [0], [1], [0, 0, 1, 1], [], []>} : vector<2x128xf32>, vector<128x512xf32>, vector<2x512xf32> -> vector<2x512xf32>
    %196 = arith.addf %193, %195 : vector<2x512xf32>
    %197 = vector.extract_strided_slice %196 {offsets = [0, 0], sizes = [2, 128], strides = [1, 1]} : vector<2x512xf32> to vector<2x128xf32>
    %198 = arith.negf %197 : vector<2x128xf32>
    %199 = math.exp %198 : vector<2x128xf32>
    %cst_60 = arith.constant 1.000000e+00 : f32
    %200 = vector.broadcast %cst_60 : f32 to vector<2x128xf32>
    %201 = arith.addf %200, %199 : vector<2x128xf32>
    %202 = arith.divf %200, %201 : vector<2x128xf32>
    %203 = vector.extract_strided_slice %196 {offsets = [0, 128], sizes = [2, 128], strides = [1, 1]} : vector<2x512xf32> to vector<2x128xf32>
    %204 = arith.negf %203 : vector<2x128xf32>
    %205 = math.exp %204 : vector<2x128xf32>
    %cst_61 = arith.constant 1.000000e+00 : f32
    %206 = vector.broadcast %cst_61 : f32 to vector<2x128xf32>
    %207 = arith.addf %206, %205 : vector<2x128xf32>
    %208 = arith.divf %206, %207 : vector<2x128xf32>
    %209 = vector.extract_strided_slice %196 {offsets = [0, 256], sizes = [2, 128], strides = [1, 1]} : vector<2x512xf32> to vector<2x128xf32>
    %210 = math.tanh %209 : vector<2x128xf32>
    %211 = vector.extract_strided_slice %196 {offsets = [0, 384], sizes = [2, 128], strides = [1, 1]} : vector<2x512xf32> to vector<2x128xf32>
    %212 = arith.negf %211 : vector<2x128xf32>
    %213 = math.exp %212 : vector<2x128xf32>
    %cst_62 = arith.constant 1.000000e+00 : f32
    %214 = vector.broadcast %cst_62 : f32 to vector<2x128xf32>
    %215 = arith.addf %214, %213 : vector<2x128xf32>
    %216 = arith.divf %214, %215 : vector<2x128xf32>
    %217 = arith.mulf %208, %157 : vector<2x128xf32>
    %218 = arith.mulf %202, %210 : vector<2x128xf32>
    %219 = arith.addf %217, %218 : vector<2x128xf32>
    %220 = math.tanh %219 : vector<2x128xf32>
    %221 = arith.mulf %216, %220 : vector<2x128xf32>
    %c0_63 = arith.constant 0 : index
    %c0_64 = arith.constant 0 : index
    %222 = vector.load %arg4[%c0_63, %c0_64] : memref<128x512xf32, #tpu.memory_space<vmem>>, vector<128x512xf32>
    %cst_65 = arith.constant dense<0.000000e+00> : vector<2x512xf32>
    %223 = tpu.matmul %221, %222, %cst_65 {dimension_numbers = #tpu.dot_dimension_numbers<[1], [0], [0], [1], [0, 0, 1, 1], [], []>} : vector<2x128xf32>, vector<128x512xf32>, vector<2x512xf32> -> vector<2x512xf32>
    %c0_66 = arith.constant 0 : index
    %c0_67 = arith.constant 0 : index
    %224 = vector.load %arg5[%c0_66, %c0_67] : memref<128x512xf32, #tpu.memory_space<vmem>>, vector<128x512xf32>
    %cst_68 = arith.constant dense<0.000000e+00> : vector<2x512xf32>
    %225 = tpu.matmul %192, %224, %cst_68 {dimension_numbers = #tpu.dot_dimension_numbers<[1], [0], [0], [1], [0, 0, 1, 1], [], []>} : vector<2x128xf32>, vector<128x512xf32>, vector<2x512xf32> -> vector<2x512xf32>
    %226 = arith.addf %223, %225 : vector<2x512xf32>
    %c0_69 = arith.constant 0 : index
    %c0_70 = arith.constant 0 : index
    %227 = vector.load %arg6[%c0_69, %c0_70] : memref<1x512xf32, #tpu.memory_space<vmem>>, vector<1x512xf32>
    %228 = vector.broadcast %227 : vector<1x512xf32> to vector<2x512xf32>
    %229 = arith.addf %226, %228 : vector<2x512xf32>
    %230 = vector.extract_strided_slice %229 {offsets = [0, 0], sizes = [2, 128], strides = [1, 1]} : vector<2x512xf32> to vector<2x128xf32>
    %231 = arith.negf %230 : vector<2x128xf32>
    %232 = math.exp %231 : vector<2x128xf32>
    %cst_71 = arith.constant 1.000000e+00 : f32
    %233 = vector.broadcast %cst_71 : f32 to vector<2x128xf32>
    %234 = arith.addf %233, %232 : vector<2x128xf32>
    %235 = arith.divf %233, %234 : vector<2x128xf32>
    %236 = vector.extract_strided_slice %229 {offsets = [0, 128], sizes = [2, 128], strides = [1, 1]} : vector<2x512xf32> to vector<2x128xf32>
    %237 = arith.negf %236 : vector<2x128xf32>
    %238 = math.exp %237 : vector<2x128xf32>
    %cst_72 = arith.constant 1.000000e+00 : f32
    %239 = vector.broadcast %cst_72 : f32 to vector<2x128xf32>
    %240 = arith.addf %239, %238 : vector<2x128xf32>
    %241 = arith.divf %239, %240 : vector<2x128xf32>
    %242 = vector.extract_strided_slice %229 {offsets = [0, 256], sizes = [2, 128], strides = [1, 1]} : vector<2x512xf32> to vector<2x128xf32>
    %243 = math.tanh %242 : vector<2x128xf32>
    %244 = vector.extract_strided_slice %229 {offsets = [0, 384], sizes = [2, 128], strides = [1, 1]} : vector<2x512xf32> to vector<2x128xf32>
    %245 = arith.negf %244 : vector<2x128xf32>
    %246 = math.exp %245 : vector<2x128xf32>
    %cst_73 = arith.constant 1.000000e+00 : f32
    %247 = vector.broadcast %cst_73 : f32 to vector<2x128xf32>
    %248 = arith.addf %247, %246 : vector<2x128xf32>
    %249 = arith.divf %247, %248 : vector<2x128xf32>
    %250 = arith.mulf %241, %190 : vector<2x128xf32>
    %251 = arith.mulf %235, %243 : vector<2x128xf32>
    %252 = arith.addf %250, %251 : vector<2x128xf32>
    %253 = math.tanh %252 : vector<2x128xf32>
    %254 = arith.mulf %249, %253 : vector<2x128xf32>
    %255 = vector.extract_strided_slice %5 {offsets = [8, 0], sizes = [2, 512], strides = [1, 1]} : vector<16x512xf32> to vector<2x512xf32>
    %c0_74 = arith.constant 0 : index
    %c0_75 = arith.constant 0 : index
    %256 = vector.load %arg2[%c0_74, %c0_75] : memref<128x512xf32, #tpu.memory_space<vmem>>, vector<128x512xf32>
    %cst_76 = arith.constant dense<0.000000e+00> : vector<2x512xf32>
    %257 = tpu.matmul %221, %256, %cst_76 {dimension_numbers = #tpu.dot_dimension_numbers<[1], [0], [0], [1], [0, 0, 1, 1], [], []>} : vector<2x128xf32>, vector<128x512xf32>, vector<2x512xf32> -> vector<2x512xf32>
    %258 = arith.addf %255, %257 : vector<2x512xf32>
    %259 = vector.extract_strided_slice %258 {offsets = [0, 0], sizes = [2, 128], strides = [1, 1]} : vector<2x512xf32> to vector<2x128xf32>
    %260 = arith.negf %259 : vector<2x128xf32>
    %261 = math.exp %260 : vector<2x128xf32>
    %cst_77 = arith.constant 1.000000e+00 : f32
    %262 = vector.broadcast %cst_77 : f32 to vector<2x128xf32>
    %263 = arith.addf %262, %261 : vector<2x128xf32>
    %264 = arith.divf %262, %263 : vector<2x128xf32>
    %265 = vector.extract_strided_slice %258 {offsets = [0, 128], sizes = [2, 128], strides = [1, 1]} : vector<2x512xf32> to vector<2x128xf32>
    %266 = arith.negf %265 : vector<2x128xf32>
    %267 = math.exp %266 : vector<2x128xf32>
    %cst_78 = arith.constant 1.000000e+00 : f32
    %268 = vector.broadcast %cst_78 : f32 to vector<2x128xf32>
    %269 = arith.addf %268, %267 : vector<2x128xf32>
    %270 = arith.divf %268, %269 : vector<2x128xf32>
    %271 = vector.extract_strided_slice %258 {offsets = [0, 256], sizes = [2, 128], strides = [1, 1]} : vector<2x512xf32> to vector<2x128xf32>
    %272 = math.tanh %271 : vector<2x128xf32>
    %273 = vector.extract_strided_slice %258 {offsets = [0, 384], sizes = [2, 128], strides = [1, 1]} : vector<2x512xf32> to vector<2x128xf32>
    %274 = arith.negf %273 : vector<2x128xf32>
    %275 = math.exp %274 : vector<2x128xf32>
    %cst_79 = arith.constant 1.000000e+00 : f32
    %276 = vector.broadcast %cst_79 : f32 to vector<2x128xf32>
    %277 = arith.addf %276, %275 : vector<2x128xf32>
    %278 = arith.divf %276, %277 : vector<2x128xf32>
    %279 = arith.mulf %270, %219 : vector<2x128xf32>
    %280 = arith.mulf %264, %272 : vector<2x128xf32>
    %281 = arith.addf %279, %280 : vector<2x128xf32>
    %282 = math.tanh %281 : vector<2x128xf32>
    %283 = arith.mulf %278, %282 : vector<2x128xf32>
    %c0_80 = arith.constant 0 : index
    %c0_81 = arith.constant 0 : index
    %284 = vector.load %arg4[%c0_80, %c0_81] : memref<128x512xf32, #tpu.memory_space<vmem>>, vector<128x512xf32>
    %cst_82 = arith.constant dense<0.000000e+00> : vector<2x512xf32>
    %285 = tpu.matmul %283, %284, %cst_82 {dimension_numbers = #tpu.dot_dimension_numbers<[1], [0], [0], [1], [0, 0, 1, 1], [], []>} : vector<2x128xf32>, vector<128x512xf32>, vector<2x512xf32> -> vector<2x512xf32>
    %c0_83 = arith.constant 0 : index
    %c0_84 = arith.constant 0 : index
    %286 = vector.load %arg5[%c0_83, %c0_84] : memref<128x512xf32, #tpu.memory_space<vmem>>, vector<128x512xf32>
    %cst_85 = arith.constant dense<0.000000e+00> : vector<2x512xf32>
    %287 = tpu.matmul %254, %286, %cst_85 {dimension_numbers = #tpu.dot_dimension_numbers<[1], [0], [0], [1], [0, 0, 1, 1], [], []>} : vector<2x128xf32>, vector<128x512xf32>, vector<2x512xf32> -> vector<2x512xf32>
    %288 = arith.addf %285, %287 : vector<2x512xf32>
    %c0_86 = arith.constant 0 : index
    %c0_87 = arith.constant 0 : index
    %289 = vector.load %arg6[%c0_86, %c0_87] : memref<1x512xf32, #tpu.memory_space<vmem>>, vector<1x512xf32>
    %290 = vector.broadcast %289 : vector<1x512xf32> to vector<2x512xf32>
    %291 = arith.addf %288, %290 : vector<2x512xf32>
    %292 = vector.extract_strided_slice %291 {offsets = [0, 0], sizes = [2, 128], strides = [1, 1]} : vector<2x512xf32> to vector<2x128xf32>
    %293 = arith.negf %292 : vector<2x128xf32>
    %294 = math.exp %293 : vector<2x128xf32>
    %cst_88 = arith.constant 1.000000e+00 : f32
    %295 = vector.broadcast %cst_88 : f32 to vector<2x128xf32>
    %296 = arith.addf %295, %294 : vector<2x128xf32>
    %297 = arith.divf %295, %296 : vector<2x128xf32>
    %298 = vector.extract_strided_slice %291 {offsets = [0, 128], sizes = [2, 128], strides = [1, 1]} : vector<2x512xf32> to vector<2x128xf32>
    %299 = arith.negf %298 : vector<2x128xf32>
    %300 = math.exp %299 : vector<2x128xf32>
    %cst_89 = arith.constant 1.000000e+00 : f32
    %301 = vector.broadcast %cst_89 : f32 to vector<2x128xf32>
    %302 = arith.addf %301, %300 : vector<2x128xf32>
    %303 = arith.divf %301, %302 : vector<2x128xf32>
    %304 = vector.extract_strided_slice %291 {offsets = [0, 256], sizes = [2, 128], strides = [1, 1]} : vector<2x512xf32> to vector<2x128xf32>
    %305 = math.tanh %304 : vector<2x128xf32>
    %306 = vector.extract_strided_slice %291 {offsets = [0, 384], sizes = [2, 128], strides = [1, 1]} : vector<2x512xf32> to vector<2x128xf32>
    %307 = arith.negf %306 : vector<2x128xf32>
    %308 = math.exp %307 : vector<2x128xf32>
    %cst_90 = arith.constant 1.000000e+00 : f32
    %309 = vector.broadcast %cst_90 : f32 to vector<2x128xf32>
    %310 = arith.addf %309, %308 : vector<2x128xf32>
    %311 = arith.divf %309, %310 : vector<2x128xf32>
    %312 = arith.mulf %303, %252 : vector<2x128xf32>
    %313 = arith.mulf %297, %305 : vector<2x128xf32>
    %314 = arith.addf %312, %313 : vector<2x128xf32>
    %315 = math.tanh %314 : vector<2x128xf32>
    %316 = arith.mulf %311, %315 : vector<2x128xf32>
    %317 = vector.extract_strided_slice %5 {offsets = [10, 0], sizes = [2, 512], strides = [1, 1]} : vector<16x512xf32> to vector<2x512xf32>
    %c0_91 = arith.constant 0 : index
    %c0_92 = arith.constant 0 : index
    %318 = vector.load %arg2[%c0_91, %c0_92] : memref<128x512xf32, #tpu.memory_space<vmem>>, vector<128x512xf32>
    %cst_93 = arith.constant dense<0.000000e+00> : vector<2x512xf32>
    %319 = tpu.matmul %283, %318, %cst_93 {dimension_numbers = #tpu.dot_dimension_numbers<[1], [0], [0], [1], [0, 0, 1, 1], [], []>} : vector<2x128xf32>, vector<128x512xf32>, vector<2x512xf32> -> vector<2x512xf32>
    %320 = arith.addf %317, %319 : vector<2x512xf32>
    %321 = vector.extract_strided_slice %320 {offsets = [0, 0], sizes = [2, 128], strides = [1, 1]} : vector<2x512xf32> to vector<2x128xf32>
    %322 = arith.negf %321 : vector<2x128xf32>
    %323 = math.exp %322 : vector<2x128xf32>
    %cst_94 = arith.constant 1.000000e+00 : f32
    %324 = vector.broadcast %cst_94 : f32 to vector<2x128xf32>
    %325 = arith.addf %324, %323 : vector<2x128xf32>
    %326 = arith.divf %324, %325 : vector<2x128xf32>
    %327 = vector.extract_strided_slice %320 {offsets = [0, 128], sizes = [2, 128], strides = [1, 1]} : vector<2x512xf32> to vector<2x128xf32>
    %328 = arith.negf %327 : vector<2x128xf32>
    %329 = math.exp %328 : vector<2x128xf32>
    %cst_95 = arith.constant 1.000000e+00 : f32
    %330 = vector.broadcast %cst_95 : f32 to vector<2x128xf32>
    %331 = arith.addf %330, %329 : vector<2x128xf32>
    %332 = arith.divf %330, %331 : vector<2x128xf32>
    %333 = vector.extract_strided_slice %320 {offsets = [0, 256], sizes = [2, 128], strides = [1, 1]} : vector<2x512xf32> to vector<2x128xf32>
    %334 = math.tanh %333 : vector<2x128xf32>
    %335 = vector.extract_strided_slice %320 {offsets = [0, 384], sizes = [2, 128], strides = [1, 1]} : vector<2x512xf32> to vector<2x128xf32>
    %336 = arith.negf %335 : vector<2x128xf32>
    %337 = math.exp %336 : vector<2x128xf32>
    %cst_96 = arith.constant 1.000000e+00 : f32
    %338 = vector.broadcast %cst_96 : f32 to vector<2x128xf32>
    %339 = arith.addf %338, %337 : vector<2x128xf32>
    %340 = arith.divf %338, %339 : vector<2x128xf32>
    %341 = arith.mulf %332, %281 : vector<2x128xf32>
    %342 = arith.mulf %326, %334 : vector<2x128xf32>
    %343 = arith.addf %341, %342 : vector<2x128xf32>
    %344 = math.tanh %343 : vector<2x128xf32>
    %345 = arith.mulf %340, %344 : vector<2x128xf32>
    %c0_97 = arith.constant 0 : index
    %c0_98 = arith.constant 0 : index
    %346 = vector.load %arg4[%c0_97, %c0_98] : memref<128x512xf32, #tpu.memory_space<vmem>>, vector<128x512xf32>
    %cst_99 = arith.constant dense<0.000000e+00> : vector<2x512xf32>
    %347 = tpu.matmul %345, %346, %cst_99 {dimension_numbers = #tpu.dot_dimension_numbers<[1], [0], [0], [1], [0, 0, 1, 1], [], []>} : vector<2x128xf32>, vector<128x512xf32>, vector<2x512xf32> -> vector<2x512xf32>
    %c0_100 = arith.constant 0 : index
    %c0_101 = arith.constant 0 : index
    %348 = vector.load %arg5[%c0_100, %c0_101] : memref<128x512xf32, #tpu.memory_space<vmem>>, vector<128x512xf32>
    %cst_102 = arith.constant dense<0.000000e+00> : vector<2x512xf32>
    %349 = tpu.matmul %316, %348, %cst_102 {dimension_numbers = #tpu.dot_dimension_numbers<[1], [0], [0], [1], [0, 0, 1, 1], [], []>} : vector<2x128xf32>, vector<128x512xf32>, vector<2x512xf32> -> vector<2x512xf32>
    %350 = arith.addf %347, %349 : vector<2x512xf32>
    %c0_103 = arith.constant 0 : index
    %c0_104 = arith.constant 0 : index
    %351 = vector.load %arg6[%c0_103, %c0_104] : memref<1x512xf32, #tpu.memory_space<vmem>>, vector<1x512xf32>
    %352 = vector.broadcast %351 : vector<1x512xf32> to vector<2x512xf32>
    %353 = arith.addf %350, %352 : vector<2x512xf32>
    %354 = vector.extract_strided_slice %353 {offsets = [0, 0], sizes = [2, 128], strides = [1, 1]} : vector<2x512xf32> to vector<2x128xf32>
    %355 = arith.negf %354 : vector<2x128xf32>
    %356 = math.exp %355 : vector<2x128xf32>
    %cst_105 = arith.constant 1.000000e+00 : f32
    %357 = vector.broadcast %cst_105 : f32 to vector<2x128xf32>
    %358 = arith.addf %357, %356 : vector<2x128xf32>
    %359 = arith.divf %357, %358 : vector<2x128xf32>
    %360 = vector.extract_strided_slice %353 {offsets = [0, 128], sizes = [2, 128], strides = [1, 1]} : vector<2x512xf32> to vector<2x128xf32>
    %361 = arith.negf %360 : vector<2x128xf32>
    %362 = math.exp %361 : vector<2x128xf32>
    %cst_106 = arith.constant 1.000000e+00 : f32
    %363 = vector.broadcast %cst_106 : f32 to vector<2x128xf32>
    %364 = arith.addf %363, %362 : vector<2x128xf32>
    %365 = arith.divf %363, %364 : vector<2x128xf32>
    %366 = vector.extract_strided_slice %353 {offsets = [0, 256], sizes = [2, 128], strides = [1, 1]} : vector<2x512xf32> to vector<2x128xf32>
    %367 = math.tanh %366 : vector<2x128xf32>
    %368 = vector.extract_strided_slice %353 {offsets = [0, 384], sizes = [2, 128], strides = [1, 1]} : vector<2x512xf32> to vector<2x128xf32>
    %369 = arith.negf %368 : vector<2x128xf32>
    %370 = math.exp %369 : vector<2x128xf32>
    %cst_107 = arith.constant 1.000000e+00 : f32
    %371 = vector.broadcast %cst_107 : f32 to vector<2x128xf32>
    %372 = arith.addf %371, %370 : vector<2x128xf32>
    %373 = arith.divf %371, %372 : vector<2x128xf32>
    %374 = arith.mulf %365, %314 : vector<2x128xf32>
    %375 = arith.mulf %359, %367 : vector<2x128xf32>
    %376 = arith.addf %374, %375 : vector<2x128xf32>
    %377 = math.tanh %376 : vector<2x128xf32>
    %378 = arith.mulf %373, %377 : vector<2x128xf32>
    %379 = vector.extract_strided_slice %5 {offsets = [12, 0], sizes = [2, 512], strides = [1, 1]} : vector<16x512xf32> to vector<2x512xf32>
    %c0_108 = arith.constant 0 : index
    %c0_109 = arith.constant 0 : index
    %380 = vector.load %arg2[%c0_108, %c0_109] : memref<128x512xf32, #tpu.memory_space<vmem>>, vector<128x512xf32>
    %cst_110 = arith.constant dense<0.000000e+00> : vector<2x512xf32>
    %381 = tpu.matmul %345, %380, %cst_110 {dimension_numbers = #tpu.dot_dimension_numbers<[1], [0], [0], [1], [0, 0, 1, 1], [], []>} : vector<2x128xf32>, vector<128x512xf32>, vector<2x512xf32> -> vector<2x512xf32>
    %382 = arith.addf %379, %381 : vector<2x512xf32>
    %383 = vector.extract_strided_slice %382 {offsets = [0, 0], sizes = [2, 128], strides = [1, 1]} : vector<2x512xf32> to vector<2x128xf32>
    %384 = arith.negf %383 : vector<2x128xf32>
    %385 = math.exp %384 : vector<2x128xf32>
    %cst_111 = arith.constant 1.000000e+00 : f32
    %386 = vector.broadcast %cst_111 : f32 to vector<2x128xf32>
    %387 = arith.addf %386, %385 : vector<2x128xf32>
    %388 = arith.divf %386, %387 : vector<2x128xf32>
    %389 = vector.extract_strided_slice %382 {offsets = [0, 128], sizes = [2, 128], strides = [1, 1]} : vector<2x512xf32> to vector<2x128xf32>
    %390 = arith.negf %389 : vector<2x128xf32>
    %391 = math.exp %390 : vector<2x128xf32>
    %cst_112 = arith.constant 1.000000e+00 : f32
    %392 = vector.broadcast %cst_112 : f32 to vector<2x128xf32>
    %393 = arith.addf %392, %391 : vector<2x128xf32>
    %394 = arith.divf %392, %393 : vector<2x128xf32>
    %395 = vector.extract_strided_slice %382 {offsets = [0, 256], sizes = [2, 128], strides = [1, 1]} : vector<2x512xf32> to vector<2x128xf32>
    %396 = math.tanh %395 : vector<2x128xf32>
    %397 = vector.extract_strided_slice %382 {offsets = [0, 384], sizes = [2, 128], strides = [1, 1]} : vector<2x512xf32> to vector<2x128xf32>
    %398 = arith.negf %397 : vector<2x128xf32>
    %399 = math.exp %398 : vector<2x128xf32>
    %cst_113 = arith.constant 1.000000e+00 : f32
    %400 = vector.broadcast %cst_113 : f32 to vector<2x128xf32>
    %401 = arith.addf %400, %399 : vector<2x128xf32>
    %402 = arith.divf %400, %401 : vector<2x128xf32>
    %403 = arith.mulf %394, %343 : vector<2x128xf32>
    %404 = arith.mulf %388, %396 : vector<2x128xf32>
    %405 = arith.addf %403, %404 : vector<2x128xf32>
    %406 = math.tanh %405 : vector<2x128xf32>
    %407 = arith.mulf %402, %406 : vector<2x128xf32>
    %c0_114 = arith.constant 0 : index
    %c0_115 = arith.constant 0 : index
    %408 = vector.load %arg4[%c0_114, %c0_115] : memref<128x512xf32, #tpu.memory_space<vmem>>, vector<128x512xf32>
    %cst_116 = arith.constant dense<0.000000e+00> : vector<2x512xf32>
    %409 = tpu.matmul %407, %408, %cst_116 {dimension_numbers = #tpu.dot_dimension_numbers<[1], [0], [0], [1], [0, 0, 1, 1], [], []>} : vector<2x128xf32>, vector<128x512xf32>, vector<2x512xf32> -> vector<2x512xf32>
    %c0_117 = arith.constant 0 : index
    %c0_118 = arith.constant 0 : index
    %410 = vector.load %arg5[%c0_117, %c0_118] : memref<128x512xf32, #tpu.memory_space<vmem>>, vector<128x512xf32>
    %cst_119 = arith.constant dense<0.000000e+00> : vector<2x512xf32>
    %411 = tpu.matmul %378, %410, %cst_119 {dimension_numbers = #tpu.dot_dimension_numbers<[1], [0], [0], [1], [0, 0, 1, 1], [], []>} : vector<2x128xf32>, vector<128x512xf32>, vector<2x512xf32> -> vector<2x512xf32>
    %412 = arith.addf %409, %411 : vector<2x512xf32>
    %c0_120 = arith.constant 0 : index
    %c0_121 = arith.constant 0 : index
    %413 = vector.load %arg6[%c0_120, %c0_121] : memref<1x512xf32, #tpu.memory_space<vmem>>, vector<1x512xf32>
    %414 = vector.broadcast %413 : vector<1x512xf32> to vector<2x512xf32>
    %415 = arith.addf %412, %414 : vector<2x512xf32>
    %416 = vector.extract_strided_slice %415 {offsets = [0, 0], sizes = [2, 128], strides = [1, 1]} : vector<2x512xf32> to vector<2x128xf32>
    %417 = arith.negf %416 : vector<2x128xf32>
    %418 = math.exp %417 : vector<2x128xf32>
    %cst_122 = arith.constant 1.000000e+00 : f32
    %419 = vector.broadcast %cst_122 : f32 to vector<2x128xf32>
    %420 = arith.addf %419, %418 : vector<2x128xf32>
    %421 = arith.divf %419, %420 : vector<2x128xf32>
    %422 = vector.extract_strided_slice %415 {offsets = [0, 128], sizes = [2, 128], strides = [1, 1]} : vector<2x512xf32> to vector<2x128xf32>
    %423 = arith.negf %422 : vector<2x128xf32>
    %424 = math.exp %423 : vector<2x128xf32>
    %cst_123 = arith.constant 1.000000e+00 : f32
    %425 = vector.broadcast %cst_123 : f32 to vector<2x128xf32>
    %426 = arith.addf %425, %424 : vector<2x128xf32>
    %427 = arith.divf %425, %426 : vector<2x128xf32>
    %428 = vector.extract_strided_slice %415 {offsets = [0, 256], sizes = [2, 128], strides = [1, 1]} : vector<2x512xf32> to vector<2x128xf32>
    %429 = math.tanh %428 : vector<2x128xf32>
    %430 = vector.extract_strided_slice %415 {offsets = [0, 384], sizes = [2, 128], strides = [1, 1]} : vector<2x512xf32> to vector<2x128xf32>
    %431 = arith.negf %430 : vector<2x128xf32>
    %432 = math.exp %431 : vector<2x128xf32>
    %cst_124 = arith.constant 1.000000e+00 : f32
    %433 = vector.broadcast %cst_124 : f32 to vector<2x128xf32>
    %434 = arith.addf %433, %432 : vector<2x128xf32>
    %435 = arith.divf %433, %434 : vector<2x128xf32>
    %436 = arith.mulf %427, %376 : vector<2x128xf32>
    %437 = arith.mulf %421, %429 : vector<2x128xf32>
    %438 = arith.addf %436, %437 : vector<2x128xf32>
    %439 = math.tanh %438 : vector<2x128xf32>
    %440 = arith.mulf %435, %439 : vector<2x128xf32>
    %441 = vector.extract_strided_slice %5 {offsets = [14, 0], sizes = [2, 512], strides = [1, 1]} : vector<16x512xf32> to vector<2x512xf32>
    %c0_125 = arith.constant 0 : index
    %c0_126 = arith.constant 0 : index
    %442 = vector.load %arg2[%c0_125, %c0_126] : memref<128x512xf32, #tpu.memory_space<vmem>>, vector<128x512xf32>
    %cst_127 = arith.constant dense<0.000000e+00> : vector<2x512xf32>
    %443 = tpu.matmul %407, %442, %cst_127 {dimension_numbers = #tpu.dot_dimension_numbers<[1], [0], [0], [1], [0, 0, 1, 1], [], []>} : vector<2x128xf32>, vector<128x512xf32>, vector<2x512xf32> -> vector<2x512xf32>
    %444 = arith.addf %441, %443 : vector<2x512xf32>
    %445 = vector.extract_strided_slice %444 {offsets = [0, 0], sizes = [2, 128], strides = [1, 1]} : vector<2x512xf32> to vector<2x128xf32>
    %446 = arith.negf %445 : vector<2x128xf32>
    %447 = math.exp %446 : vector<2x128xf32>
    %cst_128 = arith.constant 1.000000e+00 : f32
    %448 = vector.broadcast %cst_128 : f32 to vector<2x128xf32>
    %449 = arith.addf %448, %447 : vector<2x128xf32>
    %450 = arith.divf %448, %449 : vector<2x128xf32>
    %451 = vector.extract_strided_slice %444 {offsets = [0, 128], sizes = [2, 128], strides = [1, 1]} : vector<2x512xf32> to vector<2x128xf32>
    %452 = arith.negf %451 : vector<2x128xf32>
    %453 = math.exp %452 : vector<2x128xf32>
    %cst_129 = arith.constant 1.000000e+00 : f32
    %454 = vector.broadcast %cst_129 : f32 to vector<2x128xf32>
    %455 = arith.addf %454, %453 : vector<2x128xf32>
    %456 = arith.divf %454, %455 : vector<2x128xf32>
    %457 = vector.extract_strided_slice %444 {offsets = [0, 256], sizes = [2, 128], strides = [1, 1]} : vector<2x512xf32> to vector<2x128xf32>
    %458 = math.tanh %457 : vector<2x128xf32>
    %459 = vector.extract_strided_slice %444 {offsets = [0, 384], sizes = [2, 128], strides = [1, 1]} : vector<2x512xf32> to vector<2x128xf32>
    %460 = arith.negf %459 : vector<2x128xf32>
    %461 = math.exp %460 : vector<2x128xf32>
    %cst_130 = arith.constant 1.000000e+00 : f32
    %462 = vector.broadcast %cst_130 : f32 to vector<2x128xf32>
    %463 = arith.addf %462, %461 : vector<2x128xf32>
    %464 = arith.divf %462, %463 : vector<2x128xf32>
    %465 = arith.mulf %456, %405 : vector<2x128xf32>
    %466 = arith.mulf %450, %458 : vector<2x128xf32>
    %467 = arith.addf %465, %466 : vector<2x128xf32>
    %468 = math.tanh %467 : vector<2x128xf32>
    %469 = arith.mulf %464, %468 : vector<2x128xf32>
    %c0_131 = arith.constant 0 : index
    %c0_132 = arith.constant 0 : index
    %470 = vector.load %arg4[%c0_131, %c0_132] : memref<128x512xf32, #tpu.memory_space<vmem>>, vector<128x512xf32>
    %cst_133 = arith.constant dense<0.000000e+00> : vector<2x512xf32>
    %471 = tpu.matmul %469, %470, %cst_133 {dimension_numbers = #tpu.dot_dimension_numbers<[1], [0], [0], [1], [0, 0, 1, 1], [], []>} : vector<2x128xf32>, vector<128x512xf32>, vector<2x512xf32> -> vector<2x512xf32>
    %c0_134 = arith.constant 0 : index
    %c0_135 = arith.constant 0 : index
    %472 = vector.load %arg5[%c0_134, %c0_135] : memref<128x512xf32, #tpu.memory_space<vmem>>, vector<128x512xf32>
    %cst_136 = arith.constant dense<0.000000e+00> : vector<2x512xf32>
    %473 = tpu.matmul %440, %472, %cst_136 {dimension_numbers = #tpu.dot_dimension_numbers<[1], [0], [0], [1], [0, 0, 1, 1], [], []>} : vector<2x128xf32>, vector<128x512xf32>, vector<2x512xf32> -> vector<2x512xf32>
    %474 = arith.addf %471, %473 : vector<2x512xf32>
    %c0_137 = arith.constant 0 : index
    %c0_138 = arith.constant 0 : index
    %475 = vector.load %arg6[%c0_137, %c0_138] : memref<1x512xf32, #tpu.memory_space<vmem>>, vector<1x512xf32>
    %476 = vector.broadcast %475 : vector<1x512xf32> to vector<2x512xf32>
    %477 = arith.addf %474, %476 : vector<2x512xf32>
    %478 = vector.extract_strided_slice %477 {offsets = [0, 0], sizes = [2, 128], strides = [1, 1]} : vector<2x512xf32> to vector<2x128xf32>
    %479 = arith.negf %478 : vector<2x128xf32>
    %480 = math.exp %479 : vector<2x128xf32>
    %cst_139 = arith.constant 1.000000e+00 : f32
    %481 = vector.broadcast %cst_139 : f32 to vector<2x128xf32>
    %482 = arith.addf %481, %480 : vector<2x128xf32>
    %483 = arith.divf %481, %482 : vector<2x128xf32>
    %484 = vector.extract_strided_slice %477 {offsets = [0, 128], sizes = [2, 128], strides = [1, 1]} : vector<2x512xf32> to vector<2x128xf32>
    %485 = arith.negf %484 : vector<2x128xf32>
    %486 = math.exp %485 : vector<2x128xf32>
    %cst_140 = arith.constant 1.000000e+00 : f32
    %487 = vector.broadcast %cst_140 : f32 to vector<2x128xf32>
    %488 = arith.addf %487, %486 : vector<2x128xf32>
    %489 = arith.divf %487, %488 : vector<2x128xf32>
    %490 = vector.extract_strided_slice %477 {offsets = [0, 256], sizes = [2, 128], strides = [1, 1]} : vector<2x512xf32> to vector<2x128xf32>
    %491 = math.tanh %490 : vector<2x128xf32>
    %492 = vector.extract_strided_slice %477 {offsets = [0, 384], sizes = [2, 128], strides = [1, 1]} : vector<2x512xf32> to vector<2x128xf32>
    %493 = arith.negf %492 : vector<2x128xf32>
    %494 = math.exp %493 : vector<2x128xf32>
    %cst_141 = arith.constant 1.000000e+00 : f32
    %495 = vector.broadcast %cst_141 : f32 to vector<2x128xf32>
    %496 = arith.addf %495, %494 : vector<2x128xf32>
    %497 = arith.divf %495, %496 : vector<2x128xf32>
    %498 = arith.mulf %489, %438 : vector<2x128xf32>
    %499 = arith.mulf %483, %491 : vector<2x128xf32>
    %500 = arith.addf %498, %499 : vector<2x128xf32>
    %501 = math.tanh %500 : vector<2x128xf32>
    %502 = arith.mulf %497, %501 : vector<2x128xf32>
    %c0_142 = arith.constant 0 : index
    %c0_143 = arith.constant 0 : index
    %503 = vector.load %arg7[%c0_142, %c0_143] : memref<128x128xf32, #tpu.memory_space<vmem>>, vector<128x128xf32>
    %cst_144 = arith.constant dense<0.000000e+00> : vector<2x128xf32>
    %504 = tpu.matmul %502, %503, %cst_144 {dimension_numbers = #tpu.dot_dimension_numbers<[1], [0], [0], [1], [0, 0, 1, 1], [], []>} : vector<2x128xf32>, vector<128x128xf32>, vector<2x128xf32> -> vector<2x128xf32>
    %c0_145 = arith.constant 0 : index
    %c0_146 = arith.constant 0 : index
    %505 = vector.load %arg8[%c0_145, %c0_146] : memref<1x128xf32, #tpu.memory_space<vmem>>, vector<1x128xf32>
    %506 = vector.broadcast %505 : vector<1x128xf32> to vector<2x128xf32>
    %507 = arith.addf %504, %506 : vector<2x128xf32>
    %c0_147 = arith.constant 0 : index
    %c0_148 = arith.constant 0 : index
    %508 = vector.load %arg9[%c0_147, %c0_148] : memref<2x128xf32, #tpu.memory_space<vmem>>, vector<2x128xf32>
    tpu.vector_store %arg9[%c0_147, %c0_148], %507 {strides = array<i32>} : memref<2x128xf32, #tpu.memory_space<vmem>>, vector<2x128xf32>,
    return
  }
}

</mosaic_0001>

<bundles_post_ra>
// kernel: _forward_impl.1
= control target key start
LH: loop header
LB: loop body
LE: loop exit
PB: predicated region body
PF: predicated region fallthrough
CT: control target
= control target key end

     0   :  { %vm65_vm0 = vcmask 130048   ;;  %v11295_v10 = vmov 0.0   ;;  %s11285_s0 = inlined_call_operand.vmem [shape: f32[16,16], index: 0, kind: input, shape index: {}]   ;;  %s11286_s1 = inlined_call_operand.vmem [shape: f32[16,512], index: 1, kind: input, shape index: {}]   ;;  %s11287_s2 = inlined_call_operand.vmem [shape: f32[128,512], index: 2, kind: input, shape index: {}]   ;;  %s11288_s3 = inlined_call_operand.vmem [shape: f32[1,512], index: 3, kind: input, shape index: {}]   ;;  %s11289_s4 = inlined_call_operand.vmem [shape: f32[128,512], index: 4, kind: input, shape index: {}]   ;;  %s11290_s5 = inlined_call_operand.vmem [shape: f32[128,512], index: 5, kind: input, shape index: {}]   ;;  %s11291_s6 = inlined_call_operand.vmem [shape: f32[1,512], index: 6, kind: input, shape index: {}]   ;;  %s11292_s7 = inlined_call_operand.vmem [shape: f32[128,128], index: 7, kind: input, shape index: {}]   ;;  %s11293_s8 = inlined_call_operand.vmem [shape: f32[1,128], index: 8, kind: input, shape index: {}]   ;;  %s11294_s9 = inlined_call_operand.hbm [shape: f32[2,128], index: 9, kind: output, shape index: {}]  }
   0x1   :  { %v40_v0 = vld [vmem:[%s11286_s1 + $0x28] sm:$0xff]  ;;  %v39_v2 = vld [vmem:[%s11286_s1 + $0x20] sm:$0xff]  ;;  %136 = vmatprep.mubr.f32.mxu1 %v11295_v10  ;;  %v42_v12 = vld [vmem:[%s11286_s1 + $0x38] sm:$0xff] }
   0x2   :  { %v5536_v1 = vld [vmem:[%s11287_s2 + $0x1e8] sm:$0xff]  ;;  %100 = vmatprep.subr.mxu1 %v40_v0  ;;  %v5545_v3 = vld [vmem:[%s11287_s2 + $0x1e0] sm:$0xff]  ;;  %v41_v14 = vld [vmem:[%s11286_s1 + $0x30] sm:$0xff] }
   0x3   :  { %290 = vmatprep.subr.mxu0 %v5536_v1  ;;  %v36_v4 = vld [vmem:[%s11286_s1 + $0x8] sm:$0xff]  ;;  %101 = vmatpush1.msra.mxu1 %v39_v2  ;;  %v35_v6 = vld [vmem:[%s11286_s1] sm:$0xff]  ;;  %v38_v18 = vld [vmem:[%s11286_s1 + $0x18] sm:$0xff] }
   0x4   :  { %v5553_v5 = vld [vmem:[%s11287_s2 + $0x1c8] sm:$0xff]  ;;  %291 = vmatpush1.msra.mxu0 %v5545_v3  ;;  %v5562_v7 = vld [vmem:[%s11287_s2 + $0x1c0] sm:$0xff]  ;;  %102 = vmatprep.subr.mxu1 %v36_v4  ;;  %v37_v20 = vld [vmem:[%s11286_s1 + $0x10] sm:$0xff] }
   0x5   :  { %v33_v8 = vld [vmem:[%s11285_s0] sm:$0xff]  ;;  %292 = vmatprep.subr.mxu0 %v5553_v5  ;;  %v5571_v9 = vld [vmem:[%s11287_s2 + $0x1a8] sm:$0xff]  ;;  %103 = vmatpush1.msra.mxu1 %v35_v6  ;;  %v5639_v23 = vld [vmem:[%s11287_s2 + $0x1f8] sm:$0xff] }
   0x6   :  { %v5577_v11 = vld [vmem:[%s11287_s2 + $0x1a0] sm:$0xff]  ;;  %293 = vmatpush1.msra.mxu0 %v5562_v7  ;;  %4515 = vmatmul.mubr.msk.f32.vlgmr.msra.gmra.mxu1 %vm65_vm0, %v33_v8  ;;  %v5587_v13 = vld [vmem:[%s11287_s2 + $0x188] sm:$0xff]  ;;  %v5652_v25 = vld [vmem:[%s11287_s2 + $0x1f0] sm:$0xff] }
   0x7   :  { %294 = vmatprep.subr.mxu0 %v5571_v9  ;;  %142 = vmatprep.mubr.f32.mxu1 %v11295_v10  ;;  %v5597_v15 = vld [vmem:[%s11287_s2 + $0x180] sm:$0xff]  ;;  %v5602_v16 = vld [vmem:[%s11285_s0 + $0x8] sm:$0xff]  ;;  %v5664_v27 = vld [vmem:[%s11287_s2 + $0x1d8] sm:$0xff] }
   0x8   :  { %295 = vmatpush1.msra.mxu0 %v5577_v11  ;;  %177 = vmatprep.subr.mxu1 %v42_v12  ;;  %v5608_v17 = vld [vmem:[%s11287_s2 + $0x168] sm:$0xff]  ;;  %v5617_v19 = vld [vmem:[%s11287_s2 + $0x160] sm:$0xff]  ;;  %v5676_v29 = vld [vmem:[%s11287_s2 + $0x1d0] sm:$0xff] }
   0x9   :  { %296 = vmatprep.subr.mxu0 %v5587_v13  ;;  %178 = vmatpush1.msra.mxu1 %v41_v14  ;;  %v5628_v21 = vld [vmem:[%s11287_s2 + $0x148] sm:$0xff]  ;;  %v5634_v22 = vld [vmem:[%s11287_s2 + $0x140] sm:$0xff]  ;;  %v5688_v31 = vld [vmem:[%s11287_s2 + $0x1b8] sm:$0xff] }
   0xa   :  { %297 = vmatpush1.msra.mxu0 %v5597_v15  ;;  %4516 = vmatmul.mubr.msk.f32.gmra.mxu1 %vm65_vm0, %v5602_v16  ;;  %v5645_v24 = vld [vmem:[%s11287_s2 + $0x128] sm:$0xff]  ;;  %v5657_v26 = vld [vmem:[%s11287_s2 + $0x120] sm:$0xff]  ;;  %v5700_v33 = vld [vmem:[%s11287_s2 + $0x1b0] sm:$0xff] }
   0xb   :  { %298 = vmatprep.subr.mxu0 %v5608_v17  ;;  %179 = vmatprep.subr.mxu1 %v38_v18  ;;  %v5669_v28 = vld [vmem:[%s11287_s2 + $0x108] sm:$0xff]  ;;  %v5681_v30 = vld [vmem:[%s11287_s2 + $0x100] sm:$0xff]  ;;  %v5712_v35 = vld [vmem:[%s11287_s2 + $0x198] sm:$0xff] }
   0xc   :  { %299 = vmatpush1.msra.mxu0 %v5617_v19  ;;  %180 = vmatpush1.msra.mxu1 %v37_v20  ;;  %v5693_v32 = vld [vmem:[%s11287_s2 + $0xe8] sm:$0xff]  ;;  %v5705_v34 = vld [vmem:[%s11287_s2 + $0xe0] sm:$0xff]  ;;  %v5724_v37 = vld [vmem:[%s11287_s2 + $0x190] sm:$0xff] }
   0xd   :  { %300 = vmatprep.subr.mxu0 %v5628_v21  ;;  %213 = vmatprep.mubr.f32.mxu1 %v11295_v10  ;;  %v5717_v36 = vld [vmem:[%s11287_s2 + $0xc8] sm:$0xff]  ;;  %v5729_v38 = vld [vmem:[%s11287_s2 + $0xc0] sm:$0xff]  ;;  %v5736_v39 = vld [vmem:[%s11287_s2 + $0x178] sm:$0xff] }
   0xe   :  { %301 = vmatpush1.msra.mxu0 %v5634_v22  ;;  %361 = vmatprep.subr.mxu1 %v5639_v23  ;;  %v5741_v40 = vld [vmem:[%s11287_s2 + $0xa8] sm:$0xff]  ;;  %v5748_v41 = vld [vmem:[%s11287_s2 + $0x170] sm:$0xff]  ;;  %v5753_v42 = vld [vmem:[%s11287_s2 + $0xa0] sm:$0xff] }
   0xf   :  { %4517 = vmatmul.mubr.msk.f32.vlgmr.msra.gmra.mxu1 %vm65_vm0, %v33_v8  ;;  %302 = vmatprep.subr.mxu0 %v5645_v24  ;;  %v5760_v43 = vld [vmem:[%s11287_s2 + $0x158] sm:$0xff]  ;;  %v5765_v44 = vld [vmem:[%s11287_s2 + $0x88] sm:$0xff]  ;;  %v5772_v45 = vld [vmem:[%s11287_s2 + $0x150] sm:$0xff] }
  0x10   :  { %362 = vmatpush1.msra.mxu1 %v5652_v25  ;;  %303 = vmatpush1.msra.mxu0 %v5657_v26  ;;  %v5777_v46 = vld [vmem:[%s11287_s2 + $0x80] sm:$0xff]  ;;  %v5784_v47 = vld [vmem:[%s11287_s2 + $0x138] sm:$0xff]  ;;  %v5789_v48 = vld [vmem:[%s11287_s2 + $0x68] sm:$0xff] }
  0x11   :  { %363 = vmatprep.subr.mxu1 %v5664_v27  ;;  %304 = vmatprep.subr.mxu0 %v5669_v28  ;;  %11884 = vst [vmem:[#allocation5_spill] sm:$0xff] %v5777_v46  ;;  %11885 = vst [vmem:[#allocation6_spill] sm:$0xff] %v5789_v48  ;;  %v5796_v49 = vld [vmem:[%s11287_s2 + $0x130] sm:$0xff]  ;;  %v5801_v50 = vld [vmem:[%s11287_s2 + $0x60] sm:$0xff] }
  0x12   :  { %364 = vmatpush1.msra.mxu1 %v5676_v29  ;;  %305 = vmatpush1.msra.mxu0 %v5681_v30  ;;  %11886 = vst [vmem:[#allocation7_spill] sm:$0xff] %v5801_v50  ;;  %v5808_v51 = vld [vmem:[%s11287_s2 + $0x118] sm:$0xff]  ;;  %v5813_v52 = vld [vmem:[%s11287_s2 + $0x48] sm:$0xff] }
  0x13   :  { %365 = vmatprep.subr.mxu1 %v5688_v31  ;;  %306 = vmatprep.subr.mxu0 %v5693_v32  ;;  %11887 = vst [vmem:[#allocation8_spill] sm:$0xff] %v5813_v52 }
  0x14   :  { %366 = vmatpush1.msra.mxu1 %v5700_v33  ;;  %307 = vmatpush1.msra.mxu0 %v5705_v34 }
  0x15   :  { %367 = vmatprep.subr.mxu1 %v5712_v35  ;;  %308 = vmatprep.subr.mxu0 %v5717_v36 }
  0x16   :  { %368 = vmatpush1.msra.mxu1 %v5724_v37  ;;  %309 = vmatpush1.msra.mxu0 %v5729_v38 }
  0x17   :  { %369 = vmatprep.subr.mxu1 %v5736_v39  ;;  %310 = vmatprep.subr.mxu0 %v5741_v40 }
  0x18   :  { %370 = vmatpush1.msra.mxu1 %v5748_v41  ;;  %311 = vmatpush1.msra.mxu0 %v5753_v42 }
  0x19   :  { %371 = vmatprep.subr.mxu1 %v5760_v43  ;;  %312 = vmatprep.subr.mxu0 %v5765_v44 }
  0x1a   :  { %372 = vmatpush1.msra.mxu1 %v5772_v45  ;;  %313 = vmatpush1.msra.mxu0 %v5777_v46 }
  0x1b   :  { %14 = vsyncpa [#allocation3], 0  ;;  %373 = vmatprep.subr.mxu1 %v5784_v47  ;;  %314 = vmatprep.subr.mxu0 %v5789_v48  ;;  %v5820_v53 = vld [vmem:[%s11287_s2 + $0x110] sm:$0xff]  ;;  %v5825_v54 = vld [vmem:[%s11287_s2 + $0x40] sm:$0xff]  ;;  %vm5478_vm1 = vmmov 0   ;;  %s5479_s19 = smov [#allocation2]  }
  0x1c   :  { %11888 = vst [vmem:[#allocation9_spill] sm:$0xff] %v5825_v54  ;;  %374 = vmatpush1.msra.mxu1 %v5796_v49  ;;  %315 = vmatpush1.msra.mxu0 %v5801_v50  ;;  %v5832_v55 = vld [vmem:[%s11287_s2 + $0xf8] sm:$0xff]  ;;  %v5837_v56 = vld [vmem:[%s11287_s2 + $0x28] sm:$0xff]  ;;  %v5844_v57 = vld [vmem:[%s11287_s2 + $0xf0] sm:$0xff]  ;;  %s4507_s20 = sshll.u32 %s5479_s19, 4  ;;  %s4508_s20 = int_to_ptr.vmem [resolvable:$true] %s4507_s20 }
  0x1d   :  { %11889 = vst [vmem:[#allocation10_spill] sm:$0xff] %v5837_v56  ;;  %375 = vmatprep.subr.mxu1 %v5808_v51  ;;  %316 = vmatprep.subr.mxu0 %v5813_v52  ;;  %v5849_v58 = vld [vmem:[%s11287_s2 + $0x20] sm:$0xff]  ;;  %v5856_v59 = vld [vmem:[%s11287_s2 + $0xd8] sm:$0xff]  ;;  %v5861_v60 = vld [vmem:[%s11287_s2 + $0x8] sm:$0xff]  ;;  %s5455_s21 = scalar_lea.vmem %s4508_s20, 32  ;;  %p5460_p1 = scmp.lt.s32.totalorder %s4508_s20, %s4508_s20 }
  0x1e   :  { %11890 = vst [vmem:[#allocation11_spill] sm:$0xff] %v5849_v58  ;;  %376 = vmatpush1.msra.mxu1 %v5820_v53  ;;  %317 = vmatpush1.msra.mxu0 %v5825_v54  ;;  %11891 = vst [vmem:[#allocation12_spill] sm:$0xff] %v5861_v60  ;;  %v5868_v61 = vld [vmem:[%s11287_s2 + $0xd0] sm:$0xff]  ;;  %v5873_v62 = vld [vmem:[%s11287_s2] sm:$0xff]  ;;  %p5456_p0 = scmp.ne.s32.totalorder %s4508_s20, %s5455_s21  ;;  %p5461_p2 = scmp.lt.s32.totalorder %s5455_s21, %s5455_s21 }
  0x1f   :  { %377 = vmatprep.subr.mxu1 %v5832_v55  ;;  %318 = vmatprep.subr.mxu0 %v5837_v56  ;;  %11892 = vst [vmem:[#allocation13_spill] sm:$0xff] %v5873_v62  ;;  %v5880_v63 = vld [vmem:[%s11287_s2 + $0xb8] sm:$0xff]  ;;  %v5887_v0 = vld [vmem:[%s11287_s2 + $0xb0] sm:$0xff] }
  0x20   :  { %378 = vmatpush1.msra.mxu1 %v5844_v57  ;;  %319 = vmatpush1.msra.mxu0 %v5849_v58  ;;  %v5894_v2 = vld [vmem:[%s11287_s2 + $0x98] sm:$0xff]  ;;  %v5901_v4 = vld [vmem:[%s11287_s2 + $0x90] sm:$0xff]  ;;  %v5970_v58 = vld [vmem:[%s11290_s5 + $0x1e0] sm:$0xff]  ;;  %p5462_p3 = por %p5461_p2, %p5460_p1 }
  0x21   :  { %379 = vmatprep.subr.mxu1 %v5856_v59  ;;  %320 = vmatprep.subr.mxu0 %v5861_v60  ;;  %11893 = vst [vmem:[#allocation14_spill] sm:$0xff] %v5894_v2  ;;  %11894 = vst [vmem:[#allocation15_spill] sm:$0xff] %v5901_v4  ;;  %v5908_v6 = vld [vmem:[%s11287_s2 + $0x78] sm:$0xff]  ;;  %v5914_v8 = vld [vmem:[%s11287_s2 + $0x70] sm:$0xff] }
  0x22   :  { %380 = vmatpush1.msra.mxu1 %v5868_v61  ;;  %321 = vmatpush1.msra.mxu0 %v5873_v62  ;;  %11895 = vst [vmem:[#allocation16_spill] sm:$0xff] %v5908_v6  ;;  %11896 = vst [vmem:[#allocation17_spill] sm:$0xff] %v5914_v8  ;;  %v5921_v12 = vld [vmem:[%s11287_s2 + $0x58] sm:$0xff]  ;;  %v5928_v14 = vld [vmem:[%s11287_s2 + $0x50] sm:$0xff]  ;;  %v11903_v62 = vmov 0.0   ;;  %p5463_p4 = pnand %p5462_p3, %p5456_p0 }
  0x23   :  { %354 = vmatprep.mubr.f32.mxu0 %v11295_v10  ;;  %381 = vmatprep.subr.mxu1 %v5880_v63  ;;  %11897 = vst [vmem:[#allocation18_spill] sm:$0xff] %v5921_v12  ;;  %11898 = vst [vmem:[#allocation19_spill] sm:$0xff] %v5928_v14  ;;  %v5936_v18 = vld [vmem:[%s11287_s2 + $0x38] sm:$0xff]  ;;  %v5943_v20 = vld [vmem:[%s11287_s2 + $0x30] sm:$0xff] }
  0x24   :  { %355 = vmatmul.mubr.f32.vlgmr.msra.gmra.mxu0 %v11295_v10  ;;  %382 = vmatpush1.msra.mxu1 %v5887_v0  ;;  %11899 = vst [vmem:[#allocation20_spill] sm:$0xff] %v5936_v18  ;;  %11900 = vst [vmem:[#allocation21_spill] sm:$0xff] %v5943_v20  ;;  %v5965_v60 = vld [vmem:[%s11290_s5 + $0x1e8] sm:$0xff]  ;;  %v6009_v56 = vld [vmem:[%s11290_s5 + $0x1d0] sm:$0xff] }
  0x25   :  { %383 = vmatprep.subr.mxu1 %v5894_v2  ;;  %219 = vmatprep.mubr.f32.mxu1 %v11295_v10  ;;  %11904 = vst [vmem:[#allocation24_spill] sm:$0xff] %v5965_v60  ;;  %11905 = vst [vmem:[#allocation25_spill] sm:$0xff] %v5970_v58 }
  0x26   :  { %384 = vmatpush1.msra.mxu1 %v5901_v4  ;;  %652 = vmatprep.mubr.f32.mxu0 %v11295_v10  ;;  %11912 = vst [vmem:[#allocation32_spill] sm:$0xff] %v6009_v56 }
  0x27   :  { %385 = vmatprep.subr.mxu1 %v5908_v6  ;;  %4518 = vmatmul.mubr.msk.f32.gmra.mxu1 %vm65_vm0, %v5602_v16  ;;  %v5949_v16 = vld [vmem:[%s11287_s2 + $0x18] sm:$0xff] }
  0x28   :  { %386 = vmatpush1.msra.mxu1 %v5914_v8  ;;  %425 = vmatprep.mubr.f32.mxu1 %v11295_v10  ;;  %11901 = vst [vmem:[#allocation22_spill] sm:$0xff] %v5949_v16  ;;  %v5955_v10 = vld [vmem:[%s11287_s2 + $0x10] sm:$0xff] }
  0x29   :  { %387 = vmatprep.subr.mxu1 %v5921_v12  ;;  %11902 = vst [vmem:[#allocation23_spill] sm:$0xff] %v5955_v10  ;;  %588 = vmatprep.subr.mxu0 %v5965_v60  ;;  %v6004_v60 = vld [vmem:[%s11290_s5 + $0x1a8] sm:$0xff] }
  0x2a   :  { %388 = vmatpush1.msra.mxu1 %v5928_v14  ;;  %589 = vmatpush1.msra.mxu0 %v5970_v58  ;;  %11911 = vst [vmem:[#allocation31_spill] sm:$0xff] %v6004_v60  ;;  %v6021_v58 = vld [vmem:[%s11290_s5 + $0x1b8] sm:$0xff] }
  0x2b   :  { %389 = vmatprep.subr.mxu1 %v5936_v18  ;;  %v5992_v18 = vld [vmem:[%s11290_s5 + $0x1c0] sm:$0xff]  ;;  %11914 = vst [vmem:[#allocation34_spill] sm:$0xff] %v6021_v58  ;;  %v6038_v14 = vld [vmem:[%s11290_s5 + $0x198] sm:$0xff] }
  0x2c   :  { %390 = vmatpush1.msra.mxu1 %v5943_v20  ;;  %v5987_v20 = vld [vmem:[%s11290_s5 + $0x1f0] sm:$0xff]  ;;  %11909 = vst [vmem:[#allocation29_spill] sm:$0xff] %v5992_v18  ;;  %11917 = vst [vmem:[#allocation37_spill] sm:$0xff] %v6038_v14 }
  0x2d   :  { %391 = vmatprep.subr.mxu1 %v5949_v16  ;;  %v5975_v16 = vld [vmem:[%s11290_s5 + $0x1f8] sm:$0xff]  ;;  %11908 = vst [vmem:[#allocation28_spill] sm:$0xff] %v5987_v20 }
  0x2e   :  { %392 = vmatpush1.msra.mxu1 %v5955_v10  ;;  %11906 = vst [vmem:[#allocation26_spill] sm:$0xff] %v5975_v16  ;;  %v5982_v10 = vld [vmem:[%s11290_s5 + $0x1c8] sm:$0xff] }
  0x2f   :  { %426 = vmatmul.mubr.f32.vlgmr.msra.gmra.mxu1 %v11903_v62  ;;  %659 = vmatprep.subr.mxu1 %v5975_v16  ;;  %11907 = vst [vmem:[#allocation27_spill] sm:$0xff] %v5982_v10  ;;  %v5999_v16 = vld [vmem:[%s11290_s5 + $0x1d8] sm:$0xff] }
  0x30   :  { %723 = vmatprep.mubr.f32.mxu1 %v11903_v62  ;;  %660 = vmatpush1.msra.mxu1 %v5987_v20  ;;  %11910 = vst [vmem:[#allocation30_spill] sm:$0xff] %v5999_v16  ;;  %v6016_v20 = vld [vmem:[%s11290_s5 + $0x1a0] sm:$0xff] }
  0x31   :  { %590 = vmatprep.subr.mxu0 %v5982_v10  ;;  %661 = vmatprep.subr.mxu1 %v5999_v16  ;;  %11913 = vst [vmem:[#allocation33_spill] sm:$0xff] %v6016_v20  ;;  %v6028_v10 = vld [vmem:[%s11290_s5 + $0x188] sm:$0xff]  ;;  %v6033_v16 = vld [vmem:[%s11290_s5 + $0x1b0] sm:$0xff] }
  0x32   :  { %591 = vmatpush1.msra.mxu0 %v5992_v18  ;;  %662 = vmatpush1.msra.mxu1 %v6009_v56  ;;  %11915 = vst [vmem:[#allocation35_spill] sm:$0xff] %v6028_v10  ;;  %11916 = vst [vmem:[#allocation36_spill] sm:$0xff] %v6033_v16  ;;  %v6045_v56 = vld [vmem:[%s11290_s5 + $0x180] sm:$0xff]  ;;  %v6050_v18 = vld [vmem:[%s11290_s5 + $0x190] sm:$0xff] }
  0x33   :  { %592 = vmatprep.subr.mxu0 %v6004_v60  ;;  %663 = vmatprep.subr.mxu1 %v6021_v58  ;;  %11918 = vst [vmem:[#allocation38_spill] sm:$0xff] %v6045_v56  ;;  %11919 = vst [vmem:[#allocation39_spill] sm:$0xff] %v6050_v18  ;;  %v6057_v60 = vld [vmem:[%s11290_s5 + $0x168] sm:$0xff] }
  0x34   :  { %593 = vmatpush1.msra.mxu0 %v6016_v20  ;;  %664 = vmatpush1.msra.mxu1 %v6033_v16  ;;  %11920 = vst [vmem:[#allocation40_spill] sm:$0xff] %v6057_v60  ;;  %v6067_v20 = vld [vmem:[%s11290_s5 + $0x160] sm:$0xff]  ;;  %v6072_v16 = vld [vmem:[%s11290_s5 + $0x178] sm:$0xff]  ;;  %v6610_v58 = vld [vmem:[%s11289_s4 + $0x88] sm:$0xff] }
  0x35   :  { %594 = vmatprep.subr.mxu0 %v6028_v10  ;;  %665 = vmatprep.subr.mxu1 %v6038_v14  ;;  %11921 = vst [vmem:[#allocation41_spill] sm:$0xff] %v6067_v20  ;;  %11922 = vst [vmem:[#allocation42_spill] sm:$0xff] %v6072_v16  ;;  %v6576_v14 = vld [vmem:[%s11289_s4 + $0xc0] sm:$0xff]  ;;  %v6593_v10 = vld [vmem:[%s11289_s4 + $0xb8] sm:$0xff] }
  0x36   :  { %595 = vmatpush1.msra.mxu0 %v6045_v56  ;;  %666 = vmatpush1.msra.mxu1 %v6050_v18  ;;  %v6079_v18 = vld [vmem:[%s11290_s5 + $0x148] sm:$0xff]  ;;  %v6386_v56 = vld [vmem:[%s11289_s4 + $0x1c0] sm:$0xff]  ;;  %12006 = vst [vmem:[#allocation126_spill] sm:$0xff] %v6576_v14  ;;  %12009 = vst [vmem:[#allocation129_spill] sm:$0xff] %v6593_v10 }
  0x37   :  { %596 = vmatprep.subr.mxu0 %v6057_v60  ;;  %667 = vmatprep.subr.mxu1 %v6072_v16  ;;  %11923 = vst [vmem:[#allocation43_spill] sm:$0xff] %v6079_v18  ;;  %v6084_v60 = vld [vmem:[%s11290_s5 + $0x170] sm:$0xff]  ;;  %v6096_v16 = vld [vmem:[%s11290_s5 + $0x158] sm:$0xff]  ;;  %11974 = vst [vmem:[#allocation94_spill] sm:$0xff] %v6386_v56 }
  0x38   :  { %597 = vmatpush1.msra.mxu0 %v6067_v20  ;;  %11924 = vst [vmem:[#allocation44_spill] sm:$0xff] %v6084_v60  ;;  %668 = vmatpush1.msra.mxu1 %v6084_v60  ;;  %v6091_v20 = vld [vmem:[%s11290_s5 + $0x140] sm:$0xff]  ;;  %11926 = vst [vmem:[#allocation46_spill] sm:$0xff] %v6096_v16  ;;  %v6108_v60 = vld [vmem:[%s11290_s5 + $0x150] sm:$0xff] }
  0x39   :  { %598 = vmatprep.subr.mxu0 %v6079_v18  ;;  %11925 = vst [vmem:[#allocation45_spill] sm:$0xff] %v6091_v20  ;;  %669 = vmatprep.subr.mxu1 %v6096_v16  ;;  %v6103_v18 = vld [vmem:[%s11290_s5 + $0x128] sm:$0xff]  ;;  %11928 = vst [vmem:[#allocation48_spill] sm:$0xff] %v6108_v60  ;;  %v6120_v16 = vld [vmem:[%s11290_s5 + $0x138] sm:$0xff] }
  0x3a   :  { %599 = vmatpush1.msra.mxu0 %v6091_v20  ;;  %11927 = vst [vmem:[#allocation47_spill] sm:$0xff] %v6103_v18  ;;  %670 = vmatpush1.msra.mxu1 %v6108_v60  ;;  %v6115_v20 = vld [vmem:[%s11290_s5 + $0x120] sm:$0xff]  ;;  %11930 = vst [vmem:[#allocation50_spill] sm:$0xff] %v6120_v16  ;;  %v6132_v60 = vld [vmem:[%s11290_s5 + $0x130] sm:$0xff] }
  0x3b   :  { %600 = vmatprep.subr.mxu0 %v6103_v18  ;;  %11929 = vst [vmem:[#allocation49_spill] sm:$0xff] %v6115_v20  ;;  %671 = vmatprep.subr.mxu1 %v6120_v16  ;;  %v6127_v18 = vld [vmem:[%s11290_s5 + $0x108] sm:$0xff]  ;;  %11932 = vst [vmem:[#allocation52_spill] sm:$0xff] %v6132_v60  ;;  %v6144_v16 = vld [vmem:[%s11290_s5 + $0x118] sm:$0xff] }
  0x3c   :  { %601 = vmatpush1.msra.mxu0 %v6115_v20  ;;  %11931 = vst [vmem:[#allocation51_spill] sm:$0xff] %v6127_v18  ;;  %672 = vmatpush1.msra.mxu1 %v6132_v60  ;;  %v6139_v20 = vld [vmem:[%s11290_s5 + $0x100] sm:$0xff]  ;;  %11934 = vst [vmem:[#allocation54_spill] sm:$0xff] %v6144_v16  ;;  %v6156_v60 = vld [vmem:[%s11290_s5 + $0x110] sm:$0xff] }
  0x3d   :  { %602 = vmatprep.subr.mxu0 %v6127_v18  ;;  %11933 = vst [vmem:[#allocation53_spill] sm:$0xff] %v6139_v20  ;;  %673 = vmatprep.subr.mxu1 %v6144_v16  ;;  %v6151_v18 = vld [vmem:[%s11290_s5 + $0xe8] sm:$0xff]  ;;  %11936 = vst [vmem:[#allocation56_spill] sm:$0xff] %v6156_v60  ;;  %v6168_v16 = vld [vmem:[%s11290_s5 + $0xf8] sm:$0xff] }
  0x3e   :  { %603 = vmatpush1.msra.mxu0 %v6139_v20  ;;  %11935 = vst [vmem:[#allocation55_spill] sm:$0xff] %v6151_v18  ;;  %674 = vmatpush1.msra.mxu1 %v6156_v60  ;;  %v6163_v20 = vld [vmem:[%s11290_s5 + $0xe0] sm:$0xff]  ;;  %11938 = vst [vmem:[#allocation58_spill] sm:$0xff] %v6168_v16  ;;  %v6180_v60 = vld [vmem:[%s11290_s5 + $0xf0] sm:$0xff] }
  0x3f   :  { %604 = vmatprep.subr.mxu0 %v6151_v18  ;;  %11937 = vst [vmem:[#allocation57_spill] sm:$0xff] %v6163_v20  ;;  %675 = vmatprep.subr.mxu1 %v6168_v16  ;;  %v6175_v18 = vld [vmem:[%s11290_s5 + $0xc8] sm:$0xff]  ;;  %11940 = vst [vmem:[#allocation60_spill] sm:$0xff] %v6180_v60  ;;  %v6192_v16 = vld [vmem:[%s11290_s5 + $0xd8] sm:$0xff] }
  0x40   :  { %605 = vmatpush1.msra.mxu0 %v6163_v20  ;;  %11939 = vst [vmem:[#allocation59_spill] sm:$0xff] %v6175_v18  ;;  %676 = vmatpush1.msra.mxu1 %v6180_v60  ;;  %v6187_v20 = vld [vmem:[%s11290_s5 + $0xc0] sm:$0xff]  ;;  %11942 = vst [vmem:[#allocation62_spill] sm:$0xff] %v6192_v16  ;;  %v6204_v60 = vld [vmem:[%s11290_s5 + $0xd0] sm:$0xff] }
  0x41   :  { %606 = vmatprep.subr.mxu0 %v6175_v18  ;;  %11941 = vst [vmem:[#allocation61_spill] sm:$0xff] %v6187_v20  ;;  %677 = vmatprep.subr.mxu1 %v6192_v16  ;;  %v6199_v18 = vld [vmem:[%s11290_s5 + $0xa8] sm:$0xff]  ;;  %11944 = vst [vmem:[#allocation64_spill] sm:$0xff] %v6204_v60  ;;  %v6216_v16 = vld [vmem:[%s11290_s5 + $0xb8] sm:$0xff] }
  0x42   :  { %607 = vmatpush1.msra.mxu0 %v6187_v20  ;;  %11943 = vst [vmem:[#allocation63_spill] sm:$0xff] %v6199_v18  ;;  %678 = vmatpush1.msra.mxu1 %v6204_v60  ;;  %v6211_v20 = vld [vmem:[%s11290_s5 + $0xa0] sm:$0xff]  ;;  %11946 = vst [vmem:[#allocation66_spill] sm:$0xff] %v6216_v16  ;;  %v6228_v60 = vld [vmem:[%s11290_s5 + $0xb0] sm:$0xff] }
  0x43   :  { %608 = vmatprep.subr.mxu0 %v6199_v18  ;;  %11945 = vst [vmem:[#allocation65_spill] sm:$0xff] %v6211_v20  ;;  %679 = vmatprep.subr.mxu1 %v6216_v16  ;;  %v6223_v18 = vld [vmem:[%s11290_s5 + $0x88] sm:$0xff]  ;;  %11948 = vst [vmem:[#allocation68_spill] sm:$0xff] %v6228_v60  ;;  %v6240_v16 = vld [vmem:[%s11290_s5 + $0x98] sm:$0xff] }
  0x44   :  { %609 = vmatpush1.msra.mxu0 %v6211_v20  ;;  %11947 = vst [vmem:[#allocation67_spill] sm:$0xff] %v6223_v18  ;;  %680 = vmatpush1.msra.mxu1 %v6228_v60  ;;  %v6235_v20 = vld [vmem:[%s11290_s5 + $0x80] sm:$0xff]  ;;  %11950 = vst [vmem:[#allocation70_spill] sm:$0xff] %v6240_v16  ;;  %v6252_v60 = vld [vmem:[%s11290_s5 + $0x90] sm:$0xff] }
  0x45   :  { %610 = vmatprep.subr.mxu0 %v6223_v18  ;;  %11949 = vst [vmem:[#allocation69_spill] sm:$0xff] %v6235_v20  ;;  %681 = vmatprep.subr.mxu1 %v6240_v16  ;;  %v6247_v18 = vld [vmem:[%s11290_s5 + $0x68] sm:$0xff]  ;;  %11952 = vst [vmem:[#allocation72_spill] sm:$0xff] %v6252_v60  ;;  %v6264_v16 = vld [vmem:[%s11290_s5 + $0x78] sm:$0xff] }
  0x46   :  { %611 = vmatpush1.msra.mxu0 %v6235_v20  ;;  %11951 = vst [vmem:[#allocation71_spill] sm:$0xff] %v6247_v18  ;;  %682 = vmatpush1.msra.mxu1 %v6252_v60  ;;  %v6259_v20 = vld [vmem:[%s11290_s5 + $0x60] sm:$0xff]  ;;  %11954 = vst [vmem:[#allocation74_spill] sm:$0xff] %v6264_v16  ;;  %v6276_v60 = vld [vmem:[%s11290_s5 + $0x70] sm:$0xff] }
  0x47   :  { %612 = vmatprep.subr.mxu0 %v6247_v18  ;;  %11953 = vst [vmem:[#allocation73_spill] sm:$0xff] %v6259_v20  ;;  %683 = vmatprep.subr.mxu1 %v6264_v16  ;;  %v6271_v18 = vld [vmem:[%s11290_s5 + $0x48] sm:$0xff]  ;;  %11956 = vst [vmem:[#allocation76_spill] sm:$0xff] %v6276_v60  ;;  %v6288_v16 = vld [vmem:[%s11290_s5 + $0x58] sm:$0xff] }
  0x48   :  { %613 = vmatpush1.msra.mxu0 %v6259_v20  ;;  %11955 = vst [vmem:[#allocation75_spill] sm:$0xff] %v6271_v18  ;;  %684 = vmatpush1.msra.mxu1 %v6276_v60  ;;  %v6283_v20 = vld [vmem:[%s11290_s5 + $0x40] sm:$0xff]  ;;  %11958 = vst [vmem:[#allocation78_spill] sm:$0xff] %v6288_v16  ;;  %v6300_v60 = vld [vmem:[%s11290_s5 + $0x50] sm:$0xff] }
  0x49   :  { %614 = vmatprep.subr.mxu0 %v6271_v18  ;;  %11957 = vst [vmem:[#allocation77_spill] sm:$0xff] %v6283_v20  ;;  %685 = vmatprep.subr.mxu1 %v6288_v16  ;;  %v6295_v18 = vld [vmem:[%s11290_s5 + $0x28] sm:$0xff]  ;;  %11960 = vst [vmem:[#allocation80_spill] sm:$0xff] %v6300_v60  ;;  %v6312_v16 = vld [vmem:[%s11290_s5 + $0x38] sm:$0xff] }
  0x4a   :  { %615 = vmatpush1.msra.mxu0 %v6283_v20  ;;  %11959 = vst [vmem:[#allocation79_spill] sm:$0xff] %v6295_v18  ;;  %686 = vmatpush1.msra.mxu1 %v6300_v60  ;;  %v6307_v20 = vld [vmem:[%s11290_s5 + $0x20] sm:$0xff]  ;;  %11962 = vst [vmem:[#allocation82_spill] sm:$0xff] %v6312_v16  ;;  %v6324_v60 = vld [vmem:[%s11290_s5 + $0x30] sm:$0xff] }
  0x4b   :  { %616 = vmatprep.subr.mxu0 %v6295_v18  ;;  %11961 = vst [vmem:[#allocation81_spill] sm:$0xff] %v6307_v20  ;;  %687 = vmatprep.subr.mxu1 %v6312_v16  ;;  %v6319_v18 = vld [vmem:[%s11290_s5 + $0x8] sm:$0xff]  ;;  %11964 = vst [vmem:[#allocation84_spill] sm:$0xff] %v6324_v60  ;;  %v6336_v16 = vld [vmem:[%s11290_s5 + $0x18] sm:$0xff] }
  0x4c   :  { %617 = vmatpush1.msra.mxu0 %v6307_v20  ;;  %11963 = vst [vmem:[#allocation83_spill] sm:$0xff] %v6319_v18  ;;  %688 = vmatpush1.msra.mxu1 %v6324_v60  ;;  %v6331_v20 = vld [vmem:[%s11290_s5] sm:$0xff]  ;;  %11966 = vst [vmem:[#allocation86_spill] sm:$0xff] %v6336_v16  ;;  %v6350_v60 = vld [vmem:[%s11289_s4 + $0x1e8] sm:$0xff] }
  0x4d   :  { %618 = vmatprep.subr.mxu0 %v6319_v18  ;;  %11965 = vst [vmem:[#allocation85_spill] sm:$0xff] %v6331_v20  ;;  %689 = vmatprep.subr.mxu1 %v6336_v16  ;;  %v6343_v18 = vld [vmem:[%s11290_s5 + $0x10] sm:$0xff]  ;;  %11968 = vst [vmem:[#allocation88_spill] sm:$0xff] %v6350_v60  ;;  %v6362_v16 = vld [vmem:[%s11289_s4 + $0x1e0] sm:$0xff] }
  0x4e   :  { %619 = vmatpush1.msra.mxu0 %v6331_v20  ;;  %11967 = vst [vmem:[#allocation87_spill] sm:$0xff] %v6343_v18  ;;  %690 = vmatpush1.msra.mxu1 %v6343_v18  ;;  %v6355_v20 = vld [vmem:[%s11289_s4 + $0x1f8] sm:$0xff]  ;;  %11970 = vst [vmem:[#allocation90_spill] sm:$0xff] %v6362_v16  ;;  %v6367_v18 = vld [vmem:[%s11289_s4 + $0x1f0] sm:$0xff] }
  0x4f   :  { %653 = vmatmul.mubr.f32.vlgmr.msra.gmra.mxu0 %v11903_v62  ;;  %11969 = vst [vmem:[#allocation89_spill] sm:$0xff] %v6355_v20  ;;  %730 = vmatprep.subr.mxu0 %v6350_v60  ;;  %11971 = vst [vmem:[#allocation91_spill] sm:$0xff] %v6367_v18  ;;  %v6374_v60 = vld [vmem:[%s11289_s4 + $0x1c8] sm:$0xff] }
  0x50   :  { %801 = vmatprep.subr.mxu1 %v6355_v20  ;;  %724 = vmatmul.mubr.f32.vlgmr.msra.gmra.mxu1 %v11903_v62  ;;  %11972 = vst [vmem:[#allocation92_spill] sm:$0xff] %v6374_v60  ;;  %v6379_v20 = vld [vmem:[%s11289_s4 + $0x1d8] sm:$0xff]  ;;  %12012 = vst [vmem:[#allocation132_spill] sm:$0xff] %v6610_v58 }
  0x51   :  { %731 = vmatpush1.msra.mxu0 %v6362_v16  ;;  %11973 = vst [vmem:[#allocation93_spill] sm:$0xff] %v6379_v20  ;;  %802 = vmatpush1.msra.mxu1 %v6367_v18  ;;  %v6391_v16 = vld [vmem:[%s11289_s4 + $0x1d0] sm:$0xff]  ;;  %v6398_v18 = vld [vmem:[%s11289_s4 + $0x1a8] sm:$0xff] }
  0x52   :  { %732 = vmatprep.subr.mxu0 %v6374_v60  ;;  %11975 = vst [vmem:[#allocation95_spill] sm:$0xff] %v6391_v16  ;;  %803 = vmatprep.subr.mxu1 %v6379_v20  ;;  %11976 = vst [vmem:[#allocation96_spill] sm:$0xff] %v6398_v18  ;;  %v6403_v60 = vld [vmem:[%s11289_s4 + $0x1b8] sm:$0xff]  ;;  %v6410_v20 = vld [vmem:[%s11289_s4 + $0x1a0] sm:$0xff] }
  0x53   :  { %733 = vmatpush1.msra.mxu0 %v6386_v56  ;;  %11977 = vst [vmem:[#allocation97_spill] sm:$0xff] %v6403_v60  ;;  %804 = vmatpush1.msra.mxu1 %v6391_v16  ;;  %11978 = vst [vmem:[#allocation98_spill] sm:$0xff] %v6410_v20  ;;  %v6415_v56 = vld [vmem:[%s11289_s4 + $0x1b0] sm:$0xff]  ;;  %v6422_v16 = vld [vmem:[%s11289_s4 + $0x188] sm:$0xff] }
  0x54   :  { %734 = vmatprep.subr.mxu0 %v6398_v18  ;;  %11979 = vst [vmem:[#allocation99_spill] sm:$0xff] %v6415_v56  ;;  %805 = vmatprep.subr.mxu1 %v6403_v60  ;;  %11980 = vst [vmem:[#allocation100_spill] sm:$0xff] %v6422_v16  ;;  %v6427_v18 = vld [vmem:[%s11289_s4 + $0x198] sm:$0xff]  ;;  %v6434_v60 = vld [vmem:[%s11289_s4 + $0x180] sm:$0xff] }
  0x55   :  { %735 = vmatpush1.msra.mxu0 %v6410_v20  ;;  %11981 = vst [vmem:[#allocation101_spill] sm:$0xff] %v6427_v18  ;;  %806 = vmatpush1.msra.mxu1 %v6415_v56  ;;  %11982 = vst [vmem:[#allocation102_spill] sm:$0xff] %v6434_v60  ;;  %v6439_v20 = vld [vmem:[%s11289_s4 + $0x190] sm:$0xff]  ;;  %v6446_v56 = vld [vmem:[%s11289_s4 + $0x168] sm:$0xff] }
  0x56   :  { %736 = vmatprep.subr.mxu0 %v6422_v16  ;;  %11983 = vst [vmem:[#allocation103_spill] sm:$0xff] %v6439_v20  ;;  %807 = vmatprep.subr.mxu1 %v6427_v18  ;;  %11984 = vst [vmem:[#allocation104_spill] sm:$0xff] %v6446_v56  ;;  %v6451_v16 = vld [vmem:[%s11289_s4 + $0x178] sm:$0xff]  ;;  %v6458_v18 = vld [vmem:[%s11289_s4 + $0x160] sm:$0xff] }
  0x57   :  { %737 = vmatpush1.msra.mxu0 %v6434_v60  ;;  %11985 = vst [vmem:[#allocation105_spill] sm:$0xff] %v6451_v16  ;;  %808 = vmatpush1.msra.mxu1 %v6439_v20  ;;  %11986 = vst [vmem:[#allocation106_spill] sm:$0xff] %v6458_v18  ;;  %v6463_v60 = vld [vmem:[%s11289_s4 + $0x170] sm:$0xff]  ;;  %v6470_v20 = vld [vmem:[%s11289_s4 + $0x148] sm:$0xff] }
  0x58   :  { %738 = vmatprep.subr.mxu0 %v6446_v56  ;;  %11987 = vst [vmem:[#allocation107_spill] sm:$0xff] %v6463_v60  ;;  %809 = vmatprep.subr.mxu1 %v6451_v16  ;;  %11988 = vst [vmem:[#allocation108_spill] sm:$0xff] %v6470_v20  ;;  %v6475_v56 = vld [vmem:[%s11289_s4 + $0x158] sm:$0xff]  ;;  %v6482_v16 = vld [vmem:[%s11289_s4 + $0x140] sm:$0xff] }
  0x59   :  { %739 = vmatpush1.msra.mxu0 %v6458_v18  ;;  %11989 = vst [vmem:[#allocation109_spill] sm:$0xff] %v6475_v56  ;;  %810 = vmatpush1.msra.mxu1 %v6463_v60  ;;  %11990 = vst [vmem:[#allocation110_spill] sm:$0xff] %v6482_v16  ;;  %v6487_v18 = vld [vmem:[%s11289_s4 + $0x150] sm:$0xff]  ;;  %v6494_v60 = vld [vmem:[%s11289_s4 + $0x128] sm:$0xff] }
  0x5a   :  { %740 = vmatprep.subr.mxu0 %v6470_v20  ;;  %11991 = vst [vmem:[#allocation111_spill] sm:$0xff] %v6487_v18  ;;  %811 = vmatprep.subr.mxu1 %v6475_v56  ;;  %11992 = vst [vmem:[#allocation112_spill] sm:$0xff] %v6494_v60  ;;  %v6499_v20 = vld [vmem:[%s11289_s4 + $0x138] sm:$0xff]  ;;  %v6506_v56 = vld [vmem:[%s11289_s4 + $0x120] sm:$0xff] }
  0x5b   :  { %741 = vmatpush1.msra.mxu0 %v6482_v16  ;;  %11993 = vst [vmem:[#allocation113_spill] sm:$0xff] %v6499_v20  ;;  %812 = vmatpush1.msra.mxu1 %v6487_v18  ;;  %11994 = vst [vmem:[#allocation114_spill] sm:$0xff] %v6506_v56  ;;  %v6511_v16 = vld [vmem:[%s11289_s4 + $0x130] sm:$0xff]  ;;  %v6518_v18 = vld [vmem:[%s11289_s4 + $0x108] sm:$0xff] }
  0x5c   :  { %742 = vmatprep.subr.mxu0 %v6494_v60  ;;  %11995 = vst [vmem:[#allocation115_spill] sm:$0xff] %v6511_v16  ;;  %813 = vmatprep.subr.mxu1 %v6499_v20  ;;  %11996 = vst [vmem:[#allocation116_spill] sm:$0xff] %v6518_v18  ;;  %v6523_v60 = vld [vmem:[%s11289_s4 + $0x118] sm:$0xff]  ;;  %v6530_v20 = vld [vmem:[%s11289_s4 + $0x100] sm:$0xff] }
  0x5d   :  { %743 = vmatpush1.msra.mxu0 %v6506_v56  ;;  %11997 = vst [vmem:[#allocation117_spill] sm:$0xff] %v6523_v60  ;;  %814 = vmatpush1.msra.mxu1 %v6511_v16  ;;  %11998 = vst [vmem:[#allocation118_spill] sm:$0xff] %v6530_v20  ;;  %v6535_v56 = vld [vmem:[%s11289_s4 + $0x110] sm:$0xff]  ;;  %v6542_v16 = vld [vmem:[%s11289_s4 + $0xe8] sm:$0xff] }
  0x5e   :  { %744 = vmatprep.subr.mxu0 %v6518_v18  ;;  %11999 = vst [vmem:[#allocation119_spill] sm:$0xff] %v6535_v56  ;;  %815 = vmatprep.subr.mxu1 %v6523_v60  ;;  %12000 = vst [vmem:[#allocation120_spill] sm:$0xff] %v6542_v16  ;;  %v6547_v18 = vld [vmem:[%s11289_s4 + $0xf8] sm:$0xff]  ;;  %v6554_v60 = vld [vmem:[%s11289_s4 + $0xe0] sm:$0xff] }
  0x5f   :  { %745 = vmatpush1.msra.mxu0 %v6530_v20  ;;  %12001 = vst [vmem:[#allocation121_spill] sm:$0xff] %v6547_v18  ;;  %816 = vmatpush1.msra.mxu1 %v6535_v56  ;;  %12002 = vst [vmem:[#allocation122_spill] sm:$0xff] %v6554_v60  ;;  %v6559_v20 = vld [vmem:[%s11289_s4 + $0xf0] sm:$0xff]  ;;  %v6566_v56 = vld [vmem:[%s11289_s4 + $0xc8] sm:$0xff] }
  0x60   :  { %746 = vmatprep.subr.mxu0 %v6542_v16  ;;  %12003 = vst [vmem:[#allocation123_spill] sm:$0xff] %v6559_v20  ;;  %817 = vmatprep.subr.mxu1 %v6547_v18  ;;  %12004 = vst [vmem:[#allocation124_spill] sm:$0xff] %v6566_v56  ;;  %v6571_v16 = vld [vmem:[%s11289_s4 + $0xd8] sm:$0xff]  ;;  %v6588_v18 = vld [vmem:[%s11289_s4 + $0xa8] sm:$0xff] }
  0x61   :  { %747 = vmatpush1.msra.mxu0 %v6554_v60  ;;  %12005 = vst [vmem:[#allocation125_spill] sm:$0xff] %v6571_v16  ;;  %818 = vmatpush1.msra.mxu1 %v6559_v20  ;;  %v6583_v60 = vld [vmem:[%s11289_s4 + $0xd0] sm:$0xff]  ;;  %12008 = vst [vmem:[#allocation128_spill] sm:$0xff] %v6588_v18 }
  0x62   :  { %748 = vmatprep.subr.mxu0 %v6566_v56  ;;  %12007 = vst [vmem:[#allocation127_spill] sm:$0xff] %v6583_v60  ;;  %819 = vmatprep.subr.mxu1 %v6571_v16  ;;  %v6600_v56 = vld [vmem:[%s11289_s4 + $0xa0] sm:$0xff]  ;;  %v6605_v20 = vld [vmem:[%s11289_s4 + $0xb0] sm:$0xff] }
  0x63   :  { %749 = vmatpush1.msra.mxu0 %v6576_v14  ;;  %12010 = vst [vmem:[#allocation130_spill] sm:$0xff] %v6600_v56  ;;  %12011 = vst [vmem:[#allocation131_spill] sm:$0xff] %v6605_v20  ;;  %820 = vmatpush1.msra.mxu1 %v6583_v60  ;;  %v6617_v14 = vld [vmem:[%s11289_s4 + $0x98] sm:$0xff]  ;;  %v6622_v16 = vld [vmem:[%s11289_s4 + $0x80] sm:$0xff] }
  0x64   :  { %750 = vmatprep.subr.mxu0 %v6588_v18  ;;  %12013 = vst [vmem:[#allocation133_spill] sm:$0xff] %v6617_v14  ;;  %12014 = vst [vmem:[#allocation134_spill] sm:$0xff] %v6622_v16  ;;  %821 = vmatprep.subr.mxu1 %v6593_v10  ;;  %v6629_v60 = vld [vmem:[%s11289_s4 + $0x90] sm:$0xff]  ;;  %v6634_v18 = vld [vmem:[%s11289_s4 + $0x68] sm:$0xff] }
  0x65   :  { %751 = vmatpush1.msra.mxu0 %v6600_v56  ;;  %12015 = vst [vmem:[#allocation135_spill] sm:$0xff] %v6629_v60  ;;  %12016 = vst [vmem:[#allocation136_spill] sm:$0xff] %v6634_v18  ;;  %822 = vmatpush1.msra.mxu1 %v6605_v20  ;;  %v6641_v10 = vld [vmem:[%s11289_s4 + $0x78] sm:$0xff]  ;;  %v6646_v56 = vld [vmem:[%s11289_s4 + $0x60] sm:$0xff] }
  0x66   :  { %752 = vmatprep.subr.mxu0 %v6610_v58  ;;  %12017 = vst [vmem:[#allocation137_spill] sm:$0xff] %v6641_v10  ;;  %12018 = vst [vmem:[#allocation138_spill] sm:$0xff] %v6646_v56  ;;  %823 = vmatprep.subr.mxu1 %v6617_v14  ;;  %v6653_v20 = vld [vmem:[%s11289_s4 + $0x70] sm:$0xff]  ;;  %v6658_v58 = vld [vmem:[%s11289_s4 + $0x48] sm:$0xff] }
  0x67   :  { %753 = vmatpush1.msra.mxu0 %v6622_v16  ;;  %12019 = vst [vmem:[#allocation139_spill] sm:$0xff] %v6653_v20  ;;  %12020 = vst [vmem:[#allocation140_spill] sm:$0xff] %v6658_v58  ;;  %824 = vmatpush1.msra.mxu1 %v6629_v60  ;;  %v6665_v14 = vld [vmem:[%s11289_s4 + $0x58] sm:$0xff]  ;;  %v6670_v16 = vld [vmem:[%s11289_s4 + $0x40] sm:$0xff] }
  0x68   :  { %754 = vmatprep.subr.mxu0 %v6634_v18  ;;  %12021 = vst [vmem:[#allocation141_spill] sm:$0xff] %v6665_v14  ;;  %12022 = vst [vmem:[#allocation142_spill] sm:$0xff] %v6670_v16  ;;  %825 = vmatprep.subr.mxu1 %v6641_v10  ;;  %v6677_v60 = vld [vmem:[%s11289_s4 + $0x50] sm:$0xff]  ;;  %v6682_v18 = vld [vmem:[%s11289_s4 + $0x28] sm:$0xff] }
  0x69   :  { %755 = vmatpush1.msra.mxu0 %v6646_v56  ;;  %12023 = vst [vmem:[#allocation143_spill] sm:$0xff] %v6677_v60  ;;  %12024 = vst [vmem:[#allocation144_spill] sm:$0xff] %v6682_v18  ;;  %826 = vmatpush1.msra.mxu1 %v6653_v20  ;;  %v6689_v10 = vld [vmem:[%s11289_s4 + $0x38] sm:$0xff]  ;;  %v6694_v56 = vld [vmem:[%s11289_s4 + $0x20] sm:$0xff] }
  0x6a   :  { %756 = vmatprep.subr.mxu0 %v6658_v58  ;;  %12025 = vst [vmem:[#allocation145_spill] sm:$0xff] %v6689_v10  ;;  %12026 = vst [vmem:[#allocation146_spill] sm:$0xff] %v6694_v56  ;;  %827 = vmatprep.subr.mxu1 %v6665_v14  ;;  %v6701_v20 = vld [vmem:[%s11289_s4 + $0x30] sm:$0xff]  ;;  %v6706_v58 = vld [vmem:[%s11289_s4 + $0x8] sm:$0xff] }
  0x6b   :  { %757 = vmatpush1.msra.mxu0 %v6670_v16  ;;  %12027 = vst [vmem:[#allocation147_spill] sm:$0xff] %v6701_v20  ;;  %12028 = vst [vmem:[#allocation148_spill] sm:$0xff] %v6706_v58  ;;  %828 = vmatpush1.msra.mxu1 %v6677_v60  ;;  %v6713_v14 = vld [vmem:[%s11289_s4 + $0x18] sm:$0xff]  ;;  %v6718_v16 = vld [vmem:[%s11289_s4] sm:$0xff] }
  0x6c   :  { %758 = vmatprep.subr.mxu0 %v6682_v18  ;;  %12029 = vst [vmem:[#allocation149_spill] sm:$0xff] %v6713_v14  ;;  %12030 = vst [vmem:[#allocation150_spill] sm:$0xff] %v6718_v16  ;;  %829 = vmatprep.subr.mxu1 %v6689_v10  ;;  %v6725_v60 = vld [vmem:[%s11289_s4 + $0x10] sm:$0xff] }
  0x6d   :  { %759 = vmatpush1.msra.mxu0 %v6694_v56  ;;  %12031 = vst [vmem:[#allocation151_spill] sm:$0xff] %v6725_v60  ;;  %830 = vmatpush1.msra.mxu1 %v6701_v20  ;;  %v45_v56 = vlaneseq }
  0x6e   :  { %760 = vmatprep.subr.mxu0 %v6706_v58  ;;  %831 = vmatprep.subr.mxu1 %v6713_v14  ;;  %v43_v14 = vld [vmem:[%s11288_s3] sm:$0xf] }
  0x6f   :  { %761 = vmatpush1.msra.mxu0 %v6718_v16  ;;  %832 = vmatpush1.msra.mxu1 %v6725_v60  ;;  %v6736_v10 = vshrl.u32 %v45_v56, 7 }
  0x70   :  { %794 = vmatprep.mubr.f32.mxu0 %v11903_v62  ;;  %865 = vmatprep.mubr.f32.mxu1 %v11903_v62 }
  0x71   :  { %922 = vmatprep.subr.mxu0 %v5536_v1  ;;  %993 = vmatprep.subr.mxu1 %v5639_v23  ;;  %v11442_v20 = vsub.s32 0, %v6736_v10  ;;  %v11444_v60 = vsub.s32 1, %v6736_v10  ;;  %v11450_v52 = vsub.s32 2, %v6736_v10  ;;  %v11454_v50 = vsub.s32 3, %v6736_v10 }
  0x73   :  { %v48_v18 = vrot.slane %v43_v14, %v11442_v20  ;;  %v52_v1 = vrot.slane %v43_v14, %v11444_v60 }
  0xc6   :  { %v138_v16 = vpop.f32.mrf.mxu1 }
  0xc7   :  { %v6752_v8 = vadd.f32 %v138_v16, %v48_v18 }
  0xc8   :  { %v140_v58 = vpop.f32.mrf.mxu1 }
  0xc9   :  { %12034 = vst [vmem:[#allocation154_spill] sm:$0xff] %v6752_v8  ;;  %v6755_v48 = vadd.f32 %v140_v58, %v52_v1 }
  0xca   :  { %v144_v62 = vpop.f32.mrf.mxu1 }
  0xcb   :  { %v6747_v23 = vadd.f32 %v144_v62, %v48_v18  ;;  %12035 = vst [vmem:[#allocation155_spill] sm:$0xff] %v6755_v48  ;;  %v56_v62 = vrot.slane %v43_v14, %v11450_v52  ;;  %v60_v18 = vrot.slane %v43_v14, %v11454_v50 }
  0xcc   :  { %v146_v56 = vpop.f32.mrf.mxu1 }
  0xcd   :  { %12032 = vst [vmem:[#allocation152_spill] sm:$0xff] %v6747_v23  ;;  %v6749_v54 = vadd.f32 %v146_v56, %v52_v1 }
  0xcf   :  { %12033 = vst [vmem:[#allocation153_spill] sm:$0xff] %v6749_v54  ;;  %v215_v12 = vpop.f32.mrf.mxu1 }
  0xd0   :  { %v6770_v2 = vadd.f32 %v215_v12, %v56_v62 }
  0xd1   :  { %v217_v20 = vpop.f32.mrf.mxu1 }
  0xe4   :  { %v356_v6 = vpop.f32.mrf.mxu0 }
  0xe5   :  { %v432_v4 = vadd.f32 %v356_v6, %v6752_v8  ;;  %v6767_v8 = vadd.f32 %v217_v20, %v60_v18 }
  0xe6   :  { %v358_v60 = vpop.f32.mrf.mxu0 }
  0xe7   :  { %v4519_v23 = vmul.f32 -1.442695, %v432_v4  ;;  %v433_v56 = vadd.f32 %v358_v60, %v6755_v48  ;;  %v221_v54 = vpop.f32.mrf.mxu1 }
  0xe8   :  { %v6763_v16 = vadd.f32 %v221_v54, %v56_v62 }
  0xe9   :  { %4623 = vpow2.f32 %v4519_v23  ;;  %v4520_v46 = vmul.f32 -1.442695, %v433_v56  ;;  %v223_v58 = vpop.f32.mrf.mxu1 }
  0xea   :  { %12036 = vst [vmem:[#allocation156_spill] sm:$0xff] %v6763_v16  ;;  %v6765_v1 = vadd.f32 %v223_v58, %v60_v18 }
  0xeb   :  { %4625 = vpow2.f32 %v4520_v46 }
  0xec   :  { %12037 = vst [vmem:[#allocation157_spill] sm:$0xff] %v6765_v1  ;;  %v7325_v1 = vld [vmem:[%s11287_s2 + $0x70] sm:$0xff] }
  0xef   :  { %v427_v6 = vpop.f32.mrf.mxu1 }
  0xf0   :  { %v434_v14 = vadd.f32 %v427_v6, %v6770_v2 }
  0xf1   :  { %v429_v52 = vpop.f32.mrf.mxu1 }
  0xf2   :  { %v435_v4 = vadd.f32 %v429_v52, %v6767_v8 }
  0xf4   :  { %v4521_v60 = vmul.f32 -1.442695, %v435_v4  ;;  %v12083_v4 = vld [vmem:[#allocation50_spill] sm:$0xff] }
  0xf6   :  { %v4624_v48 = vpop.eup %4623  ;;  %4627 = vpow2.f32 %v4521_v60  ;;  %v12084_v60 = vld [vmem:[#allocation49_spill] sm:$0xff] }
  0xf7   :  { %v439_v54 = vadd.f32 1.0, %v4624_v48 }
  0xf8   :  { %v4626_v50 = vpop.eup %4625 }
  0xf9   :  { %4629 = vrcp.f32 %v439_v54  ;;  %v445_v23 = vadd.f32 1.0, %v4626_v50  ;;  %v12073_v50 = vld [vmem:[#allocation39_spill] sm:$0xff] }
  0xfa   :  { %4631 = vtanh.f32 %v434_v14  ;;  %v12085_v14 = vld [vmem:[#allocation52_spill] sm:$0xff]  ;;  %v12086_v54 = vld [vmem:[#allocation51_spill] sm:$0xff] }
  0xfb   :  { %4633 = vrcp.f32 %v445_v23  ;;  %v12087_v23 = vld [vmem:[#allocation54_spill] sm:$0xff] }
 0x103   :  { %v4628_v46 = vpop.eup %4627 }
 0x104   :  { %v452_v58 = vadd.f32 1.0, %v4628_v46  ;;  %v12088_v46 = vld [vmem:[#allocation53_spill] sm:$0xff] }
 0x106   :  { %v4630_v56 = vpop.eup %4629  ;;  %4635 = vrcp.f32 %v452_v58  ;;  %v12092_v58 = vld [vmem:[#allocation57_spill] sm:$0xff] }
 0x107   :  { %v4632_v20 = vpop.eup %4631 }
 0x108   :  { %v4634_v18 = vpop.eup %4633  ;;  %v456_v52 = vmul.f32 %v4632_v20, %v4630_v56  ;;  %v12089_v56 = vld [vmem:[#allocation56_spill] sm:$0xff]  ;;  %v12090_v20 = vld [vmem:[#allocation55_spill] sm:$0xff] }
 0x109   :  { %v455_v16 = vmul.f32 0.0, %v4634_v18  ;;  %v12091_v18 = vld [vmem:[#allocation58_spill] sm:$0xff] }
 0x10b   :  { %v6773_v12 = vadd.f32 %v456_v52, %v455_v16  ;;  %v12082_v16 = vld [vmem:[#allocation47_spill] sm:$0xff]  ;;  %v12093_v52 = vld [vmem:[#allocation60_spill] sm:$0xff] }
 0x10d   :  { %4637 = vtanh.f32 %v6773_v12 }
 0x113   :  { %v4636_v62 = vpop.eup %4635 }
 0x11a   :  { %v4638_v48 = vpop.eup %4637 }
 0x11b   :  { %v6776_v6 = vmul.f32 %v4638_v48, %v4636_v62  ;;  %v12094_v62 = vld [vmem:[#allocation59_spill] sm:$0xff]  ;;  %v12095_v48 = vld [vmem:[#allocation62_spill] sm:$0xff] }
 0x11d   :  { %795 = vmatmul.mubr.f32.vlgmr.msra.gmra.mxu0 %v6776_v6  ;;  %866 = vmatmul.mubr.f32.vlgmr.msra.gmra.mxu1 %v6776_v6 }
 0x11e   :  { %923 = vmatpush1.msra.mxu0 %v5545_v3  ;;  %994 = vmatpush1.msra.mxu1 %v5652_v25  ;;  %v12038_v3 = vld [vmem:[#allocation14_spill] sm:$0xff]  ;;  %v12050_v25 = vld [vmem:[#allocation20_spill] sm:$0xff] }
 0x11f   :  { %924 = vmatprep.subr.mxu0 %v5553_v5  ;;  %995 = vmatprep.subr.mxu1 %v5664_v27  ;;  %v12039_v5 = vld [vmem:[#allocation5_spill] sm:$0xff] }
 0x120   :  { %925 = vmatpush1.msra.mxu0 %v5562_v7  ;;  %996 = vmatpush1.msra.mxu1 %v5676_v29  ;;  %v12040_v7 = vld [vmem:[#allocation15_spill] sm:$0xff]  ;;  %v12052_v27 = vld [vmem:[#allocation21_spill] sm:$0xff]  ;;  %v12054_v29 = vld [vmem:[#allocation22_spill] sm:$0xff] }
 0x121   :  { %926 = vmatprep.subr.mxu0 %v5571_v9  ;;  %997 = vmatprep.subr.mxu1 %v5688_v31  ;;  %v12041_v9 = vld [vmem:[#allocation6_spill] sm:$0xff]  ;;  %v12056_v31 = vmov 0.0  }
 0x122   :  { %927 = vmatpush1.msra.mxu0 %v5577_v11  ;;  %998 = vmatpush1.msra.mxu1 %v5700_v33  ;;  %v12042_v11 = vld [vmem:[#allocation16_spill] sm:$0xff] }
 0x123   :  { %928 = vmatprep.subr.mxu0 %v5587_v13  ;;  %999 = vmatprep.subr.mxu1 %v5712_v35  ;;  %v12043_v13 = vld [vmem:[#allocation7_spill] sm:$0xff]  ;;  %v12058_v33 = vld [vmem:[#allocation24_spill] sm:$0xff]  ;;  %v12060_v35 = vld [vmem:[#allocation25_spill] sm:$0xff] }
 0x124   :  { %929 = vmatpush1.msra.mxu0 %v5597_v15  ;;  %1000 = vmatpush1.msra.mxu1 %v5724_v37  ;;  %v12044_v15 = vld [vmem:[#allocation17_spill] sm:$0xff]  ;;  %v12062_v37 = vld [vmem:[#allocation27_spill] sm:$0xff] }
 0x125   :  { %930 = vmatprep.subr.mxu0 %v5608_v17  ;;  %1001 = vmatprep.subr.mxu1 %v5736_v39  ;;  %v12045_v17 = vld [vmem:[#allocation8_spill] sm:$0xff]  ;;  %v12064_v39 = vld [vmem:[#allocation29_spill] sm:$0xff] }
 0x126   :  { %931 = vmatpush1.msra.mxu0 %v5617_v19  ;;  %1002 = vmatpush1.msra.mxu1 %v5748_v41  ;;  %v12046_v19 = vld [vmem:[#allocation18_spill] sm:$0xff]  ;;  %v12066_v41 = vld [vmem:[#allocation31_spill] sm:$0xff] }
 0x127   :  { %932 = vmatprep.subr.mxu0 %v5628_v21  ;;  %1003 = vmatprep.subr.mxu1 %v5760_v43  ;;  %v12047_v21 = vld [vmem:[#allocation9_spill] sm:$0xff] }
 0x128   :  { %933 = vmatpush1.msra.mxu0 %v5634_v22  ;;  %1004 = vmatpush1.msra.mxu1 %v5772_v45  ;;  %v12048_v22 = vld [vmem:[#allocation19_spill] sm:$0xff]  ;;  %v12068_v43 = vld [vmem:[#allocation33_spill] sm:$0xff] }
 0x129   :  { %934 = vmatprep.subr.mxu0 %v5645_v24  ;;  %1005 = vmatprep.subr.mxu1 %v5784_v47  ;;  %v12049_v24 = vld [vmem:[#allocation10_spill] sm:$0xff]  ;;  %v12070_v45 = vld [vmem:[#allocation35_spill] sm:$0xff]  ;;  %v12071_v47 = vld [vmem:[#allocation37_spill] sm:$0xff] }
 0x12a   :  { %935 = vmatpush1.msra.mxu0 %v5657_v26  ;;  %1006 = vmatpush1.msra.mxu1 %v5796_v49  ;;  %v12051_v26 = vld [vmem:[#allocation11_spill] sm:$0xff]  ;;  %v12072_v49 = vld [vmem:[#allocation38_spill] sm:$0xff] }
 0x12b   :  { %936 = vmatprep.subr.mxu0 %v5669_v28  ;;  %1007 = vmatprep.subr.mxu1 %v5808_v51  ;;  %v12053_v28 = vld [vmem:[#allocation12_spill] sm:$0xff] }
 0x12c   :  { %937 = vmatpush1.msra.mxu0 %v5681_v30  ;;  %1008 = vmatpush1.msra.mxu1 %v5820_v53  ;;  %v12055_v30 = vld [vmem:[#allocation13_spill] sm:$0xff]  ;;  %v12074_v51 = vld [vmem:[#allocation40_spill] sm:$0xff]  ;;  %v12075_v53 = vld [vmem:[#allocation42_spill] sm:$0xff] }
 0x12d   :  { %938 = vmatprep.subr.mxu0 %v5693_v32  ;;  %1009 = vmatprep.subr.mxu1 %v5832_v55  ;;  %v12057_v32 = vld [vmem:[#allocation23_spill] sm:$0xff]  ;;  %v12076_v55 = vld [vmem:[#allocation41_spill] sm:$0xff] }
 0x12e   :  { %939 = vmatpush1.msra.mxu0 %v5705_v34  ;;  %1010 = vmatpush1.msra.mxu1 %v5844_v57  ;;  %v12059_v34 = vld [vmem:[#allocation26_spill] sm:$0xff]  ;;  %v12077_v57 = vld [vmem:[#allocation44_spill] sm:$0xff]  ;;  %12210 = vst [vmem:[#allocation23_spill] sm:$0xff] %v7325_v1 }
 0x12f   :  { %940 = vmatprep.subr.mxu0 %v5717_v36  ;;  %1011 = vmatprep.subr.mxu1 %v5856_v59  ;;  %v12061_v36 = vld [vmem:[#allocation28_spill] sm:$0xff]  ;;  %v12078_v59 = vld [vmem:[#allocation43_spill] sm:$0xff] }
 0x130   :  { %941 = vmatpush1.msra.mxu0 %v5729_v38  ;;  %1012 = vmatpush1.msra.mxu1 %v5868_v61  ;;  %v12063_v38 = vld [vmem:[#allocation30_spill] sm:$0xff] }
 0x131   :  { %942 = vmatprep.subr.mxu0 %v5741_v40  ;;  %1013 = vmatprep.subr.mxu1 %v5880_v63  ;;  %v12065_v40 = vld [vmem:[#allocation32_spill] sm:$0xff]  ;;  %v12079_v61 = vld [vmem:[#allocation46_spill] sm:$0xff]  ;;  %v12080_v63 = vld [vmem:[#allocation45_spill] sm:$0xff] }
 0x132   :  { %943 = vmatpush1.msra.mxu0 %v5753_v42  ;;  %1014 = vmatpush1.msra.mxu1 %v5887_v0  ;;  %v12067_v42 = vld [vmem:[#allocation34_spill] sm:$0xff]  ;;  %v12081_v0 = vld [vmem:[#allocation48_spill] sm:$0xff] }
 0x133   :  { %944 = vmatprep.subr.mxu0 %v5765_v44  ;;  %1015 = vmatprep.subr.mxu1 %v12038_v3  ;;  %v12069_v44 = vld [vmem:[#allocation36_spill] sm:$0xff] }
 0x134   :  { %945 = vmatpush1.msra.mxu0 %v12039_v5  ;;  %1016 = vmatpush1.msra.mxu1 %v12040_v7  ;;  %v12097_v3 = vld [vmem:[#allocation64_spill] sm:$0xff]  ;;  %v12098_v5 = vld [vmem:[#allocation63_spill] sm:$0xff]  ;;  %v12099_v7 = vld [vmem:[#allocation66_spill] sm:$0xff] }
 0x135   :  { %946 = vmatprep.subr.mxu0 %v12041_v9  ;;  %1017 = vmatprep.subr.mxu1 %v12042_v11  ;;  %v12100_v9 = vld [vmem:[#allocation65_spill] sm:$0xff]  ;;  %v12101_v11 = vld [vmem:[#allocation68_spill] sm:$0xff] }
 0x136   :  { %947 = vmatpush1.msra.mxu0 %v12043_v13  ;;  %1018 = vmatpush1.msra.mxu1 %v12044_v15  ;;  %v12102_v13 = vld [vmem:[#allocation67_spill] sm:$0xff]  ;;  %v12103_v15 = vld [vmem:[#allocation70_spill] sm:$0xff] }
 0x137   :  { %948 = vmatprep.subr.mxu0 %v12045_v17  ;;  %1019 = vmatprep.subr.mxu1 %v12046_v19  ;;  %v12104_v17 = vld [vmem:[#allocation69_spill] sm:$0xff]  ;;  %v12105_v19 = vld [vmem:[#allocation72_spill] sm:$0xff] }
 0x138   :  { %949 = vmatpush1.msra.mxu0 %v12047_v21  ;;  %1020 = vmatpush1.msra.mxu1 %v12048_v22  ;;  %v12106_v21 = vld [vmem:[#allocation71_spill] sm:$0xff]  ;;  %v12107_v22 = vld [vmem:[#allocation74_spill] sm:$0xff] }
 0x139   :  { %950 = vmatprep.subr.mxu0 %v12049_v24  ;;  %1021 = vmatprep.subr.mxu1 %v12050_v25  ;;  %v12108_v24 = vld [vmem:[#allocation73_spill] sm:$0xff]  ;;  %v12109_v25 = vld [vmem:[#allocation76_spill] sm:$0xff] }
 0x13a   :  { %951 = vmatpush1.msra.mxu0 %v12051_v26  ;;  %1022 = vmatpush1.msra.mxu1 %v12052_v27  ;;  %v12110_v26 = vld [vmem:[#allocation75_spill] sm:$0xff]  ;;  %v12111_v27 = vld [vmem:[#allocation78_spill] sm:$0xff] }
 0x13b   :  { %952 = vmatprep.subr.mxu0 %v12053_v28  ;;  %1023 = vmatprep.subr.mxu1 %v12054_v29  ;;  %v12112_v28 = vld [vmem:[#allocation77_spill] sm:$0xff]  ;;  %v12113_v29 = vld [vmem:[#allocation80_spill] sm:$0xff] }
 0x13c   :  { %953 = vmatpush1.msra.mxu0 %v12055_v30  ;;  %986 = vmatprep.mubr.f32.mxu0 %v12056_v31  ;;  %v12114_v30 = vld [vmem:[#allocation79_spill] sm:$0xff] }
 0x13d   :  { %1024 = vmatpush1.msra.mxu1 %v12057_v32  ;;  %1057 = vmatprep.mubr.f32.mxu1 %v12056_v31  ;;  %v12115_v32 = vld [vmem:[#allocation82_spill] sm:$0xff] }
 0x13e   :  { %987 = vmatmul.mubr.f32.vlgmr.msra.gmra.mxu0 %v6776_v6  ;;  %1058 = vmatmul.mubr.f32.vlgmr.msra.gmra.mxu1 %v6776_v6  ;;  %v12096_v6 = vld [vmem:[#allocation61_spill] sm:$0xff] }
 0x13f   :  { %1107 = vmatprep.subr.mxu0 %v12058_v33  ;;  %1178 = vmatprep.subr.mxu1 %v12059_v34  ;;  %v12116_v33 = vld [vmem:[#allocation81_spill] sm:$0xff]  ;;  %v12117_v34 = vld [vmem:[#allocation84_spill] sm:$0xff] }
 0x140   :  { %1108 = vmatpush1.msra.mxu0 %v12060_v35  ;;  %1179 = vmatpush1.msra.mxu1 %v12061_v36  ;;  %v12118_v35 = vld [vmem:[#allocation83_spill] sm:$0xff]  ;;  %v12119_v36 = vld [vmem:[#allocation86_spill] sm:$0xff] }
 0x141   :  { %1109 = vmatprep.subr.mxu0 %v12062_v37  ;;  %1180 = vmatprep.subr.mxu1 %v12063_v38  ;;  %v12120_v37 = vld [vmem:[#allocation85_spill] sm:$0xff]  ;;  %v12121_v38 = vld [vmem:[#allocation87_spill] sm:$0xff] }
 0x142   :  { %1110 = vmatpush1.msra.mxu0 %v12064_v39  ;;  %1181 = vmatpush1.msra.mxu1 %v12065_v40  ;;  %v12122_v39 = vld [vmem:[#allocation88_spill] sm:$0xff]  ;;  %v12123_v40 = vld [vmem:[#allocation89_spill] sm:$0xff] }
 0x143   :  { %1111 = vmatprep.subr.mxu0 %v12066_v41  ;;  %1182 = vmatprep.subr.mxu1 %v12067_v42  ;;  %v654_v41 = vpop.f32.mrf.mxu0  ;;  %v872_v42 = vld [vmem:[%s11291_s6] sm:$0xf] }
 0x144   :  { %1112 = vmatpush1.msra.mxu0 %v12068_v43  ;;  %1183 = vmatpush1.msra.mxu1 %v12069_v44  ;;  %v725_v43 = vpop.f32.mrf.mxu1 }
 0x145   :  { %1113 = vmatprep.subr.mxu0 %v12070_v45  ;;  %1184 = vmatprep.subr.mxu1 %v12071_v47  ;;  %v656_v44 = vpop.f32.mrf.mxu0  ;;  %v12124_v45 = vsub.s32 0, %v6736_v10 }
 0x146   :  { %1114 = vmatpush1.msra.mxu0 %v12072_v49  ;;  %1185 = vmatpush1.msra.mxu1 %v12073_v50  ;;  %v727_v49 = vpop.f32.mrf.mxu1 }
 0x147   :  { %1115 = vmatprep.subr.mxu0 %v12074_v51  ;;  %1186 = vmatprep.subr.mxu1 %v12075_v53  ;;  %v6919_v47 = vrot.slane %v872_v42, %v12124_v45  ;;  %v12125_v51 = vsub.s32 1, %v6736_v10 }
 0x148   :  { %1116 = vmatpush1.msra.mxu0 %v12076_v55  ;;  %1187 = vmatpush1.msra.mxu1 %v12077_v57 }
 0x149   :  { %1117 = vmatprep.subr.mxu0 %v12078_v59  ;;  %1188 = vmatprep.subr.mxu1 %v12079_v61  ;;  %v6923_v53 = vrot.slane %v872_v42, %v12125_v51  ;;  %v12132_v51 = vld [vmem:[#allocation92_spill] sm:$0xff] }
 0x14a   :  { %1118 = vmatpush1.msra.mxu0 %v12080_v63  ;;  %1189 = vmatpush1.msra.mxu1 %v12081_v0 }
 0x14b   :  { %1119 = vmatprep.subr.mxu0 %v12082_v16  ;;  %1190 = vmatprep.subr.mxu1 %v12083_v4 }
 0x14c   :  { %1120 = vmatpush1.msra.mxu0 %v12084_v60  ;;  %1191 = vmatpush1.msra.mxu1 %v12085_v14  ;;  %v12126_v14 = vsub.s32 3, %v6736_v10 }
 0x14d   :  { %1121 = vmatprep.subr.mxu0 %v12086_v54  ;;  %1192 = vmatprep.subr.mxu1 %v12087_v23 }
 0x14e   :  { %1122 = vmatpush1.msra.mxu0 %v12088_v46  ;;  %1193 = vmatpush1.msra.mxu1 %v12089_v56  ;;  %v6929_v54 = vrot.slane %v872_v42, %v12126_v14  ;;  %v12127_v56 = vsub.s32 2, %v6736_v10  ;;  %v12128_v10 = vld [vmem:[#allocation154_spill] sm:$0xff] }
 0x14f   :  { %1123 = vmatprep.subr.mxu0 %v12090_v20  ;;  %1194 = vmatprep.subr.mxu1 %v12091_v18  ;;  %v12142_v14 = vld [vmem:[#allocation102_spill] sm:$0xff] }
 0x150   :  { %1124 = vmatpush1.msra.mxu0 %v12092_v58  ;;  %1195 = vmatpush1.msra.mxu1 %v12093_v52  ;;  %v6934_v20 = vrot.slane %v872_v42, %v12127_v56  ;;  %v12145_v56 = vld [vmem:[#allocation105_spill] sm:$0xff] }
 0x151   :  { %1125 = vmatprep.subr.mxu0 %v12094_v62  ;;  %1196 = vmatprep.subr.mxu1 %v12095_v48 }
 0x152   :  { %1126 = vmatpush1.msra.mxu0 %v12096_v6  ;;  %1197 = vmatpush1.msra.mxu1 %v12097_v3 }
 0x153   :  { %1127 = vmatprep.subr.mxu0 %v12098_v5  ;;  %1198 = vmatprep.subr.mxu1 %v12099_v7 }
 0x154   :  { %1128 = vmatpush1.msra.mxu0 %v12100_v9  ;;  %1199 = vmatpush1.msra.mxu1 %v12101_v11 }
 0x155   :  { %1129 = vmatprep.subr.mxu0 %v12102_v13  ;;  %1200 = vmatprep.subr.mxu1 %v12103_v15 }
 0x156   :  { %1130 = vmatpush1.msra.mxu0 %v12104_v17  ;;  %1201 = vmatpush1.msra.mxu1 %v12105_v19 }
 0x157   :  { %1131 = vmatprep.subr.mxu0 %v12106_v21  ;;  %1202 = vmatprep.subr.mxu1 %v12107_v22 }
 0x158   :  { %1132 = vmatpush1.msra.mxu0 %v12108_v24  ;;  %1203 = vmatpush1.msra.mxu1 %v12109_v25 }
 0x159   :  { %1133 = vmatprep.subr.mxu0 %v12110_v26  ;;  %1204 = vmatprep.subr.mxu1 %v12111_v27  ;;  %v12129_v26 = vld [vmem:[#allocation155_spill] sm:$0xff] }
 0x15a   :  { %1134 = vmatpush1.msra.mxu0 %v12112_v28  ;;  %1205 = vmatpush1.msra.mxu1 %v12113_v29 }
 0x15b   :  { %1135 = vmatprep.subr.mxu0 %v12114_v30  ;;  %1206 = vmatprep.subr.mxu1 %v12115_v32 }
 0x15c   :  { %1136 = vmatpush1.msra.mxu0 %v12116_v33  ;;  %1207 = vmatpush1.msra.mxu1 %v12117_v34 }
 0x15d   :  { %1137 = vmatprep.subr.mxu0 %v12118_v35  ;;  %1208 = vmatprep.subr.mxu1 %v12119_v36 }
 0x15e   :  { %1138 = vmatpush1.msra.mxu0 %v12120_v37  ;;  %1171 = vmatprep.mubr.f32.mxu0 %v12056_v31 }
 0x15f   :  { %1209 = vmatpush1.msra.mxu1 %v12121_v38  ;;  %1242 = vmatprep.mubr.f32.mxu1 %v12056_v31 }
 0x160   :  { %1252 = vmatprep.subr.mxu0 %v12122_v39  ;;  %1323 = vmatprep.subr.mxu1 %v12123_v40 }
 0x1dd   :  { %v796_v50 = vpop.f32.mrf.mxu0  ;;  %v867_v57 = vpop.f32.mrf.mxu1 }
 0x1de   :  { %v797_v55 = vadd.f32 %v796_v50, %v654_v41  ;;  %v868_v18 = vadd.f32 %v867_v57, %v725_v43  ;;  %v12131_v50 = vld [vmem:[#allocation91_spill] sm:$0xff]  ;;  %v12134_v57 = vld [vmem:[#allocation94_spill] sm:$0xff] }
 0x1df   :  { %v798_v59 = vpop.f32.mrf.mxu0  ;;  %v869_v4 = vpop.f32.mrf.mxu1 }
 0x1e0   :  { %v894_v61 = vadd.f32 %v6919_v47, %v797_v55  ;;  %v799_v63 = vadd.f32 %v798_v59, %v656_v44  ;;  %v870_v23 = vadd.f32 %v869_v4, %v727_v49  ;;  %v896_v62 = vadd.f32 %v6934_v20, %v868_v18  ;;  %v12130_v49 = vld [vmem:[#allocation90_spill] sm:$0xff]  ;;  %v12133_v55 = vld [vmem:[#allocation93_spill] sm:$0xff]  ;;  %v12135_v59 = vld [vmem:[#allocation95_spill] sm:$0xff] }
 0x1e1   :  { %v12140_v4 = vld [vmem:[#allocation100_spill] sm:$0xff] }
 0x1e2   :  { %v4522_v0 = vmul.f32 -1.442695, %v894_v61  ;;  %v895_v16 = vadd.f32 %v6923_v53, %v799_v63  ;;  %v897_v46 = vadd.f32 %v6929_v54, %v870_v23  ;;  %v12136_v61 = vld [vmem:[#allocation96_spill] sm:$0xff]  ;;  %v12137_v63 = vld [vmem:[#allocation97_spill] sm:$0xff]  ;;  %v12143_v23 = vld [vmem:[#allocation103_spill] sm:$0xff] }
 0x1e4   :  { %4639 = vpow2.f32 %v4522_v0  ;;  %v4523_v60 = vmul.f32 -1.442695, %v895_v16  ;;  %v4524_v58 = vmul.f32 -1.442695, %v897_v46  ;;  %v12138_v0 = vld [vmem:[#allocation98_spill] sm:$0xff]  ;;  %v12139_v16 = vld [vmem:[#allocation99_spill] sm:$0xff] }
 0x1e5   :  { %v12144_v46 = vld [vmem:[#allocation104_spill] sm:$0xff] }
 0x1e6   :  { %4641 = vpow2.f32 %v4523_v60  ;;  %v12141_v60 = vld [vmem:[#allocation101_spill] sm:$0xff] }
 0x1e7   :  { %4643 = vpow2.f32 %v4524_v58  ;;  %v12146_v58 = vld [vmem:[#allocation106_spill] sm:$0xff] }
 0x1f1   :  { %v4640_v52 = vpop.eup %4639 }
 0x1f2   :  { %v901_v48 = vadd.f32 1.0, %v4640_v52  ;;  %v12147_v52 = vld [vmem:[#allocation107_spill] sm:$0xff] }
 0x1f3   :  { %v4642_v6 = vpop.eup %4641 }
 0x1f4   :  { %4645 = vrcp.f32 %v901_v48  ;;  %v907_v3 = vadd.f32 1.0, %v4642_v6  ;;  %v4644_v7 = vpop.eup %4643  ;;  %v12148_v48 = vld [vmem:[#allocation108_spill] sm:$0xff]  ;;  %v12149_v6 = vld [vmem:[#allocation109_spill] sm:$0xff] }
 0x1f5   :  { %4647 = vtanh.f32 %v896_v62  ;;  %v914_v22 = vadd.f32 1.0, %v4644_v7  ;;  %v12150_v7 = vld [vmem:[#allocation110_spill] sm:$0xff] }
 0x1f6   :  { %4649 = vrcp.f32 %v907_v3 }
 0x1fe   :  { %v988_v5 = vpop.f32.mrf.mxu0  ;;  %v1059_v17 = vpop.f32.mrf.mxu1 }
 0x1ff   :  { %v1068_v9 = vrot.slane %v988_v5, 6  ;;  %v1070_v36 = vrot.slane %v1059_v17, 6  ;;  %v1100_v5 = vrot.slane %v6773_v12, 6  ;;  %v12153_v17 = vld [vmem:[#allocation113_spill] sm:$0xff] }
 0x200   :  { %v990_v11 = vpop.f32.mrf.mxu0  ;;  %v1061_v32 = vpop.f32.mrf.mxu1 }
 0x201   :  { %v4646_v13 = vpop.eup %4645  ;;  %v1076_v15 = vadd.f32 %v1068_v9, %v12128_v10  ;;  %v1069_v19 = vrot.slane %v990_v11, 6  ;;  %v1071_v34 = vrot.slane %v1061_v32, 6  ;;  %v1078_v39 = vadd.f32 %v1070_v36, %v6770_v2  ;;  %v12151_v9 = vld [vmem:[#allocation111_spill] sm:$0xff]  ;;  %v12161_v32 = vld [vmem:[#allocation121_spill] sm:$0xff]  ;;  %v12164_v36 = vld [vmem:[#allocation124_spill] sm:$0xff] }
 0x202   :  { %v4648_v21 = vpop.eup %4647 }
 0x203   :  { %v4650_v24 = vpop.eup %4649  ;;  %v4525_v25 = vmul.f32 -1.442695, %v1076_v15  ;;  %v1077_v27 = vadd.f32 %v1069_v19, %v12129_v26  ;;  %v918_v29 = vmul.f32 %v4648_v21, %v4646_v13  ;;  %v1079_v35 = vadd.f32 %v1071_v34, %v6767_v8  ;;  %v12152_v15 = vld [vmem:[#allocation112_spill] sm:$0xff]  ;;  %v12162_v34 = vld [vmem:[#allocation122_spill] sm:$0xff] }
 0x204   :  { %v917_v28 = vmul.f32 0.0, %v4650_v24  ;;  %v12155_v24 = vld [vmem:[#allocation115_spill] sm:$0xff] }
 0x205   :  { %4651 = vpow2.f32 %v4525_v25  ;;  %v4526_v30 = vmul.f32 -1.442695, %v1077_v27  ;;  %v4527_v37 = vmul.f32 -1.442695, %v1079_v35  ;;  %v12156_v25 = vld [vmem:[#allocation116_spill] sm:$0xff]  ;;  %v12157_v27 = vld [vmem:[#allocation117_spill] sm:$0xff] }
 0x206   :  { %v6939_v33 = vadd.f32 %v918_v29, %v917_v28  ;;  %4653 = vrcp.f32 %v914_v22  ;;  %v12154_v22 = vld [vmem:[#allocation114_spill] sm:$0xff]  ;;  %v12159_v29 = vld [vmem:[#allocation119_spill] sm:$0xff] }
 0x207   :  { %4655 = vpow2.f32 %v4526_v30  ;;  %v12158_v28 = vld [vmem:[#allocation118_spill] sm:$0xff]  ;;  %v12160_v30 = vld [vmem:[#allocation120_spill] sm:$0xff]  ;;  %v12163_v35 = vld [vmem:[#allocation123_spill] sm:$0xff] }
 0x208   :  { %4657 = vtanh.f32 %v6939_v33 }
 0x209   :  { %4659 = vpow2.f32 %v4527_v37  ;;  %v12165_v37 = vld [vmem:[#allocation125_spill] sm:$0xff] }
 0x212   :  { %v4652_v38 = vpop.eup %4651 }
 0x213   :  { %v4654_v40 = vpop.eup %4653  ;;  %v1083_v41 = vadd.f32 1.0, %v4652_v38  ;;  %v12166_v38 = vld [vmem:[#allocation126_spill] sm:$0xff] }
 0x214   :  { %v4656_v42 = vpop.eup %4655 }
 0x215   :  { %v4658_v43 = vpop.eup %4657  ;;  %4661 = vrcp.f32 %v1083_v41  ;;  %v1089_v44 = vadd.f32 1.0, %v4656_v42  ;;  %v12169_v41 = vld [vmem:[#allocation129_spill] sm:$0xff]  ;;  %v12170_v42 = vld [vmem:[#allocation130_spill] sm:$0xff] }
 0x216   :  { %4663 = vtanh.f32 %v1078_v39  ;;  %v921_v45 = vmul.f32 %v4658_v43, %v4654_v40  ;;  %v4660_v18 = vpop.eup %4659  ;;  %v12167_v39 = vld [vmem:[#allocation127_spill] sm:$0xff]  ;;  %v12168_v40 = vld [vmem:[#allocation128_spill] sm:$0xff] }
 0x217   :  { %4665 = vrcp.f32 %v1089_v44  ;;  %v1096_v13 = vadd.f32 1.0, %v4660_v18  ;;  %v12171_v43 = vld [vmem:[#allocation131_spill] sm:$0xff]  ;;  %v12172_v44 = vld [vmem:[#allocation132_spill] sm:$0xff] }
 0x218   :  { %1172 = vmatmul.mubr.f32.vlgmr.msra.gmra.mxu0 %v921_v45  ;;  %1243 = vmatmul.mubr.f32.vlgmr.msra.gmra.mxu1 %v921_v45  ;;  %v12173_v45 = vld [vmem:[#allocation133_spill] sm:$0xff]  ;;  %v12188_v18 = vld [vmem:[#allocation148_spill] sm:$0xff] }
 0x219   :  { %1253 = vmatpush1.msra.mxu0 %v12130_v49  ;;  %1324 = vmatpush1.msra.mxu1 %v12131_v50  ;;  %4667 = vrcp.f32 %v1096_v13  ;;  %v12174_v49 = vld [vmem:[#allocation134_spill] sm:$0xff]  ;;  %v12175_v50 = vld [vmem:[#allocation135_spill] sm:$0xff] }
 0x21a   :  { %1254 = vmatprep.subr.mxu0 %v12132_v51  ;;  %1325 = vmatprep.subr.mxu1 %v12133_v55  ;;  %v12176_v51 = vld [vmem:[#allocation136_spill] sm:$0xff]  ;;  %v12177_v55 = vld [vmem:[#allocation137_spill] sm:$0xff] }
 0x21b   :  { %1255 = vmatpush1.msra.mxu0 %v12134_v57  ;;  %1326 = vmatpush1.msra.mxu1 %v12135_v59  ;;  %v12178_v57 = vld [vmem:[#allocation138_spill] sm:$0xff]  ;;  %v12179_v59 = vld [vmem:[#allocation139_spill] sm:$0xff] }
 0x21c   :  { %1256 = vmatprep.subr.mxu0 %v12136_v61  ;;  %1327 = vmatprep.subr.mxu1 %v12137_v63  ;;  %v12180_v61 = vld [vmem:[#allocation140_spill] sm:$0xff]  ;;  %v12181_v63 = vld [vmem:[#allocation141_spill] sm:$0xff] }
 0x21d   :  { %1257 = vmatpush1.msra.mxu0 %v12138_v0  ;;  %1328 = vmatpush1.msra.mxu1 %v12139_v16  ;;  %v12182_v0 = vld [vmem:[#allocation142_spill] sm:$0xff]  ;;  %v12183_v16 = vld [vmem:[#allocation143_spill] sm:$0xff] }
 0x21e   :  { %1258 = vmatprep.subr.mxu0 %v12140_v4  ;;  %1329 = vmatprep.subr.mxu1 %v12141_v60  ;;  %v12184_v4 = vld [vmem:[#allocation144_spill] sm:$0xff]  ;;  %v12185_v60 = vld [vmem:[#allocation145_spill] sm:$0xff] }
 0x21f   :  { %1259 = vmatpush1.msra.mxu0 %v12142_v14  ;;  %1330 = vmatpush1.msra.mxu1 %v12143_v23  ;;  %v12186_v23 = vld [vmem:[#allocation146_spill] sm:$0xff]  ;;  %v7049_v13 = vld [vmem:[%s11287_s2 + $0x1d8] sm:$0xff] }
 0x220   :  { %1260 = vmatprep.subr.mxu0 %v12144_v46  ;;  %1331 = vmatprep.subr.mxu1 %v12145_v56  ;;  %v12187_v46 = vld [vmem:[#allocation147_spill] sm:$0xff] }
 0x221   :  { %1261 = vmatpush1.msra.mxu0 %v12146_v58  ;;  %1332 = vmatpush1.msra.mxu1 %v12147_v52  ;;  %v12189_v58 = vld [vmem:[#allocation149_spill] sm:$0xff]  ;;  %v12190_v52 = vld [vmem:[#allocation150_spill] sm:$0xff] }
 0x222   :  { %v4662_v62 = vpop.eup %4661  ;;  %1262 = vmatprep.subr.mxu0 %v12148_v48  ;;  %1333 = vmatprep.subr.mxu1 %v12149_v6  ;;  %v7015_v6 = vld [vmem:[%s11287_s2 + $0x1e8] sm:$0xff] }
 0x223   :  { %v4664_v3 = vpop.eup %4663  ;;  %1263 = vmatpush1.msra.mxu0 %v12150_v7  ;;  %1334 = vmatpush1.msra.mxu1 %v12151_v9  ;;  %v7031_v7 = vld [vmem:[%s11287_s2 + $0x1e0] sm:$0xff]  ;;  %v7037_v9 = vld [vmem:[%s11287_s2 + $0x1f0] sm:$0xff] }
 0x224   :  { %v4666_v11 = vpop.eup %4665  ;;  %1264 = vmatprep.subr.mxu0 %v12152_v15  ;;  %1335 = vmatprep.subr.mxu1 %v12153_v17  ;;  %v1103_v19 = vmul.f32 %v4664_v3, %v4662_v62  ;;  %v12191_v62 = vld [vmem:[#allocation151_spill] sm:$0xff]  ;;  %v7055_v15 = vld [vmem:[%s11287_s2 + $0x1c0] sm:$0xff] }
 0x225   :  { %v1102_v21 = vmul.f32 %v4666_v11, %v1100_v5  ;;  %1265 = vmatpush1.msra.mxu0 %v12154_v22  ;;  %1336 = vmatpush1.msra.mxu1 %v12155_v24  ;;  %v7021_v3 = vld [vmem:[%s11287_s2 + $0x1f8] sm:$0xff]  ;;  %v7043_v11 = vld [vmem:[%s11287_s2 + $0x1c8] sm:$0xff]  ;;  %v7061_v17 = vld [vmem:[%s11287_s2 + $0x1d0] sm:$0xff] }
 0x226   :  { %1266 = vmatprep.subr.mxu0 %v12156_v25  ;;  %1337 = vmatprep.subr.mxu1 %v12157_v27  ;;  %v4668_v14 = vpop.eup %4667  ;;  %v7079_v22 = vld [vmem:[%s11287_s2 + $0x1a0] sm:$0xff]  ;;  %v7085_v24 = vld [vmem:[%s11287_s2 + $0x1b0] sm:$0xff]  ;;  %v7091_v25 = vld [vmem:[%s11287_s2 + $0x188] sm:$0xff] }
 0x227   :  { %v6973_v12 = vadd.f32 %v1103_v19, %v1102_v21  ;;  %1267 = vmatpush1.msra.mxu0 %v12158_v28  ;;  %1338 = vmatpush1.msra.mxu1 %v12159_v29  ;;  %v7067_v19 = vld [vmem:[%s11287_s2 + $0x1a8] sm:$0xff]  ;;  %v7073_v21 = vld [vmem:[%s11287_s2 + $0x1b8] sm:$0xff]  ;;  %v7103_v28 = vld [vmem:[%s11287_s2 + $0x180] sm:$0xff] }
 0x228   :  { %1268 = vmatprep.subr.mxu0 %v12160_v30  ;;  %1339 = vmatprep.subr.mxu1 %v12161_v32  ;;  %v7097_v27 = vld [vmem:[%s11287_s2 + $0x198] sm:$0xff]  ;;  %v7109_v29 = vld [vmem:[%s11287_s2 + $0x190] sm:$0xff]  ;;  %v7115_v30 = vld [vmem:[%s11287_s2 + $0x168] sm:$0xff] }
 0x229   :  { %1269 = vmatpush1.msra.mxu0 %v12162_v34  ;;  %1340 = vmatpush1.msra.mxu1 %v12163_v35  ;;  %4669 = vtanh.f32 %v6973_v12  ;;  %v7121_v32 = vld [vmem:[%s11287_s2 + $0x178] sm:$0xff]  ;;  %v7127_v34 = vld [vmem:[%s11287_s2 + $0x160] sm:$0xff]  ;;  %v7133_v35 = vld [vmem:[%s11287_s2 + $0x170] sm:$0xff] }
 0x22a   :  { %1270 = vmatprep.subr.mxu0 %v12164_v36  ;;  %1341 = vmatprep.subr.mxu1 %v12165_v37  ;;  %v7139_v36 = vld [vmem:[%s11287_s2 + $0x148] sm:$0xff]  ;;  %v7145_v37 = vld [vmem:[%s11287_s2 + $0x158] sm:$0xff] }
 0x22b   :  { %1271 = vmatpush1.msra.mxu0 %v12166_v38  ;;  %1342 = vmatpush1.msra.mxu1 %v12167_v39  ;;  %v7151_v38 = vld [vmem:[%s11287_s2 + $0x140] sm:$0xff]  ;;  %v7157_v39 = vld [vmem:[%s11287_s2 + $0x150] sm:$0xff] }
 0x22c   :  { %1272 = vmatprep.subr.mxu0 %v12168_v40  ;;  %1343 = vmatprep.subr.mxu1 %v12169_v41  ;;  %v7163_v40 = vld [vmem:[%s11287_s2 + $0x128] sm:$0xff]  ;;  %v7169_v41 = vld [vmem:[%s11287_s2 + $0x138] sm:$0xff] }
 0x22d   :  { %1273 = vmatpush1.msra.mxu0 %v12170_v42  ;;  %1344 = vmatpush1.msra.mxu1 %v12171_v43  ;;  %v7175_v42 = vld [vmem:[%s11287_s2 + $0x120] sm:$0xff]  ;;  %v7181_v43 = vld [vmem:[%s11287_s2 + $0x130] sm:$0xff] }
 0x22e   :  { %1274 = vmatprep.subr.mxu0 %v12172_v44  ;;  %1345 = vmatprep.subr.mxu1 %v12173_v45  ;;  %v7187_v44 = vld [vmem:[%s11287_s2 + $0x108] sm:$0xff]  ;;  %v7193_v45 = vld [vmem:[%s11287_s2 + $0x118] sm:$0xff] }
 0x22f   :  { %1275 = vmatpush1.msra.mxu0 %v12174_v49  ;;  %1346 = vmatpush1.msra.mxu1 %v12175_v50  ;;  %v7199_v49 = vld [vmem:[%s11287_s2 + $0x100] sm:$0xff]  ;;  %v7205_v50 = vld [vmem:[%s11287_s2 + $0x110] sm:$0xff] }
 0x230   :  { %1276 = vmatprep.subr.mxu0 %v12176_v51  ;;  %1347 = vmatprep.subr.mxu1 %v12177_v55  ;;  %v7211_v51 = vld [vmem:[%s11287_s2 + $0xe8] sm:$0xff]  ;;  %v7217_v55 = vld [vmem:[%s11287_s2 + $0xf8] sm:$0xff] }
 0x231   :  { %1277 = vmatpush1.msra.mxu0 %v12178_v57  ;;  %1348 = vmatpush1.msra.mxu1 %v12179_v59  ;;  %12192 = vst [vmem:[#allocation14_spill] sm:$0xff] %v7217_v55  ;;  %v7223_v57 = vld [vmem:[%s11287_s2 + $0xe0] sm:$0xff]  ;;  %v7229_v59 = vld [vmem:[%s11287_s2 + $0xf0] sm:$0xff] }
 0x232   :  { %1278 = vmatprep.subr.mxu0 %v12180_v61  ;;  %1349 = vmatprep.subr.mxu1 %v12181_v63  ;;  %12193 = vst [vmem:[#allocation5_spill] sm:$0xff] %v7223_v57  ;;  %12194 = vst [vmem:[#allocation15_spill] sm:$0xff] %v7229_v59  ;;  %v7235_v61 = vld [vmem:[%s11287_s2 + $0xc8] sm:$0xff]  ;;  %v7241_v63 = vld [vmem:[%s11287_s2 + $0xd8] sm:$0xff] }
 0x233   :  { %1279 = vmatpush1.msra.mxu0 %v12182_v0  ;;  %1350 = vmatpush1.msra.mxu1 %v12183_v16  ;;  %12195 = vst [vmem:[#allocation6_spill] sm:$0xff] %v7235_v61  ;;  %12196 = vst [vmem:[#allocation16_spill] sm:$0xff] %v7241_v63  ;;  %v7247_v0 = vld [vmem:[%s11287_s2 + $0xc0] sm:$0xff]  ;;  %v7253_v16 = vld [vmem:[%s11287_s2 + $0xd0] sm:$0xff] }
 0x234   :  { %1280 = vmatprep.subr.mxu0 %v12184_v4  ;;  %1351 = vmatprep.subr.mxu1 %v12185_v60  ;;  %12197 = vst [vmem:[#allocation7_spill] sm:$0xff] %v7247_v0  ;;  %12198 = vst [vmem:[#allocation17_spill] sm:$0xff] %v7253_v16  ;;  %v7259_v4 = vld [vmem:[%s11287_s2 + $0xa8] sm:$0xff]  ;;  %v7265_v60 = vld [vmem:[%s11287_s2 + $0xb8] sm:$0xff] }
 0x235   :  { %1281 = vmatpush1.msra.mxu0 %v12186_v23  ;;  %1352 = vmatpush1.msra.mxu1 %v12187_v46  ;;  %12199 = vst [vmem:[#allocation8_spill] sm:$0xff] %v7259_v4  ;;  %12200 = vst [vmem:[#allocation18_spill] sm:$0xff] %v7265_v60  ;;  %v7277_v23 = vld [vmem:[%s11287_s2 + $0xb0] sm:$0xff]  ;;  %v7283_v46 = vld [vmem:[%s11287_s2 + $0x88] sm:$0xff] }
 0x236   :  { %v4670_v56 = vpop.eup %4669  ;;  %1282 = vmatprep.subr.mxu0 %v12188_v18  ;;  %1353 = vmatprep.subr.mxu1 %v12189_v58  ;;  %12202 = vst [vmem:[#allocation19_spill] sm:$0xff] %v7277_v23  ;;  %12203 = vst [vmem:[#allocation10_spill] sm:$0xff] %v7283_v46  ;;  %v7295_v18 = vld [vmem:[%s11287_s2 + $0x80] sm:$0xff]  ;;  %v7301_v58 = vld [vmem:[%s11287_s2 + $0x90] sm:$0xff] }
 0x237   :  { %1283 = vmatpush1.msra.mxu0 %v12190_v52  ;;  %1354 = vmatpush1.msra.mxu1 %v12191_v62  ;;  %v1106_v48 = vmul.f32 %v4670_v56, %v4668_v14  ;;  %v7271_v14 = vld [vmem:[%s11287_s2 + $0xa0] sm:$0xff]  ;;  %v7289_v56 = vld [vmem:[%s11287_s2 + $0x98] sm:$0xff]  ;;  %12205 = vst [vmem:[#allocation11_spill] sm:$0xff] %v7295_v18  ;;  %12206 = vst [vmem:[#allocation21_spill] sm:$0xff] %v7301_v58 }
 0x238   :  { %1316 = vmatprep.mubr.f32.mxu0 %v12056_v31  ;;  %1387 = vmatprep.mubr.f32.mxu1 %v12056_v31  ;;  %12201 = vst [vmem:[#allocation9_spill] sm:$0xff] %v7271_v14  ;;  %12204 = vst [vmem:[#allocation20_spill] sm:$0xff] %v7289_v56  ;;  %v7307_v52 = vld [vmem:[%s11287_s2 + $0x68] sm:$0xff]  ;;  %v7313_v62 = vld [vmem:[%s11287_s2 + $0x78] sm:$0xff] }
 0x239   :  { %1422 = vmatprep.subr.mxu0 %v7015_v6  ;;  %1493 = vmatprep.subr.mxu1 %v7021_v3  ;;  %v7024_v5 = vrot.slane %v1106_v48, 2  ;;  %12207 = vst [vmem:[#allocation12_spill] sm:$0xff] %v7307_v52  ;;  %12208 = vst [vmem:[#allocation22_spill] sm:$0xff] %v7313_v62  ;;  %v7319_v48 = vld [vmem:[%s11287_s2 + $0x60] sm:$0xff] }
 0x23a   :  { %12209 = vst [vmem:[#allocation13_spill] sm:$0xff] %v7319_v48 }
 0x23b   :  { %1317 = vmatmul.mubr.f32.vlgmr.msra.gmra.mxu0 %v7024_v5  ;;  %1388 = vmatmul.mubr.f32.vlgmr.msra.gmra.mxu1 %v7024_v5 }
 0x23c   :  { %1423 = vmatpush1.msra.mxu0 %v7031_v7  ;;  %1494 = vmatpush1.msra.mxu1 %v7037_v9 }
 0x23d   :  { %1424 = vmatprep.subr.mxu0 %v7043_v11  ;;  %1495 = vmatprep.subr.mxu1 %v7049_v13 }
 0x23e   :  { %1425 = vmatpush1.msra.mxu0 %v7055_v15  ;;  %1496 = vmatpush1.msra.mxu1 %v7061_v17 }
 0x23f   :  { %1426 = vmatprep.subr.mxu0 %v7067_v19  ;;  %1497 = vmatprep.subr.mxu1 %v7073_v21 }
 0x240   :  { %1427 = vmatpush1.msra.mxu0 %v7079_v22  ;;  %1498 = vmatpush1.msra.mxu1 %v7085_v24 }
 0x241   :  { %1428 = vmatprep.subr.mxu0 %v7091_v25  ;;  %1499 = vmatprep.subr.mxu1 %v7097_v27 }
 0x242   :  { %1429 = vmatpush1.msra.mxu0 %v7103_v28  ;;  %1500 = vmatpush1.msra.mxu1 %v7109_v29 }
 0x243   :  { %1430 = vmatprep.subr.mxu0 %v7115_v30  ;;  %1501 = vmatprep.subr.mxu1 %v7121_v32 }
 0x244   :  { %1431 = vmatpush1.msra.mxu0 %v7127_v34  ;;  %1502 = vmatpush1.msra.mxu1 %v7133_v35 }
 0x245   :  { %1432 = vmatprep.subr.mxu0 %v7139_v36  ;;  %1503 = vmatprep.subr.mxu1 %v7145_v37 }
 0x246   :  { %1433 = vmatpush1.msra.mxu0 %v7151_v38  ;;  %1504 = vmatpush1.msra.mxu1 %v7157_v39 }
 0x247   :  { %1434 = vmatprep.subr.mxu0 %v7163_v40  ;;  %1505 = vmatprep.subr.mxu1 %v7169_v41 }
 0x248   :  { %1435 = vmatpush1.msra.mxu0 %v7175_v42  ;;  %1506 = vmatpush1.msra.mxu1 %v7181_v43 }
 0x249   :  { %1436 = vmatprep.subr.mxu0 %v7187_v44  ;;  %1507 = vmatprep.subr.mxu1 %v7193_v45 }
 0x24a   :  { %1437 = vmatpush1.msra.mxu0 %v7199_v49  ;;  %1508 = vmatpush1.msra.mxu1 %v7205_v50 }
 0x24b   :  { %1438 = vmatprep.subr.mxu0 %v7211_v51  ;;  %1509 = vmatprep.subr.mxu1 %v7217_v55 }
 0x24c   :  { %1439 = vmatpush1.msra.mxu0 %v7223_v57  ;;  %1510 = vmatpush1.msra.mxu1 %v7229_v59 }
 0x24d   :  { %1440 = vmatprep.subr.mxu0 %v7235_v61  ;;  %1511 = vmatprep.subr.mxu1 %v7241_v63 }
 0x24e   :  { %1441 = vmatpush1.msra.mxu0 %v7247_v0  ;;  %1512 = vmatpush1.msra.mxu1 %v7253_v16 }
 0x24f   :  { %1442 = vmatprep.subr.mxu0 %v7259_v4  ;;  %1513 = vmatprep.subr.mxu1 %v7265_v60 }
 0x250   :  { %1443 = vmatpush1.msra.mxu0 %v7271_v14  ;;  %1514 = vmatpush1.msra.mxu1 %v7277_v23 }
 0x251   :  { %1444 = vmatprep.subr.mxu0 %v7283_v46  ;;  %1515 = vmatprep.subr.mxu1 %v7289_v56 }
 0x252   :  { %1445 = vmatpush1.msra.mxu0 %v7295_v18  ;;  %1516 = vmatpush1.msra.mxu1 %v7301_v58 }
 0x253   :  { %1446 = vmatprep.subr.mxu0 %v7307_v52  ;;  %1517 = vmatprep.subr.mxu1 %v7313_v62  ;;  %v7331_v52 = vld [vmem:[%s11287_s2 + $0x48] sm:$0xff]  ;;  %v7337_v62 = vld [vmem:[%s11287_s2 + $0x58] sm:$0xff] }
 0x254   :  { %1447 = vmatpush1.msra.mxu0 %v7319_v48  ;;  %1518 = vmatpush1.msra.mxu1 %v7325_v1  ;;  %12211 = vst [vmem:[#allocation24_spill] sm:$0xff] %v7331_v52  ;;  %12212 = vst [vmem:[#allocation26_spill] sm:$0xff] %v7337_v62  ;;  %v7343_v48 = vld [vmem:[%s11287_s2 + $0x40] sm:$0xff]  ;;  %v7349_v1 = vld [vmem:[%s11287_s2 + $0x50] sm:$0xff] }
 0x255   :  { %1448 = vmatprep.subr.mxu0 %v7331_v52  ;;  %1519 = vmatprep.subr.mxu1 %v7337_v62  ;;  %12213 = vst [vmem:[#allocation25_spill] sm:$0xff] %v7343_v48  ;;  %12214 = vst [vmem:[#allocation28_spill] sm:$0xff] %v7349_v1  ;;  %v7355_v52 = vld [vmem:[%s11287_s2 + $0x28] sm:$0xff]  ;;  %v7361_v62 = vld [vmem:[%s11287_s2 + $0x38] sm:$0xff] }
 0x256   :  { %1449 = vmatpush1.msra.mxu0 %v7343_v48  ;;  %1520 = vmatpush1.msra.mxu1 %v7349_v1  ;;  %12215 = vst [vmem:[#allocation27_spill] sm:$0xff] %v7355_v52  ;;  %12216 = vst [vmem:[#allocation30_spill] sm:$0xff] %v7361_v62  ;;  %v7367_v48 = vld [vmem:[%s11287_s2 + $0x20] sm:$0xff]  ;;  %v7373_v1 = vld [vmem:[%s11287_s2 + $0x30] sm:$0xff] }
 0x257   :  { %1450 = vmatprep.subr.mxu0 %v7355_v52  ;;  %1521 = vmatprep.subr.mxu1 %v7361_v62  ;;  %12217 = vst [vmem:[#allocation29_spill] sm:$0xff] %v7367_v48  ;;  %12218 = vst [vmem:[#allocation32_spill] sm:$0xff] %v7373_v1  ;;  %v7379_v52 = vld [vmem:[%s11287_s2 + $0x8] sm:$0xff]  ;;  %v7385_v62 = vld [vmem:[%s11287_s2 + $0x18] sm:$0xff] }
 0x258   :  { %1451 = vmatpush1.msra.mxu0 %v7367_v48  ;;  %1522 = vmatpush1.msra.mxu1 %v7373_v1  ;;  %12219 = vst [vmem:[#allocation31_spill] sm:$0xff] %v7379_v52  ;;  %12220 = vst [vmem:[#allocation34_spill] sm:$0xff] %v7385_v62  ;;  %v7391_v48 = vld [vmem:[%s11287_s2] sm:$0xff] }
 0x259   :  { %1452 = vmatprep.subr.mxu0 %v7379_v52  ;;  %1523 = vmatprep.subr.mxu1 %v7385_v62  ;;  %12221 = vst [vmem:[#allocation33_spill] sm:$0xff] %v7391_v48  ;;  %v7398_v52 = vld [vmem:[%s11287_s2 + $0x10] sm:$0xff]  ;;  %v7407_v62 = vld [vmem:[%s11290_s5 + $0x1e8] sm:$0xff] }
 0x25a   :  { %1453 = vmatpush1.msra.mxu0 %v7391_v48  ;;  %1486 = vmatprep.mubr.f32.mxu0 %v12056_v31  ;;  %12222 = vst [vmem:[#allocation36_spill] sm:$0xff] %v7398_v52  ;;  %12223 = vst [vmem:[#allocation35_spill] sm:$0xff] %v7407_v62  ;;  %v7413_v48 = vld [vmem:[%s11290_s5 + $0x1f8] sm:$0xff] }
 0x25b   :  { %1524 = vmatpush1.msra.mxu1 %v7398_v52  ;;  %1557 = vmatprep.mubr.f32.mxu1 %v12056_v31  ;;  %12224 = vst [vmem:[#allocation37_spill] sm:$0xff] %v7413_v48  ;;  %v7419_v52 = vld [vmem:[%s11290_s5 + $0x1e0] sm:$0xff] }
 0x25c   :  { %1487 = vmatmul.mubr.f32.vlgmr.msra.gmra.mxu0 %v7024_v5  ;;  %1558 = vmatmul.mubr.f32.vlgmr.msra.gmra.mxu1 %v7024_v5  ;;  %12225 = vst [vmem:[#allocation38_spill] sm:$0xff] %v7419_v52  ;;  %v7425_v5 = vld [vmem:[%s11290_s5 + $0x1f0] sm:$0xff] }
 0x25d   :  { %1607 = vmatprep.subr.mxu0 %v7407_v62  ;;  %1678 = vmatprep.subr.mxu1 %v7413_v48  ;;  %12226 = vst [vmem:[#allocation39_spill] sm:$0xff] %v7425_v5  ;;  %v7431_v62 = vld [vmem:[%s11290_s5 + $0x1c8] sm:$0xff]  ;;  %v7437_v48 = vld [vmem:[%s11290_s5 + $0x1d8] sm:$0xff] }
 0x25e   :  { %1608 = vmatpush1.msra.mxu0 %v7419_v52  ;;  %1679 = vmatpush1.msra.mxu1 %v7425_v5  ;;  %12227 = vst [vmem:[#allocation40_spill] sm:$0xff] %v7431_v62  ;;  %12228 = vst [vmem:[#allocation42_spill] sm:$0xff] %v7437_v48  ;;  %v7443_v52 = vld [vmem:[%s11290_s5 + $0x1c0] sm:$0xff]  ;;  %v7449_v5 = vld [vmem:[%s11290_s5 + $0x1d0] sm:$0xff] }
 0x25f   :  { %1609 = vmatprep.subr.mxu0 %v7431_v62  ;;  %1680 = vmatprep.subr.mxu1 %v7437_v48  ;;  %12229 = vst [vmem:[#allocation41_spill] sm:$0xff] %v7443_v52  ;;  %12230 = vst [vmem:[#allocation44_spill] sm:$0xff] %v7449_v5  ;;  %v7455_v62 = vld [vmem:[%s11290_s5 + $0x1a8] sm:$0xff]  ;;  %v7461_v48 = vld [vmem:[%s11290_s5 + $0x1b8] sm:$0xff] }
 0x260   :  { %1610 = vmatpush1.msra.mxu0 %v7443_v52  ;;  %1681 = vmatpush1.msra.mxu1 %v7449_v5  ;;  %12231 = vst [vmem:[#allocation43_spill] sm:$0xff] %v7455_v62  ;;  %12232 = vst [vmem:[#allocation46_spill] sm:$0xff] %v7461_v48  ;;  %v7467_v52 = vld [vmem:[%s11290_s5 + $0x1a0] sm:$0xff]  ;;  %v7473_v5 = vld [vmem:[%s11290_s5 + $0x1b0] sm:$0xff] }
 0x261   :  { %1611 = vmatprep.subr.mxu0 %v7455_v62  ;;  %1682 = vmatprep.subr.mxu1 %v7461_v48  ;;  %12233 = vst [vmem:[#allocation45_spill] sm:$0xff] %v7467_v52  ;;  %12234 = vst [vmem:[#allocation48_spill] sm:$0xff] %v7473_v5  ;;  %v7479_v62 = vld [vmem:[%s11290_s5 + $0x188] sm:$0xff]  ;;  %v7485_v48 = vld [vmem:[%s11290_s5 + $0x198] sm:$0xff] }
 0x262   :  { %1612 = vmatpush1.msra.mxu0 %v7467_v52  ;;  %1683 = vmatpush1.msra.mxu1 %v7473_v5  ;;  %12235 = vst [vmem:[#allocation47_spill] sm:$0xff] %v7479_v62  ;;  %12236 = vst [vmem:[#allocation50_spill] sm:$0xff] %v7485_v48  ;;  %v7491_v52 = vld [vmem:[%s11290_s5 + $0x180] sm:$0xff]  ;;  %v7497_v5 = vld [vmem:[%s11290_s5 + $0x190] sm:$0xff] }
 0x263   :  { %1613 = vmatprep.subr.mxu0 %v7479_v62  ;;  %1684 = vmatprep.subr.mxu1 %v7485_v48  ;;  %12237 = vst [vmem:[#allocation49_spill] sm:$0xff] %v7491_v52  ;;  %12238 = vst [vmem:[#allocation52_spill] sm:$0xff] %v7497_v5  ;;  %v7503_v62 = vld [vmem:[%s11290_s5 + $0x168] sm:$0xff]  ;;  %v7509_v48 = vld [vmem:[%s11290_s5 + $0x178] sm:$0xff] }
 0x264   :  { %1614 = vmatpush1.msra.mxu0 %v7491_v52  ;;  %1685 = vmatpush1.msra.mxu1 %v7497_v5  ;;  %12239 = vst [vmem:[#allocation51_spill] sm:$0xff] %v7503_v62  ;;  %12240 = vst [vmem:[#allocation54_spill] sm:$0xff] %v7509_v48  ;;  %v7515_v52 = vld [vmem:[%s11290_s5 + $0x160] sm:$0xff]  ;;  %v7521_v5 = vld [vmem:[%s11290_s5 + $0x170] sm:$0xff] }
 0x265   :  { %1615 = vmatprep.subr.mxu0 %v7503_v62  ;;  %1686 = vmatprep.subr.mxu1 %v7509_v48  ;;  %12241 = vst [vmem:[#allocation53_spill] sm:$0xff] %v7515_v52  ;;  %12242 = vst [vmem:[#allocation56_spill] sm:$0xff] %v7521_v5  ;;  %v7527_v62 = vld [vmem:[%s11290_s5 + $0x148] sm:$0xff]  ;;  %v7533_v48 = vld [vmem:[%s11290_s5 + $0x158] sm:$0xff] }
 0x266   :  { %1616 = vmatpush1.msra.mxu0 %v7515_v52  ;;  %1687 = vmatpush1.msra.mxu1 %v7521_v5  ;;  %12243 = vst [vmem:[#allocation55_spill] sm:$0xff] %v7527_v62  ;;  %12244 = vst [vmem:[#allocation58_spill] sm:$0xff] %v7533_v48  ;;  %v7539_v52 = vld [vmem:[%s11290_s5 + $0x140] sm:$0xff]  ;;  %v7545_v5 = vld [vmem:[%s11290_s5 + $0x150] sm:$0xff] }
 0x267   :  { %1617 = vmatprep.subr.mxu0 %v7527_v62  ;;  %1688 = vmatprep.subr.mxu1 %v7533_v48  ;;  %12245 = vst [vmem:[#allocation57_spill] sm:$0xff] %v7539_v52  ;;  %12246 = vst [vmem:[#allocation60_spill] sm:$0xff] %v7545_v5  ;;  %v7551_v62 = vld [vmem:[%s11290_s5 + $0x128] sm:$0xff]  ;;  %v7557_v48 = vld [vmem:[%s11290_s5 + $0x138] sm:$0xff] }
 0x268   :  { %1618 = vmatpush1.msra.mxu0 %v7539_v52  ;;  %1689 = vmatpush1.msra.mxu1 %v7545_v5  ;;  %12247 = vst [vmem:[#allocation59_spill] sm:$0xff] %v7551_v62  ;;  %12248 = vst [vmem:[#allocation62_spill] sm:$0xff] %v7557_v48  ;;  %v7563_v52 = vld [vmem:[%s11290_s5 + $0x120] sm:$0xff]  ;;  %v7569_v5 = vld [vmem:[%s11290_s5 + $0x130] sm:$0xff] }
 0x269   :  { %1619 = vmatprep.subr.mxu0 %v7551_v62  ;;  %1690 = vmatprep.subr.mxu1 %v7557_v48  ;;  %12249 = vst [vmem:[#allocation61_spill] sm:$0xff] %v7563_v52  ;;  %12250 = vst [vmem:[#allocation64_spill] sm:$0xff] %v7569_v5  ;;  %v7575_v62 = vld [vmem:[%s11290_s5 + $0x108] sm:$0xff]  ;;  %v7581_v48 = vld [vmem:[%s11290_s5 + $0x118] sm:$0xff] }
 0x26a   :  { %1620 = vmatpush1.msra.mxu0 %v7563_v52  ;;  %1691 = vmatpush1.msra.mxu1 %v7569_v5  ;;  %12251 = vst [vmem:[#allocation63_spill] sm:$0xff] %v7575_v62  ;;  %12252 = vst [vmem:[#allocation66_spill] sm:$0xff] %v7581_v48  ;;  %v7587_v52 = vld [vmem:[%s11290_s5 + $0x100] sm:$0xff]  ;;  %v7593_v5 = vld [vmem:[%s11290_s5 + $0x110] sm:$0xff] }
 0x26b   :  { %1621 = vmatprep.subr.mxu0 %v7575_v62  ;;  %1692 = vmatprep.subr.mxu1 %v7581_v48  ;;  %12253 = vst [vmem:[#allocation65_spill] sm:$0xff] %v7587_v52  ;;  %12254 = vst [vmem:[#allocation68_spill] sm:$0xff] %v7593_v5  ;;  %v7599_v62 = vld [vmem:[%s11290_s5 + $0xe8] sm:$0xff]  ;;  %v7605_v48 = vld [vmem:[%s11290_s5 + $0xf8] sm:$0xff] }
 0x26c   :  { %1622 = vmatpush1.msra.mxu0 %v7587_v52  ;;  %1693 = vmatpush1.msra.mxu1 %v7593_v5  ;;  %12255 = vst [vmem:[#allocation67_spill] sm:$0xff] %v7599_v62  ;;  %12256 = vst [vmem:[#allocation70_spill] sm:$0xff] %v7605_v48  ;;  %v7611_v52 = vld [vmem:[%s11290_s5 + $0xe0] sm:$0xff]  ;;  %v7617_v5 = vld [vmem:[%s11290_s5 + $0xf0] sm:$0xff] }
 0x26d   :  { %1623 = vmatprep.subr.mxu0 %v7599_v62  ;;  %1694 = vmatprep.subr.mxu1 %v7605_v48  ;;  %12257 = vst [vmem:[#allocation69_spill] sm:$0xff] %v7611_v52  ;;  %12258 = vst [vmem:[#allocation72_spill] sm:$0xff] %v7617_v5  ;;  %v7623_v62 = vld [vmem:[%s11290_s5 + $0xc8] sm:$0xff]  ;;  %v7629_v48 = vld [vmem:[%s11290_s5 + $0xd8] sm:$0xff] }
 0x26e   :  { %1624 = vmatpush1.msra.mxu0 %v7611_v52  ;;  %1695 = vmatpush1.msra.mxu1 %v7617_v5  ;;  %12259 = vst [vmem:[#allocation71_spill] sm:$0xff] %v7623_v62  ;;  %12260 = vst [vmem:[#allocation74_spill] sm:$0xff] %v7629_v48  ;;  %v7635_v52 = vld [vmem:[%s11290_s5 + $0xc0] sm:$0xff]  ;;  %v7641_v5 = vld [vmem:[%s11290_s5 + $0xd0] sm:$0xff] }
 0x26f   :  { %1625 = vmatprep.subr.mxu0 %v7623_v62  ;;  %1696 = vmatprep.subr.mxu1 %v7629_v48  ;;  %12261 = vst [vmem:[#allocation73_spill] sm:$0xff] %v7635_v52  ;;  %12262 = vst [vmem:[#allocation76_spill] sm:$0xff] %v7641_v5  ;;  %v7647_v62 = vld [vmem:[%s11290_s5 + $0xa8] sm:$0xff]  ;;  %v7653_v48 = vld [vmem:[%s11290_s5 + $0xb8] sm:$0xff] }
 0x270   :  { %1626 = vmatpush1.msra.mxu0 %v7635_v52  ;;  %1697 = vmatpush1.msra.mxu1 %v7641_v5  ;;  %12263 = vst [vmem:[#allocation75_spill] sm:$0xff] %v7647_v62  ;;  %12264 = vst [vmem:[#allocation78_spill] sm:$0xff] %v7653_v48  ;;  %v7659_v52 = vld [vmem:[%s11290_s5 + $0xa0] sm:$0xff]  ;;  %v7665_v5 = vld [vmem:[%s11290_s5 + $0xb0] sm:$0xff] }
 0x271   :  { %1627 = vmatprep.subr.mxu0 %v7647_v62  ;;  %1698 = vmatprep.subr.mxu1 %v7653_v48  ;;  %12265 = vst [vmem:[#allocation77_spill] sm:$0xff] %v7659_v52  ;;  %12266 = vst [vmem:[#allocation80_spill] sm:$0xff] %v7665_v5  ;;  %v7671_v62 = vld [vmem:[%s11290_s5 + $0x88] sm:$0xff]  ;;  %v7677_v48 = vld [vmem:[%s11290_s5 + $0x98] sm:$0xff] }
 0x272   :  { %1628 = vmatpush1.msra.mxu0 %v7659_v52  ;;  %1699 = vmatpush1.msra.mxu1 %v7665_v5  ;;  %12267 = vst [vmem:[#allocation79_spill] sm:$0xff] %v7671_v62  ;;  %12268 = vst [vmem:[#allocation82_spill] sm:$0xff] %v7677_v48  ;;  %v7683_v52 = vld [vmem:[%s11290_s5 + $0x80] sm:$0xff]  ;;  %v7689_v5 = vld [vmem:[%s11290_s5 + $0x90] sm:$0xff] }
 0x273   :  { %1629 = vmatprep.subr.mxu0 %v7671_v62  ;;  %1700 = vmatprep.subr.mxu1 %v7677_v48  ;;  %12269 = vst [vmem:[#allocation81_spill] sm:$0xff] %v7683_v52  ;;  %12270 = vst [vmem:[#allocation84_spill] sm:$0xff] %v7689_v5  ;;  %v7695_v62 = vld [vmem:[%s11290_s5 + $0x68] sm:$0xff]  ;;  %v7701_v48 = vld [vmem:[%s11290_s5 + $0x78] sm:$0xff] }
 0x274   :  { %1630 = vmatpush1.msra.mxu0 %v7683_v52  ;;  %1701 = vmatpush1.msra.mxu1 %v7689_v5  ;;  %12271 = vst [vmem:[#allocation83_spill] sm:$0xff] %v7695_v62  ;;  %12272 = vst [vmem:[#allocation86_spill] sm:$0xff] %v7701_v48  ;;  %v7707_v52 = vld [vmem:[%s11290_s5 + $0x60] sm:$0xff]  ;;  %v7713_v5 = vld [vmem:[%s11290_s5 + $0x70] sm:$0xff] }
 0x275   :  { %1631 = vmatprep.subr.mxu0 %v7695_v62  ;;  %1702 = vmatprep.subr.mxu1 %v7701_v48  ;;  %12273 = vst [vmem:[#allocation85_spill] sm:$0xff] %v7707_v52  ;;  %12274 = vst [vmem:[#allocation87_spill] sm:$0xff] %v7713_v5  ;;  %v7719_v62 = vld [vmem:[%s11290_s5 + $0x48] sm:$0xff]  ;;  %v7725_v48 = vld [vmem:[%s11290_s5 + $0x58] sm:$0xff] }
 0x276   :  { %1632 = vmatpush1.msra.mxu0 %v7707_v52  ;;  %1703 = vmatpush1.msra.mxu1 %v7713_v5  ;;  %12275 = vst [vmem:[#allocation88_spill] sm:$0xff] %v7719_v62  ;;  %12276 = vst [vmem:[#allocation89_spill] sm:$0xff] %v7725_v48  ;;  %v7731_v52 = vld [vmem:[%s11290_s5 + $0x40] sm:$0xff]  ;;  %v7737_v5 = vld [vmem:[%s11290_s5 + $0x50] sm:$0xff] }
 0x277   :  { %1633 = vmatprep.subr.mxu0 %v7719_v62  ;;  %1704 = vmatprep.subr.mxu1 %v7725_v48  ;;  %12277 = vst [vmem:[#allocation154_spill] sm:$0xff] %v7731_v52  ;;  %12278 = vst [vmem:[#allocation155_spill] sm:$0xff] %v7737_v5  ;;  %v7743_v62 = vld [vmem:[%s11290_s5 + $0x28] sm:$0xff]  ;;  %v7749_v48 = vld [vmem:[%s11290_s5 + $0x38] sm:$0xff] }
 0x278   :  { %1634 = vmatpush1.msra.mxu0 %v7731_v52  ;;  %1705 = vmatpush1.msra.mxu1 %v7737_v5  ;;  %12279 = vst [vmem:[#allocation90_spill] sm:$0xff] %v7743_v62  ;;  %12280 = vst [vmem:[#allocation91_spill] sm:$0xff] %v7749_v48  ;;  %v7755_v52 = vld [vmem:[%s11290_s5 + $0x20] sm:$0xff]  ;;  %v7761_v5 = vld [vmem:[%s11290_s5 + $0x30] sm:$0xff] }
 0x279   :  { %1635 = vmatprep.subr.mxu0 %v7743_v62  ;;  %1706 = vmatprep.subr.mxu1 %v7749_v48  ;;  %12281 = vst [vmem:[#allocation92_spill] sm:$0xff] %v7755_v52  ;;  %12282 = vst [vmem:[#allocation93_spill] sm:$0xff] %v7761_v5  ;;  %v7767_v62 = vld [vmem:[%s11290_s5 + $0x8] sm:$0xff]  ;;  %v7773_v48 = vld [vmem:[%s11290_s5 + $0x18] sm:$0xff] }
 0x27a   :  { %1636 = vmatpush1.msra.mxu0 %v7755_v52  ;;  %1707 = vmatpush1.msra.mxu1 %v7761_v5  ;;  %12283 = vst [vmem:[#allocation94_spill] sm:$0xff] %v7767_v62  ;;  %12284 = vst [vmem:[#allocation95_spill] sm:$0xff] %v7773_v48  ;;  %v7779_v52 = vld [vmem:[%s11290_s5] sm:$0xff] }
 0x27b   :  { %1637 = vmatprep.subr.mxu0 %v7767_v62  ;;  %1708 = vmatprep.subr.mxu1 %v7773_v48  ;;  %12285 = vst [vmem:[#allocation96_spill] sm:$0xff] %v7779_v52  ;;  %v7786_v62 = vld [vmem:[%s11290_s5 + $0x10] sm:$0xff]  ;;  %v7793_v48 = vld [vmem:[%s11289_s4 + $0x1e8] sm:$0xff] }
 0x27c   :  { %1638 = vmatpush1.msra.mxu0 %v7779_v52  ;;  %1671 = vmatprep.mubr.f32.mxu0 %v12056_v31  ;;  %12286 = vst [vmem:[#allocation97_spill] sm:$0xff] %v7786_v62  ;;  %12287 = vst [vmem:[#allocation98_spill] sm:$0xff] %v7793_v48  ;;  %v7799_v52 = vld [vmem:[%s11289_s4 + $0x1f8] sm:$0xff] }
 0x27d   :  { %1709 = vmatpush1.msra.mxu1 %v7786_v62  ;;  %1742 = vmatprep.mubr.f32.mxu1 %v12056_v31  ;;  %12288 = vst [vmem:[#allocation99_spill] sm:$0xff] %v7799_v52 }
 0x27e   :  { %1752 = vmatprep.subr.mxu0 %v7793_v48  ;;  %1823 = vmatprep.subr.mxu1 %v7799_v52 }
 0x2d8   :  { %v1173_v5 = vpop.f32.mrf.mxu0  ;;  %v1244_v1 = vpop.f32.mrf.mxu1 }
 0x2da   :  { %v1175_v58 = vpop.f32.mrf.mxu0  ;;  %v1246_v18 = vpop.f32.mrf.mxu1 }
 0x2fb   :  { %v1318_v62 = vpop.f32.mrf.mxu0  ;;  %v1389_v14 = vpop.f32.mrf.mxu1 }
 0x2fc   :  { %v1319_v56 = vadd.f32 %v1318_v62, %v1173_v5  ;;  %v1390_v61 = vadd.f32 %v1389_v14, %v1244_v1 }
 0x2fd   :  { %v1320_v46 = vpop.f32.mrf.mxu0  ;;  %v1391_v0 = vpop.f32.mrf.mxu1 }
 0x2fe   :  { %v1394_v23 = vadd.f32 %v1319_v56, %v6919_v47  ;;  %v1321_v60 = vadd.f32 %v1320_v46, %v1175_v58  ;;  %v1392_v63 = vadd.f32 %v1391_v0, %v1246_v18  ;;  %v1396_v62 = vadd.f32 %v1390_v61, %v6934_v20 }
 0x300   :  { %v4528_v4 = vmul.f32 -1.442695, %v1394_v23  ;;  %v1395_v48 = vadd.f32 %v1321_v60, %v6923_v53  ;;  %v1397_v52 = vadd.f32 %v1392_v63, %v6929_v54 }
 0x302   :  { %4671 = vpow2.f32 %v4528_v4  ;;  %v4529_v16 = vmul.f32 -1.442695, %v1395_v48  ;;  %v4530_v59 = vmul.f32 -1.442695, %v1397_v52 }
 0x304   :  { %4673 = vpow2.f32 %v4529_v16 }
 0x305   :  { %4675 = vpow2.f32 %v4530_v59 }
 0x30f   :  { %v4672_v57 = vpop.eup %4671 }
 0x310   :  { %v1401_v5 = vadd.f32 1.0, %v4672_v57 }
 0x311   :  { %v4674_v55 = vpop.eup %4673 }
 0x312   :  { %4677 = vrcp.f32 %v1401_v5  ;;  %v1407_v46 = vadd.f32 1.0, %v4674_v55  ;;  %v4676_v23 = vpop.eup %4675 }
 0x313   :  { %4679 = vtanh.f32 %v1396_v62  ;;  %v1414_v55 = vadd.f32 1.0, %v4676_v23 }
 0x314   :  { %4681 = vrcp.f32 %v1407_v46 }
 0x31c   :  { %v1488_v60 = vpop.f32.mrf.mxu0  ;;  %v1559_v63 = vpop.f32.mrf.mxu1 }
 0x31d   :  { %v1568_v4 = vrot.slane %v1488_v60, 4  ;;  %v1570_v60 = vrot.slane %v1559_v63, 4  ;;  %v7817_v63 = vld [vmem:[%s11289_s4 + $0x1e0] sm:$0xff] }
 0x31e   :  { %v1490_v56 = vpop.f32.mrf.mxu0  ;;  %v1561_v48 = vpop.f32.mrf.mxu1 }
 0x31f   :  { %v4678_v16 = vpop.eup %4677  ;;  %v1576_v0 = vadd.f32 %v1568_v4, %v12128_v10  ;;  %v1569_v1 = vrot.slane %v1490_v56, 4  ;;  %v1571_v5 = vrot.slane %v1561_v48, 4  ;;  %v7859_v48 = vld [vmem:[%s11289_s4 + $0x1b8] sm:$0xff] }
 0x320   :  { %v4680_v14 = vpop.eup %4679 }
 0x321   :  { %v4682_v18 = vpop.eup %4681  ;;  %v4531_v58 = vmul.f32 -1.442695, %v1576_v0  ;;  %v1577_v57 = vadd.f32 %v1569_v1, %v12129_v26  ;;  %v1418_v61 = vmul.f32 %v4680_v14, %v4678_v16  ;;  %v1579_v46 = vadd.f32 %v1571_v5, %v6767_v8  ;;  %v7865_v5 = vld [vmem:[%s11289_s4 + $0x1a0] sm:$0xff] }
 0x322   :  { %v1417_v59 = vmul.f32 %v4682_v18, %v6939_v33  ;;  %v1578_v16 = vadd.f32 %v1570_v60, %v6770_v2  ;;  %v7877_v60 = vld [vmem:[%s11289_s4 + $0x188] sm:$0xff] }
 0x323   :  { %4683 = vpow2.f32 %v4531_v58  ;;  %v4532_v52 = vmul.f32 -1.442695, %v1577_v57  ;;  %v4533_v4 = vmul.f32 -1.442695, %v1579_v46  ;;  %v7823_v58 = vld [vmem:[%s11289_s4 + $0x1f0] sm:$0xff]  ;;  %v7829_v57 = vld [vmem:[%s11289_s4 + $0x1c8] sm:$0xff] }
 0x324   :  { %v7809_v62 = vadd.f32 %v1418_v61, %v1417_v59  ;;  %v7835_v61 = vld [vmem:[%s11289_s4 + $0x1d8] sm:$0xff]  ;;  %v7841_v59 = vld [vmem:[%s11289_s4 + $0x1c0] sm:$0xff]  ;;  %v7871_v46 = vld [vmem:[%s11289_s4 + $0x1b0] sm:$0xff]  ;;  %12289 = vst [vmem:[#allocation100_spill] sm:$0xff] %v7877_v60 }
 0x325   :  { %4685 = vpow2.f32 %v4532_v52  ;;  %v7853_v52 = vld [vmem:[%s11289_s4 + $0x1a8] sm:$0xff] }
 0x326   :  { %4687 = vrcp.f32 %v1414_v55  ;;  %v7847_v55 = vld [vmem:[%s11289_s4 + $0x1d0] sm:$0xff] }
 0x327   :  { %4689 = vtanh.f32 %v7809_v62 }
 0x328   :  { %4691 = vpow2.f32 %v4533_v4  ;;  %v7883_v4 = vld [vmem:[%s11289_s4 + $0x198] sm:$0xff] }
 0x329   :  { %12290 = vst [vmem:[#allocation101_spill] sm:$0xff] %v7883_v4 }
 0x330   :  { %v4684_v56 = vpop.eup %4683 }
 0x331   :  { %v1583_v0 = vadd.f32 1.0, %v4684_v56  ;;  %v7889_v56 = vld [vmem:[%s11289_s4 + $0x180] sm:$0xff] }
 0x332   :  { %v4686_v33 = vpop.eup %4685  ;;  %12291 = vst [vmem:[#allocation102_spill] sm:$0xff] %v7889_v56 }
 0x333   :  { %v4688_v23 = vpop.eup %4687  ;;  %4693 = vrcp.f32 %v1583_v0  ;;  %v1589_v1 = vadd.f32 1.0, %v4686_v33  ;;  %v7901_v33 = vld [vmem:[%s11289_s4 + $0x168] sm:$0xff] }
 0x334   :  { %v4690_v14 = vpop.eup %4689  ;;  %4695 = vtanh.f32 %v1578_v16  ;;  %v7895_v16 = vld [vmem:[%s11289_s4 + $0x190] sm:$0xff]  ;;  %12293 = vst [vmem:[#allocation104_spill] sm:$0xff] %v7901_v33 }
 0x335   :  { %4697 = vrcp.f32 %v1589_v1  ;;  %v1421_v18 = vmul.f32 %v4690_v14, %v4688_v23  ;;  %12292 = vst [vmem:[#allocation103_spill] sm:$0xff] %v7895_v16  ;;  %v4692_v0 = vpop.eup %4691  ;;  %v7907_v23 = vld [vmem:[%s11289_s4 + $0x178] sm:$0xff]  ;;  %v7913_v14 = vld [vmem:[%s11289_s4 + $0x160] sm:$0xff] }
 0x336   :  { %12294 = vst [vmem:[#allocation105_spill] sm:$0xff] %v7907_v23  ;;  %12295 = vst [vmem:[#allocation106_spill] sm:$0xff] %v7913_v14 }
 0x337   :  { %1672 = vmatmul.mubr.f32.vlgmr.msra.gmra.mxu0 %v1421_v18  ;;  %1743 = vmatmul.mubr.f32.vlgmr.msra.gmra.mxu1 %v1421_v18  ;;  %v7919_v18 = vld [vmem:[%s11289_s4 + $0x170] sm:$0xff] }
 0x338   :  { %1753 = vmatpush1.msra.mxu0 %v7817_v63  ;;  %1824 = vmatpush1.msra.mxu1 %v7823_v58  ;;  %12296 = vst [vmem:[#allocation107_spill] sm:$0xff] %v7919_v18 }
 0x339   :  { %1754 = vmatprep.subr.mxu0 %v7829_v57  ;;  %1825 = vmatprep.subr.mxu1 %v7835_v61 }
 0x33a   :  { %1755 = vmatpush1.msra.mxu0 %v7841_v59  ;;  %1826 = vmatpush1.msra.mxu1 %v7847_v55 }
 0x33b   :  { %1756 = vmatprep.subr.mxu0 %v7853_v52  ;;  %1827 = vmatprep.subr.mxu1 %v7859_v48 }
 0x33c   :  { %1757 = vmatpush1.msra.mxu0 %v7865_v5  ;;  %1828 = vmatpush1.msra.mxu1 %v7871_v46 }
 0x33d   :  { %1758 = vmatprep.subr.mxu0 %v7877_v60  ;;  %1829 = vmatprep.subr.mxu1 %v7883_v4  ;;  %v1596_v4 = vadd.f32 1.0, %v4692_v0  ;;  %v7950_v0 = vld [vmem:[%s11289_s4 + $0x128] sm:$0xff] }
 0x33e   :  { %1759 = vmatpush1.msra.mxu0 %v7889_v56  ;;  %1830 = vmatpush1.msra.mxu1 %v7895_v16  ;;  %v1600_v16 = vrot.slane %v6973_v12, 6  ;;  %v7938_v12 = vld [vmem:[%s11289_s4 + $0x140] sm:$0xff] }
 0x33f   :  { %1760 = vmatprep.subr.mxu0 %v7901_v33  ;;  %1831 = vmatprep.subr.mxu1 %v7907_v23  ;;  %v7926_v23 = vld [vmem:[%s11289_s4 + $0x148] sm:$0xff]  ;;  %12298 = vst [vmem:[#allocation109_spill] sm:$0xff] %v7938_v12  ;;  %4699 = vrcp.f32 %v1596_v4  ;;  %v8006_v4 = vld [vmem:[%s11289_s4 + $0xf8] sm:$0xff] }
 0x340   :  { %v4694_v1 = vpop.eup %4693  ;;  %1761 = vmatpush1.msra.mxu0 %v7913_v14  ;;  %1832 = vmatpush1.msra.mxu1 %v7919_v18  ;;  %12297 = vst [vmem:[#allocation108_spill] sm:$0xff] %v7926_v23  ;;  %v7932_v14 = vld [vmem:[%s11289_s4 + $0x158] sm:$0xff]  ;;  %12307 = vst [vmem:[#allocation118_spill] sm:$0xff] %v8006_v4 }
 0x341   :  { %v4696_v33 = vpop.eup %4695  ;;  %1762 = vmatprep.subr.mxu0 %v7926_v23  ;;  %1833 = vmatprep.subr.mxu1 %v7932_v14  ;;  %v7944_v23 = vld [vmem:[%s11289_s4 + $0x150] sm:$0xff] }
 0x342   :  { %v4698_v56 = vpop.eup %4697  ;;  %1763 = vmatpush1.msra.mxu0 %v7938_v12  ;;  %12299 = vst [vmem:[#allocation110_spill] sm:$0xff] %v7944_v23  ;;  %1834 = vmatpush1.msra.mxu1 %v7944_v23  ;;  %v1603_v18 = vmul.f32 %v4696_v33, %v4694_v1  ;;  %v7956_v12 = vld [vmem:[%s11289_s4 + $0x138] sm:$0xff]  ;;  %v7962_v23 = vld [vmem:[%s11289_s4 + $0x120] sm:$0xff]  ;;  %v7976_v33 = vld [vmem:[%s11289_s4 + $0x108] sm:$0xff] }
 0x343   :  { %v1602_v60 = vmul.f32 %v4698_v56, %v1600_v16  ;;  %1764 = vmatprep.subr.mxu0 %v7950_v0  ;;  %1835 = vmatprep.subr.mxu1 %v7956_v12  ;;  %12300 = vst [vmem:[#allocation111_spill] sm:$0xff] %v7962_v23  ;;  %v7968_v56 = vld [vmem:[%s11289_s4 + $0x130] sm:$0xff]  ;;  %12302 = vst [vmem:[#allocation113_spill] sm:$0xff] %v7976_v33  ;;  %v7982_v1 = vld [vmem:[%s11289_s4 + $0x118] sm:$0xff] }
 0x344   :  { %1765 = vmatpush1.msra.mxu0 %v7962_v23  ;;  %12301 = vst [vmem:[#allocation112_spill] sm:$0xff] %v7968_v56  ;;  %1836 = vmatpush1.msra.mxu1 %v7968_v56  ;;  %12303 = vst [vmem:[#allocation114_spill] sm:$0xff] %v7982_v1  ;;  %v8163_v56 = vld [vmem:[%s11289_s4 + $0x30] sm:$0xff]  ;;  %v8181_v23 = vld [vmem:[%s11289_s4] sm:$0xff] }
 0x345   :  { %v7971_v16 = vadd.f32 %v1603_v18, %v1602_v60  ;;  %1766 = vmatprep.subr.mxu0 %v7976_v33  ;;  %1837 = vmatprep.subr.mxu1 %v7982_v1  ;;  %v7988_v60 = vld [vmem:[%s11289_s4 + $0x100] sm:$0xff]  ;;  %v7994_v18 = vld [vmem:[%s11289_s4 + $0x110] sm:$0xff]  ;;  %v8000_v33 = vld [vmem:[%s11289_s4 + $0xe8] sm:$0xff]  ;;  %12333 = vst [vmem:[#allocation144_spill] sm:$0xff] %v8163_v56 }
 0x346   :  { %12304 = vst [vmem:[#allocation115_spill] sm:$0xff] %v7988_v60  ;;  %1767 = vmatpush1.msra.mxu0 %v7988_v60  ;;  %12305 = vst [vmem:[#allocation116_spill] sm:$0xff] %v7994_v18  ;;  %1838 = vmatpush1.msra.mxu1 %v7994_v18  ;;  %v8013_v18 = vld [vmem:[%s11289_s4 + $0xe0] sm:$0xff]  ;;  %v8031_v60 = vld [vmem:[%s11289_s4 + $0xd8] sm:$0xff] }
 0x347   :  { %12306 = vst [vmem:[#allocation117_spill] sm:$0xff] %v8000_v33  ;;  %1768 = vmatprep.subr.mxu0 %v8000_v33  ;;  %1839 = vmatprep.subr.mxu1 %v8006_v4  ;;  %4701 = vtanh.f32 %v7971_v16  ;;  %12308 = vst [vmem:[#allocation119_spill] sm:$0xff] %v8013_v18  ;;  %v8019_v33 = vld [vmem:[%s11289_s4 + $0xf0] sm:$0xff]  ;;  %v8025_v4 = vld [vmem:[%s11289_s4 + $0xc8] sm:$0xff] }
 0x348   :  { %1769 = vmatpush1.msra.mxu0 %v8013_v18  ;;  %12309 = vst [vmem:[#allocation120_spill] sm:$0xff] %v8019_v33  ;;  %1840 = vmatpush1.msra.mxu1 %v8019_v33  ;;  %12310 = vst [vmem:[#allocation121_spill] sm:$0xff] %v8025_v4  ;;  %v8037_v18 = vld [vmem:[%s11289_s4 + $0xc0] sm:$0xff]  ;;  %v8043_v33 = vld [vmem:[%s11289_s4 + $0xd0] sm:$0xff] }
 0x349   :  { %1770 = vmatprep.subr.mxu0 %v8025_v4  ;;  %12311 = vst [vmem:[#allocation122_spill] sm:$0xff] %v8031_v60  ;;  %1841 = vmatprep.subr.mxu1 %v8031_v60  ;;  %12312 = vst [vmem:[#allocation123_spill] sm:$0xff] %v8037_v18  ;;  %v8049_v4 = vld [vmem:[%s11289_s4 + $0xa8] sm:$0xff]  ;;  %v8055_v60 = vld [vmem:[%s11289_s4 + $0xb8] sm:$0xff] }
 0x34a   :  { %1771 = vmatpush1.msra.mxu0 %v8037_v18  ;;  %12313 = vst [vmem:[#allocation124_spill] sm:$0xff] %v8043_v33  ;;  %1842 = vmatpush1.msra.mxu1 %v8043_v33  ;;  %12314 = vst [vmem:[#allocation125_spill] sm:$0xff] %v8049_v4  ;;  %v8061_v18 = vld [vmem:[%s11289_s4 + $0xa0] sm:$0xff]  ;;  %v8067_v33 = vld [vmem:[%s11289_s4 + $0xb0] sm:$0xff] }
 0x34b   :  { %1772 = vmatprep.subr.mxu0 %v8049_v4  ;;  %12315 = vst [vmem:[#allocation126_spill] sm:$0xff] %v8055_v60  ;;  %1843 = vmatprep.subr.mxu1 %v8055_v60  ;;  %12316 = vst [vmem:[#allocation127_spill] sm:$0xff] %v8061_v18  ;;  %v8073_v4 = vld [vmem:[%s11289_s4 + $0x88] sm:$0xff]  ;;  %v8079_v60 = vld [vmem:[%s11289_s4 + $0x98] sm:$0xff] }
 0x34c   :  { %1773 = vmatpush1.msra.mxu0 %v8061_v18  ;;  %12317 = vst [vmem:[#allocation128_spill] sm:$0xff] %v8067_v33  ;;  %1844 = vmatpush1.msra.mxu1 %v8067_v33  ;;  %12318 = vst [vmem:[#allocation129_spill] sm:$0xff] %v8073_v4  ;;  %v8085_v18 = vld [vmem:[%s11289_s4 + $0x80] sm:$0xff]  ;;  %v8091_v33 = vld [vmem:[%s11289_s4 + $0x90] sm:$0xff] }
 0x34d   :  { %1774 = vmatprep.subr.mxu0 %v8073_v4  ;;  %12319 = vst [vmem:[#allocation130_spill] sm:$0xff] %v8079_v60  ;;  %1845 = vmatprep.subr.mxu1 %v8079_v60  ;;  %12320 = vst [vmem:[#allocation131_spill] sm:$0xff] %v8085_v18  ;;  %v8097_v4 = vld [vmem:[%s11289_s4 + $0x68] sm:$0xff]  ;;  %v8103_v60 = vld [vmem:[%s11289_s4 + $0x78] sm:$0xff] }
 0x34e   :  { %1775 = vmatpush1.msra.mxu0 %v8085_v18  ;;  %12321 = vst [vmem:[#allocation132_spill] sm:$0xff] %v8091_v33  ;;  %1846 = vmatpush1.msra.mxu1 %v8091_v33  ;;  %12322 = vst [vmem:[#allocation133_spill] sm:$0xff] %v8097_v4  ;;  %v8109_v18 = vld [vmem:[%s11289_s4 + $0x60] sm:$0xff]  ;;  %v8115_v33 = vld [vmem:[%s11289_s4 + $0x70] sm:$0xff] }
 0x34f   :  { %1776 = vmatprep.subr.mxu0 %v8097_v4  ;;  %12323 = vst [vmem:[#allocation134_spill] sm:$0xff] %v8103_v60  ;;  %1847 = vmatprep.subr.mxu1 %v8103_v60  ;;  %12324 = vst [vmem:[#allocation135_spill] sm:$0xff] %v8109_v18  ;;  %v8121_v4 = vld [vmem:[%s11289_s4 + $0x48] sm:$0xff]  ;;  %v8127_v60 = vld [vmem:[%s11289_s4 + $0x58] sm:$0xff] }
 0x350   :  { %1777 = vmatpush1.msra.mxu0 %v8109_v18  ;;  %12325 = vst [vmem:[#allocation136_spill] sm:$0xff] %v8115_v33  ;;  %1848 = vmatpush1.msra.mxu1 %v8115_v33  ;;  %12326 = vst [vmem:[#allocation137_spill] sm:$0xff] %v8121_v4  ;;  %v8133_v18 = vld [vmem:[%s11289_s4 + $0x40] sm:$0xff]  ;;  %v8139_v33 = vld [vmem:[%s11289_s4 + $0x50] sm:$0xff] }
 0x351   :  { %1778 = vmatprep.subr.mxu0 %v8121_v4  ;;  %12327 = vst [vmem:[#allocation138_spill] sm:$0xff] %v8127_v60  ;;  %1849 = vmatprep.subr.mxu1 %v8127_v60  ;;  %12328 = vst [vmem:[#allocation139_spill] sm:$0xff] %v8133_v18  ;;  %v4700_v4 = vpop.eup %4699  ;;  %v8145_v1 = vld [vmem:[%s11289_s4 + $0x28] sm:$0xff]  ;;  %v8151_v60 = vld [vmem:[%s11289_s4 + $0x38] sm:$0xff] }
 0x352   :  { %1779 = vmatpush1.msra.mxu0 %v8133_v18  ;;  %12329 = vst [vmem:[#allocation140_spill] sm:$0xff] %v8139_v33  ;;  %1850 = vmatpush1.msra.mxu1 %v8139_v33  ;;  %12330 = vst [vmem:[#allocation141_spill] sm:$0xff] %v8145_v1  ;;  %v8157_v33 = vld [vmem:[%s11289_s4 + $0x20] sm:$0xff] }
 0x353   :  { %1780 = vmatprep.subr.mxu0 %v8145_v1  ;;  %12331 = vst [vmem:[#allocation142_spill] sm:$0xff] %v8151_v60  ;;  %1851 = vmatprep.subr.mxu1 %v8151_v60  ;;  %12332 = vst [vmem:[#allocation143_spill] sm:$0xff] %v8157_v33  ;;  %v8169_v1 = vld [vmem:[%s11289_s4 + $0x8] sm:$0xff]  ;;  %v8175_v60 = vld [vmem:[%s11289_s4 + $0x18] sm:$0xff] }
 0x354   :  { %v4702_v18 = vpop.eup %4701  ;;  %1781 = vmatpush1.msra.mxu0 %v8157_v33  ;;  %1852 = vmatpush1.msra.mxu1 %v8163_v56  ;;  %12334 = vst [vmem:[#allocation145_spill] sm:$0xff] %v8175_v60  ;;  %v8187_v56 = vld [vmem:[%s11289_s4 + $0x10] sm:$0xff] }
 0x355   :  { %1782 = vmatprep.subr.mxu0 %v8169_v1  ;;  %1853 = vmatprep.subr.mxu1 %v8175_v60  ;;  %v1606_v33 = vmul.f32 %v4702_v18, %v4700_v4  ;;  %v12369_v18 = vld [vmem:[#allocation39_spill] sm:$0xff]  ;;  %v12370_v4 = vld [vmem:[#allocation40_spill] sm:$0xff] }
 0x356   :  { %1783 = vmatpush1.msra.mxu0 %v8181_v23  ;;  %1854 = vmatpush1.msra.mxu1 %v8187_v56 }
 0x357   :  { %1816 = vmatprep.mubr.f32.mxu0 %v12056_v31  ;;  %1887 = vmatprep.mubr.f32.mxu1 %v12056_v31  ;;  %v8192_v60 = vrot.slane %v1606_v33, 4  ;;  %v12368_v33 = vld [vmem:[#allocation38_spill] sm:$0xff] }
 0x358   :  { %1922 = vmatprep.subr.mxu0 %v7015_v6  ;;  %1993 = vmatprep.subr.mxu1 %v7021_v3  ;;  %v12335_v6 = vld [vmem:[#allocation14_spill] sm:$0xff]  ;;  %v12336_v3 = vld [vmem:[#allocation5_spill] sm:$0xff] }
 0x359   :  { %1817 = vmatmul.mubr.f32.vlgmr.msra.gmra.mxu0 %v8192_v60  ;;  %1888 = vmatmul.mubr.f32.vlgmr.msra.gmra.mxu1 %v8192_v60 }
 0x35a   :  { %1923 = vmatpush1.msra.mxu0 %v7031_v7  ;;  %1994 = vmatpush1.msra.mxu1 %v7037_v9  ;;  %v12337_v7 = vld [vmem:[#allocation15_spill] sm:$0xff]  ;;  %v12338_v9 = vld [vmem:[#allocation6_spill] sm:$0xff] }
 0x35b   :  { %1924 = vmatprep.subr.mxu0 %v7043_v11  ;;  %1995 = vmatprep.subr.mxu1 %v7049_v13  ;;  %v12339_v11 = vld [vmem:[#allocation16_spill] sm:$0xff]  ;;  %v12340_v13 = vld [vmem:[#allocation7_spill] sm:$0xff] }
 0x35c   :  { %1925 = vmatpush1.msra.mxu0 %v7055_v15  ;;  %1996 = vmatpush1.msra.mxu1 %v7061_v17  ;;  %v12341_v15 = vld [vmem:[#allocation17_spill] sm:$0xff]  ;;  %v12342_v17 = vld [vmem:[#allocation8_spill] sm:$0xff] }
 0x35d   :  { %1926 = vmatprep.subr.mxu0 %v7067_v19  ;;  %1997 = vmatprep.subr.mxu1 %v7073_v21  ;;  %v12343_v19 = vld [vmem:[#allocation18_spill] sm:$0xff]  ;;  %v12344_v21 = vld [vmem:[#allocation9_spill] sm:$0xff] }
 0x35e   :  { %1927 = vmatpush1.msra.mxu0 %v7079_v22  ;;  %1998 = vmatpush1.msra.mxu1 %v7085_v24  ;;  %v12345_v22 = vld [vmem:[#allocation19_spill] sm:$0xff]  ;;  %v12346_v24 = vld [vmem:[#allocation10_spill] sm:$0xff] }
 0x35f   :  { %1928 = vmatprep.subr.mxu0 %v7091_v25  ;;  %1999 = vmatprep.subr.mxu1 %v7097_v27  ;;  %v12347_v25 = vld [vmem:[#allocation20_spill] sm:$0xff]  ;;  %v12348_v27 = vld [vmem:[#allocation11_spill] sm:$0xff] }
 0x360   :  { %1929 = vmatpush1.msra.mxu0 %v7103_v28  ;;  %2000 = vmatpush1.msra.mxu1 %v7109_v29  ;;  %v12349_v28 = vld [vmem:[#allocation21_spill] sm:$0xff]  ;;  %v12350_v29 = vld [vmem:[#allocation12_spill] sm:$0xff] }
 0x361   :  { %1930 = vmatprep.subr.mxu0 %v7115_v30  ;;  %2001 = vmatprep.subr.mxu1 %v7121_v32  ;;  %v12351_v30 = vld [vmem:[#allocation22_spill] sm:$0xff]  ;;  %v12352_v32 = vld [vmem:[#allocation13_spill] sm:$0xff] }
 0x362   :  { %1931 = vmatpush1.msra.mxu0 %v7127_v34  ;;  %2002 = vmatpush1.msra.mxu1 %v7133_v35  ;;  %v12353_v34 = vld [vmem:[#allocation23_spill] sm:$0xff]  ;;  %v12354_v35 = vld [vmem:[#allocation24_spill] sm:$0xff] }
 0x363   :  { %1932 = vmatprep.subr.mxu0 %v7139_v36  ;;  %2003 = vmatprep.subr.mxu1 %v7145_v37  ;;  %v12355_v36 = vld [vmem:[#allocation26_spill] sm:$0xff]  ;;  %v12356_v37 = vld [vmem:[#allocation25_spill] sm:$0xff] }
 0x364   :  { %1933 = vmatpush1.msra.mxu0 %v7151_v38  ;;  %2004 = vmatpush1.msra.mxu1 %v7157_v39  ;;  %v12357_v38 = vld [vmem:[#allocation28_spill] sm:$0xff]  ;;  %v12358_v39 = vld [vmem:[#allocation27_spill] sm:$0xff] }
 0x365   :  { %1934 = vmatprep.subr.mxu0 %v7163_v40  ;;  %2005 = vmatprep.subr.mxu1 %v7169_v41  ;;  %v12359_v40 = vld [vmem:[#allocation30_spill] sm:$0xff]  ;;  %v12360_v41 = vld [vmem:[#allocation29_spill] sm:$0xff] }
 0x366   :  { %1935 = vmatpush1.msra.mxu0 %v7175_v42  ;;  %2006 = vmatpush1.msra.mxu1 %v7181_v43  ;;  %v12361_v42 = vld [vmem:[#allocation32_spill] sm:$0xff]  ;;  %v12362_v43 = vld [vmem:[#allocation31_spill] sm:$0xff] }
 0x367   :  { %1936 = vmatprep.subr.mxu0 %v7187_v44  ;;  %2007 = vmatprep.subr.mxu1 %v7193_v45  ;;  %v12363_v44 = vld [vmem:[#allocation34_spill] sm:$0xff]  ;;  %v12364_v45 = vld [vmem:[#allocation33_spill] sm:$0xff] }
 0x368   :  { %1937 = vmatpush1.msra.mxu0 %v7199_v49  ;;  %2008 = vmatpush1.msra.mxu1 %v7205_v50  ;;  %v12365_v49 = vld [vmem:[#allocation36_spill] sm:$0xff]  ;;  %v12366_v50 = vld [vmem:[#allocation35_spill] sm:$0xff] }
 0x369   :  { %1938 = vmatprep.subr.mxu0 %v7211_v51  ;;  %2009 = vmatprep.subr.mxu1 %v12335_v6  ;;  %v12367_v51 = vld [vmem:[#allocation37_spill] sm:$0xff]  ;;  %v12371_v6 = vld [vmem:[#allocation42_spill] sm:$0xff] }
 0x36a   :  { %1939 = vmatpush1.msra.mxu0 %v12336_v3  ;;  %2010 = vmatpush1.msra.mxu1 %v12337_v7  ;;  %v12372_v3 = vld [vmem:[#allocation41_spill] sm:$0xff]  ;;  %v12373_v7 = vld [vmem:[#allocation44_spill] sm:$0xff] }
 0x36b   :  { %1940 = vmatprep.subr.mxu0 %v12338_v9  ;;  %2011 = vmatprep.subr.mxu1 %v12339_v11  ;;  %v12374_v9 = vld [vmem:[#allocation43_spill] sm:$0xff]  ;;  %v12375_v11 = vld [vmem:[#allocation46_spill] sm:$0xff] }
 0x36c   :  { %1941 = vmatpush1.msra.mxu0 %v12340_v13  ;;  %2012 = vmatpush1.msra.mxu1 %v12341_v15  ;;  %v12377_v13 = vld [vmem:[#allocation48_spill] sm:$0xff]  ;;  %v12378_v15 = vld [vmem:[#allocation47_spill] sm:$0xff] }
 0x36d   :  { %1942 = vmatprep.subr.mxu0 %v12342_v17  ;;  %2013 = vmatprep.subr.mxu1 %v12343_v19  ;;  %v12379_v17 = vld [vmem:[#allocation50_spill] sm:$0xff]  ;;  %v12380_v19 = vld [vmem:[#allocation49_spill] sm:$0xff] }
 0x36e   :  { %1943 = vmatpush1.msra.mxu0 %v12344_v21  ;;  %2014 = vmatpush1.msra.mxu1 %v12345_v22  ;;  %v12381_v21 = vld [vmem:[#allocation52_spill] sm:$0xff]  ;;  %v12382_v22 = vld [vmem:[#allocation51_spill] sm:$0xff] }
 0x36f   :  { %1944 = vmatprep.subr.mxu0 %v12346_v24  ;;  %2015 = vmatprep.subr.mxu1 %v12347_v25  ;;  %v12383_v24 = vld [vmem:[#allocation54_spill] sm:$0xff]  ;;  %v12384_v25 = vld [vmem:[#allocation53_spill] sm:$0xff] }
 0x370   :  { %1945 = vmatpush1.msra.mxu0 %v12348_v27  ;;  %2016 = vmatpush1.msra.mxu1 %v12349_v28  ;;  %v12385_v27 = vld [vmem:[#allocation56_spill] sm:$0xff]  ;;  %v12386_v28 = vld [vmem:[#allocation55_spill] sm:$0xff] }
 0x371   :  { %1946 = vmatprep.subr.mxu0 %v12350_v29  ;;  %2017 = vmatprep.subr.mxu1 %v12351_v30  ;;  %v12387_v29 = vld [vmem:[#allocation58_spill] sm:$0xff]  ;;  %v12388_v30 = vld [vmem:[#allocation57_spill] sm:$0xff] }
 0x372   :  { %1947 = vmatpush1.msra.mxu0 %v12352_v32  ;;  %2018 = vmatpush1.msra.mxu1 %v12353_v34  ;;  %v12389_v32 = vld [vmem:[#allocation60_spill] sm:$0xff]  ;;  %v12390_v34 = vld [vmem:[#allocation59_spill] sm:$0xff] }
 0x373   :  { %1948 = vmatprep.subr.mxu0 %v12354_v35  ;;  %2019 = vmatprep.subr.mxu1 %v12355_v36  ;;  %v12391_v35 = vld [vmem:[#allocation62_spill] sm:$0xff]  ;;  %v12392_v36 = vld [vmem:[#allocation61_spill] sm:$0xff] }
 0x374   :  { %1949 = vmatpush1.msra.mxu0 %v12356_v37  ;;  %2020 = vmatpush1.msra.mxu1 %v12357_v38  ;;  %v12393_v37 = vld [vmem:[#allocation64_spill] sm:$0xff]  ;;  %v12394_v38 = vld [vmem:[#allocation63_spill] sm:$0xff] }
 0x375   :  { %1950 = vmatprep.subr.mxu0 %v12358_v39  ;;  %2021 = vmatprep.subr.mxu1 %v12359_v40  ;;  %v12395_v39 = vld [vmem:[#allocation66_spill] sm:$0xff]  ;;  %v12396_v40 = vld [vmem:[#allocation65_spill] sm:$0xff] }
 0x376   :  { %1951 = vmatpush1.msra.mxu0 %v12360_v41  ;;  %2022 = vmatpush1.msra.mxu1 %v12361_v42  ;;  %v12397_v41 = vld [vmem:[#allocation68_spill] sm:$0xff]  ;;  %v12398_v42 = vld [vmem:[#allocation67_spill] sm:$0xff] }
 0x377   :  { %1952 = vmatprep.subr.mxu0 %v12362_v43  ;;  %2023 = vmatprep.subr.mxu1 %v12363_v44  ;;  %v12399_v43 = vld [vmem:[#allocation70_spill] sm:$0xff]  ;;  %v12400_v44 = vld [vmem:[#allocation69_spill] sm:$0xff] }
 0x378   :  { %1953 = vmatpush1.msra.mxu0 %v12364_v45  ;;  %1986 = vmatprep.mubr.f32.mxu0 %v12056_v31  ;;  %v12401_v45 = vld [vmem:[#allocation72_spill] sm:$0xff] }
 0x379   :  { %2024 = vmatpush1.msra.mxu1 %v12365_v49  ;;  %2057 = vmatprep.mubr.f32.mxu1 %v12056_v31  ;;  %v12402_v49 = vld [vmem:[#allocation71_spill] sm:$0xff] }
 0x37a   :  { %1987 = vmatmul.mubr.f32.vlgmr.msra.gmra.mxu0 %v8192_v60  ;;  %2058 = vmatmul.mubr.f32.vlgmr.msra.gmra.mxu1 %v8192_v60  ;;  %v12376_v60 = vld [vmem:[#allocation45_spill] sm:$0xff] }
 0x37b   :  { %2107 = vmatprep.subr.mxu0 %v12366_v50  ;;  %2178 = vmatprep.subr.mxu1 %v12367_v51  ;;  %v12403_v50 = vld [vmem:[#allocation74_spill] sm:$0xff]  ;;  %v12404_v51 = vld [vmem:[#allocation73_spill] sm:$0xff] }
 0x37c   :  { %2108 = vmatpush1.msra.mxu0 %v12368_v33  ;;  %2179 = vmatpush1.msra.mxu1 %v12369_v18  ;;  %v12405_v33 = vld [vmem:[#allocation76_spill] sm:$0xff]  ;;  %v12406_v18 = vld [vmem:[#allocation75_spill] sm:$0xff] }
 0x37d   :  { %2109 = vmatprep.subr.mxu0 %v12370_v4  ;;  %2180 = vmatprep.subr.mxu1 %v12371_v6  ;;  %v12407_v4 = vld [vmem:[#allocation78_spill] sm:$0xff]  ;;  %v12408_v6 = vld [vmem:[#allocation77_spill] sm:$0xff] }
 0x37e   :  { %2110 = vmatpush1.msra.mxu0 %v12372_v3  ;;  %2181 = vmatpush1.msra.mxu1 %v12373_v7  ;;  %v12409_v3 = vld [vmem:[#allocation80_spill] sm:$0xff]  ;;  %v12410_v7 = vld [vmem:[#allocation79_spill] sm:$0xff] }
 0x37f   :  { %2111 = vmatprep.subr.mxu0 %v12374_v9  ;;  %2182 = vmatprep.subr.mxu1 %v12375_v11  ;;  %v12411_v9 = vld [vmem:[#allocation82_spill] sm:$0xff]  ;;  %v12412_v11 = vld [vmem:[#allocation81_spill] sm:$0xff] }
 0x380   :  { %2112 = vmatpush1.msra.mxu0 %v12376_v60  ;;  %2183 = vmatpush1.msra.mxu1 %v12377_v13  ;;  %v12413_v60 = vld [vmem:[#allocation84_spill] sm:$0xff]  ;;  %v12414_v13 = vld [vmem:[#allocation83_spill] sm:$0xff] }
 0x381   :  { %2113 = vmatprep.subr.mxu0 %v12378_v15  ;;  %2184 = vmatprep.subr.mxu1 %v12379_v17  ;;  %v12415_v15 = vld [vmem:[#allocation86_spill] sm:$0xff]  ;;  %v12416_v17 = vld [vmem:[#allocation85_spill] sm:$0xff] }
 0x382   :  { %2114 = vmatpush1.msra.mxu0 %v12380_v19  ;;  %2185 = vmatpush1.msra.mxu1 %v12381_v21  ;;  %v12417_v19 = vld [vmem:[#allocation87_spill] sm:$0xff]  ;;  %v12418_v21 = vld [vmem:[#allocation88_spill] sm:$0xff] }
 0x383   :  { %2115 = vmatprep.subr.mxu0 %v12382_v22  ;;  %2186 = vmatprep.subr.mxu1 %v12383_v24  ;;  %v12419_v22 = vld [vmem:[#allocation89_spill] sm:$0xff]  ;;  %v12420_v24 = vld [vmem:[#allocation154_spill] sm:$0xff] }
 0x384   :  { %2116 = vmatpush1.msra.mxu0 %v12384_v25  ;;  %2187 = vmatpush1.msra.mxu1 %v12385_v27  ;;  %v12421_v25 = vld [vmem:[#allocation155_spill] sm:$0xff]  ;;  %v12422_v27 = vld [vmem:[#allocation90_spill] sm:$0xff] }
 0x385   :  { %2117 = vmatprep.subr.mxu0 %v12386_v28  ;;  %2188 = vmatprep.subr.mxu1 %v12387_v29  ;;  %v12423_v28 = vld [vmem:[#allocation91_spill] sm:$0xff]  ;;  %v12424_v29 = vld [vmem:[#allocation92_spill] sm:$0xff] }
 0x386   :  { %2118 = vmatpush1.msra.mxu0 %v12388_v30  ;;  %2189 = vmatpush1.msra.mxu1 %v12389_v32  ;;  %v12425_v30 = vld [vmem:[#allocation93_spill] sm:$0xff]  ;;  %v12426_v32 = vld [vmem:[#allocation94_spill] sm:$0xff] }
 0x387   :  { %2119 = vmatprep.subr.mxu0 %v12390_v34  ;;  %2190 = vmatprep.subr.mxu1 %v12391_v35  ;;  %v12427_v34 = vld [vmem:[#allocation95_spill] sm:$0xff]  ;;  %v12428_v35 = vld [vmem:[#allocation96_spill] sm:$0xff] }
 0x388   :  { %2120 = vmatpush1.msra.mxu0 %v12392_v36  ;;  %2191 = vmatpush1.msra.mxu1 %v12393_v37  ;;  %v12429_v36 = vld [vmem:[#allocation97_spill] sm:$0xff]  ;;  %v12430_v37 = vld [vmem:[#allocation98_spill] sm:$0xff] }
 0x389   :  { %2121 = vmatprep.subr.mxu0 %v12394_v38  ;;  %2192 = vmatprep.subr.mxu1 %v12395_v39  ;;  %v12431_v38 = vld [vmem:[#allocation99_spill] sm:$0xff] }
 0x38a   :  { %2122 = vmatpush1.msra.mxu0 %v12396_v40  ;;  %2193 = vmatpush1.msra.mxu1 %v12397_v41 }
 0x38b   :  { %2123 = vmatprep.subr.mxu0 %v12398_v42  ;;  %2194 = vmatprep.subr.mxu1 %v12399_v43 }
 0x38c   :  { %2124 = vmatpush1.msra.mxu0 %v12400_v44  ;;  %2195 = vmatpush1.msra.mxu1 %v12401_v45 }
 0x38d   :  { %2125 = vmatprep.subr.mxu0 %v12402_v49  ;;  %2196 = vmatprep.subr.mxu1 %v12403_v50 }
 0x38e   :  { %2126 = vmatpush1.msra.mxu0 %v12404_v51  ;;  %2197 = vmatpush1.msra.mxu1 %v12405_v33 }
 0x38f   :  { %2127 = vmatprep.subr.mxu0 %v12406_v18  ;;  %2198 = vmatprep.subr.mxu1 %v12407_v4 }
 0x390   :  { %2128 = vmatpush1.msra.mxu0 %v12408_v6  ;;  %2199 = vmatpush1.msra.mxu1 %v12409_v3 }
 0x391   :  { %2129 = vmatprep.subr.mxu0 %v12410_v7  ;;  %2200 = vmatprep.subr.mxu1 %v12411_v9 }
 0x392   :  { %2130 = vmatpush1.msra.mxu0 %v12412_v11  ;;  %2201 = vmatpush1.msra.mxu1 %v12413_v60 }
 0x393   :  { %2131 = vmatprep.subr.mxu0 %v12414_v13  ;;  %2202 = vmatprep.subr.mxu1 %v12415_v15 }
 0x394   :  { %2132 = vmatpush1.msra.mxu0 %v12416_v17  ;;  %2203 = vmatpush1.msra.mxu1 %v12417_v19 }
 0x395   :  { %2133 = vmatprep.subr.mxu0 %v12418_v21  ;;  %2204 = vmatprep.subr.mxu1 %v12419_v22 }
 0x396   :  { %2134 = vmatpush1.msra.mxu0 %v12420_v24  ;;  %2205 = vmatpush1.msra.mxu1 %v12421_v25 }
 0x397   :  { %2135 = vmatprep.subr.mxu0 %v12422_v27  ;;  %2206 = vmatprep.subr.mxu1 %v12423_v28 }
 0x398   :  { %2136 = vmatpush1.msra.mxu0 %v12424_v29  ;;  %2207 = vmatpush1.msra.mxu1 %v12425_v30 }
 0x399   :  { %2137 = vmatprep.subr.mxu0 %v12426_v32  ;;  %2208 = vmatprep.subr.mxu1 %v12427_v34 }
 0x39a   :  { %2138 = vmatpush1.msra.mxu0 %v12428_v35  ;;  %2171 = vmatprep.mubr.f32.mxu0 %v12056_v31 }
 0x39b   :  { %2209 = vmatpush1.msra.mxu1 %v12429_v36  ;;  %2242 = vmatprep.mubr.f32.mxu1 %v12056_v31 }
 0x39c   :  { %2252 = vmatprep.subr.mxu0 %v12430_v37  ;;  %2323 = vmatprep.subr.mxu1 %v12431_v38 }
 0x3f7   :  { %v1673_v39 = vpop.f32.mrf.mxu0  ;;  %v1744_v40 = vpop.f32.mrf.mxu1 }
 0x3f9   :  { %v1675_v41 = vpop.f32.mrf.mxu0  ;;  %v1746_v43 = vpop.f32.mrf.mxu1 }
 0x419   :  { %v1818_v42 = vpop.f32.mrf.mxu0  ;;  %v1889_v50 = vpop.f32.mrf.mxu1 }
 0x41a   :  { %v1819_v44 = vadd.f32 %v1818_v42, %v1673_v39  ;;  %v1890_v9 = vadd.f32 %v1889_v50, %v1744_v40 }
 0x41b   :  { %v1820_v45 = vpop.f32.mrf.mxu0  ;;  %v1891_v6 = vpop.f32.mrf.mxu1 }
 0x41c   :  { %v1894_v49 = vadd.f32 %v1819_v44, %v6919_v47  ;;  %v1821_v51 = vadd.f32 %v1820_v45, %v1675_v41  ;;  %v1892_v3 = vadd.f32 %v1891_v6, %v1746_v43  ;;  %v1896_v13 = vadd.f32 %v1890_v9, %v6934_v20  ;;  %v12440_v6 = vld [vmem:[#allocation108_spill] sm:$0xff]  ;;  %v12441_v9 = vld [vmem:[#allocation109_spill] sm:$0xff] }
 0x41e   :  { %v4534_v33 = vmul.f32 -1.442695, %v1894_v49  ;;  %v1895_v18 = vadd.f32 %v1821_v51, %v6923_v53  ;;  %v1897_v7 = vadd.f32 %v1892_v3, %v6929_v54 }
 0x420   :  { %4703 = vpow2.f32 %v4534_v33  ;;  %v4535_v4 = vmul.f32 -1.442695, %v1895_v18  ;;  %v4536_v11 = vmul.f32 -1.442695, %v1897_v7 }
 0x422   :  { %4705 = vpow2.f32 %v4535_v4 }
 0x423   :  { %4707 = vpow2.f32 %v4536_v11  ;;  %v12442_v11 = vld [vmem:[#allocation110_spill] sm:$0xff] }
 0x42d   :  { %v4704_v60 = vpop.eup %4703 }
 0x42e   :  { %v1901_v15 = vadd.f32 1.0, %v4704_v60 }
 0x42f   :  { %v4706_v17 = vpop.eup %4705 }
 0x430   :  { %4709 = vrcp.f32 %v1901_v15  ;;  %v1907_v19 = vadd.f32 1.0, %v4706_v17  ;;  %v4708_v24 = vpop.eup %4707  ;;  %v12443_v15 = vld [vmem:[#allocation111_spill] sm:$0xff]  ;;  %v12444_v17 = vld [vmem:[#allocation112_spill] sm:$0xff] }
 0x431   :  { %4711 = vtanh.f32 %v1896_v13  ;;  %v1914_v39 = vadd.f32 1.0, %v4708_v24  ;;  %v12449_v24 = vld [vmem:[#allocation117_spill] sm:$0xff] }
 0x432   :  { %4713 = vrcp.f32 %v1907_v19  ;;  %v12445_v19 = vld [vmem:[#allocation113_spill] sm:$0xff] }
 0x43a   :  { %v1988_v21 = vpop.f32.mrf.mxu0  ;;  %v2059_v29 = vpop.f32.mrf.mxu1 }
 0x43b   :  { %v2068_v22 = vrot.slane %v1988_v21, 2  ;;  %v2070_v44 = vrot.slane %v2059_v29, 2  ;;  %v12447_v21 = vld [vmem:[#allocation115_spill] sm:$0xff] }
 0x43c   :  { %v1990_v25 = vpop.f32.mrf.mxu0  ;;  %v2061_v41 = vpop.f32.mrf.mxu1  ;;  %v12455_v29 = vld [vmem:[#allocation123_spill] sm:$0xff] }
 0x43d   :  { %v4710_v27 = vpop.eup %4709  ;;  %v2076_v28 = vadd.f32 %v2068_v22, %v12128_v10  ;;  %v2069_v30 = vrot.slane %v1990_v25, 2  ;;  %v2071_v43 = vrot.slane %v2061_v41, 2  ;;  %v12448_v22 = vld [vmem:[#allocation116_spill] sm:$0xff]  ;;  %v12465_v41 = vld [vmem:[#allocation133_spill] sm:$0xff] }
 0x43e   :  { %v4712_v32 = vpop.eup %4711  ;;  %v12452_v25 = vld [vmem:[#allocation120_spill] sm:$0xff] }
 0x43f   :  { %v4714_v34 = vpop.eup %4713  ;;  %v4537_v35 = vmul.f32 -1.442695, %v2076_v28  ;;  %v2077_v36 = vadd.f32 %v2069_v30, %v12129_v26  ;;  %v1918_v37 = vmul.f32 %v4712_v32, %v4710_v27  ;;  %v2079_v10 = vadd.f32 %v2071_v43, %v6767_v8  ;;  %v12433_v8 = vld [vmem:[#allocation101_spill] sm:$0xff]  ;;  %v12454_v28 = vld [vmem:[#allocation122_spill] sm:$0xff]  ;;  %v12456_v30 = vld [vmem:[#allocation124_spill] sm:$0xff] }
 0x440   :  { %v1917_v38 = vmul.f32 %v4714_v34, %v7809_v62  ;;  %v2078_v26 = vadd.f32 %v2070_v44, %v6770_v2  ;;  %v12432_v2 = vld [vmem:[#allocation100_spill] sm:$0xff]  ;;  %v12453_v27 = vld [vmem:[#allocation121_spill] sm:$0xff]  ;;  %v12458_v34 = vld [vmem:[#allocation126_spill] sm:$0xff] }
 0x441   :  { %4715 = vpow2.f32 %v4537_v35  ;;  %v4538_v40 = vmul.f32 -1.442695, %v2077_v36  ;;  %v4539_v45 = vmul.f32 -1.442695, %v2079_v10  ;;  %v12457_v32 = vld [vmem:[#allocation125_spill] sm:$0xff]  ;;  %v12459_v35 = vld [vmem:[#allocation127_spill] sm:$0xff] }
 0x442   :  { %v8339_v42 = vadd.f32 %v1918_v37, %v1917_v38  ;;  %v12460_v36 = vld [vmem:[#allocation128_spill] sm:$0xff]  ;;  %v12461_v37 = vld [vmem:[#allocation129_spill] sm:$0xff]  ;;  %v12462_v38 = vld [vmem:[#allocation130_spill] sm:$0xff] }
 0x443   :  { %4717 = vpow2.f32 %v4538_v40  ;;  %v12464_v40 = vld [vmem:[#allocation132_spill] sm:$0xff]  ;;  %v12466_v43 = vld [vmem:[#allocation134_spill] sm:$0xff]  ;;  %v12467_v10 = vld [vmem:[#allocation135_spill] sm:$0xff] }
 0x444   :  { %4719 = vrcp.f32 %v1914_v39  ;;  %v12463_v39 = vld [vmem:[#allocation131_spill] sm:$0xff]  ;;  %v12468_v44 = vld [vmem:[#allocation136_spill] sm:$0xff] }
 0x445   :  { %4721 = vtanh.f32 %v8339_v42 }
 0x446   :  { %4723 = vpow2.f32 %v4539_v45  ;;  %v12469_v45 = vld [vmem:[#allocation137_spill] sm:$0xff] }
 0x44e   :  { %v4716_v49 = vpop.eup %4715 }
 0x44f   :  { %v2083_v50 = vadd.f32 1.0, %v4716_v49  ;;  %v12470_v49 = vld [vmem:[#allocation138_spill] sm:$0xff] }
 0x450   :  { %v4718_v62 = vpop.eup %4717 }
 0x451   :  { %v4720_v51 = vpop.eup %4719  ;;  %4725 = vrcp.f32 %v2083_v50  ;;  %v2089_v33 = vadd.f32 1.0, %v4718_v62  ;;  %v12472_v50 = vld [vmem:[#allocation140_spill] sm:$0xff] }
 0x452   :  { %v4722_v18 = vpop.eup %4721  ;;  %4727 = vtanh.f32 %v2078_v26  ;;  %v12471_v26 = vld [vmem:[#allocation139_spill] sm:$0xff] }
 0x453   :  { %4729 = vrcp.f32 %v2089_v33  ;;  %v1921_v4 = vmul.f32 %v4722_v18, %v4720_v51  ;;  %v12473_v51 = vld [vmem:[#allocation141_spill] sm:$0xff]  ;;  %v12474_v33 = vld [vmem:[#allocation142_spill] sm:$0xff] }
 0x455   :  { %2172 = vmatmul.mubr.f32.vlgmr.msra.gmra.mxu0 %v1921_v4  ;;  %2243 = vmatmul.mubr.f32.vlgmr.msra.gmra.mxu1 %v1921_v4  ;;  %v12475_v4 = vld [vmem:[#allocation143_spill] sm:$0xff] }
 0x456   :  { %2253 = vmatpush1.msra.mxu0 %v7817_v63  ;;  %2324 = vmatpush1.msra.mxu1 %v7823_v58  ;;  %v12434_v63 = vld [vmem:[#allocation102_spill] sm:$0xff]  ;;  %v12435_v58 = vld [vmem:[#allocation103_spill] sm:$0xff] }
 0x457   :  { %2254 = vmatprep.subr.mxu0 %v7829_v57  ;;  %2325 = vmatprep.subr.mxu1 %v7835_v61  ;;  %v4724_v57 = vpop.eup %4723  ;;  %v12436_v61 = vld [vmem:[#allocation104_spill] sm:$0xff] }
 0x458   :  { %2255 = vmatpush1.msra.mxu0 %v7841_v59  ;;  %2326 = vmatpush1.msra.mxu1 %v7847_v55  ;;  %v12437_v59 = vld [vmem:[#allocation105_spill] sm:$0xff]  ;;  %v2096_v7 = vadd.f32 1.0, %v4724_v57 }
 0x459   :  { %2256 = vmatprep.subr.mxu0 %v7853_v52  ;;  %2327 = vmatprep.subr.mxu1 %v7859_v48  ;;  %v12438_v52 = vld [vmem:[#allocation106_spill] sm:$0xff]  ;;  %v12439_v48 = vld [vmem:[#allocation107_spill] sm:$0xff] }
 0x45a   :  { %2257 = vmatpush1.msra.mxu0 %v7865_v5  ;;  %2328 = vmatpush1.msra.mxu1 %v7871_v46  ;;  %v2100_v46 = vrot.slane %v7971_v16, 6  ;;  %4731 = vrcp.f32 %v2096_v7  ;;  %v8417_v57 = vld [vmem:[%s11287_s2 + $0x1e8] sm:$0xff]  ;;  %v8497_v7 = vld [vmem:[%s11287_s2 + $0x198] sm:$0xff] }
 0x45b   :  { %2258 = vmatprep.subr.mxu0 %v12432_v2  ;;  %2329 = vmatprep.subr.mxu1 %v12433_v8  ;;  %v12476_v2 = vld [vmem:[#allocation144_spill] sm:$0xff]  ;;  %v12477_v8 = vld [vmem:[#allocation145_spill] sm:$0xff] }
 0x45c   :  { %2259 = vmatpush1.msra.mxu0 %v12434_v63  ;;  %2330 = vmatpush1.msra.mxu1 %v12435_v58 }
 0x45d   :  { %2260 = vmatprep.subr.mxu0 %v12436_v61  ;;  %2331 = vmatprep.subr.mxu1 %v12437_v59  ;;  %v8443_v61 = vld [vmem:[%s11287_s2 + $0x1c8] sm:$0xff]  ;;  %v8449_v59 = vld [vmem:[%s11287_s2 + $0x1d8] sm:$0xff] }
 0x45e   :  { %v4726_v55 = vpop.eup %4725  ;;  %2261 = vmatpush1.msra.mxu0 %v12438_v52  ;;  %2332 = vmatpush1.msra.mxu1 %v12439_v48  ;;  %v8461_v52 = vld [vmem:[%s11287_s2 + $0x1d0] sm:$0xff]  ;;  %v8467_v48 = vld [vmem:[%s11287_s2 + $0x1a8] sm:$0xff] }
 0x45f   :  { %v4728_v5 = vpop.eup %4727  ;;  %2262 = vmatprep.subr.mxu0 %v12440_v6  ;;  %2333 = vmatprep.subr.mxu1 %v7932_v14  ;;  %v12446_v14 = vld [vmem:[#allocation114_spill] sm:$0xff] }
 0x460   :  { %v4730_v3 = vpop.eup %4729  ;;  %2263 = vmatpush1.msra.mxu0 %v12441_v9  ;;  %2334 = vmatpush1.msra.mxu1 %v12442_v11  ;;  %v2103_v60 = vmul.f32 %v4728_v5, %v4726_v55  ;;  %v8455_v55 = vld [vmem:[%s11287_s2 + $0x1c0] sm:$0xff]  ;;  %v8473_v5 = vld [vmem:[%s11287_s2 + $0x1b8] sm:$0xff]  ;;  %v8485_v6 = vld [vmem:[%s11287_s2 + $0x1b0] sm:$0xff] }
 0x461   :  { %v2102_v13 = vmul.f32 %v4730_v3, %v2100_v46  ;;  %2264 = vmatprep.subr.mxu0 %v7950_v0  ;;  %2335 = vmatprep.subr.mxu1 %v7956_v12  ;;  %v12450_v0 = vld [vmem:[#allocation118_spill] sm:$0xff]  ;;  %v12451_v12 = vld [vmem:[#allocation119_spill] sm:$0xff]  ;;  %v8479_v46 = vld [vmem:[%s11287_s2 + $0x1a0] sm:$0xff] }
 0x462   :  { %2265 = vmatpush1.msra.mxu0 %v12443_v15  ;;  %2336 = vmatpush1.msra.mxu1 %v12444_v17  ;;  %v8491_v3 = vld [vmem:[%s11287_s2 + $0x188] sm:$0xff]  ;;  %v8503_v9 = vld [vmem:[%s11287_s2 + $0x180] sm:$0xff]  ;;  %v8509_v11 = vld [vmem:[%s11287_s2 + $0x190] sm:$0xff] }
 0x463   :  { %v8371_v16 = vadd.f32 %v2103_v60, %v2102_v13  ;;  %2266 = vmatprep.subr.mxu0 %v12445_v19  ;;  %2337 = vmatprep.subr.mxu1 %v12446_v14  ;;  %v8515_v60 = vld [vmem:[%s11287_s2 + $0x168] sm:$0xff]  ;;  %v8521_v13 = vld [vmem:[%s11287_s2 + $0x178] sm:$0xff]  ;;  %v8527_v15 = vld [vmem:[%s11287_s2 + $0x160] sm:$0xff] }
 0x464   :  { %2267 = vmatpush1.msra.mxu0 %v12447_v21  ;;  %2338 = vmatpush1.msra.mxu1 %v12448_v22  ;;  %v8533_v17 = vld [vmem:[%s11287_s2 + $0x170] sm:$0xff]  ;;  %v8539_v19 = vld [vmem:[%s11287_s2 + $0x148] sm:$0xff]  ;;  %v8545_v14 = vld [vmem:[%s11287_s2 + $0x158] sm:$0xff] }
 0x465   :  { %2268 = vmatprep.subr.mxu0 %v12449_v24  ;;  %2339 = vmatprep.subr.mxu1 %v12450_v0  ;;  %4733 = vtanh.f32 %v8371_v16  ;;  %v8551_v21 = vld [vmem:[%s11287_s2 + $0x140] sm:$0xff]  ;;  %v8557_v22 = vld [vmem:[%s11287_s2 + $0x150] sm:$0xff]  ;;  %v8563_v24 = vld [vmem:[%s11287_s2 + $0x128] sm:$0xff] }
 0x466   :  { %2269 = vmatpush1.msra.mxu0 %v12451_v12  ;;  %2340 = vmatpush1.msra.mxu1 %v12452_v25  ;;  %v8569_v0 = vld [vmem:[%s11287_s2 + $0x138] sm:$0xff]  ;;  %v8575_v12 = vld [vmem:[%s11287_s2 + $0x120] sm:$0xff]  ;;  %v8581_v25 = vld [vmem:[%s11287_s2 + $0x130] sm:$0xff] }
 0x467   :  { %2270 = vmatprep.subr.mxu0 %v12453_v27  ;;  %2341 = vmatprep.subr.mxu1 %v12454_v28  ;;  %v4732_v62 = vpop.eup %4731  ;;  %v8587_v27 = vld [vmem:[%s11287_s2 + $0x108] sm:$0xff]  ;;  %v8593_v28 = vld [vmem:[%s11287_s2 + $0x118] sm:$0xff] }
 0x468   :  { %2271 = vmatpush1.msra.mxu0 %v12455_v29  ;;  %2342 = vmatpush1.msra.mxu1 %v12456_v30  ;;  %v8599_v29 = vld [vmem:[%s11287_s2 + $0x100] sm:$0xff]  ;;  %v8605_v30 = vld [vmem:[%s11287_s2 + $0x110] sm:$0xff] }
 0x469   :  { %2272 = vmatprep.subr.mxu0 %v12457_v32  ;;  %2343 = vmatprep.subr.mxu1 %v12458_v34  ;;  %v8611_v32 = vld [vmem:[%s11287_s2 + $0xe8] sm:$0xff]  ;;  %v8617_v34 = vld [vmem:[%s11287_s2 + $0xf8] sm:$0xff] }
 0x46a   :  { %2273 = vmatpush1.msra.mxu0 %v12459_v35  ;;  %2344 = vmatpush1.msra.mxu1 %v12460_v36  ;;  %v8623_v35 = vld [vmem:[%s11287_s2 + $0xe0] sm:$0xff]  ;;  %v8629_v36 = vld [vmem:[%s11287_s2 + $0xf0] sm:$0xff] }
 0x46b   :  { %2274 = vmatprep.subr.mxu0 %v12461_v37  ;;  %2345 = vmatprep.subr.mxu1 %v12462_v38  ;;  %v8635_v37 = vld [vmem:[%s11287_s2 + $0xc8] sm:$0xff]  ;;  %v8641_v38 = vld [vmem:[%s11287_s2 + $0xd8] sm:$0xff] }
 0x46c   :  { %2275 = vmatpush1.msra.mxu0 %v12463_v39  ;;  %2346 = vmatpush1.msra.mxu1 %v12464_v40  ;;  %12478 = vst [vmem:[#allocation146_spill] sm:$0xff] %v8641_v38  ;;  %v8647_v39 = vld [vmem:[%s11287_s2 + $0xc0] sm:$0xff]  ;;  %v8653_v40 = vld [vmem:[%s11287_s2 + $0xd0] sm:$0xff] }
 0x46d   :  { %2276 = vmatprep.subr.mxu0 %v12465_v41  ;;  %2347 = vmatprep.subr.mxu1 %v12466_v43  ;;  %12479 = vst [vmem:[#allocation147_spill] sm:$0xff] %v8647_v39  ;;  %12480 = vst [vmem:[#allocation148_spill] sm:$0xff] %v8653_v40  ;;  %v8659_v41 = vld [vmem:[%s11287_s2 + $0xa8] sm:$0xff]  ;;  %v8665_v43 = vld [vmem:[%s11287_s2 + $0xb8] sm:$0xff] }
 0x46e   :  { %2277 = vmatpush1.msra.mxu0 %v12467_v10  ;;  %2348 = vmatpush1.msra.mxu1 %v12468_v44  ;;  %12481 = vst [vmem:[#allocation149_spill] sm:$0xff] %v8659_v41  ;;  %12482 = vst [vmem:[#allocation150_spill] sm:$0xff] %v8665_v43  ;;  %v8671_v10 = vld [vmem:[%s11287_s2 + $0xa0] sm:$0xff]  ;;  %v8677_v44 = vld [vmem:[%s11287_s2 + $0xb0] sm:$0xff] }
 0x46f   :  { %2278 = vmatprep.subr.mxu0 %v12469_v45  ;;  %2349 = vmatprep.subr.mxu1 %v12470_v49  ;;  %12483 = vst [vmem:[#allocation151_spill] sm:$0xff] %v8671_v10  ;;  %12484 = vst [vmem:[#allocation14_spill] sm:$0xff] %v8677_v44  ;;  %v8683_v45 = vld [vmem:[%s11287_s2 + $0x88] sm:$0xff]  ;;  %v8689_v49 = vld [vmem:[%s11287_s2 + $0x98] sm:$0xff] }
 0x470   :  { %2279 = vmatpush1.msra.mxu0 %v12471_v26  ;;  %2350 = vmatpush1.msra.mxu1 %v12472_v50  ;;  %12485 = vst [vmem:[#allocation5_spill] sm:$0xff] %v8683_v45  ;;  %12486 = vst [vmem:[#allocation15_spill] sm:$0xff] %v8689_v49  ;;  %v8695_v26 = vld [vmem:[%s11287_s2 + $0x80] sm:$0xff]  ;;  %v8701_v50 = vld [vmem:[%s11287_s2 + $0x90] sm:$0xff] }
 0x471   :  { %2280 = vmatprep.subr.mxu0 %v12473_v51  ;;  %2351 = vmatprep.subr.mxu1 %v12474_v33  ;;  %12487 = vst [vmem:[#allocation6_spill] sm:$0xff] %v8695_v26  ;;  %12488 = vst [vmem:[#allocation16_spill] sm:$0xff] %v8701_v50  ;;  %v8713_v51 = vld [vmem:[%s11287_s2 + $0x78] sm:$0xff]  ;;  %v8719_v33 = vld [vmem:[%s11287_s2 + $0x60] sm:$0xff] }
 0x472   :  { %v4734_v18 = vpop.eup %4733  ;;  %2281 = vmatpush1.msra.mxu0 %v12475_v4  ;;  %2352 = vmatpush1.msra.mxu1 %v12476_v2  ;;  %12490 = vst [vmem:[#allocation17_spill] sm:$0xff] %v8713_v51  ;;  %12491 = vst [vmem:[#allocation8_spill] sm:$0xff] %v8719_v33  ;;  %v8731_v4 = vld [vmem:[%s11287_s2 + $0x48] sm:$0xff]  ;;  %v8737_v2 = vld [vmem:[%s11287_s2 + $0x58] sm:$0xff] }
 0x473   :  { %2282 = vmatprep.subr.mxu0 %v8169_v1  ;;  %2353 = vmatprep.subr.mxu1 %v12477_v8  ;;  %v2106_v63 = vmul.f32 %v4734_v18, %v4732_v62  ;;  %v8423_v1 = vld [vmem:[%s11287_s2 + $0x1f8] sm:$0xff]  ;;  %v8707_v62 = vld [vmem:[%s11287_s2 + $0x68] sm:$0xff]  ;;  %v8725_v18 = vld [vmem:[%s11287_s2 + $0x70] sm:$0xff]  ;;  %12493 = vst [vmem:[#allocation9_spill] sm:$0xff] %v8731_v4 }
 0x474   :  { %2283 = vmatpush1.msra.mxu0 %v8181_v23  ;;  %2354 = vmatpush1.msra.mxu1 %v8187_v56  ;;  %v8431_v23 = vld [vmem:[%s11287_s2 + $0x1e0] sm:$0xff]  ;;  %v8437_v56 = vld [vmem:[%s11287_s2 + $0x1f0] sm:$0xff]  ;;  %12489 = vst [vmem:[#allocation7_spill] sm:$0xff] %v8707_v62  ;;  %12492 = vst [vmem:[#allocation18_spill] sm:$0xff] %v8725_v18 }
 0x475   :  { %2316 = vmatprep.mubr.f32.mxu0 %v12056_v31  ;;  %2387 = vmatprep.mubr.f32.mxu1 %v12056_v31  ;;  %v8412_v58 = vrot.slane %v2106_v63, 6  ;;  %12494 = vst [vmem:[#allocation19_spill] sm:$0xff] %v8737_v2  ;;  %v8743_v8 = vld [vmem:[%s11287_s2 + $0x40] sm:$0xff]  ;;  %v8749_v63 = vld [vmem:[%s11287_s2 + $0x50] sm:$0xff] }
 0x476   :  { %2422 = vmatprep.subr.mxu0 %v8417_v57  ;;  %2493 = vmatprep.subr.mxu1 %v8423_v1  ;;  %12495 = vst [vmem:[#allocation10_spill] sm:$0xff] %v8743_v8  ;;  %12496 = vst [vmem:[#allocation20_spill] sm:$0xff] %v8749_v63 }
 0x477   :  { %2317 = vmatmul.mubr.f32.vlgmr.msra.gmra.mxu0 %v8412_v58  ;;  %2388 = vmatmul.mubr.f32.vlgmr.msra.gmra.mxu1 %v8412_v58 }
 0x478   :  { %2423 = vmatpush1.msra.mxu0 %v8431_v23  ;;  %2494 = vmatpush1.msra.mxu1 %v8437_v56 }
 0x479   :  { %2424 = vmatprep.subr.mxu0 %v8443_v61  ;;  %2495 = vmatprep.subr.mxu1 %v8449_v59 }
 0x47a   :  { %2425 = vmatpush1.msra.mxu0 %v8455_v55  ;;  %2496 = vmatpush1.msra.mxu1 %v8461_v52 }
 0x47b   :  { %2426 = vmatprep.subr.mxu0 %v8467_v48  ;;  %2497 = vmatprep.subr.mxu1 %v8473_v5 }
 0x47c   :  { %2427 = vmatpush1.msra.mxu0 %v8479_v46  ;;  %2498 = vmatpush1.msra.mxu1 %v8485_v6 }
 0x47d   :  { %2428 = vmatprep.subr.mxu0 %v8491_v3  ;;  %2499 = vmatprep.subr.mxu1 %v8497_v7 }
 0x47e   :  { %2429 = vmatpush1.msra.mxu0 %v8503_v9  ;;  %2500 = vmatpush1.msra.mxu1 %v8509_v11 }
 0x47f   :  { %2430 = vmatprep.subr.mxu0 %v8515_v60  ;;  %2501 = vmatprep.subr.mxu1 %v8521_v13 }
 0x480   :  { %2431 = vmatpush1.msra.mxu0 %v8527_v15  ;;  %2502 = vmatpush1.msra.mxu1 %v8533_v17 }
 0x481   :  { %2432 = vmatprep.subr.mxu0 %v8539_v19  ;;  %2503 = vmatprep.subr.mxu1 %v8545_v14 }
 0x482   :  { %2433 = vmatpush1.msra.mxu0 %v8551_v21  ;;  %2504 = vmatpush1.msra.mxu1 %v8557_v22 }
 0x483   :  { %2434 = vmatprep.subr.mxu0 %v8563_v24  ;;  %2505 = vmatprep.subr.mxu1 %v8569_v0 }
 0x484   :  { %2435 = vmatpush1.msra.mxu0 %v8575_v12  ;;  %2506 = vmatpush1.msra.mxu1 %v8581_v25 }
 0x485   :  { %2436 = vmatprep.subr.mxu0 %v8587_v27  ;;  %2507 = vmatprep.subr.mxu1 %v8593_v28 }
 0x486   :  { %2437 = vmatpush1.msra.mxu0 %v8599_v29  ;;  %2508 = vmatpush1.msra.mxu1 %v8605_v30 }
 0x487   :  { %2438 = vmatprep.subr.mxu0 %v8611_v32  ;;  %2509 = vmatprep.subr.mxu1 %v8617_v34 }
 0x488   :  { %2439 = vmatpush1.msra.mxu0 %v8623_v35  ;;  %2510 = vmatpush1.msra.mxu1 %v8629_v36 }
 0x489   :  { %2440 = vmatprep.subr.mxu0 %v8635_v37  ;;  %2511 = vmatprep.subr.mxu1 %v8641_v38 }
 0x48a   :  { %2441 = vmatpush1.msra.mxu0 %v8647_v39  ;;  %2512 = vmatpush1.msra.mxu1 %v8653_v40 }
 0x48b   :  { %2442 = vmatprep.subr.mxu0 %v8659_v41  ;;  %2513 = vmatprep.subr.mxu1 %v8665_v43 }
 0x48c   :  { %2443 = vmatpush1.msra.mxu0 %v8671_v10  ;;  %2514 = vmatpush1.msra.mxu1 %v8677_v44 }
 0x48d   :  { %2444 = vmatprep.subr.mxu0 %v8683_v45  ;;  %2515 = vmatprep.subr.mxu1 %v8689_v49 }
 0x48e   :  { %2445 = vmatpush1.msra.mxu0 %v8695_v26  ;;  %2516 = vmatpush1.msra.mxu1 %v8701_v50 }
 0x48f   :  { %2446 = vmatprep.subr.mxu0 %v8707_v62  ;;  %2517 = vmatprep.subr.mxu1 %v8713_v51 }
 0x490   :  { %2447 = vmatpush1.msra.mxu0 %v8719_v33  ;;  %2518 = vmatpush1.msra.mxu1 %v8725_v18 }
 0x491   :  { %2448 = vmatprep.subr.mxu0 %v8731_v4  ;;  %2519 = vmatprep.subr.mxu1 %v8737_v2  ;;  %v8755_v4 = vld [vmem:[%s11287_s2 + $0x28] sm:$0xff]  ;;  %v8761_v2 = vld [vmem:[%s11287_s2 + $0x38] sm:$0xff] }
 0x492   :  { %2449 = vmatpush1.msra.mxu0 %v8743_v8  ;;  %2520 = vmatpush1.msra.mxu1 %v8749_v63  ;;  %12497 = vst [vmem:[#allocation11_spill] sm:$0xff] %v8755_v4  ;;  %12498 = vst [vmem:[#allocation21_spill] sm:$0xff] %v8761_v2  ;;  %v8767_v8 = vld [vmem:[%s11287_s2 + $0x20] sm:$0xff]  ;;  %v8773_v63 = vld [vmem:[%s11287_s2 + $0x30] sm:$0xff] }
 0x493   :  { %2450 = vmatprep.subr.mxu0 %v8755_v4  ;;  %2521 = vmatprep.subr.mxu1 %v8761_v2  ;;  %12499 = vst [vmem:[#allocation12_spill] sm:$0xff] %v8767_v8  ;;  %12500 = vst [vmem:[#allocation22_spill] sm:$0xff] %v8773_v63  ;;  %v8779_v4 = vld [vmem:[%s11287_s2 + $0x8] sm:$0xff]  ;;  %v8785_v2 = vld [vmem:[%s11287_s2 + $0x18] sm:$0xff] }
 0x494   :  { %2451 = vmatpush1.msra.mxu0 %v8767_v8  ;;  %2522 = vmatpush1.msra.mxu1 %v8773_v63  ;;  %12501 = vst [vmem:[#allocation13_spill] sm:$0xff] %v8779_v4  ;;  %12502 = vst [vmem:[#allocation23_spill] sm:$0xff] %v8785_v2  ;;  %v8791_v8 = vld [vmem:[%s11287_s2] sm:$0xff] }
 0x495   :  { %2452 = vmatprep.subr.mxu0 %v8779_v4  ;;  %2523 = vmatprep.subr.mxu1 %v8785_v2  ;;  %12503 = vst [vmem:[#allocation24_spill] sm:$0xff] %v8791_v8  ;;  %v8798_v4 = vld [vmem:[%s11287_s2 + $0x10] sm:$0xff]  ;;  %v8807_v2 = vld [vmem:[%s11290_s5 + $0x1e8] sm:$0xff] }
 0x496   :  { %2453 = vmatpush1.msra.mxu0 %v8791_v8  ;;  %2486 = vmatprep.mubr.f32.mxu0 %v12056_v31  ;;  %12504 = vst [vmem:[#allocation26_spill] sm:$0xff] %v8798_v4  ;;  %12505 = vst [vmem:[#allocation25_spill] sm:$0xff] %v8807_v2  ;;  %v8813_v8 = vld [vmem:[%s11290_s5 + $0x1f8] sm:$0xff] }
 0x497   :  { %2524 = vmatpush1.msra.mxu1 %v8798_v4  ;;  %2557 = vmatprep.mubr.f32.mxu1 %v12056_v31  ;;  %12506 = vst [vmem:[#allocation28_spill] sm:$0xff] %v8813_v8  ;;  %v8819_v4 = vld [vmem:[%s11290_s5 + $0x1e0] sm:$0xff] }
 0x498   :  { %2487 = vmatmul.mubr.f32.vlgmr.msra.gmra.mxu0 %v8412_v58  ;;  %2558 = vmatmul.mubr.f32.vlgmr.msra.gmra.mxu1 %v8412_v58  ;;  %12507 = vst [vmem:[#allocation27_spill] sm:$0xff] %v8819_v4  ;;  %v8825_v58 = vld [vmem:[%s11290_s5 + $0x1f0] sm:$0xff] }
 0x499   :  { %2595 = vmatprep.subr.mxu0 %v8807_v2  ;;  %2666 = vmatprep.subr.mxu1 %v8813_v8  ;;  %12508 = vst [vmem:[#allocation30_spill] sm:$0xff] %v8825_v58  ;;  %v8831_v2 = vld [vmem:[%s11290_s5 + $0x1c8] sm:$0xff]  ;;  %v8837_v8 = vld [vmem:[%s11290_s5 + $0x1d8] sm:$0xff] }
 0x49a   :  { %2596 = vmatpush1.msra.mxu0 %v8819_v4  ;;  %2667 = vmatpush1.msra.mxu1 %v8825_v58  ;;  %12509 = vst [vmem:[#allocation29_spill] sm:$0xff] %v8831_v2  ;;  %12510 = vst [vmem:[#allocation32_spill] sm:$0xff] %v8837_v8  ;;  %v8843_v4 = vld [vmem:[%s11290_s5 + $0x1c0] sm:$0xff]  ;;  %v8849_v58 = vld [vmem:[%s11290_s5 + $0x1d0] sm:$0xff] }
 0x49b   :  { %2597 = vmatprep.subr.mxu0 %v8831_v2  ;;  %2668 = vmatprep.subr.mxu1 %v8837_v8  ;;  %12511 = vst [vmem:[#allocation31_spill] sm:$0xff] %v8843_v4  ;;  %12512 = vst [vmem:[#allocation34_spill] sm:$0xff] %v8849_v58  ;;  %v8855_v2 = vld [vmem:[%s11290_s5 + $0x1a8] sm:$0xff]  ;;  %v8861_v8 = vld [vmem:[%s11290_s5 + $0x1b8] sm:$0xff] }
 0x49c   :  { %2598 = vmatpush1.msra.mxu0 %v8843_v4  ;;  %2669 = vmatpush1.msra.mxu1 %v8849_v58  ;;  %12513 = vst [vmem:[#allocation33_spill] sm:$0xff] %v8855_v2  ;;  %12514 = vst [vmem:[#allocation36_spill] sm:$0xff] %v8861_v8  ;;  %v8867_v4 = vld [vmem:[%s11290_s5 + $0x1a0] sm:$0xff]  ;;  %v8873_v58 = vld [vmem:[%s11290_s5 + $0x1b0] sm:$0xff] }
 0x49d   :  { %2599 = vmatprep.subr.mxu0 %v8855_v2  ;;  %2670 = vmatprep.subr.mxu1 %v8861_v8  ;;  %12515 = vst [vmem:[#allocation35_spill] sm:$0xff] %v8867_v4  ;;  %12516 = vst [vmem:[#allocation37_spill] sm:$0xff] %v8873_v58  ;;  %v8879_v2 = vld [vmem:[%s11290_s5 + $0x188] sm:$0xff]  ;;  %v8885_v8 = vld [vmem:[%s11290_s5 + $0x198] sm:$0xff] }
 0x49e   :  { %2600 = vmatpush1.msra.mxu0 %v8867_v4  ;;  %2671 = vmatpush1.msra.mxu1 %v8873_v58  ;;  %12517 = vst [vmem:[#allocation38_spill] sm:$0xff] %v8879_v2  ;;  %12518 = vst [vmem:[#allocation39_spill] sm:$0xff] %v8885_v8  ;;  %v8891_v4 = vld [vmem:[%s11290_s5 + $0x180] sm:$0xff]  ;;  %v8897_v58 = vld [vmem:[%s11290_s5 + $0x190] sm:$0xff] }
 0x49f   :  { %2601 = vmatprep.subr.mxu0 %v8879_v2  ;;  %2672 = vmatprep.subr.mxu1 %v8885_v8  ;;  %12519 = vst [vmem:[#allocation40_spill] sm:$0xff] %v8891_v4  ;;  %12520 = vst [vmem:[#allocation42_spill] sm:$0xff] %v8897_v58  ;;  %v8903_v2 = vld [vmem:[%s11290_s5 + $0x168] sm:$0xff]  ;;  %v8909_v8 = vld [vmem:[%s11290_s5 + $0x178] sm:$0xff] }
 0x4a0   :  { %2602 = vmatpush1.msra.mxu0 %v8891_v4  ;;  %2673 = vmatpush1.msra.mxu1 %v8897_v58  ;;  %12521 = vst [vmem:[#allocation41_spill] sm:$0xff] %v8903_v2  ;;  %12522 = vst [vmem:[#allocation44_spill] sm:$0xff] %v8909_v8  ;;  %v8915_v4 = vld [vmem:[%s11290_s5 + $0x160] sm:$0xff]  ;;  %v8921_v58 = vld [vmem:[%s11290_s5 + $0x170] sm:$0xff] }
 0x4a1   :  { %2603 = vmatprep.subr.mxu0 %v8903_v2  ;;  %2674 = vmatprep.subr.mxu1 %v8909_v8  ;;  %12523 = vst [vmem:[#allocation43_spill] sm:$0xff] %v8915_v4  ;;  %12524 = vst [vmem:[#allocation46_spill] sm:$0xff] %v8921_v58  ;;  %v8927_v2 = vld [vmem:[%s11290_s5 + $0x148] sm:$0xff]  ;;  %v8933_v8 = vld [vmem:[%s11290_s5 + $0x158] sm:$0xff] }
 0x4a2   :  { %2604 = vmatpush1.msra.mxu0 %v8915_v4  ;;  %2675 = vmatpush1.msra.mxu1 %v8921_v58  ;;  %12525 = vst [vmem:[#allocation45_spill] sm:$0xff] %v8927_v2  ;;  %12526 = vst [vmem:[#allocation48_spill] sm:$0xff] %v8933_v8  ;;  %v8939_v4 = vld [vmem:[%s11290_s5 + $0x140] sm:$0xff]  ;;  %v8945_v58 = vld [vmem:[%s11290_s5 + $0x150] sm:$0xff] }
 0x4a3   :  { %2605 = vmatprep.subr.mxu0 %v8927_v2  ;;  %2676 = vmatprep.subr.mxu1 %v8933_v8  ;;  %12527 = vst [vmem:[#allocation47_spill] sm:$0xff] %v8939_v4  ;;  %12528 = vst [vmem:[#allocation50_spill] sm:$0xff] %v8945_v58  ;;  %v8951_v2 = vld [vmem:[%s11290_s5 + $0x128] sm:$0xff]  ;;  %v8957_v8 = vld [vmem:[%s11290_s5 + $0x138] sm:$0xff] }
 0x4a4   :  { %2606 = vmatpush1.msra.mxu0 %v8939_v4  ;;  %2677 = vmatpush1.msra.mxu1 %v8945_v58  ;;  %12529 = vst [vmem:[#allocation49_spill] sm:$0xff] %v8951_v2  ;;  %12530 = vst [vmem:[#allocation52_spill] sm:$0xff] %v8957_v8  ;;  %v8963_v4 = vld [vmem:[%s11290_s5 + $0x120] sm:$0xff]  ;;  %v8969_v58 = vld [vmem:[%s11290_s5 + $0x130] sm:$0xff] }
 0x4a5   :  { %2607 = vmatprep.subr.mxu0 %v8951_v2  ;;  %2678 = vmatprep.subr.mxu1 %v8957_v8  ;;  %12531 = vst [vmem:[#allocation51_spill] sm:$0xff] %v8963_v4  ;;  %12532 = vst [vmem:[#allocation54_spill] sm:$0xff] %v8969_v58  ;;  %v8975_v2 = vld [vmem:[%s11290_s5 + $0x108] sm:$0xff]  ;;  %v8981_v8 = vld [vmem:[%s11290_s5 + $0x118] sm:$0xff] }
 0x4a6   :  { %2608 = vmatpush1.msra.mxu0 %v8963_v4  ;;  %2679 = vmatpush1.msra.mxu1 %v8969_v58  ;;  %12533 = vst [vmem:[#allocation53_spill] sm:$0xff] %v8975_v2  ;;  %12534 = vst [vmem:[#allocation56_spill] sm:$0xff] %v8981_v8  ;;  %v8987_v4 = vld [vmem:[%s11290_s5 + $0x100] sm:$0xff]  ;;  %v8993_v58 = vld [vmem:[%s11290_s5 + $0x110] sm:$0xff] }
 0x4a7   :  { %2609 = vmatprep.subr.mxu0 %v8975_v2  ;;  %2680 = vmatprep.subr.mxu1 %v8981_v8  ;;  %12535 = vst [vmem:[#allocation55_spill] sm:$0xff] %v8987_v4  ;;  %12536 = vst [vmem:[#allocation58_spill] sm:$0xff] %v8993_v58  ;;  %v8999_v2 = vld [vmem:[%s11290_s5 + $0xe8] sm:$0xff]  ;;  %v9005_v8 = vld [vmem:[%s11290_s5 + $0xf8] sm:$0xff] }
 0x4a8   :  { %2610 = vmatpush1.msra.mxu0 %v8987_v4  ;;  %2681 = vmatpush1.msra.mxu1 %v8993_v58  ;;  %12537 = vst [vmem:[#allocation57_spill] sm:$0xff] %v8999_v2  ;;  %12538 = vst [vmem:[#allocation60_spill] sm:$0xff] %v9005_v8  ;;  %v9011_v4 = vld [vmem:[%s11290_s5 + $0xe0] sm:$0xff]  ;;  %v9017_v58 = vld [vmem:[%s11290_s5 + $0xf0] sm:$0xff] }
 0x4a9   :  { %2611 = vmatprep.subr.mxu0 %v8999_v2  ;;  %2682 = vmatprep.subr.mxu1 %v9005_v8  ;;  %12539 = vst [vmem:[#allocation59_spill] sm:$0xff] %v9011_v4  ;;  %12540 = vst [vmem:[#allocation62_spill] sm:$0xff] %v9017_v58  ;;  %v9023_v2 = vld [vmem:[%s11290_s5 + $0xc8] sm:$0xff]  ;;  %v9029_v8 = vld [vmem:[%s11290_s5 + $0xd8] sm:$0xff] }
 0x4aa   :  { %2612 = vmatpush1.msra.mxu0 %v9011_v4  ;;  %2683 = vmatpush1.msra.mxu1 %v9017_v58  ;;  %12541 = vst [vmem:[#allocation61_spill] sm:$0xff] %v9023_v2  ;;  %12542 = vst [vmem:[#allocation64_spill] sm:$0xff] %v9029_v8  ;;  %v9035_v4 = vld [vmem:[%s11290_s5 + $0xc0] sm:$0xff]  ;;  %v9041_v58 = vld [vmem:[%s11290_s5 + $0xd0] sm:$0xff] }
 0x4ab   :  { %2613 = vmatprep.subr.mxu0 %v9023_v2  ;;  %2684 = vmatprep.subr.mxu1 %v9029_v8  ;;  %12543 = vst [vmem:[#allocation63_spill] sm:$0xff] %v9035_v4  ;;  %12544 = vst [vmem:[#allocation66_spill] sm:$0xff] %v9041_v58  ;;  %v9047_v2 = vld [vmem:[%s11290_s5 + $0xa8] sm:$0xff]  ;;  %v9053_v8 = vld [vmem:[%s11290_s5 + $0xb8] sm:$0xff] }
 0x4ac   :  { %2614 = vmatpush1.msra.mxu0 %v9035_v4  ;;  %2685 = vmatpush1.msra.mxu1 %v9041_v58  ;;  %12545 = vst [vmem:[#allocation65_spill] sm:$0xff] %v9047_v2  ;;  %12546 = vst [vmem:[#allocation68_spill] sm:$0xff] %v9053_v8  ;;  %v9059_v4 = vld [vmem:[%s11290_s5 + $0xa0] sm:$0xff]  ;;  %v9065_v58 = vld [vmem:[%s11290_s5 + $0xb0] sm:$0xff] }
 0x4ad   :  { %2615 = vmatprep.subr.mxu0 %v9047_v2  ;;  %2686 = vmatprep.subr.mxu1 %v9053_v8  ;;  %12547 = vst [vmem:[#allocation67_spill] sm:$0xff] %v9059_v4  ;;  %12548 = vst [vmem:[#allocation70_spill] sm:$0xff] %v9065_v58  ;;  %v9071_v2 = vld [vmem:[%s11290_s5 + $0x88] sm:$0xff]  ;;  %v9077_v8 = vld [vmem:[%s11290_s5 + $0x98] sm:$0xff] }
 0x4ae   :  { %2616 = vmatpush1.msra.mxu0 %v9059_v4  ;;  %2687 = vmatpush1.msra.mxu1 %v9065_v58  ;;  %12549 = vst [vmem:[#allocation69_spill] sm:$0xff] %v9071_v2  ;;  %12550 = vst [vmem:[#allocation72_spill] sm:$0xff] %v9077_v8  ;;  %v9083_v4 = vld [vmem:[%s11290_s5 + $0x80] sm:$0xff]  ;;  %v9089_v58 = vld [vmem:[%s11290_s5 + $0x90] sm:$0xff] }
 0x4af   :  { %2617 = vmatprep.subr.mxu0 %v9071_v2  ;;  %2688 = vmatprep.subr.mxu1 %v9077_v8  ;;  %12551 = vst [vmem:[#allocation71_spill] sm:$0xff] %v9083_v4  ;;  %12552 = vst [vmem:[#allocation74_spill] sm:$0xff] %v9089_v58  ;;  %v9095_v2 = vld [vmem:[%s11290_s5 + $0x68] sm:$0xff]  ;;  %v9101_v8 = vld [vmem:[%s11290_s5 + $0x78] sm:$0xff] }
 0x4b0   :  { %2618 = vmatpush1.msra.mxu0 %v9083_v4  ;;  %2689 = vmatpush1.msra.mxu1 %v9089_v58  ;;  %12553 = vst [vmem:[#allocation73_spill] sm:$0xff] %v9095_v2  ;;  %12554 = vst [vmem:[#allocation76_spill] sm:$0xff] %v9101_v8  ;;  %v9107_v4 = vld [vmem:[%s11290_s5 + $0x60] sm:$0xff]  ;;  %v9113_v58 = vld [vmem:[%s11290_s5 + $0x70] sm:$0xff] }
 0x4b1   :  { %2619 = vmatprep.subr.mxu0 %v9095_v2  ;;  %2690 = vmatprep.subr.mxu1 %v9101_v8  ;;  %12555 = vst [vmem:[#allocation75_spill] sm:$0xff] %v9107_v4  ;;  %12556 = vst [vmem:[#allocation78_spill] sm:$0xff] %v9113_v58  ;;  %v9119_v2 = vld [vmem:[%s11290_s5 + $0x48] sm:$0xff]  ;;  %v9125_v8 = vld [vmem:[%s11290_s5 + $0x58] sm:$0xff] }
 0x4b2   :  { %2620 = vmatpush1.msra.mxu0 %v9107_v4  ;;  %2691 = vmatpush1.msra.mxu1 %v9113_v58  ;;  %12557 = vst [vmem:[#allocation77_spill] sm:$0xff] %v9119_v2  ;;  %12558 = vst [vmem:[#allocation80_spill] sm:$0xff] %v9125_v8  ;;  %v9131_v4 = vld [vmem:[%s11290_s5 + $0x40] sm:$0xff]  ;;  %v9137_v58 = vld [vmem:[%s11290_s5 + $0x50] sm:$0xff] }
 0x4b3   :  { %2621 = vmatprep.subr.mxu0 %v9119_v2  ;;  %2692 = vmatprep.subr.mxu1 %v9125_v8  ;;  %12559 = vst [vmem:[#allocation79_spill] sm:$0xff] %v9131_v4  ;;  %12560 = vst [vmem:[#allocation82_spill] sm:$0xff] %v9137_v58  ;;  %v9143_v2 = vld [vmem:[%s11290_s5 + $0x28] sm:$0xff]  ;;  %v9149_v8 = vld [vmem:[%s11290_s5 + $0x38] sm:$0xff] }
 0x4b4   :  { %2622 = vmatpush1.msra.mxu0 %v9131_v4  ;;  %2693 = vmatpush1.msra.mxu1 %v9137_v58  ;;  %12561 = vst [vmem:[#allocation81_spill] sm:$0xff] %v9143_v2  ;;  %12562 = vst [vmem:[#allocation84_spill] sm:$0xff] %v9149_v8  ;;  %v9155_v4 = vld [vmem:[%s11290_s5 + $0x20] sm:$0xff]  ;;  %v9161_v58 = vld [vmem:[%s11290_s5 + $0x30] sm:$0xff] }
 0x4b5   :  { %2623 = vmatprep.subr.mxu0 %v9143_v2  ;;  %2694 = vmatprep.subr.mxu1 %v9149_v8  ;;  %12563 = vst [vmem:[#allocation83_spill] sm:$0xff] %v9155_v4  ;;  %12564 = vst [vmem:[#allocation86_spill] sm:$0xff] %v9161_v58  ;;  %v9167_v2 = vld [vmem:[%s11290_s5 + $0x8] sm:$0xff]  ;;  %v9173_v8 = vld [vmem:[%s11290_s5 + $0x18] sm:$0xff] }
 0x4b6   :  { %2624 = vmatpush1.msra.mxu0 %v9155_v4  ;;  %2695 = vmatpush1.msra.mxu1 %v9161_v58  ;;  %12565 = vst [vmem:[#allocation85_spill] sm:$0xff] %v9167_v2  ;;  %12566 = vst [vmem:[#allocation87_spill] sm:$0xff] %v9173_v8  ;;  %v9179_v4 = vld [vmem:[%s11290_s5] sm:$0xff]  ;;  %v9185_v58 = vld [vmem:[%s11290_s5 + $0x10] sm:$0xff] }
 0x4b7   :  { %2625 = vmatprep.subr.mxu0 %v9167_v2  ;;  %2696 = vmatprep.subr.mxu1 %v9173_v8  ;;  %12567 = vst [vmem:[#allocation88_spill] sm:$0xff] %v9179_v4  ;;  %12568 = vst [vmem:[#allocation89_spill] sm:$0xff] %v9185_v58  ;;  %v9193_v8 = vld [vmem:[%s11289_s4 + $0x1e8] sm:$0xff] }
 0x4b8   :  { %2626 = vmatpush1.msra.mxu0 %v9179_v4  ;;  %2697 = vmatpush1.msra.mxu1 %v9185_v58  ;;  %12569 = vst [vmem:[#allocation154_spill] sm:$0xff] %v9193_v8  ;;  %v9199_v4 = vld [vmem:[%s11289_s4 + $0x1f8] sm:$0xff] }
 0x4b9   :  { %2659 = vmatprep.mubr.f32.mxu0 %v12056_v31  ;;  %2730 = vmatprep.mubr.f32.mxu1 %v12056_v31  ;;  %12570 = vst [vmem:[#allocation155_spill] sm:$0xff] %v9199_v4 }
 0x4ba   :  { %2737 = vmatprep.subr.mxu0 %v9193_v8  ;;  %2808 = vmatprep.subr.mxu1 %v9199_v4 }
 0x515   :  { %v2173_v2 = vpop.f32.mrf.mxu0  ;;  %v2244_v58 = vpop.f32.mrf.mxu1 }
 0x517   :  { %v2175_v63 = vpop.f32.mrf.mxu0  ;;  %v2246_v33 = vpop.f32.mrf.mxu1 }
 0x537   :  { %v2318_v18 = vpop.f32.mrf.mxu0  ;;  %v2389_v26 = vpop.f32.mrf.mxu1 }
 0x538   :  { %v2319_v51 = vadd.f32 %v2318_v18, %v2173_v2  ;;  %v2390_v41 = vadd.f32 %v2389_v26, %v2244_v58 }
 0x539   :  { %v2320_v62 = vpop.f32.mrf.mxu0  ;;  %v2391_v10 = vpop.f32.mrf.mxu1 }
 0x53a   :  { %v2394_v50 = vadd.f32 %v2319_v51, %v6919_v47  ;;  %v2321_v49 = vadd.f32 %v2320_v62, %v2175_v63  ;;  %v2392_v43 = vadd.f32 %v2391_v10, %v2246_v33  ;;  %v2396_v18 = vadd.f32 %v2390_v41, %v6934_v20 }
 0x53c   :  { %v4540_v45 = vmul.f32 -1.442695, %v2394_v50  ;;  %v2395_v8 = vadd.f32 %v2321_v49, %v6923_v53  ;;  %v2397_v4 = vadd.f32 %v2392_v43, %v6929_v54  ;;  %v12572_v43 = vld [vmem:[#allocation153_spill] sm:$0xff] }
 0x53e   :  { %4735 = vpow2.f32 %v4540_v45  ;;  %v4541_v44 = vmul.f32 -1.442695, %v2395_v8  ;;  %v4542_v40 = vmul.f32 -1.442695, %v2397_v4  ;;  %v12571_v45 = vld [vmem:[#allocation152_spill] sm:$0xff] }
 0x540   :  { %4737 = vpow2.f32 %v4541_v44 }
 0x541   :  { %4739 = vpow2.f32 %v4542_v40 }
 0x54b   :  { %v4736_v39 = vpop.eup %4735 }
 0x54c   :  { %v2401_v2 = vadd.f32 1.0, %v4736_v39 }
 0x54d   :  { %v4738_v38 = vpop.eup %4737 }
 0x54e   :  { %4741 = vrcp.f32 %v2401_v2  ;;  %v2407_v62 = vadd.f32 1.0, %v4738_v38  ;;  %v4740_v51 = vpop.eup %4739  ;;  %v12573_v2 = vld [vmem:[#allocation157_spill] sm:$0xff] }
 0x54f   :  { %4743 = vtanh.f32 %v2396_v18  ;;  %v2414_v63 = vadd.f32 1.0, %v4740_v51 }
 0x550   :  { %4745 = vrcp.f32 %v2407_v62 }
 0x558   :  { %v2488_v49 = vpop.f32.mrf.mxu0  ;;  %v2559_v38 = vpop.f32.mrf.mxu1 }
 0x559   :  { %v2564_v50 = vadd.f32 %v2488_v49, %v12571_v45  ;;  %v12574_v49 = vld [vmem:[#allocation156_spill] sm:$0xff] }
 0x55a   :  { %v2490_v44 = vpop.f32.mrf.mxu0  ;;  %v2561_v18 = vpop.f32.mrf.mxu1 }
 0x55b   :  { %v4742_v10 = vpop.eup %4741  ;;  %v4543_v33 = vmul.f32 -1.442695, %v2564_v50  ;;  %v2565_v26 = vadd.f32 %v2490_v44, %v12572_v43  ;;  %v2567_v62 = vadd.f32 %v2561_v18, %v12573_v2  ;;  %v2566_v50 = vadd.f32 %v2559_v38, %v12574_v49  ;;  %v9253_v38 = vld [vmem:[%s11289_s4 + $0x1a8] sm:$0xff]  ;;  %v9259_v18 = vld [vmem:[%s11289_s4 + $0x1b8] sm:$0xff] }
 0x55c   :  { %v4744_v4 = vpop.eup %4743 }
 0x55d   :  { %v4746_v8 = vpop.eup %4745  ;;  %4747 = vpow2.f32 %v4543_v33  ;;  %v4544_v39 = vmul.f32 -1.442695, %v2565_v26  ;;  %v2418_v41 = vmul.f32 %v4744_v4, %v4742_v10  ;;  %v4545_v43 = vmul.f32 -1.442695, %v2567_v62  ;;  %v9265_v62 = vld [vmem:[%s11289_s4 + $0x1a0] sm:$0xff] }
 0x55e   :  { %v2417_v40 = vmul.f32 %v4746_v8, %v8339_v42  ;;  %v9217_v8 = vld [vmem:[%s11289_s4 + $0x1e0] sm:$0xff]  ;;  %12575 = vst [vmem:[#allocation90_spill] sm:$0xff] %v9265_v62 }
 0x55f   :  { %4749 = vpow2.f32 %v4544_v39  ;;  %v9235_v39 = vld [vmem:[%s11289_s4 + $0x1d8] sm:$0xff] }
 0x560   :  { %v9209_v58 = vadd.f32 %v2418_v41, %v2417_v40  ;;  %4751 = vrcp.f32 %v2414_v63  ;;  %v9223_v63 = vld [vmem:[%s11289_s4 + $0x1f0] sm:$0xff]  ;;  %v9241_v41 = vld [vmem:[%s11289_s4 + $0x1c0] sm:$0xff] }
 0x561   :  { %v9247_v40 = vld [vmem:[%s11289_s4 + $0x1d0] sm:$0xff] }
 0x562   :  { %4753 = vtanh.f32 %v9209_v58 }
 0x563   :  { %4755 = vtanh.f32 %v2566_v50  ;;  %v9271_v50 = vld [vmem:[%s11289_s4 + $0x1b0] sm:$0xff] }
 0x564   :  { %12576 = vst [vmem:[#allocation91_spill] sm:$0xff] %v9271_v50 }
 0x56a   :  { %v4748_v44 = vpop.eup %4747 }
 0x56b   :  { %v2571_v51 = vadd.f32 1.0, %v4748_v44  ;;  %v9277_v44 = vld [vmem:[%s11289_s4 + $0x188] sm:$0xff] }
 0x56c   :  { %v4750_v33 = vpop.eup %4749  ;;  %12577 = vst [vmem:[#allocation92_spill] sm:$0xff] %v9277_v44 }
 0x56d   :  { %4757 = vrcp.f32 %v2571_v51  ;;  %v2577_v10 = vadd.f32 1.0, %v4750_v33  ;;  %v4752_v42 = vpop.eup %4751  ;;  %v9283_v51 = vld [vmem:[%s11289_s4 + $0x198] sm:$0xff] }
 0x56e   :  { %4759 = vpow2.f32 %v4545_v43  ;;  %v9229_v43 = vld [vmem:[%s11289_s4 + $0x1c8] sm:$0xff]  ;;  %12578 = vst [vmem:[#allocation93_spill] sm:$0xff] %v9283_v51 }
 0x56f   :  { %v4754_v26 = vpop.eup %4753  ;;  %4761 = vrcp.f32 %v2577_v10  ;;  %v9289_v10 = vld [vmem:[%s11289_s4 + $0x180] sm:$0xff] }
 0x570   :  { %v2421_v4 = vmul.f32 %v4754_v26, %v4752_v42  ;;  %v4756_v33 = vpop.eup %4755  ;;  %12579 = vst [vmem:[#allocation94_spill] sm:$0xff] %v9289_v10  ;;  %v9295_v42 = vld [vmem:[%s11289_s4 + $0x190] sm:$0xff] }
 0x571   :  { %12580 = vst [vmem:[#allocation95_spill] sm:$0xff] %v9295_v42 }
 0x572   :  { %2660 = vmatmul.mubr.f32.vlgmr.msra.gmra.mxu0 %v2421_v4  ;;  %2731 = vmatmul.mubr.f32.vlgmr.msra.gmra.mxu1 %v2421_v4  ;;  %v9301_v4 = vld [vmem:[%s11289_s4 + $0x168] sm:$0xff] }
 0x573   :  { %2738 = vmatpush1.msra.mxu0 %v9217_v8  ;;  %2809 = vmatpush1.msra.mxu1 %v9223_v63  ;;  %12581 = vst [vmem:[#allocation96_spill] sm:$0xff] %v9301_v4 }
 0x574   :  { %2739 = vmatprep.subr.mxu0 %v9229_v43  ;;  %2810 = vmatprep.subr.mxu1 %v9235_v39 }
 0x575   :  { %2740 = vmatpush1.msra.mxu0 %v9241_v41  ;;  %2811 = vmatpush1.msra.mxu1 %v9247_v40 }
 0x576   :  { %2741 = vmatprep.subr.mxu0 %v9253_v38  ;;  %2812 = vmatprep.subr.mxu1 %v9259_v18 }
 0x577   :  { %2742 = vmatpush1.msra.mxu0 %v9265_v62  ;;  %2813 = vmatpush1.msra.mxu1 %v9271_v50 }
 0x578   :  { %2743 = vmatprep.subr.mxu0 %v9277_v44  ;;  %2814 = vmatprep.subr.mxu1 %v9283_v51  ;;  %v9307_v51 = vld [vmem:[%s11289_s4 + $0x178] sm:$0xff]  ;;  %v2588_v44 = vrot.slane %v8371_v16, 6 }
 0x579   :  { %2744 = vmatpush1.msra.mxu0 %v9289_v10  ;;  %2815 = vmatpush1.msra.mxu1 %v9295_v42  ;;  %12582 = vst [vmem:[#allocation97_spill] sm:$0xff] %v9307_v51  ;;  %v9314_v42 = vld [vmem:[%s11289_s4 + $0x160] sm:$0xff]  ;;  %v9332_v16 = vld [vmem:[%s11289_s4 + $0x158] sm:$0xff] }
 0x57a   :  { %v4758_v26 = vpop.eup %4757  ;;  %2745 = vmatprep.subr.mxu0 %v9301_v4  ;;  %2816 = vmatprep.subr.mxu1 %v9307_v51  ;;  %12583 = vst [vmem:[#allocation98_spill] sm:$0xff] %v9314_v42  ;;  %v9320_v4 = vld [vmem:[%s11289_s4 + $0x170] sm:$0xff]  ;;  %v9326_v51 = vld [vmem:[%s11289_s4 + $0x148] sm:$0xff]  ;;  %12586 = vst [vmem:[#allocation101_spill] sm:$0xff] %v9332_v16 }
 0x57b   :  { %v4760_v10 = vpop.eup %4759  ;;  %2746 = vmatpush1.msra.mxu0 %v9314_v42  ;;  %12584 = vst [vmem:[#allocation99_spill] sm:$0xff] %v9320_v4  ;;  %2817 = vmatpush1.msra.mxu1 %v9320_v4  ;;  %12585 = vst [vmem:[#allocation100_spill] sm:$0xff] %v9326_v51  ;;  %v2591_v42 = vmul.f32 %v4758_v26, %v4756_v33  ;;  %v9338_v4 = vld [vmem:[%s11289_s4 + $0x140] sm:$0xff] }
 0x57c   :  { %v4762_v50 = vpop.eup %4761  ;;  %2747 = vmatprep.subr.mxu0 %v9326_v51  ;;  %2818 = vmatprep.subr.mxu1 %v9332_v16  ;;  %v9344_v51 = vld [vmem:[%s11289_s4 + $0x150] sm:$0xff]  ;;  %v9350_v16 = vld [vmem:[%s11289_s4 + $0x128] sm:$0xff]  ;;  %v2584_v33 = vadd.f32 1.0, %v4760_v10  ;;  %v9364_v26 = vld [vmem:[%s11289_s4 + $0x120] sm:$0xff] }
 0x57d   :  { %v2590_v62 = vmul.f32 %v4762_v50, %v2588_v44  ;;  %2748 = vmatpush1.msra.mxu0 %v9338_v4  ;;  %2819 = vmatpush1.msra.mxu1 %v9344_v51  ;;  %12587 = vst [vmem:[#allocation102_spill] sm:$0xff] %v9350_v16  ;;  %v9356_v50 = vld [vmem:[%s11289_s4 + $0x138] sm:$0xff]  ;;  %12588 = vst [vmem:[#allocation103_spill] sm:$0xff] %v9364_v26 }
 0x57e   :  { %2749 = vmatprep.subr.mxu0 %v9350_v16  ;;  %2820 = vmatprep.subr.mxu1 %v9356_v50  ;;  %v9370_v16 = vld [vmem:[%s11289_s4 + $0x130] sm:$0xff]  ;;  %v9382_v10 = vld [vmem:[%s11289_s4 + $0x118] sm:$0xff] }
 0x57f   :  { %v9359_v44 = vadd.f32 %v2591_v42, %v2590_v62  ;;  %2750 = vmatpush1.msra.mxu0 %v9364_v26  ;;  %12589 = vst [vmem:[#allocation104_spill] sm:$0xff] %v9370_v16  ;;  %2821 = vmatpush1.msra.mxu1 %v9370_v16  ;;  %v9376_v62 = vld [vmem:[%s11289_s4 + $0x108] sm:$0xff]  ;;  %12591 = vst [vmem:[#allocation106_spill] sm:$0xff] %v9382_v10  ;;  %v9388_v42 = vld [vmem:[%s11289_s4 + $0x100] sm:$0xff] }
 0x580   :  { %12590 = vst [vmem:[#allocation105_spill] sm:$0xff] %v9376_v62  ;;  %2751 = vmatprep.subr.mxu0 %v9376_v62  ;;  %2822 = vmatprep.subr.mxu1 %v9382_v10  ;;  %12592 = vst [vmem:[#allocation107_spill] sm:$0xff] %v9388_v42  ;;  %v9394_v16 = vld [vmem:[%s11289_s4 + $0x110] sm:$0xff]  ;;  %v9401_v10 = vld [vmem:[%s11289_s4 + $0xe8] sm:$0xff] }
 0x581   :  { %2752 = vmatpush1.msra.mxu0 %v9388_v42  ;;  %12593 = vst [vmem:[#allocation108_spill] sm:$0xff] %v9394_v16  ;;  %2823 = vmatpush1.msra.mxu1 %v9394_v16  ;;  %4763 = vtanh.f32 %v9359_v44  ;;  %12594 = vst [vmem:[#allocation109_spill] sm:$0xff] %v9401_v10  ;;  %v9407_v42 = vld [vmem:[%s11289_s4 + $0xf8] sm:$0xff]  ;;  %v9413_v16 = vld [vmem:[%s11289_s4 + $0xe0] sm:$0xff] }
 0x582   :  { %2753 = vmatprep.subr.mxu0 %v9401_v10  ;;  %12595 = vst [vmem:[#allocation110_spill] sm:$0xff] %v9407_v42  ;;  %2824 = vmatprep.subr.mxu1 %v9407_v42  ;;  %4765 = vrcp.f32 %v2584_v33  ;;  %12596 = vst [vmem:[#allocation111_spill] sm:$0xff] %v9413_v16  ;;  %v9419_v62 = vld [vmem:[%s11289_s4 + $0xf0] sm:$0xff]  ;;  %v9425_v10 = vld [vmem:[%s11289_s4 + $0xc8] sm:$0xff] }
 0x583   :  { %2754 = vmatpush1.msra.mxu0 %v9413_v16  ;;  %12597 = vst [vmem:[#allocation112_spill] sm:$0xff] %v9419_v62  ;;  %2825 = vmatpush1.msra.mxu1 %v9419_v62  ;;  %12598 = vst [vmem:[#allocation113_spill] sm:$0xff] %v9425_v10  ;;  %v9431_v33 = vld [vmem:[%s11289_s4 + $0xd8] sm:$0xff]  ;;  %v9437_v16 = vld [vmem:[%s11289_s4 + $0xc0] sm:$0xff] }
 0x584   :  { %2755 = vmatprep.subr.mxu0 %v9425_v10  ;;  %12599 = vst [vmem:[#allocation114_spill] sm:$0xff] %v9431_v33  ;;  %2826 = vmatprep.subr.mxu1 %v9431_v33  ;;  %12600 = vst [vmem:[#allocation115_spill] sm:$0xff] %v9437_v16  ;;  %v9443_v62 = vld [vmem:[%s11289_s4 + $0xd0] sm:$0xff]  ;;  %v9449_v10 = vld [vmem:[%s11289_s4 + $0xa8] sm:$0xff] }
 0x585   :  { %2756 = vmatpush1.msra.mxu0 %v9437_v16  ;;  %12601 = vst [vmem:[#allocation116_spill] sm:$0xff] %v9443_v62  ;;  %2827 = vmatpush1.msra.mxu1 %v9443_v62  ;;  %12602 = vst [vmem:[#allocation117_spill] sm:$0xff] %v9449_v10  ;;  %v9455_v33 = vld [vmem:[%s11289_s4 + $0xb8] sm:$0xff]  ;;  %v9461_v16 = vld [vmem:[%s11289_s4 + $0xa0] sm:$0xff] }
 0x586   :  { %2757 = vmatprep.subr.mxu0 %v9449_v10  ;;  %12603 = vst [vmem:[#allocation118_spill] sm:$0xff] %v9455_v33  ;;  %2828 = vmatprep.subr.mxu1 %v9455_v33  ;;  %12604 = vst [vmem:[#allocation119_spill] sm:$0xff] %v9461_v16  ;;  %v9467_v62 = vld [vmem:[%s11289_s4 + $0xb0] sm:$0xff]  ;;  %v9473_v10 = vld [vmem:[%s11289_s4 + $0x88] sm:$0xff] }
 0x587   :  { %2758 = vmatpush1.msra.mxu0 %v9461_v16  ;;  %12605 = vst [vmem:[#allocation120_spill] sm:$0xff] %v9467_v62  ;;  %2829 = vmatpush1.msra.mxu1 %v9467_v62  ;;  %12606 = vst [vmem:[#allocation121_spill] sm:$0xff] %v9473_v10  ;;  %v9479_v33 = vld [vmem:[%s11289_s4 + $0x98] sm:$0xff]  ;;  %v9485_v16 = vld [vmem:[%s11289_s4 + $0x80] sm:$0xff] }
 0x588   :  { %2759 = vmatprep.subr.mxu0 %v9473_v10  ;;  %12607 = vst [vmem:[#allocation122_spill] sm:$0xff] %v9479_v33  ;;  %2830 = vmatprep.subr.mxu1 %v9479_v33  ;;  %12608 = vst [vmem:[#allocation123_spill] sm:$0xff] %v9485_v16  ;;  %v9491_v62 = vld [vmem:[%s11289_s4 + $0x90] sm:$0xff]  ;;  %v9497_v10 = vld [vmem:[%s11289_s4 + $0x68] sm:$0xff] }
 0x589   :  { %2760 = vmatpush1.msra.mxu0 %v9485_v16  ;;  %12609 = vst [vmem:[#allocation124_spill] sm:$0xff] %v9491_v62  ;;  %2831 = vmatpush1.msra.mxu1 %v9491_v62  ;;  %12610 = vst [vmem:[#allocation125_spill] sm:$0xff] %v9497_v10  ;;  %v9503_v33 = vld [vmem:[%s11289_s4 + $0x78] sm:$0xff]  ;;  %v9509_v16 = vld [vmem:[%s11289_s4 + $0x60] sm:$0xff] }
 0x58a   :  { %2761 = vmatprep.subr.mxu0 %v9497_v10  ;;  %12611 = vst [vmem:[#allocation126_spill] sm:$0xff] %v9503_v33  ;;  %2832 = vmatprep.subr.mxu1 %v9503_v33  ;;  %12612 = vst [vmem:[#allocation127_spill] sm:$0xff] %v9509_v16  ;;  %v9515_v62 = vld [vmem:[%s11289_s4 + $0x70] sm:$0xff]  ;;  %v9521_v10 = vld [vmem:[%s11289_s4 + $0x48] sm:$0xff] }
 0x58b   :  { %2762 = vmatpush1.msra.mxu0 %v9509_v16  ;;  %12613 = vst [vmem:[#allocation128_spill] sm:$0xff] %v9515_v62  ;;  %2833 = vmatpush1.msra.mxu1 %v9515_v62  ;;  %12614 = vst [vmem:[#allocation129_spill] sm:$0xff] %v9521_v10  ;;  %v9527_v33 = vld [vmem:[%s11289_s4 + $0x58] sm:$0xff]  ;;  %v9533_v16 = vld [vmem:[%s11289_s4 + $0x40] sm:$0xff] }
 0x58c   :  { %2763 = vmatprep.subr.mxu0 %v9521_v10  ;;  %12615 = vst [vmem:[#allocation130_spill] sm:$0xff] %v9527_v33  ;;  %2834 = vmatprep.subr.mxu1 %v9527_v33  ;;  %12616 = vst [vmem:[#allocation131_spill] sm:$0xff] %v9533_v16  ;;  %v9539_v62 = vld [vmem:[%s11289_s4 + $0x50] sm:$0xff]  ;;  %v9545_v42 = vld [vmem:[%s11289_s4 + $0x28] sm:$0xff] }
 0x58d   :  { %2764 = vmatpush1.msra.mxu0 %v9533_v16  ;;  %12617 = vst [vmem:[#allocation132_spill] sm:$0xff] %v9539_v62  ;;  %2835 = vmatpush1.msra.mxu1 %v9539_v62  ;;  %12618 = vst [vmem:[#allocation133_spill] sm:$0xff] %v9545_v42  ;;  %v9551_v33 = vld [vmem:[%s11289_s4 + $0x38] sm:$0xff]  ;;  %v9557_v16 = vld [vmem:[%s11289_s4 + $0x20] sm:$0xff] }
 0x58e   :  { %v4764_v10 = vpop.eup %4763  ;;  %2765 = vmatprep.subr.mxu0 %v9545_v42  ;;  %12619 = vst [vmem:[#allocation134_spill] sm:$0xff] %v9551_v33  ;;  %2836 = vmatprep.subr.mxu1 %v9551_v33  ;;  %12620 = vst [vmem:[#allocation135_spill] sm:$0xff] %v9557_v16  ;;  %v9563_v62 = vld [vmem:[%s11289_s4 + $0x30] sm:$0xff]  ;;  %v9569_v26 = vld [vmem:[%s11289_s4 + $0x8] sm:$0xff] }
 0x58f   :  { %2766 = vmatpush1.msra.mxu0 %v9557_v16  ;;  %12621 = vst [vmem:[#allocation136_spill] sm:$0xff] %v9563_v62  ;;  %2837 = vmatpush1.msra.mxu1 %v9563_v62  ;;  %v4766_v42 = vpop.eup %4765  ;;  %12622 = vst [vmem:[#allocation137_spill] sm:$0xff] %v9569_v26  ;;  %v9575_v33 = vld [vmem:[%s11289_s4 + $0x18] sm:$0xff]  ;;  %v9581_v16 = vld [vmem:[%s11289_s4] sm:$0xff] }
 0x590   :  { %2767 = vmatprep.subr.mxu0 %v9569_v26  ;;  %2838 = vmatprep.subr.mxu1 %v9575_v33  ;;  %v9585_v62 = vmul.f32 %v4766_v42, %v4764_v10  ;;  %v9590_v26 = vld [vmem:[%s11289_s4 + $0x10] sm:$0xff]  ;;  %v12661_v10 = vld [vmem:[#allocation37_spill] sm:$0xff] }
 0x591   :  { %2768 = vmatpush1.msra.mxu0 %v9581_v16  ;;  %2801 = vmatprep.mubr.f32.mxu0 %v12056_v31  ;;  %v12662_v42 = vld [vmem:[#allocation38_spill] sm:$0xff] }
 0x592   :  { %2839 = vmatpush1.msra.mxu1 %v9590_v26  ;;  %2872 = vmatprep.mubr.f32.mxu1 %v12056_v31 }
 0x593   :  { %2802 = vmatmul.mubr.f32.vlgmr.msra.gmra.mxu0 %v9585_v62  ;;  %2873 = vmatmul.mubr.f32.vlgmr.msra.gmra.mxu1 %v9585_v62 }
 0x594   :  { %2907 = vmatprep.subr.mxu0 %v8417_v57  ;;  %2978 = vmatprep.subr.mxu1 %v8423_v1  ;;  %v12623_v57 = vld [vmem:[#allocation146_spill] sm:$0xff]  ;;  %v12624_v1 = vld [vmem:[#allocation147_spill] sm:$0xff] }
 0x595   :  { %2908 = vmatpush1.msra.mxu0 %v8431_v23  ;;  %2979 = vmatpush1.msra.mxu1 %v8437_v56  ;;  %v12625_v23 = vld [vmem:[#allocation148_spill] sm:$0xff]  ;;  %v12626_v56 = vld [vmem:[#allocation149_spill] sm:$0xff] }
 0x596   :  { %2909 = vmatprep.subr.mxu0 %v8443_v61  ;;  %2980 = vmatprep.subr.mxu1 %v8449_v59  ;;  %v12627_v61 = vld [vmem:[#allocation150_spill] sm:$0xff]  ;;  %v12628_v59 = vld [vmem:[#allocation151_spill] sm:$0xff] }
 0x597   :  { %2910 = vmatpush1.msra.mxu0 %v8455_v55  ;;  %2981 = vmatpush1.msra.mxu1 %v8461_v52  ;;  %v12629_v55 = vld [vmem:[#allocation14_spill] sm:$0xff]  ;;  %v12630_v52 = vld [vmem:[#allocation5_spill] sm:$0xff] }
 0x598   :  { %2911 = vmatprep.subr.mxu0 %v8467_v48  ;;  %2982 = vmatprep.subr.mxu1 %v8473_v5  ;;  %v12631_v48 = vld [vmem:[#allocation15_spill] sm:$0xff]  ;;  %v12632_v5 = vld [vmem:[#allocation6_spill] sm:$0xff] }
 0x599   :  { %2912 = vmatpush1.msra.mxu0 %v8479_v46  ;;  %2983 = vmatpush1.msra.mxu1 %v8485_v6  ;;  %v12633_v46 = vld [vmem:[#allocation16_spill] sm:$0xff]  ;;  %v12634_v6 = vld [vmem:[#allocation7_spill] sm:$0xff] }
 0x59a   :  { %2913 = vmatprep.subr.mxu0 %v8491_v3  ;;  %2984 = vmatprep.subr.mxu1 %v8497_v7  ;;  %v12635_v3 = vld [vmem:[#allocation17_spill] sm:$0xff]  ;;  %v12636_v7 = vld [vmem:[#allocation8_spill] sm:$0xff] }
 0x59b   :  { %2914 = vmatpush1.msra.mxu0 %v8503_v9  ;;  %2985 = vmatpush1.msra.mxu1 %v8509_v11  ;;  %v12637_v9 = vld [vmem:[#allocation18_spill] sm:$0xff]  ;;  %v12638_v11 = vld [vmem:[#allocation9_spill] sm:$0xff] }
 0x59c   :  { %2915 = vmatprep.subr.mxu0 %v8515_v60  ;;  %2986 = vmatprep.subr.mxu1 %v8521_v13  ;;  %v12639_v60 = vld [vmem:[#allocation19_spill] sm:$0xff]  ;;  %v12640_v13 = vld [vmem:[#allocation10_spill] sm:$0xff] }
 0x59d   :  { %2916 = vmatpush1.msra.mxu0 %v8527_v15  ;;  %2987 = vmatpush1.msra.mxu1 %v8533_v17  ;;  %v12641_v15 = vld [vmem:[#allocation20_spill] sm:$0xff]  ;;  %v12642_v17 = vld [vmem:[#allocation11_spill] sm:$0xff] }
 0x59e   :  { %2917 = vmatprep.subr.mxu0 %v8539_v19  ;;  %2988 = vmatprep.subr.mxu1 %v8545_v14  ;;  %v12643_v19 = vld [vmem:[#allocation21_spill] sm:$0xff]  ;;  %v12644_v14 = vld [vmem:[#allocation12_spill] sm:$0xff] }
 0x59f   :  { %2918 = vmatpush1.msra.mxu0 %v8551_v21  ;;  %2989 = vmatpush1.msra.mxu1 %v8557_v22  ;;  %v12645_v21 = vld [vmem:[#allocation22_spill] sm:$0xff]  ;;  %v12646_v22 = vld [vmem:[#allocation13_spill] sm:$0xff] }
 0x5a0   :  { %2919 = vmatprep.subr.mxu0 %v8563_v24  ;;  %2990 = vmatprep.subr.mxu1 %v8569_v0  ;;  %v12647_v24 = vld [vmem:[#allocation23_spill] sm:$0xff]  ;;  %v12648_v0 = vld [vmem:[#allocation24_spill] sm:$0xff] }
 0x5a1   :  { %2920 = vmatpush1.msra.mxu0 %v8575_v12  ;;  %2991 = vmatpush1.msra.mxu1 %v8581_v25  ;;  %v12649_v12 = vld [vmem:[#allocation26_spill] sm:$0xff]  ;;  %v12650_v25 = vld [vmem:[#allocation25_spill] sm:$0xff] }
 0x5a2   :  { %2921 = vmatprep.subr.mxu0 %v8587_v27  ;;  %2992 = vmatprep.subr.mxu1 %v8593_v28  ;;  %v12651_v27 = vld [vmem:[#allocation28_spill] sm:$0xff]  ;;  %v12652_v28 = vld [vmem:[#allocation27_spill] sm:$0xff] }
 0x5a3   :  { %2922 = vmatpush1.msra.mxu0 %v8599_v29  ;;  %2993 = vmatpush1.msra.mxu1 %v8605_v30  ;;  %v12653_v29 = vld [vmem:[#allocation30_spill] sm:$0xff]  ;;  %v12654_v30 = vld [vmem:[#allocation29_spill] sm:$0xff] }
 0x5a4   :  { %2923 = vmatprep.subr.mxu0 %v8611_v32  ;;  %2994 = vmatprep.subr.mxu1 %v8617_v34  ;;  %v12655_v32 = vld [vmem:[#allocation32_spill] sm:$0xff]  ;;  %v12656_v34 = vld [vmem:[#allocation31_spill] sm:$0xff] }
 0x5a5   :  { %2924 = vmatpush1.msra.mxu0 %v8623_v35  ;;  %2995 = vmatpush1.msra.mxu1 %v8629_v36  ;;  %v12657_v35 = vld [vmem:[#allocation34_spill] sm:$0xff]  ;;  %v12658_v36 = vld [vmem:[#allocation33_spill] sm:$0xff] }
 0x5a6   :  { %2925 = vmatprep.subr.mxu0 %v8635_v37  ;;  %2996 = vmatprep.subr.mxu1 %v12623_v57  ;;  %v12659_v37 = vld [vmem:[#allocation36_spill] sm:$0xff]  ;;  %v12663_v57 = vld [vmem:[#allocation39_spill] sm:$0xff] }
 0x5a7   :  { %2926 = vmatpush1.msra.mxu0 %v12624_v1  ;;  %2997 = vmatpush1.msra.mxu1 %v12625_v23  ;;  %v12664_v1 = vld [vmem:[#allocation40_spill] sm:$0xff]  ;;  %v12665_v23 = vld [vmem:[#allocation42_spill] sm:$0xff] }
 0x5a8   :  { %2927 = vmatprep.subr.mxu0 %v12626_v56  ;;  %2998 = vmatprep.subr.mxu1 %v12627_v61  ;;  %v12666_v56 = vld [vmem:[#allocation41_spill] sm:$0xff]  ;;  %v12667_v61 = vld [vmem:[#allocation44_spill] sm:$0xff] }
 0x5a9   :  { %2928 = vmatpush1.msra.mxu0 %v12628_v59  ;;  %2999 = vmatpush1.msra.mxu1 %v12629_v55  ;;  %v12668_v59 = vld [vmem:[#allocation43_spill] sm:$0xff]  ;;  %v12669_v55 = vld [vmem:[#allocation46_spill] sm:$0xff] }
 0x5aa   :  { %2929 = vmatprep.subr.mxu0 %v12630_v52  ;;  %3000 = vmatprep.subr.mxu1 %v12631_v48  ;;  %v12670_v52 = vld [vmem:[#allocation45_spill] sm:$0xff]  ;;  %v12671_v48 = vld [vmem:[#allocation48_spill] sm:$0xff] }
 0x5ab   :  { %2930 = vmatpush1.msra.mxu0 %v12632_v5  ;;  %3001 = vmatpush1.msra.mxu1 %v12633_v46  ;;  %v12672_v5 = vld [vmem:[#allocation47_spill] sm:$0xff]  ;;  %v12673_v46 = vld [vmem:[#allocation50_spill] sm:$0xff] }
 0x5ac   :  { %2931 = vmatprep.subr.mxu0 %v12634_v6  ;;  %3002 = vmatprep.subr.mxu1 %v12635_v3  ;;  %v12674_v6 = vld [vmem:[#allocation49_spill] sm:$0xff]  ;;  %v12675_v3 = vld [vmem:[#allocation52_spill] sm:$0xff] }
 0x5ad   :  { %2932 = vmatpush1.msra.mxu0 %v12636_v7  ;;  %3003 = vmatpush1.msra.mxu1 %v12637_v9  ;;  %v12676_v7 = vld [vmem:[#allocation51_spill] sm:$0xff]  ;;  %v12677_v9 = vld [vmem:[#allocation54_spill] sm:$0xff] }
 0x5ae   :  { %2933 = vmatprep.subr.mxu0 %v12638_v11  ;;  %3004 = vmatprep.subr.mxu1 %v12639_v60  ;;  %v12678_v11 = vld [vmem:[#allocation53_spill] sm:$0xff]  ;;  %v12679_v60 = vld [vmem:[#allocation56_spill] sm:$0xff] }
 0x5af   :  { %2934 = vmatpush1.msra.mxu0 %v12640_v13  ;;  %3005 = vmatpush1.msra.mxu1 %v12641_v15  ;;  %v12680_v13 = vld [vmem:[#allocation55_spill] sm:$0xff]  ;;  %v12681_v15 = vld [vmem:[#allocation58_spill] sm:$0xff] }
 0x5b0   :  { %2935 = vmatprep.subr.mxu0 %v12642_v17  ;;  %3006 = vmatprep.subr.mxu1 %v12643_v19  ;;  %v12682_v17 = vld [vmem:[#allocation57_spill] sm:$0xff]  ;;  %v12683_v19 = vld [vmem:[#allocation60_spill] sm:$0xff] }
 0x5b1   :  { %2936 = vmatpush1.msra.mxu0 %v12644_v14  ;;  %3007 = vmatpush1.msra.mxu1 %v12645_v21  ;;  %v12684_v14 = vld [vmem:[#allocation59_spill] sm:$0xff]  ;;  %v12685_v21 = vld [vmem:[#allocation62_spill] sm:$0xff] }
 0x5b2   :  { %2937 = vmatprep.subr.mxu0 %v12646_v22  ;;  %3008 = vmatprep.subr.mxu1 %v12647_v24  ;;  %v12686_v22 = vld [vmem:[#allocation61_spill] sm:$0xff]  ;;  %v12687_v24 = vld [vmem:[#allocation64_spill] sm:$0xff] }
 0x5b3   :  { %2938 = vmatpush1.msra.mxu0 %v12648_v0  ;;  %2971 = vmatprep.mubr.f32.mxu0 %v12056_v31  ;;  %v12688_v0 = vld [vmem:[#allocation63_spill] sm:$0xff] }
 0x5b4   :  { %3009 = vmatpush1.msra.mxu1 %v12649_v12  ;;  %3042 = vmatprep.mubr.f32.mxu1 %v12056_v31  ;;  %v12689_v12 = vld [vmem:[#allocation66_spill] sm:$0xff] }
 0x5b5   :  { %2972 = vmatmul.mubr.f32.vlgmr.msra.gmra.mxu0 %v9585_v62  ;;  %3043 = vmatmul.mubr.f32.vlgmr.msra.gmra.mxu1 %v9585_v62  ;;  %v12660_v62 = vld [vmem:[#allocation35_spill] sm:$0xff] }
 0x5b6   :  { %3092 = vmatprep.subr.mxu0 %v12650_v25  ;;  %3163 = vmatprep.subr.mxu1 %v12651_v27  ;;  %v12690_v25 = vld [vmem:[#allocation65_spill] sm:$0xff]  ;;  %v12691_v27 = vld [vmem:[#allocation68_spill] sm:$0xff] }
 0x5b7   :  { %3093 = vmatpush1.msra.mxu0 %v12652_v28  ;;  %3164 = vmatpush1.msra.mxu1 %v12653_v29  ;;  %v12692_v28 = vld [vmem:[#allocation67_spill] sm:$0xff]  ;;  %v12693_v29 = vld [vmem:[#allocation70_spill] sm:$0xff] }
 0x5b8   :  { %3094 = vmatprep.subr.mxu0 %v12654_v30  ;;  %3165 = vmatprep.subr.mxu1 %v12655_v32  ;;  %v12694_v30 = vld [vmem:[#allocation69_spill] sm:$0xff]  ;;  %v12695_v32 = vld [vmem:[#allocation72_spill] sm:$0xff] }
 0x5b9   :  { %3095 = vmatpush1.msra.mxu0 %v12656_v34  ;;  %3166 = vmatpush1.msra.mxu1 %v12657_v35  ;;  %v12696_v34 = vld [vmem:[#allocation71_spill] sm:$0xff]  ;;  %v12697_v35 = vld [vmem:[#allocation74_spill] sm:$0xff] }
 0x5ba   :  { %3096 = vmatprep.subr.mxu0 %v12658_v36  ;;  %3167 = vmatprep.subr.mxu1 %v12659_v37  ;;  %v12698_v36 = vld [vmem:[#allocation73_spill] sm:$0xff]  ;;  %v12699_v37 = vld [vmem:[#allocation76_spill] sm:$0xff] }
 0x5bb   :  { %3097 = vmatpush1.msra.mxu0 %v12660_v62  ;;  %3168 = vmatpush1.msra.mxu1 %v12661_v10  ;;  %v12700_v62 = vld [vmem:[#allocation75_spill] sm:$0xff]  ;;  %v12701_v10 = vld [vmem:[#allocation78_spill] sm:$0xff] }
 0x5bc   :  { %3098 = vmatprep.subr.mxu0 %v12662_v42  ;;  %3169 = vmatprep.subr.mxu1 %v12663_v57  ;;  %v12702_v42 = vld [vmem:[#allocation77_spill] sm:$0xff]  ;;  %v12703_v57 = vld [vmem:[#allocation80_spill] sm:$0xff] }
 0x5bd   :  { %3099 = vmatpush1.msra.mxu0 %v12664_v1  ;;  %3170 = vmatpush1.msra.mxu1 %v12665_v23  ;;  %v12704_v1 = vld [vmem:[#allocation79_spill] sm:$0xff]  ;;  %v12705_v23 = vld [vmem:[#allocation82_spill] sm:$0xff] }
 0x5be   :  { %3100 = vmatprep.subr.mxu0 %v12666_v56  ;;  %3171 = vmatprep.subr.mxu1 %v12667_v61  ;;  %v12706_v56 = vld [vmem:[#allocation81_spill] sm:$0xff]  ;;  %v12707_v61 = vld [vmem:[#allocation84_spill] sm:$0xff] }
 0x5bf   :  { %3101 = vmatpush1.msra.mxu0 %v12668_v59  ;;  %3172 = vmatpush1.msra.mxu1 %v12669_v55  ;;  %v12708_v59 = vld [vmem:[#allocation83_spill] sm:$0xff]  ;;  %v12709_v55 = vld [vmem:[#allocation86_spill] sm:$0xff] }
 0x5c0   :  { %3102 = vmatprep.subr.mxu0 %v12670_v52  ;;  %3173 = vmatprep.subr.mxu1 %v12671_v48  ;;  %v12710_v52 = vld [vmem:[#allocation85_spill] sm:$0xff]  ;;  %v12711_v48 = vld [vmem:[#allocation87_spill] sm:$0xff] }
 0x5c1   :  { %3103 = vmatpush1.msra.mxu0 %v12672_v5  ;;  %3174 = vmatpush1.msra.mxu1 %v12673_v46  ;;  %v12712_v5 = vld [vmem:[#allocation88_spill] sm:$0xff]  ;;  %v12713_v46 = vld [vmem:[#allocation89_spill] sm:$0xff] }
 0x5c2   :  { %3104 = vmatprep.subr.mxu0 %v12674_v6  ;;  %3175 = vmatprep.subr.mxu1 %v12675_v3  ;;  %v12714_v6 = vld [vmem:[#allocation154_spill] sm:$0xff]  ;;  %v12715_v3 = vld [vmem:[#allocation155_spill] sm:$0xff] }
 0x5c3   :  { %3105 = vmatpush1.msra.mxu0 %v12676_v7  ;;  %3176 = vmatpush1.msra.mxu1 %v12677_v9 }
 0x5c4   :  { %3106 = vmatprep.subr.mxu0 %v12678_v11  ;;  %3177 = vmatprep.subr.mxu1 %v12679_v60 }
 0x5c5   :  { %3107 = vmatpush1.msra.mxu0 %v12680_v13  ;;  %3178 = vmatpush1.msra.mxu1 %v12681_v15 }
 0x5c6   :  { %3108 = vmatprep.subr.mxu0 %v12682_v17  ;;  %3179 = vmatprep.subr.mxu1 %v12683_v19 }
 0x5c7   :  { %3109 = vmatpush1.msra.mxu0 %v12684_v14  ;;  %3180 = vmatpush1.msra.mxu1 %v12685_v21 }
 0x5c8   :  { %3110 = vmatprep.subr.mxu0 %v12686_v22  ;;  %3181 = vmatprep.subr.mxu1 %v12687_v24 }
 0x5c9   :  { %3111 = vmatpush1.msra.mxu0 %v12688_v0  ;;  %3182 = vmatpush1.msra.mxu1 %v12689_v12 }
 0x5ca   :  { %3112 = vmatprep.subr.mxu0 %v12690_v25  ;;  %3183 = vmatprep.subr.mxu1 %v12691_v27 }
 0x5cb   :  { %3113 = vmatpush1.msra.mxu0 %v12692_v28  ;;  %3184 = vmatpush1.msra.mxu1 %v12693_v29 }
 0x5cc   :  { %3114 = vmatprep.subr.mxu0 %v12694_v30  ;;  %3185 = vmatprep.subr.mxu1 %v12695_v32 }
 0x5cd   :  { %3115 = vmatpush1.msra.mxu0 %v12696_v34  ;;  %3186 = vmatpush1.msra.mxu1 %v12697_v35 }
 0x5ce   :  { %3116 = vmatprep.subr.mxu0 %v12698_v36  ;;  %3187 = vmatprep.subr.mxu1 %v12699_v37 }
 0x5cf   :  { %3117 = vmatpush1.msra.mxu0 %v12700_v62  ;;  %3188 = vmatpush1.msra.mxu1 %v12701_v10 }
 0x5d0   :  { %3118 = vmatprep.subr.mxu0 %v12702_v42  ;;  %3189 = vmatprep.subr.mxu1 %v12703_v57 }
 0x5d1   :  { %3119 = vmatpush1.msra.mxu0 %v12704_v1  ;;  %3190 = vmatpush1.msra.mxu1 %v12705_v23 }
 0x5d2   :  { %3120 = vmatprep.subr.mxu0 %v12706_v56  ;;  %3191 = vmatprep.subr.mxu1 %v12707_v61 }
 0x5d3   :  { %3121 = vmatpush1.msra.mxu0 %v12708_v59  ;;  %3192 = vmatpush1.msra.mxu1 %v12709_v55 }
 0x5d4   :  { %3122 = vmatprep.subr.mxu0 %v12710_v52  ;;  %3193 = vmatprep.subr.mxu1 %v12711_v48 }
 0x5d5   :  { %3123 = vmatpush1.msra.mxu0 %v12712_v5  ;;  %3156 = vmatprep.mubr.f32.mxu0 %v12056_v31  ;;  %v12716_v5 = vld [vmem:[#allocation153_spill] sm:$0xff] }
 0x5d6   :  { %3194 = vmatpush1.msra.mxu1 %v12713_v46  ;;  %3227 = vmatprep.mubr.f32.mxu1 %v12056_v31 }
 0x5d7   :  { %3237 = vmatprep.subr.mxu0 %v12714_v6  ;;  %3308 = vmatprep.subr.mxu1 %v12715_v3 }
 0x632   :  { %v2661_v7 = vpop.f32.mrf.mxu0  ;;  %v2732_v11 = vpop.f32.mrf.mxu1 }
 0x634   :  { %v2663_v9 = vpop.f32.mrf.mxu0  ;;  %v2734_v17 = vpop.f32.mrf.mxu1 }
 0x653   :  { %v2803_v60 = vpop.f32.mrf.mxu0  ;;  %v2874_v22 = vpop.f32.mrf.mxu1 }
 0x654   :  { %v2804_v13 = vadd.f32 %v2803_v60, %v2661_v7  ;;  %v2875_v27 = vadd.f32 %v2874_v22, %v2732_v11 }
 0x655   :  { %v2805_v15 = vpop.f32.mrf.mxu0  ;;  %v2876_v12 = vpop.f32.mrf.mxu1 }
 0x656   :  { %v2879_v19 = vadd.f32 %v2804_v13, %v6919_v47  ;;  %v2806_v14 = vadd.f32 %v2805_v15, %v2663_v9  ;;  %v2877_v25 = vadd.f32 %v2876_v12, %v2734_v17  ;;  %v2881_v29 = vadd.f32 %v2875_v27, %v6934_v20  ;;  %v12717_v12 = vld [vmem:[#allocation90_spill] sm:$0xff]  ;;  %v12719_v27 = vld [vmem:[#allocation92_spill] sm:$0xff] }
 0x658   :  { %v4546_v21 = vmul.f32 -1.442695, %v2879_v19  ;;  %v2880_v24 = vadd.f32 %v2806_v14, %v6923_v53  ;;  %v2882_v28 = vadd.f32 %v2877_v25, %v6929_v54  ;;  %v12718_v25 = vld [vmem:[#allocation91_spill] sm:$0xff] }
 0x65a   :  { %4767 = vpow2.f32 %v4546_v21  ;;  %v4547_v0 = vmul.f32 -1.442695, %v2880_v24  ;;  %v4548_v32 = vmul.f32 -1.442695, %v2882_v28  ;;  %v12725_v28 = vld [vmem:[#allocation98_spill] sm:$0xff] }
 0x65c   :  { %4769 = vpow2.f32 %v4547_v0 }
 0x65d   :  { %4771 = vtanh.f32 %v2881_v29 }
 0x667   :  { %v4768_v30 = vpop.eup %4767 }
 0x668   :  { %v2886_v34 = vadd.f32 1.0, %v4768_v30  ;;  %v3085_v30 = vrot.slane %v9359_v44, 6 }
 0x669   :  { %v4770_v35 = vpop.eup %4769 }
 0x66a   :  { %4773 = vrcp.f32 %v2886_v34  ;;  %v2892_v36 = vadd.f32 1.0, %v4770_v35  ;;  %v4772_v62 = vpop.eup %4771  ;;  %v12728_v34 = vld [vmem:[#allocation101_spill] sm:$0xff] }
 0x66b   :  { %4775 = vpow2.f32 %v4548_v32  ;;  %v12727_v32 = vld [vmem:[#allocation100_spill] sm:$0xff] }
 0x66c   :  { %4777 = vrcp.f32 %v2892_v36 }
 0x675   :  { %v2973_v37 = vpop.f32.mrf.mxu0  ;;  %v3044_v56 = vpop.f32.mrf.mxu1 }
 0x676   :  { %v3053_v10 = vrot.slane %v2973_v37, 6  ;;  %v3055_v13 = vrot.slane %v3044_v56, 6  ;;  %v12736_v56 = vld [vmem:[#allocation109_spill] sm:$0xff] }
 0x677   :  { %v4774_v42 = vpop.eup %4773  ;;  %v2975_v57 = vpop.f32.mrf.mxu0 }
 0x678   :  { %v4776_v1 = vpop.eup %4775  ;;  %v3061_v23 = vadd.f32 %v3053_v10, %v12571_v45  ;;  %v3054_v61 = vrot.slane %v2975_v57, 6  ;;  %v2903_v55 = vmul.f32 %v4774_v42, %v4772_v62  ;;  %v3046_v7 = vpop.f32.mrf.mxu1  ;;  %v12729_v10 = vld [vmem:[#allocation102_spill] sm:$0xff]  ;;  %v12730_v42 = vld [vmem:[#allocation103_spill] sm:$0xff]  ;;  %v12731_v57 = vld [vmem:[#allocation104_spill] sm:$0xff] }
 0x679   :  { %v4778_v59 = vpop.eup %4777  ;;  %v2899_v6 = vadd.f32 1.0, %v4776_v1  ;;  %v3056_v11 = vrot.slane %v3046_v7, 6  ;;  %v12732_v1 = vld [vmem:[#allocation105_spill] sm:$0xff]  ;;  %v12746_v7 = vld [vmem:[#allocation119_spill] sm:$0xff] }
 0x67a   :  { %v2902_v52 = vmul.f32 %v4778_v59, %v9209_v58  ;;  %v4549_v48 = vmul.f32 -1.442695, %v3061_v23  ;;  %v3062_v46 = vadd.f32 %v3054_v61, %v12716_v5  ;;  %v3063_v58 = vadd.f32 %v3055_v13, %v12574_v49  ;;  %v12733_v23 = vld [vmem:[#allocation106_spill] sm:$0xff]  ;;  %v12739_v59 = vld [vmem:[#allocation112_spill] sm:$0xff] }
 0x67b   :  { %v3064_v60 = vadd.f32 %v3056_v11, %v12573_v2  ;;  %v12737_v61 = vld [vmem:[#allocation110_spill] sm:$0xff]  ;;  %v12747_v11 = vld [vmem:[#allocation120_spill] sm:$0xff] }
 0x67c   :  { %4779 = vpow2.f32 %v4549_v48  ;;  %v4550_v3 = vmul.f32 -1.442695, %v3062_v46  ;;  %v9739_v9 = vadd.f32 %v2903_v55, %v2902_v52  ;;  %v12740_v55 = vld [vmem:[#allocation113_spill] sm:$0xff]  ;;  %v12741_v52 = vld [vmem:[#allocation114_spill] sm:$0xff]  ;;  %v12742_v48 = vld [vmem:[#allocation115_spill] sm:$0xff] }
 0x67d   :  { %v4551_v15 = vmul.f32 -1.442695, %v3064_v60  ;;  %v12743_v46 = vld [vmem:[#allocation116_spill] sm:$0xff]  ;;  %v12748_v60 = vld [vmem:[#allocation121_spill] sm:$0xff]  ;;  %v12749_v13 = vld [vmem:[#allocation122_spill] sm:$0xff] }
 0x67e   :  { %4781 = vpow2.f32 %v4550_v3  ;;  %v12745_v3 = vld [vmem:[#allocation118_spill] sm:$0xff] }
 0x67f   :  { %4783 = vrcp.f32 %v2899_v6  ;;  %v12744_v6 = vld [vmem:[#allocation117_spill] sm:$0xff] }
 0x680   :  { %4785 = vtanh.f32 %v9739_v9 }
 0x681   :  { %4787 = vpow2.f32 %v4551_v15  ;;  %v12750_v15 = vld [vmem:[#allocation123_spill] sm:$0xff] }
 0x689   :  { %v4780_v17 = vpop.eup %4779 }
 0x68a   :  { %v3068_v19 = vadd.f32 1.0, %v4780_v17  ;;  %v12751_v17 = vld [vmem:[#allocation124_spill] sm:$0xff] }
 0x68b   :  { %v4782_v14 = vpop.eup %4781 }
 0x68c   :  { %v4784_v21 = vpop.eup %4783  ;;  %4789 = vrcp.f32 %v3068_v19  ;;  %v3074_v22 = vadd.f32 1.0, %v4782_v14  ;;  %v12753_v19 = vld [vmem:[#allocation126_spill] sm:$0xff]  ;;  %v12754_v14 = vld [vmem:[#allocation127_spill] sm:$0xff] }
 0x68d   :  { %v4786_v24 = vpop.eup %4785  ;;  %4791 = vtanh.f32 %v3063_v58  ;;  %v12752_v58 = vld [vmem:[#allocation125_spill] sm:$0xff] }
 0x68e   :  { %4793 = vrcp.f32 %v3074_v22  ;;  %v2906_v0 = vmul.f32 %v4786_v24, %v4784_v21  ;;  %v12755_v21 = vld [vmem:[#allocation128_spill] sm:$0xff]  ;;  %v12756_v22 = vld [vmem:[#allocation129_spill] sm:$0xff]  ;;  %v12757_v24 = vld [vmem:[#allocation130_spill] sm:$0xff] }
 0x690   :  { %3157 = vmatmul.mubr.f32.vlgmr.msra.gmra.mxu0 %v2906_v0  ;;  %3228 = vmatmul.mubr.f32.vlgmr.msra.gmra.mxu1 %v2906_v0  ;;  %v12758_v0 = vld [vmem:[#allocation131_spill] sm:$0xff] }
 0x691   :  { %3238 = vmatpush1.msra.mxu0 %v9217_v8  ;;  %3309 = vmatpush1.msra.mxu1 %v9223_v63  ;;  %v12720_v8 = vld [vmem:[#allocation93_spill] sm:$0xff]  ;;  %v12721_v63 = vld [vmem:[#allocation94_spill] sm:$0xff] }
 0x692   :  { %3239 = vmatprep.subr.mxu0 %v9229_v43  ;;  %3310 = vmatprep.subr.mxu1 %v9235_v39  ;;  %v12722_v43 = vld [vmem:[#allocation95_spill] sm:$0xff]  ;;  %v4788_v39 = vpop.eup %4787 }
 0x693   :  { %3240 = vmatpush1.msra.mxu0 %v9241_v41  ;;  %3311 = vmatpush1.msra.mxu1 %v9247_v40  ;;  %v12723_v41 = vld [vmem:[#allocation96_spill] sm:$0xff]  ;;  %v12724_v40 = vld [vmem:[#allocation97_spill] sm:$0xff]  ;;  %v3081_v36 = vadd.f32 1.0, %v4788_v39 }
 0x694   :  { %3241 = vmatprep.subr.mxu0 %v9253_v38  ;;  %3312 = vmatprep.subr.mxu1 %v9259_v18  ;;  %v12726_v18 = vld [vmem:[#allocation99_spill] sm:$0xff]  ;;  %v12763_v39 = vld [vmem:[#allocation136_spill] sm:$0xff] }
 0x695   :  { %3242 = vmatpush1.msra.mxu0 %v12717_v12  ;;  %3313 = vmatpush1.msra.mxu1 %v12718_v25  ;;  %4795 = vrcp.f32 %v3081_v36  ;;  %v12759_v12 = vld [vmem:[#allocation132_spill] sm:$0xff] }
 0x696   :  { %3243 = vmatprep.subr.mxu0 %v12719_v27  ;;  %3314 = vmatprep.subr.mxu1 %v12720_v8  ;;  %v12760_v27 = vld [vmem:[#allocation133_spill] sm:$0xff]  ;;  %v12761_v8 = vld [vmem:[#allocation134_spill] sm:$0xff] }
 0x697   :  { %3244 = vmatpush1.msra.mxu0 %v12721_v63  ;;  %3315 = vmatpush1.msra.mxu1 %v12722_v43  ;;  %v12762_v43 = vld [vmem:[#allocation135_spill] sm:$0xff]  ;;  %v9879_v36 = vld [vmem:[%s11287_s2 + $0x1a0] sm:$0xff] }
 0x698   :  { %3245 = vmatprep.subr.mxu0 %v12723_v41  ;;  %3316 = vmatprep.subr.mxu1 %v12724_v40  ;;  %v12764_v41 = vld [vmem:[#allocation137_spill] sm:$0xff] }
 0x699   :  { %v4790_v38 = vpop.eup %4789  ;;  %3246 = vmatpush1.msra.mxu0 %v12725_v28  ;;  %3317 = vmatpush1.msra.mxu1 %v12726_v18  ;;  %v9817_v28 = vld [vmem:[%s11287_s2 + $0x1e8] sm:$0xff] }
 0x69a   :  { %v4792_v29 = vpop.eup %4791  ;;  %3247 = vmatprep.subr.mxu0 %v12727_v32  ;;  %3318 = vmatprep.subr.mxu1 %v12728_v34  ;;  %v9843_v18 = vld [vmem:[%s11287_s2 + $0x1c8] sm:$0xff]  ;;  %v9861_v32 = vld [vmem:[%s11287_s2 + $0x1d0] sm:$0xff] }
 0x69b   :  { %v4794_v35 = vpop.eup %4793  ;;  %3248 = vmatpush1.msra.mxu0 %v9338_v4  ;;  %3319 = vmatpush1.msra.mxu1 %v9344_v51  ;;  %v3088_v37 = vmul.f32 %v4792_v29, %v4790_v38  ;;  %v12734_v4 = vld [vmem:[#allocation107_spill] sm:$0xff]  ;;  %v12735_v51 = vld [vmem:[#allocation108_spill] sm:$0xff]  ;;  %v9867_v34 = vld [vmem:[%s11287_s2 + $0x1a8] sm:$0xff] }
 0x69c   :  { %v3087_v62 = vmul.f32 %v4794_v35, %v3085_v30  ;;  %3249 = vmatprep.subr.mxu0 %v12729_v10  ;;  %3320 = vmatprep.subr.mxu1 %v9356_v50  ;;  %v12738_v50 = vld [vmem:[#allocation111_spill] sm:$0xff]  ;;  %v9855_v30 = vld [vmem:[%s11287_s2 + $0x1c0] sm:$0xff] }
 0x69d   :  { %3250 = vmatpush1.msra.mxu0 %v12730_v42  ;;  %3321 = vmatpush1.msra.mxu1 %v12731_v57  ;;  %v9849_v29 = vld [vmem:[%s11287_s2 + $0x1d8] sm:$0xff]  ;;  %v9903_v42 = vld [vmem:[%s11287_s2 + $0x180] sm:$0xff]  ;;  %v9909_v57 = vld [vmem:[%s11287_s2 + $0x190] sm:$0xff] }
 0x69e   :  { %v9771_v44 = vadd.f32 %v3088_v37, %v3087_v62  ;;  %3251 = vmatprep.subr.mxu0 %v12732_v1  ;;  %3322 = vmatprep.subr.mxu1 %v12733_v23  ;;  %v9873_v35 = vld [vmem:[%s11287_s2 + $0x1b8] sm:$0xff]  ;;  %v9885_v37 = vld [vmem:[%s11287_s2 + $0x1b0] sm:$0xff]  ;;  %v9891_v62 = vld [vmem:[%s11287_s2 + $0x188] sm:$0xff] }
 0x69f   :  { %3252 = vmatpush1.msra.mxu0 %v12734_v4  ;;  %3323 = vmatpush1.msra.mxu1 %v12735_v51  ;;  %v9897_v10 = vld [vmem:[%s11287_s2 + $0x198] sm:$0xff]  ;;  %v9915_v1 = vld [vmem:[%s11287_s2 + $0x168] sm:$0xff]  ;;  %v9927_v4 = vld [vmem:[%s11287_s2 + $0x160] sm:$0xff] }
 0x6a0   :  { %3253 = vmatprep.subr.mxu0 %v12736_v56  ;;  %3324 = vmatprep.subr.mxu1 %v12737_v61  ;;  %4797 = vtanh.f32 %v9771_v44  ;;  %v9921_v23 = vld [vmem:[%s11287_s2 + $0x178] sm:$0xff]  ;;  %v9933_v51 = vld [vmem:[%s11287_s2 + $0x170] sm:$0xff]  ;;  %v9939_v56 = vld [vmem:[%s11287_s2 + $0x148] sm:$0xff] }
 0x6a1   :  { %3254 = vmatpush1.msra.mxu0 %v12738_v50  ;;  %3325 = vmatpush1.msra.mxu1 %v12739_v59  ;;  %v9945_v61 = vld [vmem:[%s11287_s2 + $0x158] sm:$0xff]  ;;  %v9951_v50 = vld [vmem:[%s11287_s2 + $0x140] sm:$0xff]  ;;  %v9957_v59 = vld [vmem:[%s11287_s2 + $0x150] sm:$0xff] }
 0x6a2   :  { %3255 = vmatprep.subr.mxu0 %v12740_v55  ;;  %3326 = vmatprep.subr.mxu1 %v12741_v52  ;;  %v4796_v25 = vpop.eup %4795  ;;  %v9963_v55 = vld [vmem:[%s11287_s2 + $0x128] sm:$0xff]  ;;  %v9969_v52 = vld [vmem:[%s11287_s2 + $0x138] sm:$0xff] }
 0x6a3   :  { %3256 = vmatpush1.msra.mxu0 %v12742_v48  ;;  %3327 = vmatpush1.msra.mxu1 %v12743_v46  ;;  %v9975_v48 = vld [vmem:[%s11287_s2 + $0x120] sm:$0xff]  ;;  %v9981_v46 = vld [vmem:[%s11287_s2 + $0x130] sm:$0xff] }
 0x6a4   :  { %3257 = vmatprep.subr.mxu0 %v12744_v6  ;;  %3328 = vmatprep.subr.mxu1 %v12745_v3  ;;  %v9987_v6 = vld [vmem:[%s11287_s2 + $0x108] sm:$0xff]  ;;  %v9993_v3 = vld [vmem:[%s11287_s2 + $0x118] sm:$0xff] }
 0x6a5   :  { %3258 = vmatpush1.msra.mxu0 %v12746_v7  ;;  %3329 = vmatpush1.msra.mxu1 %v12747_v11  ;;  %v9999_v7 = vld [vmem:[%s11287_s2 + $0x100] sm:$0xff]  ;;  %v10005_v11 = vld [vmem:[%s11287_s2 + $0x110] sm:$0xff] }
 0x6a6   :  { %3259 = vmatprep.subr.mxu0 %v12748_v60  ;;  %3330 = vmatprep.subr.mxu1 %v12749_v13  ;;  %v10011_v60 = vld [vmem:[%s11287_s2 + $0xe8] sm:$0xff]  ;;  %v10017_v13 = vld [vmem:[%s11287_s2 + $0xf8] sm:$0xff] }
 0x6a7   :  { %3260 = vmatpush1.msra.mxu0 %v12750_v15  ;;  %3331 = vmatpush1.msra.mxu1 %v12751_v17  ;;  %12765 = vst [vmem:[#allocation138_spill] sm:$0xff] %v10017_v13  ;;  %v10023_v15 = vld [vmem:[%s11287_s2 + $0xe0] sm:$0xff]  ;;  %v10029_v17 = vld [vmem:[%s11287_s2 + $0xf0] sm:$0xff] }
 0x6a8   :  { %3261 = vmatprep.subr.mxu0 %v12752_v58  ;;  %3332 = vmatprep.subr.mxu1 %v12753_v19  ;;  %12766 = vst [vmem:[#allocation139_spill] sm:$0xff] %v10023_v15  ;;  %12767 = vst [vmem:[#allocation140_spill] sm:$0xff] %v10029_v17  ;;  %v10035_v58 = vld [vmem:[%s11287_s2 + $0xc8] sm:$0xff]  ;;  %v10041_v19 = vld [vmem:[%s11287_s2 + $0xd8] sm:$0xff] }
 0x6a9   :  { %3262 = vmatpush1.msra.mxu0 %v12754_v14  ;;  %3333 = vmatpush1.msra.mxu1 %v12755_v21  ;;  %12768 = vst [vmem:[#allocation141_spill] sm:$0xff] %v10035_v58  ;;  %12769 = vst [vmem:[#allocation142_spill] sm:$0xff] %v10041_v19  ;;  %v10047_v14 = vld [vmem:[%s11287_s2 + $0xc0] sm:$0xff]  ;;  %v10053_v21 = vld [vmem:[%s11287_s2 + $0xd0] sm:$0xff] }
 0x6aa   :  { %3263 = vmatprep.subr.mxu0 %v12756_v22  ;;  %3334 = vmatprep.subr.mxu1 %v12757_v24  ;;  %12770 = vst [vmem:[#allocation143_spill] sm:$0xff] %v10047_v14  ;;  %12771 = vst [vmem:[#allocation144_spill] sm:$0xff] %v10053_v21  ;;  %v10059_v22 = vld [vmem:[%s11287_s2 + $0xa8] sm:$0xff]  ;;  %v10065_v24 = vld [vmem:[%s11287_s2 + $0xb8] sm:$0xff] }
 0x6ab   :  { %3264 = vmatpush1.msra.mxu0 %v12758_v0  ;;  %3335 = vmatpush1.msra.mxu1 %v12759_v12  ;;  %12772 = vst [vmem:[#allocation145_spill] sm:$0xff] %v10059_v22  ;;  %12773 = vst [vmem:[#allocation152_spill] sm:$0xff] %v10065_v24  ;;  %v10071_v0 = vld [vmem:[%s11287_s2 + $0xa0] sm:$0xff]  ;;  %v10077_v12 = vld [vmem:[%s11287_s2 + $0xb0] sm:$0xff] }
 0x6ac   :  { %3265 = vmatprep.subr.mxu0 %v12760_v27  ;;  %3336 = vmatprep.subr.mxu1 %v12761_v8  ;;  %12774 = vst [vmem:[#allocation157_spill] sm:$0xff] %v10071_v0  ;;  %12775 = vst [vmem:[#allocation156_spill] sm:$0xff] %v10077_v12  ;;  %v10089_v27 = vld [vmem:[%s11287_s2 + $0x98] sm:$0xff]  ;;  %v10095_v8 = vld [vmem:[%s11287_s2 + $0x80] sm:$0xff] }
 0x6ad   :  { %v4798_v63 = vpop.eup %4797  ;;  %3266 = vmatpush1.msra.mxu0 %v12762_v43  ;;  %3337 = vmatpush1.msra.mxu1 %v12763_v39  ;;  %12777 = vst [vmem:[#allocation147_spill] sm:$0xff] %v10089_v27  ;;  %12778 = vst [vmem:[#allocation148_spill] sm:$0xff] %v10095_v8  ;;  %v10107_v43 = vld [vmem:[%s11287_s2 + $0x68] sm:$0xff]  ;;  %v10113_v39 = vld [vmem:[%s11287_s2 + $0x78] sm:$0xff] }
 0x6ae   :  { %3267 = vmatprep.subr.mxu0 %v12764_v41  ;;  %3338 = vmatprep.subr.mxu1 %v9575_v33  ;;  %v3091_v40 = vmul.f32 %v4798_v63, %v4796_v25  ;;  %v9823_v33 = vld [vmem:[%s11287_s2 + $0x1f8] sm:$0xff]  ;;  %v10083_v25 = vld [vmem:[%s11287_s2 + $0x88] sm:$0xff]  ;;  %v10101_v63 = vld [vmem:[%s11287_s2 + $0x90] sm:$0xff]  ;;  %12780 = vst [vmem:[#allocation150_spill] sm:$0xff] %v10107_v43 }
 0x6af   :  { %3268 = vmatpush1.msra.mxu0 %v9581_v16  ;;  %3339 = vmatpush1.msra.mxu1 %v9590_v26  ;;  %v9831_v16 = vld [vmem:[%s11287_s2 + $0x1e0] sm:$0xff]  ;;  %v9837_v26 = vld [vmem:[%s11287_s2 + $0x1f0] sm:$0xff]  ;;  %12776 = vst [vmem:[#allocation146_spill] sm:$0xff] %v10083_v25  ;;  %12779 = vst [vmem:[#allocation149_spill] sm:$0xff] %v10101_v63 }
 0x6b0   :  { %3301 = vmatprep.mubr.f32.mxu0 %v12056_v31  ;;  %3372 = vmatprep.mubr.f32.mxu1 %v12056_v31  ;;  %v9812_v38 = vrot.slane %v3091_v40, 2  ;;  %12781 = vst [vmem:[#allocation151_spill] sm:$0xff] %v10113_v39  ;;  %v10119_v41 = vld [vmem:[%s11287_s2 + $0x60] sm:$0xff]  ;;  %v10125_v40 = vld [vmem:[%s11287_s2 + $0x70] sm:$0xff] }
 0x6b1   :  { %3407 = vmatprep.subr.mxu0 %v9817_v28  ;;  %3478 = vmatprep.subr.mxu1 %v9823_v33  ;;  %12782 = vst [vmem:[#allocation14_spill] sm:$0xff] %v10119_v41  ;;  %12783 = vst [vmem:[#allocation5_spill] sm:$0xff] %v10125_v40 }
 0x6b2   :  { %3302 = vmatmul.mubr.f32.vlgmr.msra.gmra.mxu0 %v9812_v38  ;;  %3373 = vmatmul.mubr.f32.vlgmr.msra.gmra.mxu1 %v9812_v38 }
 0x6b3   :  { %3408 = vmatpush1.msra.mxu0 %v9831_v16  ;;  %3479 = vmatpush1.msra.mxu1 %v9837_v26 }
 0x6b4   :  { %3409 = vmatprep.subr.mxu0 %v9843_v18  ;;  %3480 = vmatprep.subr.mxu1 %v9849_v29 }
 0x6b5   :  { %3410 = vmatpush1.msra.mxu0 %v9855_v30  ;;  %3481 = vmatpush1.msra.mxu1 %v9861_v32 }
 0x6b6   :  { %3411 = vmatprep.subr.mxu0 %v9867_v34  ;;  %3482 = vmatprep.subr.mxu1 %v9873_v35 }
 0x6b7   :  { %3412 = vmatpush1.msra.mxu0 %v9879_v36  ;;  %3483 = vmatpush1.msra.mxu1 %v9885_v37 }
 0x6b8   :  { %3413 = vmatprep.subr.mxu0 %v9891_v62  ;;  %3484 = vmatprep.subr.mxu1 %v9897_v10 }
 0x6b9   :  { %3414 = vmatpush1.msra.mxu0 %v9903_v42  ;;  %3485 = vmatpush1.msra.mxu1 %v9909_v57 }
 0x6ba   :  { %3415 = vmatprep.subr.mxu0 %v9915_v1  ;;  %3486 = vmatprep.subr.mxu1 %v9921_v23 }
 0x6bb   :  { %3416 = vmatpush1.msra.mxu0 %v9927_v4  ;;  %3487 = vmatpush1.msra.mxu1 %v9933_v51 }
 0x6bc   :  { %3417 = vmatprep.subr.mxu0 %v9939_v56  ;;  %3488 = vmatprep.subr.mxu1 %v9945_v61 }
 0x6bd   :  { %3418 = vmatpush1.msra.mxu0 %v9951_v50  ;;  %3489 = vmatpush1.msra.mxu1 %v9957_v59 }
 0x6be   :  { %3419 = vmatprep.subr.mxu0 %v9963_v55  ;;  %3490 = vmatprep.subr.mxu1 %v9969_v52 }
 0x6bf   :  { %3420 = vmatpush1.msra.mxu0 %v9975_v48  ;;  %3491 = vmatpush1.msra.mxu1 %v9981_v46 }
 0x6c0   :  { %3421 = vmatprep.subr.mxu0 %v9987_v6  ;;  %3492 = vmatprep.subr.mxu1 %v9993_v3 }
 0x6c1   :  { %3422 = vmatpush1.msra.mxu0 %v9999_v7  ;;  %3493 = vmatpush1.msra.mxu1 %v10005_v11 }
 0x6c2   :  { %3423 = vmatprep.subr.mxu0 %v10011_v60  ;;  %3494 = vmatprep.subr.mxu1 %v10017_v13 }
 0x6c3   :  { %3424 = vmatpush1.msra.mxu0 %v10023_v15  ;;  %3495 = vmatpush1.msra.mxu1 %v10029_v17 }
 0x6c4   :  { %3425 = vmatprep.subr.mxu0 %v10035_v58  ;;  %3496 = vmatprep.subr.mxu1 %v10041_v19 }
 0x6c5   :  { %3426 = vmatpush1.msra.mxu0 %v10047_v14  ;;  %3497 = vmatpush1.msra.mxu1 %v10053_v21 }
 0x6c6   :  { %3427 = vmatprep.subr.mxu0 %v10059_v22  ;;  %3498 = vmatprep.subr.mxu1 %v10065_v24 }
 0x6c7   :  { %3428 = vmatpush1.msra.mxu0 %v10071_v0  ;;  %3499 = vmatpush1.msra.mxu1 %v10077_v12 }
 0x6c8   :  { %3429 = vmatprep.subr.mxu0 %v10083_v25  ;;  %3500 = vmatprep.subr.mxu1 %v10089_v27 }
 0x6c9   :  { %3430 = vmatpush1.msra.mxu0 %v10095_v8  ;;  %3501 = vmatpush1.msra.mxu1 %v10101_v63 }
 0x6ca   :  { %3431 = vmatprep.subr.mxu0 %v10107_v43  ;;  %3502 = vmatprep.subr.mxu1 %v10113_v39  ;;  %v10131_v43 = vld [vmem:[%s11287_s2 + $0x48] sm:$0xff]  ;;  %v10137_v39 = vld [vmem:[%s11287_s2 + $0x58] sm:$0xff] }
 0x6cb   :  { %3432 = vmatpush1.msra.mxu0 %v10119_v41  ;;  %3503 = vmatpush1.msra.mxu1 %v10125_v40  ;;  %12784 = vst [vmem:[#allocation15_spill] sm:$0xff] %v10131_v43  ;;  %12785 = vst [vmem:[#allocation6_spill] sm:$0xff] %v10137_v39  ;;  %v10143_v41 = vld [vmem:[%s11287_s2 + $0x40] sm:$0xff]  ;;  %v10149_v40 = vld [vmem:[%s11287_s2 + $0x50] sm:$0xff] }
 0x6cc   :  { %3433 = vmatprep.subr.mxu0 %v10131_v43  ;;  %3504 = vmatprep.subr.mxu1 %v10137_v39  ;;  %12786 = vst [vmem:[#allocation16_spill] sm:$0xff] %v10143_v41  ;;  %12787 = vst [vmem:[#allocation7_spill] sm:$0xff] %v10149_v40  ;;  %v10155_v43 = vld [vmem:[%s11287_s2 + $0x28] sm:$0xff]  ;;  %v10161_v39 = vld [vmem:[%s11287_s2 + $0x38] sm:$0xff] }
 0x6cd   :  { %3434 = vmatpush1.msra.mxu0 %v10143_v41  ;;  %3505 = vmatpush1.msra.mxu1 %v10149_v40  ;;  %12788 = vst [vmem:[#allocation17_spill] sm:$0xff] %v10155_v43  ;;  %12789 = vst [vmem:[#allocation8_spill] sm:$0xff] %v10161_v39  ;;  %v10167_v41 = vld [vmem:[%s11287_s2 + $0x20] sm:$0xff]  ;;  %v10173_v40 = vld [vmem:[%s11287_s2 + $0x30] sm:$0xff] }
 0x6ce   :  { %3435 = vmatprep.subr.mxu0 %v10155_v43  ;;  %3506 = vmatprep.subr.mxu1 %v10161_v39  ;;  %12790 = vst [vmem:[#allocation18_spill] sm:$0xff] %v10167_v41  ;;  %12791 = vst [vmem:[#allocation9_spill] sm:$0xff] %v10173_v40  ;;  %v10179_v43 = vld [vmem:[%s11287_s2 + $0x8] sm:$0xff]  ;;  %v10185_v39 = vld [vmem:[%s11287_s2 + $0x18] sm:$0xff] }
 0x6cf   :  { %3436 = vmatpush1.msra.mxu0 %v10167_v41  ;;  %3507 = vmatpush1.msra.mxu1 %v10173_v40  ;;  %12792 = vst [vmem:[#allocation19_spill] sm:$0xff] %v10179_v43  ;;  %12793 = vst [vmem:[#allocation10_spill] sm:$0xff] %v10185_v39  ;;  %v10191_v41 = vld [vmem:[%s11287_s2] sm:$0xff] }
 0x6d0   :  { %3437 = vmatprep.subr.mxu0 %v10179_v43  ;;  %3508 = vmatprep.subr.mxu1 %v10185_v39  ;;  %12794 = vst [vmem:[#allocation20_spill] sm:$0xff] %v10191_v41  ;;  %v10198_v43 = vld [vmem:[%s11287_s2 + $0x10] sm:$0xff]  ;;  %v10207_v39 = vld [vmem:[%s11290_s5 + $0x1e8] sm:$0xff] }
 0x6d1   :  { %3438 = vmatpush1.msra.mxu0 %v10191_v41  ;;  %3471 = vmatprep.mubr.f32.mxu0 %v12056_v31  ;;  %12795 = vst [vmem:[#allocation11_spill] sm:$0xff] %v10198_v43  ;;  %12796 = vst [vmem:[#allocation21_spill] sm:$0xff] %v10207_v39  ;;  %v10213_v41 = vld [vmem:[%s11290_s5 + $0x1f8] sm:$0xff] }
 0x6d2   :  { %3509 = vmatpush1.msra.mxu1 %v10198_v43  ;;  %3542 = vmatprep.mubr.f32.mxu1 %v12056_v31  ;;  %12797 = vst [vmem:[#allocation12_spill] sm:$0xff] %v10213_v41  ;;  %v10219_v43 = vld [vmem:[%s11290_s5 + $0x1e0] sm:$0xff] }
 0x6d3   :  { %3472 = vmatmul.mubr.f32.vlgmr.msra.gmra.mxu0 %v9812_v38  ;;  %3543 = vmatmul.mubr.f32.vlgmr.msra.gmra.mxu1 %v9812_v38  ;;  %12798 = vst [vmem:[#allocation22_spill] sm:$0xff] %v10219_v43  ;;  %v10225_v38 = vld [vmem:[%s11290_s5 + $0x1f0] sm:$0xff] }
 0x6d4   :  { %3592 = vmatprep.subr.mxu0 %v10207_v39  ;;  %3663 = vmatprep.subr.mxu1 %v10213_v41  ;;  %12799 = vst [vmem:[#allocation13_spill] sm:$0xff] %v10225_v38  ;;  %v10231_v39 = vld [vmem:[%s11290_s5 + $0x1c8] sm:$0xff]  ;;  %v10237_v41 = vld [vmem:[%s11290_s5 + $0x1d8] sm:$0xff] }
 0x6d5   :  { %3593 = vmatpush1.msra.mxu0 %v10219_v43  ;;  %3664 = vmatpush1.msra.mxu1 %v10225_v38  ;;  %12800 = vst [vmem:[#allocation23_spill] sm:$0xff] %v10231_v39  ;;  %12801 = vst [vmem:[#allocation24_spill] sm:$0xff] %v10237_v41  ;;  %v10243_v43 = vld [vmem:[%s11290_s5 + $0x1c0] sm:$0xff]  ;;  %v10249_v38 = vld [vmem:[%s11290_s5 + $0x1d0] sm:$0xff] }
 0x6d6   :  { %3594 = vmatprep.subr.mxu0 %v10231_v39  ;;  %3665 = vmatprep.subr.mxu1 %v10237_v41  ;;  %12802 = vst [vmem:[#allocation26_spill] sm:$0xff] %v10243_v43  ;;  %12803 = vst [vmem:[#allocation25_spill] sm:$0xff] %v10249_v38  ;;  %v10255_v39 = vld [vmem:[%s11290_s5 + $0x1a8] sm:$0xff]  ;;  %v10261_v41 = vld [vmem:[%s11290_s5 + $0x1b8] sm:$0xff] }
 0x6d7   :  { %3595 = vmatpush1.msra.mxu0 %v10243_v43  ;;  %3666 = vmatpush1.msra.mxu1 %v10249_v38  ;;  %12804 = vst [vmem:[#allocation28_spill] sm:$0xff] %v10255_v39  ;;  %12805 = vst [vmem:[#allocation27_spill] sm:$0xff] %v10261_v41  ;;  %v10267_v43 = vld [vmem:[%s11290_s5 + $0x1a0] sm:$0xff]  ;;  %v10273_v38 = vld [vmem:[%s11290_s5 + $0x1b0] sm:$0xff] }
 0x6d8   :  { %3596 = vmatprep.subr.mxu0 %v10255_v39  ;;  %3667 = vmatprep.subr.mxu1 %v10261_v41  ;;  %12806 = vst [vmem:[#allocation30_spill] sm:$0xff] %v10267_v43  ;;  %12807 = vst [vmem:[#allocation29_spill] sm:$0xff] %v10273_v38  ;;  %v10279_v39 = vld [vmem:[%s11290_s5 + $0x188] sm:$0xff]  ;;  %v10285_v41 = vld [vmem:[%s11290_s5 + $0x198] sm:$0xff] }
 0x6d9   :  { %3597 = vmatpush1.msra.mxu0 %v10267_v43  ;;  %3668 = vmatpush1.msra.mxu1 %v10273_v38  ;;  %12808 = vst [vmem:[#allocation32_spill] sm:$0xff] %v10279_v39  ;;  %12809 = vst [vmem:[#allocation31_spill] sm:$0xff] %v10285_v41  ;;  %v10291_v43 = vld [vmem:[%s11290_s5 + $0x180] sm:$0xff]  ;;  %v10297_v38 = vld [vmem:[%s11290_s5 + $0x190] sm:$0xff] }
 0x6da   :  { %3598 = vmatprep.subr.mxu0 %v10279_v39  ;;  %3669 = vmatprep.subr.mxu1 %v10285_v41  ;;  %12810 = vst [vmem:[#allocation34_spill] sm:$0xff] %v10291_v43  ;;  %12811 = vst [vmem:[#allocation33_spill] sm:$0xff] %v10297_v38  ;;  %v10303_v39 = vld [vmem:[%s11290_s5 + $0x168] sm:$0xff]  ;;  %v10309_v41 = vld [vmem:[%s11290_s5 + $0x178] sm:$0xff] }
 0x6db   :  { %3599 = vmatpush1.msra.mxu0 %v10291_v43  ;;  %3670 = vmatpush1.msra.mxu1 %v10297_v38  ;;  %12812 = vst [vmem:[#allocation36_spill] sm:$0xff] %v10303_v39  ;;  %12813 = vst [vmem:[#allocation35_spill] sm:$0xff] %v10309_v41  ;;  %v10315_v43 = vld [vmem:[%s11290_s5 + $0x160] sm:$0xff]  ;;  %v10321_v38 = vld [vmem:[%s11290_s5 + $0x170] sm:$0xff] }
 0x6dc   :  { %3600 = vmatprep.subr.mxu0 %v10303_v39  ;;  %3671 = vmatprep.subr.mxu1 %v10309_v41  ;;  %12814 = vst [vmem:[#allocation37_spill] sm:$0xff] %v10315_v43  ;;  %12815 = vst [vmem:[#allocation38_spill] sm:$0xff] %v10321_v38  ;;  %v10327_v39 = vld [vmem:[%s11290_s5 + $0x148] sm:$0xff]  ;;  %v10333_v41 = vld [vmem:[%s11290_s5 + $0x158] sm:$0xff] }
 0x6dd   :  { %3601 = vmatpush1.msra.mxu0 %v10315_v43  ;;  %3672 = vmatpush1.msra.mxu1 %v10321_v38  ;;  %12816 = vst [vmem:[#allocation39_spill] sm:$0xff] %v10327_v39  ;;  %12817 = vst [vmem:[#allocation40_spill] sm:$0xff] %v10333_v41  ;;  %v10339_v43 = vld [vmem:[%s11290_s5 + $0x140] sm:$0xff]  ;;  %v10345_v38 = vld [vmem:[%s11290_s5 + $0x150] sm:$0xff] }
 0x6de   :  { %3602 = vmatprep.subr.mxu0 %v10327_v39  ;;  %3673 = vmatprep.subr.mxu1 %v10333_v41  ;;  %12818 = vst [vmem:[#allocation42_spill] sm:$0xff] %v10339_v43  ;;  %12819 = vst [vmem:[#allocation41_spill] sm:$0xff] %v10345_v38  ;;  %v10351_v39 = vld [vmem:[%s11290_s5 + $0x128] sm:$0xff]  ;;  %v10357_v41 = vld [vmem:[%s11290_s5 + $0x138] sm:$0xff] }
 0x6df   :  { %3603 = vmatpush1.msra.mxu0 %v10339_v43  ;;  %3674 = vmatpush1.msra.mxu1 %v10345_v38  ;;  %12820 = vst [vmem:[#allocation44_spill] sm:$0xff] %v10351_v39  ;;  %12821 = vst [vmem:[#allocation43_spill] sm:$0xff] %v10357_v41  ;;  %v10363_v43 = vld [vmem:[%s11290_s5 + $0x120] sm:$0xff]  ;;  %v10369_v38 = vld [vmem:[%s11290_s5 + $0x130] sm:$0xff] }
 0x6e0   :  { %3604 = vmatprep.subr.mxu0 %v10351_v39  ;;  %3675 = vmatprep.subr.mxu1 %v10357_v41  ;;  %12822 = vst [vmem:[#allocation46_spill] sm:$0xff] %v10363_v43  ;;  %12823 = vst [vmem:[#allocation45_spill] sm:$0xff] %v10369_v38  ;;  %v10375_v39 = vld [vmem:[%s11290_s5 + $0x108] sm:$0xff]  ;;  %v10381_v41 = vld [vmem:[%s11290_s5 + $0x118] sm:$0xff] }
 0x6e1   :  { %3605 = vmatpush1.msra.mxu0 %v10363_v43  ;;  %3676 = vmatpush1.msra.mxu1 %v10369_v38  ;;  %12824 = vst [vmem:[#allocation48_spill] sm:$0xff] %v10375_v39  ;;  %12825 = vst [vmem:[#allocation47_spill] sm:$0xff] %v10381_v41  ;;  %v10387_v43 = vld [vmem:[%s11290_s5 + $0x100] sm:$0xff]  ;;  %v10393_v38 = vld [vmem:[%s11290_s5 + $0x110] sm:$0xff] }
 0x6e2   :  { %3606 = vmatprep.subr.mxu0 %v10375_v39  ;;  %3677 = vmatprep.subr.mxu1 %v10381_v41  ;;  %12826 = vst [vmem:[#allocation50_spill] sm:$0xff] %v10387_v43  ;;  %12827 = vst [vmem:[#allocation49_spill] sm:$0xff] %v10393_v38  ;;  %v10399_v39 = vld [vmem:[%s11290_s5 + $0xe8] sm:$0xff]  ;;  %v10405_v41 = vld [vmem:[%s11290_s5 + $0xf8] sm:$0xff] }
 0x6e3   :  { %3607 = vmatpush1.msra.mxu0 %v10387_v43  ;;  %3678 = vmatpush1.msra.mxu1 %v10393_v38  ;;  %12828 = vst [vmem:[#allocation52_spill] sm:$0xff] %v10399_v39  ;;  %12829 = vst [vmem:[#allocation51_spill] sm:$0xff] %v10405_v41  ;;  %v10411_v43 = vld [vmem:[%s11290_s5 + $0xe0] sm:$0xff]  ;;  %v10417_v38 = vld [vmem:[%s11290_s5 + $0xf0] sm:$0xff] }
 0x6e4   :  { %3608 = vmatprep.subr.mxu0 %v10399_v39  ;;  %3679 = vmatprep.subr.mxu1 %v10405_v41  ;;  %12830 = vst [vmem:[#allocation54_spill] sm:$0xff] %v10411_v43  ;;  %12831 = vst [vmem:[#allocation53_spill] sm:$0xff] %v10417_v38  ;;  %v10423_v39 = vld [vmem:[%s11290_s5 + $0xc8] sm:$0xff]  ;;  %v10429_v41 = vld [vmem:[%s11290_s5 + $0xd8] sm:$0xff] }
 0x6e5   :  { %3609 = vmatpush1.msra.mxu0 %v10411_v43  ;;  %3680 = vmatpush1.msra.mxu1 %v10417_v38  ;;  %12832 = vst [vmem:[#allocation56_spill] sm:$0xff] %v10423_v39  ;;  %12833 = vst [vmem:[#allocation55_spill] sm:$0xff] %v10429_v41  ;;  %v10435_v43 = vld [vmem:[%s11290_s5 + $0xc0] sm:$0xff]  ;;  %v10441_v38 = vld [vmem:[%s11290_s5 + $0xd0] sm:$0xff] }
 0x6e6   :  { %3610 = vmatprep.subr.mxu0 %v10423_v39  ;;  %3681 = vmatprep.subr.mxu1 %v10429_v41  ;;  %12834 = vst [vmem:[#allocation58_spill] sm:$0xff] %v10435_v43  ;;  %12835 = vst [vmem:[#allocation57_spill] sm:$0xff] %v10441_v38  ;;  %v10447_v39 = vld [vmem:[%s11290_s5 + $0xa8] sm:$0xff]  ;;  %v10453_v41 = vld [vmem:[%s11290_s5 + $0xb8] sm:$0xff] }
 0x6e7   :  { %3611 = vmatpush1.msra.mxu0 %v10435_v43  ;;  %3682 = vmatpush1.msra.mxu1 %v10441_v38  ;;  %12836 = vst [vmem:[#allocation60_spill] sm:$0xff] %v10447_v39  ;;  %12837 = vst [vmem:[#allocation59_spill] sm:$0xff] %v10453_v41  ;;  %v10459_v43 = vld [vmem:[%s11290_s5 + $0xa0] sm:$0xff]  ;;  %v10465_v38 = vld [vmem:[%s11290_s5 + $0xb0] sm:$0xff] }
 0x6e8   :  { %3612 = vmatprep.subr.mxu0 %v10447_v39  ;;  %3683 = vmatprep.subr.mxu1 %v10453_v41  ;;  %12838 = vst [vmem:[#allocation62_spill] sm:$0xff] %v10459_v43  ;;  %12839 = vst [vmem:[#allocation61_spill] sm:$0xff] %v10465_v38  ;;  %v10471_v39 = vld [vmem:[%s11290_s5 + $0x88] sm:$0xff]  ;;  %v10477_v41 = vld [vmem:[%s11290_s5 + $0x98] sm:$0xff] }
 0x6e9   :  { %3613 = vmatpush1.msra.mxu0 %v10459_v43  ;;  %3684 = vmatpush1.msra.mxu1 %v10465_v38  ;;  %12840 = vst [vmem:[#allocation64_spill] sm:$0xff] %v10471_v39  ;;  %12841 = vst [vmem:[#allocation63_spill] sm:$0xff] %v10477_v41  ;;  %v10483_v43 = vld [vmem:[%s11290_s5 + $0x80] sm:$0xff]  ;;  %v10489_v38 = vld [vmem:[%s11290_s5 + $0x90] sm:$0xff] }
 0x6ea   :  { %3614 = vmatprep.subr.mxu0 %v10471_v39  ;;  %3685 = vmatprep.subr.mxu1 %v10477_v41  ;;  %12842 = vst [vmem:[#allocation66_spill] sm:$0xff] %v10483_v43  ;;  %12843 = vst [vmem:[#allocation65_spill] sm:$0xff] %v10489_v38  ;;  %v10495_v39 = vld [vmem:[%s11290_s5 + $0x68] sm:$0xff]  ;;  %v10501_v41 = vld [vmem:[%s11290_s5 + $0x78] sm:$0xff] }
 0x6eb   :  { %3615 = vmatpush1.msra.mxu0 %v10483_v43  ;;  %3686 = vmatpush1.msra.mxu1 %v10489_v38  ;;  %12844 = vst [vmem:[#allocation68_spill] sm:$0xff] %v10495_v39  ;;  %12845 = vst [vmem:[#allocation67_spill] sm:$0xff] %v10501_v41  ;;  %v10507_v43 = vld [vmem:[%s11290_s5 + $0x60] sm:$0xff]  ;;  %v10513_v38 = vld [vmem:[%s11290_s5 + $0x70] sm:$0xff] }
 0x6ec   :  { %3616 = vmatprep.subr.mxu0 %v10495_v39  ;;  %3687 = vmatprep.subr.mxu1 %v10501_v41  ;;  %12846 = vst [vmem:[#allocation70_spill] sm:$0xff] %v10507_v43  ;;  %12847 = vst [vmem:[#allocation69_spill] sm:$0xff] %v10513_v38  ;;  %v10519_v39 = vld [vmem:[%s11290_s5 + $0x48] sm:$0xff]  ;;  %v10525_v41 = vld [vmem:[%s11290_s5 + $0x58] sm:$0xff] }
 0x6ed   :  { %3617 = vmatpush1.msra.mxu0 %v10507_v43  ;;  %3688 = vmatpush1.msra.mxu1 %v10513_v38  ;;  %12848 = vst [vmem:[#allocation72_spill] sm:$0xff] %v10519_v39  ;;  %12849 = vst [vmem:[#allocation71_spill] sm:$0xff] %v10525_v41  ;;  %v10531_v43 = vld [vmem:[%s11290_s5 + $0x40] sm:$0xff]  ;;  %v10537_v38 = vld [vmem:[%s11290_s5 + $0x50] sm:$0xff] }
 0x6ee   :  { %3618 = vmatprep.subr.mxu0 %v10519_v39  ;;  %3689 = vmatprep.subr.mxu1 %v10525_v41  ;;  %12850 = vst [vmem:[#allocation74_spill] sm:$0xff] %v10531_v43  ;;  %12851 = vst [vmem:[#allocation73_spill] sm:$0xff] %v10537_v38  ;;  %v10543_v39 = vld [vmem:[%s11290_s5 + $0x28] sm:$0xff]  ;;  %v10549_v41 = vld [vmem:[%s11290_s5 + $0x38] sm:$0xff] }
 0x6ef   :  { %3619 = vmatpush1.msra.mxu0 %v10531_v43  ;;  %3690 = vmatpush1.msra.mxu1 %v10537_v38  ;;  %12852 = vst [vmem:[#allocation76_spill] sm:$0xff] %v10543_v39  ;;  %12853 = vst [vmem:[#allocation75_spill] sm:$0xff] %v10549_v41  ;;  %v10555_v43 = vld [vmem:[%s11290_s5 + $0x20] sm:$0xff]  ;;  %v10561_v38 = vld [vmem:[%s11290_s5 + $0x30] sm:$0xff] }
 0x6f0   :  { %3620 = vmatprep.subr.mxu0 %v10543_v39  ;;  %3691 = vmatprep.subr.mxu1 %v10549_v41  ;;  %12854 = vst [vmem:[#allocation78_spill] sm:$0xff] %v10555_v43  ;;  %12855 = vst [vmem:[#allocation77_spill] sm:$0xff] %v10561_v38  ;;  %v10567_v39 = vld [vmem:[%s11290_s5 + $0x8] sm:$0xff]  ;;  %v10573_v41 = vld [vmem:[%s11290_s5 + $0x18] sm:$0xff] }
 0x6f1   :  { %3621 = vmatpush1.msra.mxu0 %v10555_v43  ;;  %3692 = vmatpush1.msra.mxu1 %v10561_v38  ;;  %12856 = vst [vmem:[#allocation80_spill] sm:$0xff] %v10567_v39  ;;  %12857 = vst [vmem:[#allocation79_spill] sm:$0xff] %v10573_v41  ;;  %v10579_v43 = vld [vmem:[%s11290_s5] sm:$0xff] }
 0x6f2   :  { %3622 = vmatprep.subr.mxu0 %v10567_v39  ;;  %3693 = vmatprep.subr.mxu1 %v10573_v41  ;;  %12858 = vst [vmem:[#allocation82_spill] sm:$0xff] %v10579_v43  ;;  %v10586_v39 = vld [vmem:[%s11290_s5 + $0x10] sm:$0xff]  ;;  %v10593_v41 = vld [vmem:[%s11289_s4 + $0x1e8] sm:$0xff] }
 0x6f3   :  { %3623 = vmatpush1.msra.mxu0 %v10579_v43  ;;  %3656 = vmatprep.mubr.f32.mxu0 %v12056_v31  ;;  %12859 = vst [vmem:[#allocation81_spill] sm:$0xff] %v10586_v39  ;;  %12860 = vst [vmem:[#allocation84_spill] sm:$0xff] %v10593_v41  ;;  %v10599_v43 = vld [vmem:[%s11289_s4 + $0x1f8] sm:$0xff] }
 0x6f4   :  { %3694 = vmatpush1.msra.mxu1 %v10586_v39  ;;  %3727 = vmatprep.mubr.f32.mxu1 %v12056_v31  ;;  %12861 = vst [vmem:[#allocation83_spill] sm:$0xff] %v10599_v43 }
 0x6f5   :  { %3737 = vmatprep.subr.mxu0 %v10593_v41  ;;  %3808 = vmatprep.subr.mxu1 %v10599_v43 }
 0x750   :  { %v3158_v38 = vpop.f32.mrf.mxu0  ;;  %v3229_v40 = vpop.f32.mrf.mxu1 }
 0x752   :  { %v3160_v63 = vpop.f32.mrf.mxu0  ;;  %v3231_v8 = vpop.f32.mrf.mxu1 }
 0x772   :  { %v3303_v39 = vpop.f32.mrf.mxu0  ;;  %v3374_v0 = vpop.f32.mrf.mxu1 }
 0x773   :  { %v3304_v27 = vadd.f32 %v3303_v39, %v3158_v38  ;;  %v3375_v58 = vadd.f32 %v3374_v0, %v3229_v40 }
 0x774   :  { %v3305_v25 = vpop.f32.mrf.mxu0  ;;  %v3376_v14 = vpop.f32.mrf.mxu1 }
 0x775   :  { %v3379_v12 = vadd.f32 %v3304_v27, %v6919_v47  ;;  %v3306_v24 = vadd.f32 %v3305_v25, %v3160_v63  ;;  %v3377_v19 = vadd.f32 %v3376_v14, %v3231_v8  ;;  %v3381_v39 = vadd.f32 %v3375_v58, %v6934_v20 }
 0x777   :  { %v4552_v22 = vmul.f32 -1.442695, %v3379_v12  ;;  %v3380_v41 = vadd.f32 %v3306_v24, %v6923_v53  ;;  %v3382_v43 = vadd.f32 %v3377_v19, %v6929_v54 }
 0x779   :  { %4799 = vpow2.f32 %v4552_v22  ;;  %v4553_v21 = vmul.f32 -1.442695, %v3380_v41  ;;  %v4554_v17 = vmul.f32 -1.442695, %v3382_v43 }
 0x77b   :  { %4801 = vpow2.f32 %v4553_v21 }
 0x77c   :  { %4803 = vpow2.f32 %v4554_v17 }
 0x786   :  { %v4800_v15 = vpop.eup %4799 }
 0x787   :  { %v3386_v38 = vadd.f32 1.0, %v4800_v15 }
 0x788   :  { %v4802_v13 = vpop.eup %4801 }
 0x789   :  { %4805 = vrcp.f32 %v3386_v38  ;;  %v3392_v25 = vadd.f32 1.0, %v4802_v13  ;;  %v4804_v12 = vpop.eup %4803 }
 0x78a   :  { %4807 = vtanh.f32 %v3381_v39  ;;  %v3399_v13 = vadd.f32 1.0, %v4804_v12 }
 0x78b   :  { %4809 = vrcp.f32 %v3392_v25 }
 0x793   :  { %v3473_v24 = vpop.f32.mrf.mxu0  ;;  %v3544_v19 = vpop.f32.mrf.mxu1 }
 0x794   :  { %v3553_v22 = vrot.slane %v3473_v24, 4  ;;  %v3555_v24 = vrot.slane %v3544_v19, 4  ;;  %v10617_v19 = vld [vmem:[%s11289_s4 + $0x1e0] sm:$0xff] }
 0x795   :  { %v3475_v27 = vpop.f32.mrf.mxu0  ;;  %v3546_v40 = vpop.f32.mrf.mxu1 }
 0x796   :  { %v4806_v21 = vpop.eup %4805  ;;  %v3561_v14 = vadd.f32 %v3553_v22, %v12571_v45  ;;  %v3554_v0 = vrot.slane %v3475_v27, 4  ;;  %v3556_v38 = vrot.slane %v3546_v40, 4  ;;  %v10659_v40 = vld [vmem:[%s11289_s4 + $0x1b8] sm:$0xff] }
 0x797   :  { %v4808_v8 = vpop.eup %4807 }
 0x798   :  { %v4810_v63 = vpop.eup %4809  ;;  %v4555_v43 = vmul.f32 -1.442695, %v3561_v14  ;;  %v3562_v15 = vadd.f32 %v3554_v0, %v12716_v5  ;;  %v3403_v58 = vmul.f32 %v4808_v8, %v4806_v21  ;;  %v3564_v25 = vadd.f32 %v3556_v38, %v12573_v2  ;;  %v10665_v38 = vld [vmem:[%s11289_s4 + $0x1a0] sm:$0xff] }
 0x799   :  { %v3402_v17 = vmul.f32 %v4810_v63, %v9739_v9  ;;  %v3563_v21 = vadd.f32 %v3555_v24, %v12574_v49  ;;  %v10677_v24 = vld [vmem:[%s11289_s4 + $0x188] sm:$0xff] }
 0x79a   :  { %4811 = vpow2.f32 %v4555_v43  ;;  %v4556_v41 = vmul.f32 -1.442695, %v3562_v15  ;;  %v4557_v22 = vmul.f32 -1.442695, %v3564_v25  ;;  %v10623_v43 = vld [vmem:[%s11289_s4 + $0x1f0] sm:$0xff]  ;;  %v10629_v15 = vld [vmem:[%s11289_s4 + $0x1c8] sm:$0xff] }
 0x79b   :  { %v10609_v39 = vadd.f32 %v3403_v58, %v3402_v17  ;;  %v10635_v58 = vld [vmem:[%s11289_s4 + $0x1d8] sm:$0xff]  ;;  %v10641_v17 = vld [vmem:[%s11289_s4 + $0x1c0] sm:$0xff]  ;;  %v10671_v25 = vld [vmem:[%s11289_s4 + $0x1b0] sm:$0xff]  ;;  %12862 = vst [vmem:[#allocation86_spill] sm:$0xff] %v10677_v24 }
 0x79c   :  { %4813 = vpow2.f32 %v4556_v41  ;;  %v10653_v41 = vld [vmem:[%s11289_s4 + $0x1a8] sm:$0xff] }
 0x79d   :  { %4815 = vrcp.f32 %v3399_v13  ;;  %v10647_v13 = vld [vmem:[%s11289_s4 + $0x1d0] sm:$0xff] }
 0x79e   :  { %4817 = vtanh.f32 %v10609_v39 }
 0x79f   :  { %4819 = vpow2.f32 %v4557_v22  ;;  %v10683_v22 = vld [vmem:[%s11289_s4 + $0x198] sm:$0xff] }
 0x7a0   :  { %12863 = vst [vmem:[#allocation85_spill] sm:$0xff] %v10683_v22 }
 0x7a7   :  { %v4812_v27 = vpop.eup %4811 }
 0x7a8   :  { %v3568_v14 = vadd.f32 1.0, %v4812_v27  ;;  %v10689_v27 = vld [vmem:[%s11289_s4 + $0x180] sm:$0xff] }
 0x7a9   :  { %v4814_v9 = vpop.eup %4813  ;;  %12864 = vst [vmem:[#allocation87_spill] sm:$0xff] %v10689_v27 }
 0x7aa   :  { %v4816_v12 = vpop.eup %4815  ;;  %4821 = vrcp.f32 %v3568_v14  ;;  %v3574_v0 = vadd.f32 1.0, %v4814_v9  ;;  %v10701_v9 = vld [vmem:[%s11289_s4 + $0x168] sm:$0xff] }
 0x7ab   :  { %v4818_v8 = vpop.eup %4817  ;;  %4823 = vtanh.f32 %v3563_v21  ;;  %v10695_v21 = vld [vmem:[%s11289_s4 + $0x190] sm:$0xff]  ;;  %12866 = vst [vmem:[#allocation89_spill] sm:$0xff] %v10701_v9 }
 0x7ac   :  { %4825 = vrcp.f32 %v3574_v0  ;;  %v3406_v63 = vmul.f32 %v4818_v8, %v4816_v12  ;;  %12865 = vst [vmem:[#allocation88_spill] sm:$0xff] %v10695_v21  ;;  %v4820_v14 = vpop.eup %4819  ;;  %v10707_v12 = vld [vmem:[%s11289_s4 + $0x178] sm:$0xff]  ;;  %v10713_v8 = vld [vmem:[%s11289_s4 + $0x160] sm:$0xff] }
 0x7ad   :  { %12867 = vst [vmem:[#allocation154_spill] sm:$0xff] %v10707_v12  ;;  %12868 = vst [vmem:[#allocation155_spill] sm:$0xff] %v10713_v8 }
 0x7ae   :  { %3657 = vmatmul.mubr.f32.vlgmr.msra.gmra.mxu0 %v3406_v63  ;;  %3728 = vmatmul.mubr.f32.vlgmr.msra.gmra.mxu1 %v3406_v63  ;;  %v10719_v63 = vld [vmem:[%s11289_s4 + $0x170] sm:$0xff] }
 0x7af   :  { %3738 = vmatpush1.msra.mxu0 %v10617_v19  ;;  %3809 = vmatpush1.msra.mxu1 %v10623_v43  ;;  %12869 = vst [vmem:[#allocation153_spill] sm:$0xff] %v10719_v63 }
 0x7b0   :  { %3739 = vmatprep.subr.mxu0 %v10629_v15  ;;  %3810 = vmatprep.subr.mxu1 %v10635_v58 }
 0x7b1   :  { %3740 = vmatpush1.msra.mxu0 %v10641_v17  ;;  %3811 = vmatpush1.msra.mxu1 %v10647_v13 }
 0x7b2   :  { %3741 = vmatprep.subr.mxu0 %v10653_v41  ;;  %3812 = vmatprep.subr.mxu1 %v10659_v40 }
 0x7b3   :  { %3742 = vmatpush1.msra.mxu0 %v10665_v38  ;;  %3813 = vmatpush1.msra.mxu1 %v10671_v25 }
 0x7b4   :  { %3743 = vmatprep.subr.mxu0 %v10677_v24  ;;  %3814 = vmatprep.subr.mxu1 %v10683_v22  ;;  %v3581_v22 = vadd.f32 1.0, %v4820_v14  ;;  %v10750_v14 = vld [vmem:[%s11289_s4 + $0x128] sm:$0xff] }
 0x7b5   :  { %3744 = vmatpush1.msra.mxu0 %v10689_v27  ;;  %3815 = vmatpush1.msra.mxu1 %v10695_v21  ;;  %v3585_v21 = vrot.slane %v9771_v44, 6  ;;  %v10738_v44 = vld [vmem:[%s11289_s4 + $0x140] sm:$0xff] }
 0x7b6   :  { %3745 = vmatprep.subr.mxu0 %v10701_v9  ;;  %3816 = vmatprep.subr.mxu1 %v10707_v12  ;;  %v10726_v12 = vld [vmem:[%s11289_s4 + $0x148] sm:$0xff]  ;;  %12871 = vst [vmem:[#allocation91_spill] sm:$0xff] %v10738_v44  ;;  %4827 = vrcp.f32 %v3581_v22  ;;  %v10806_v22 = vld [vmem:[%s11289_s4 + $0xf8] sm:$0xff] }
 0x7b7   :  { %v4822_v0 = vpop.eup %4821  ;;  %3746 = vmatpush1.msra.mxu0 %v10713_v8  ;;  %3817 = vmatpush1.msra.mxu1 %v10719_v63  ;;  %12870 = vst [vmem:[#allocation90_spill] sm:$0xff] %v10726_v12  ;;  %v10732_v8 = vld [vmem:[%s11289_s4 + $0x158] sm:$0xff]  ;;  %12880 = vst [vmem:[#allocation100_spill] sm:$0xff] %v10806_v22 }
 0x7b8   :  { %v4824_v9 = vpop.eup %4823  ;;  %3747 = vmatprep.subr.mxu0 %v10726_v12  ;;  %3818 = vmatprep.subr.mxu1 %v10732_v8  ;;  %v10744_v12 = vld [vmem:[%s11289_s4 + $0x150] sm:$0xff] }
 0x7b9   :  { %v4826_v27 = vpop.eup %4825  ;;  %3748 = vmatpush1.msra.mxu0 %v10738_v44  ;;  %12872 = vst [vmem:[#allocation92_spill] sm:$0xff] %v10744_v12  ;;  %3819 = vmatpush1.msra.mxu1 %v10744_v12  ;;  %v3588_v63 = vmul.f32 %v4824_v9, %v4822_v0  ;;  %v10756_v44 = vld [vmem:[%s11289_s4 + $0x138] sm:$0xff]  ;;  %v10762_v12 = vld [vmem:[%s11289_s4 + $0x120] sm:$0xff]  ;;  %v10776_v9 = vld [vmem:[%s11289_s4 + $0x108] sm:$0xff] }
 0x7ba   :  { %v3587_v24 = vmul.f32 %v4826_v27, %v3585_v21  ;;  %3749 = vmatprep.subr.mxu0 %v10750_v14  ;;  %3820 = vmatprep.subr.mxu1 %v10756_v44  ;;  %12873 = vst [vmem:[#allocation93_spill] sm:$0xff] %v10762_v12  ;;  %v10768_v27 = vld [vmem:[%s11289_s4 + $0x130] sm:$0xff]  ;;  %12875 = vst [vmem:[#allocation95_spill] sm:$0xff] %v10776_v9  ;;  %v10782_v0 = vld [vmem:[%s11289_s4 + $0x118] sm:$0xff] }
 0x7bb   :  { %3750 = vmatpush1.msra.mxu0 %v10762_v12  ;;  %12874 = vst [vmem:[#allocation94_spill] sm:$0xff] %v10768_v27  ;;  %3821 = vmatpush1.msra.mxu1 %v10768_v27  ;;  %12876 = vst [vmem:[#allocation96_spill] sm:$0xff] %v10782_v0  ;;  %v10963_v27 = vld [vmem:[%s11289_s4 + $0x30] sm:$0xff]  ;;  %v10981_v12 = vld [vmem:[%s11289_s4] sm:$0xff] }
 0x7bc   :  { %v10771_v21 = vadd.f32 %v3588_v63, %v3587_v24  ;;  %3751 = vmatprep.subr.mxu0 %v10776_v9  ;;  %3822 = vmatprep.subr.mxu1 %v10782_v0  ;;  %v10788_v24 = vld [vmem:[%s11289_s4 + $0x100] sm:$0xff]  ;;  %v10794_v63 = vld [vmem:[%s11289_s4 + $0x110] sm:$0xff]  ;;  %v10800_v9 = vld [vmem:[%s11289_s4 + $0xe8] sm:$0xff]  ;;  %12906 = vst [vmem:[#allocation126_spill] sm:$0xff] %v10963_v27 }
 0x7bd   :  { %12877 = vst [vmem:[#allocation97_spill] sm:$0xff] %v10788_v24  ;;  %3752 = vmatpush1.msra.mxu0 %v10788_v24  ;;  %12878 = vst [vmem:[#allocation98_spill] sm:$0xff] %v10794_v63  ;;  %3823 = vmatpush1.msra.mxu1 %v10794_v63  ;;  %v10813_v63 = vld [vmem:[%s11289_s4 + $0xe0] sm:$0xff]  ;;  %v10831_v24 = vld [vmem:[%s11289_s4 + $0xd8] sm:$0xff] }
 0x7be   :  { %12879 = vst [vmem:[#allocation99_spill] sm:$0xff] %v10800_v9  ;;  %3753 = vmatprep.subr.mxu0 %v10800_v9  ;;  %3824 = vmatprep.subr.mxu1 %v10806_v22  ;;  %4829 = vtanh.f32 %v10771_v21  ;;  %12881 = vst [vmem:[#allocation101_spill] sm:$0xff] %v10813_v63  ;;  %v10819_v9 = vld [vmem:[%s11289_s4 + $0xf0] sm:$0xff]  ;;  %v10825_v22 = vld [vmem:[%s11289_s4 + $0xc8] sm:$0xff] }
 0x7bf   :  { %3754 = vmatpush1.msra.mxu0 %v10813_v63  ;;  %12882 = vst [vmem:[#allocation102_spill] sm:$0xff] %v10819_v9  ;;  %3825 = vmatpush1.msra.mxu1 %v10819_v9  ;;  %12883 = vst [vmem:[#allocation103_spill] sm:$0xff] %v10825_v22  ;;  %v10837_v63 = vld [vmem:[%s11289_s4 + $0xc0] sm:$0xff]  ;;  %v10843_v9 = vld [vmem:[%s11289_s4 + $0xd0] sm:$0xff] }
 0x7c0   :  { %3755 = vmatprep.subr.mxu0 %v10825_v22  ;;  %12884 = vst [vmem:[#allocation104_spill] sm:$0xff] %v10831_v24  ;;  %3826 = vmatprep.subr.mxu1 %v10831_v24  ;;  %12885 = vst [vmem:[#allocation105_spill] sm:$0xff] %v10837_v63  ;;  %v10849_v22 = vld [vmem:[%s11289_s4 + $0xa8] sm:$0xff]  ;;  %v10855_v24 = vld [vmem:[%s11289_s4 + $0xb8] sm:$0xff] }
 0x7c1   :  { %3756 = vmatpush1.msra.mxu0 %v10837_v63  ;;  %12886 = vst [vmem:[#allocation106_spill] sm:$0xff] %v10843_v9  ;;  %3827 = vmatpush1.msra.mxu1 %v10843_v9  ;;  %12887 = vst [vmem:[#allocation107_spill] sm:$0xff] %v10849_v22  ;;  %v10861_v63 = vld [vmem:[%s11289_s4 + $0xa0] sm:$0xff]  ;;  %v10867_v9 = vld [vmem:[%s11289_s4 + $0xb0] sm:$0xff] }
 0x7c2   :  { %3757 = vmatprep.subr.mxu0 %v10849_v22  ;;  %12888 = vst [vmem:[#allocation108_spill] sm:$0xff] %v10855_v24  ;;  %3828 = vmatprep.subr.mxu1 %v10855_v24  ;;  %12889 = vst [vmem:[#allocation109_spill] sm:$0xff] %v10861_v63  ;;  %v10873_v22 = vld [vmem:[%s11289_s4 + $0x88] sm:$0xff]  ;;  %v10879_v24 = vld [vmem:[%s11289_s4 + $0x98] sm:$0xff] }
 0x7c3   :  { %3758 = vmatpush1.msra.mxu0 %v10861_v63  ;;  %12890 = vst [vmem:[#allocation110_spill] sm:$0xff] %v10867_v9  ;;  %3829 = vmatpush1.msra.mxu1 %v10867_v9  ;;  %12891 = vst [vmem:[#allocation111_spill] sm:$0xff] %v10873_v22  ;;  %v10885_v63 = vld [vmem:[%s11289_s4 + $0x80] sm:$0xff]  ;;  %v10891_v9 = vld [vmem:[%s11289_s4 + $0x90] sm:$0xff] }
 0x7c4   :  { %3759 = vmatprep.subr.mxu0 %v10873_v22  ;;  %12892 = vst [vmem:[#allocation112_spill] sm:$0xff] %v10879_v24  ;;  %3830 = vmatprep.subr.mxu1 %v10879_v24  ;;  %12893 = vst [vmem:[#allocation113_spill] sm:$0xff] %v10885_v63  ;;  %v10897_v22 = vld [vmem:[%s11289_s4 + $0x68] sm:$0xff]  ;;  %v10903_v24 = vld [vmem:[%s11289_s4 + $0x78] sm:$0xff] }
 0x7c5   :  { %3760 = vmatpush1.msra.mxu0 %v10885_v63  ;;  %12894 = vst [vmem:[#allocation114_spill] sm:$0xff] %v10891_v9  ;;  %3831 = vmatpush1.msra.mxu1 %v10891_v9  ;;  %12895 = vst [vmem:[#allocation115_spill] sm:$0xff] %v10897_v22  ;;  %v10909_v63 = vld [vmem:[%s11289_s4 + $0x60] sm:$0xff]  ;;  %v10915_v9 = vld [vmem:[%s11289_s4 + $0x70] sm:$0xff] }
 0x7c6   :  { %3761 = vmatprep.subr.mxu0 %v10897_v22  ;;  %12896 = vst [vmem:[#allocation116_spill] sm:$0xff] %v10903_v24  ;;  %3832 = vmatprep.subr.mxu1 %v10903_v24  ;;  %12897 = vst [vmem:[#allocation117_spill] sm:$0xff] %v10909_v63  ;;  %v10921_v22 = vld [vmem:[%s11289_s4 + $0x48] sm:$0xff]  ;;  %v10927_v24 = vld [vmem:[%s11289_s4 + $0x58] sm:$0xff] }
 0x7c7   :  { %3762 = vmatpush1.msra.mxu0 %v10909_v63  ;;  %12898 = vst [vmem:[#allocation118_spill] sm:$0xff] %v10915_v9  ;;  %3833 = vmatpush1.msra.mxu1 %v10915_v9  ;;  %12899 = vst [vmem:[#allocation119_spill] sm:$0xff] %v10921_v22  ;;  %v10933_v63 = vld [vmem:[%s11289_s4 + $0x40] sm:$0xff]  ;;  %v10939_v9 = vld [vmem:[%s11289_s4 + $0x50] sm:$0xff] }
 0x7c8   :  { %3763 = vmatprep.subr.mxu0 %v10921_v22  ;;  %12900 = vst [vmem:[#allocation120_spill] sm:$0xff] %v10927_v24  ;;  %3834 = vmatprep.subr.mxu1 %v10927_v24  ;;  %12901 = vst [vmem:[#allocation121_spill] sm:$0xff] %v10933_v63  ;;  %v4828_v22 = vpop.eup %4827  ;;  %v10945_v0 = vld [vmem:[%s11289_s4 + $0x28] sm:$0xff]  ;;  %v10951_v24 = vld [vmem:[%s11289_s4 + $0x38] sm:$0xff] }
 0x7c9   :  { %3764 = vmatpush1.msra.mxu0 %v10933_v63  ;;  %12902 = vst [vmem:[#allocation122_spill] sm:$0xff] %v10939_v9  ;;  %3835 = vmatpush1.msra.mxu1 %v10939_v9  ;;  %12903 = vst [vmem:[#allocation123_spill] sm:$0xff] %v10945_v0  ;;  %v10957_v9 = vld [vmem:[%s11289_s4 + $0x20] sm:$0xff] }
 0x7ca   :  { %3765 = vmatprep.subr.mxu0 %v10945_v0  ;;  %12904 = vst [vmem:[#allocation124_spill] sm:$0xff] %v10951_v24  ;;  %3836 = vmatprep.subr.mxu1 %v10951_v24  ;;  %12905 = vst [vmem:[#allocation125_spill] sm:$0xff] %v10957_v9  ;;  %v10969_v0 = vld [vmem:[%s11289_s4 + $0x8] sm:$0xff]  ;;  %v10975_v24 = vld [vmem:[%s11289_s4 + $0x18] sm:$0xff] }
 0x7cb   :  { %v4830_v63 = vpop.eup %4829  ;;  %3766 = vmatpush1.msra.mxu0 %v10957_v9  ;;  %3837 = vmatpush1.msra.mxu1 %v10963_v27  ;;  %12907 = vst [vmem:[#allocation127_spill] sm:$0xff] %v10975_v24  ;;  %v10987_v27 = vld [vmem:[%s11289_s4 + $0x10] sm:$0xff] }
 0x7cc   :  { %3767 = vmatprep.subr.mxu0 %v10969_v0  ;;  %3838 = vmatprep.subr.mxu1 %v10975_v24  ;;  %v3591_v9 = vmul.f32 %v4830_v63, %v4828_v22  ;;  %v12942_v63 = vld [vmem:[#allocation13_spill] sm:$0xff]  ;;  %v12943_v22 = vld [vmem:[#allocation23_spill] sm:$0xff] }
 0x7cd   :  { %3768 = vmatpush1.msra.mxu0 %v10981_v12  ;;  %3839 = vmatpush1.msra.mxu1 %v10987_v27 }
 0x7ce   :  { %3801 = vmatprep.mubr.f32.mxu0 %v12056_v31  ;;  %3872 = vmatprep.mubr.f32.mxu1 %v12056_v31  ;;  %v10992_v24 = vrot.slane %v3591_v9, 4  ;;  %v12941_v9 = vld [vmem:[#allocation22_spill] sm:$0xff] }
 0x7cf   :  { %3907 = vmatprep.subr.mxu0 %v9817_v28  ;;  %3978 = vmatprep.subr.mxu1 %v9823_v33  ;;  %v12908_v28 = vld [vmem:[#allocation138_spill] sm:$0xff]  ;;  %v12909_v33 = vld [vmem:[#allocation139_spill] sm:$0xff] }
 0x7d0   :  { %3802 = vmatmul.mubr.f32.vlgmr.msra.gmra.mxu0 %v10992_v24  ;;  %3873 = vmatmul.mubr.f32.vlgmr.msra.gmra.mxu1 %v10992_v24 }
 0x7d1   :  { %3908 = vmatpush1.msra.mxu0 %v9831_v16  ;;  %3979 = vmatpush1.msra.mxu1 %v9837_v26  ;;  %v12910_v16 = vld [vmem:[#allocation140_spill] sm:$0xff]  ;;  %v12911_v26 = vld [vmem:[#allocation141_spill] sm:$0xff] }
 0x7d2   :  { %3909 = vmatprep.subr.mxu0 %v9843_v18  ;;  %3980 = vmatprep.subr.mxu1 %v9849_v29  ;;  %v12912_v18 = vld [vmem:[#allocation142_spill] sm:$0xff]  ;;  %v12913_v29 = vld [vmem:[#allocation143_spill] sm:$0xff] }
 0x7d3   :  { %3910 = vmatpush1.msra.mxu0 %v9855_v30  ;;  %3981 = vmatpush1.msra.mxu1 %v9861_v32  ;;  %v12914_v30 = vld [vmem:[#allocation144_spill] sm:$0xff]  ;;  %v12915_v32 = vld [vmem:[#allocation145_spill] sm:$0xff] }
 0x7d4   :  { %3911 = vmatprep.subr.mxu0 %v9867_v34  ;;  %3982 = vmatprep.subr.mxu1 %v9873_v35  ;;  %v12916_v34 = vld [vmem:[#allocation152_spill] sm:$0xff]  ;;  %v12917_v35 = vld [vmem:[#allocation157_spill] sm:$0xff] }
 0x7d5   :  { %3912 = vmatpush1.msra.mxu0 %v9879_v36  ;;  %3983 = vmatpush1.msra.mxu1 %v9885_v37  ;;  %v12918_v36 = vld [vmem:[#allocation156_spill] sm:$0xff]  ;;  %v12919_v37 = vld [vmem:[#allocation146_spill] sm:$0xff] }
 0x7d6   :  { %3913 = vmatprep.subr.mxu0 %v9891_v62  ;;  %3984 = vmatprep.subr.mxu1 %v9897_v10  ;;  %v12920_v62 = vld [vmem:[#allocation147_spill] sm:$0xff]  ;;  %v12921_v10 = vld [vmem:[#allocation148_spill] sm:$0xff] }
 0x7d7   :  { %3914 = vmatpush1.msra.mxu0 %v9903_v42  ;;  %3985 = vmatpush1.msra.mxu1 %v9909_v57  ;;  %v12922_v42 = vld [vmem:[#allocation149_spill] sm:$0xff]  ;;  %v12923_v57 = vld [vmem:[#allocation150_spill] sm:$0xff] }
 0x7d8   :  { %3915 = vmatprep.subr.mxu0 %v9915_v1  ;;  %3986 = vmatprep.subr.mxu1 %v9921_v23  ;;  %v12924_v1 = vld [vmem:[#allocation151_spill] sm:$0xff]  ;;  %v12925_v23 = vld [vmem:[#allocation14_spill] sm:$0xff] }
 0x7d9   :  { %3916 = vmatpush1.msra.mxu0 %v9927_v4  ;;  %3987 = vmatpush1.msra.mxu1 %v9933_v51  ;;  %v12926_v4 = vld [vmem:[#allocation5_spill] sm:$0xff]  ;;  %v12927_v51 = vld [vmem:[#allocation15_spill] sm:$0xff] }
 0x7da   :  { %3917 = vmatprep.subr.mxu0 %v9939_v56  ;;  %3988 = vmatprep.subr.mxu1 %v9945_v61  ;;  %v12928_v56 = vld [vmem:[#allocation6_spill] sm:$0xff]  ;;  %v12929_v61 = vld [vmem:[#allocation16_spill] sm:$0xff] }
 0x7db   :  { %3918 = vmatpush1.msra.mxu0 %v9951_v50  ;;  %3989 = vmatpush1.msra.mxu1 %v9957_v59  ;;  %v12930_v50 = vld [vmem:[#allocation7_spill] sm:$0xff]  ;;  %v12931_v59 = vld [vmem:[#allocation17_spill] sm:$0xff] }
 0x7dc   :  { %3919 = vmatprep.subr.mxu0 %v9963_v55  ;;  %3990 = vmatprep.subr.mxu1 %v9969_v52  ;;  %v12932_v55 = vld [vmem:[#allocation8_spill] sm:$0xff]  ;;  %v12933_v52 = vld [vmem:[#allocation18_spill] sm:$0xff] }
 0x7dd   :  { %3920 = vmatpush1.msra.mxu0 %v9975_v48  ;;  %3991 = vmatpush1.msra.mxu1 %v9981_v46  ;;  %v12934_v48 = vld [vmem:[#allocation9_spill] sm:$0xff]  ;;  %v12935_v46 = vld [vmem:[#allocation19_spill] sm:$0xff] }
 0x7de   :  { %3921 = vmatprep.subr.mxu0 %v9987_v6  ;;  %3992 = vmatprep.subr.mxu1 %v9993_v3  ;;  %v12936_v6 = vld [vmem:[#allocation10_spill] sm:$0xff]  ;;  %v12937_v3 = vld [vmem:[#allocation20_spill] sm:$0xff] }
 0x7df   :  { %3922 = vmatpush1.msra.mxu0 %v9999_v7  ;;  %3993 = vmatpush1.msra.mxu1 %v10005_v11  ;;  %v12938_v7 = vld [vmem:[#allocation11_spill] sm:$0xff]  ;;  %v12939_v11 = vld [vmem:[#allocation21_spill] sm:$0xff] }
 0x7e0   :  { %3923 = vmatprep.subr.mxu0 %v10011_v60  ;;  %3994 = vmatprep.subr.mxu1 %v12908_v28  ;;  %v12940_v60 = vld [vmem:[#allocation12_spill] sm:$0xff] }
 0x7e1   :  { %3924 = vmatpush1.msra.mxu0 %v12909_v33  ;;  %3995 = vmatpush1.msra.mxu1 %v12910_v16  ;;  %v12944_v28 = vld [vmem:[#allocation24_spill] sm:$0xff]  ;;  %v12945_v33 = vld [vmem:[#allocation26_spill] sm:$0xff]  ;;  %v12946_v16 = vld [vmem:[#allocation25_spill] sm:$0xff] }
 0x7e2   :  { %3925 = vmatprep.subr.mxu0 %v12911_v26  ;;  %3996 = vmatprep.subr.mxu1 %v12912_v18  ;;  %v12947_v26 = vld [vmem:[#allocation28_spill] sm:$0xff]  ;;  %v12948_v18 = vld [vmem:[#allocation27_spill] sm:$0xff] }
 0x7e3   :  { %3926 = vmatpush1.msra.mxu0 %v12913_v29  ;;  %3997 = vmatpush1.msra.mxu1 %v12914_v30  ;;  %v12950_v29 = vld [vmem:[#allocation29_spill] sm:$0xff]  ;;  %v12951_v30 = vld [vmem:[#allocation32_spill] sm:$0xff] }
 0x7e4   :  { %3927 = vmatprep.subr.mxu0 %v12915_v32  ;;  %3998 = vmatprep.subr.mxu1 %v12916_v34  ;;  %v12952_v32 = vld [vmem:[#allocation31_spill] sm:$0xff]  ;;  %v12953_v34 = vld [vmem:[#allocation34_spill] sm:$0xff] }
 0x7e5   :  { %3928 = vmatpush1.msra.mxu0 %v12917_v35  ;;  %3999 = vmatpush1.msra.mxu1 %v12918_v36  ;;  %v12954_v35 = vld [vmem:[#allocation33_spill] sm:$0xff]  ;;  %v12955_v36 = vld [vmem:[#allocation36_spill] sm:$0xff] }
 0x7e6   :  { %3929 = vmatprep.subr.mxu0 %v12919_v37  ;;  %4000 = vmatprep.subr.mxu1 %v12920_v62  ;;  %v12956_v37 = vld [vmem:[#allocation35_spill] sm:$0xff]  ;;  %v12957_v62 = vld [vmem:[#allocation37_spill] sm:$0xff] }
 0x7e7   :  { %3930 = vmatpush1.msra.mxu0 %v12921_v10  ;;  %4001 = vmatpush1.msra.mxu1 %v12922_v42  ;;  %v12958_v10 = vld [vmem:[#allocation38_spill] sm:$0xff]  ;;  %v12959_v42 = vld [vmem:[#allocation39_spill] sm:$0xff] }
 0x7e8   :  { %3931 = vmatprep.subr.mxu0 %v12923_v57  ;;  %4002 = vmatprep.subr.mxu1 %v12924_v1  ;;  %v12960_v57 = vld [vmem:[#allocation40_spill] sm:$0xff]  ;;  %v12961_v1 = vld [vmem:[#allocation42_spill] sm:$0xff] }
 0x7e9   :  { %3932 = vmatpush1.msra.mxu0 %v12925_v23  ;;  %4003 = vmatpush1.msra.mxu1 %v12926_v4  ;;  %v12962_v23 = vld [vmem:[#allocation41_spill] sm:$0xff]  ;;  %v12963_v4 = vld [vmem:[#allocation44_spill] sm:$0xff] }
 0x7ea   :  { %3933 = vmatprep.subr.mxu0 %v12927_v51  ;;  %4004 = vmatprep.subr.mxu1 %v12928_v56  ;;  %v12964_v51 = vld [vmem:[#allocation43_spill] sm:$0xff]  ;;  %v12965_v56 = vld [vmem:[#allocation46_spill] sm:$0xff] }
 0x7eb   :  { %3934 = vmatpush1.msra.mxu0 %v12929_v61  ;;  %4005 = vmatpush1.msra.mxu1 %v12930_v50  ;;  %v12966_v61 = vld [vmem:[#allocation45_spill] sm:$0xff]  ;;  %v12967_v50 = vld [vmem:[#allocation48_spill] sm:$0xff] }
 0x7ec   :  { %3935 = vmatprep.subr.mxu0 %v12931_v59  ;;  %4006 = vmatprep.subr.mxu1 %v12932_v55  ;;  %v12968_v59 = vld [vmem:[#allocation47_spill] sm:$0xff]  ;;  %v12969_v55 = vld [vmem:[#allocation50_spill] sm:$0xff] }
 0x7ed   :  { %3936 = vmatpush1.msra.mxu0 %v12933_v52  ;;  %4007 = vmatpush1.msra.mxu1 %v12934_v48  ;;  %v12970_v52 = vld [vmem:[#allocation49_spill] sm:$0xff]  ;;  %v12971_v48 = vld [vmem:[#allocation52_spill] sm:$0xff] }
 0x7ee   :  { %3937 = vmatprep.subr.mxu0 %v12935_v46  ;;  %4008 = vmatprep.subr.mxu1 %v12936_v6  ;;  %v12972_v46 = vld [vmem:[#allocation51_spill] sm:$0xff]  ;;  %v12973_v6 = vld [vmem:[#allocation54_spill] sm:$0xff] }
 0x7ef   :  { %3938 = vmatpush1.msra.mxu0 %v12937_v3  ;;  %3971 = vmatprep.mubr.f32.mxu0 %v12056_v31  ;;  %v12974_v3 = vld [vmem:[#allocation53_spill] sm:$0xff] }
 0x7f0   :  { %4009 = vmatpush1.msra.mxu1 %v12938_v7  ;;  %4042 = vmatprep.mubr.f32.mxu1 %v12056_v31  ;;  %v12975_v7 = vld [vmem:[#allocation56_spill] sm:$0xff] }
 0x7f1   :  { %3972 = vmatmul.mubr.f32.vlgmr.msra.gmra.mxu0 %v10992_v24  ;;  %4043 = vmatmul.mubr.f32.vlgmr.msra.gmra.mxu1 %v10992_v24  ;;  %v12949_v24 = vld [vmem:[#allocation30_spill] sm:$0xff] }
 0x7f2   :  { %4092 = vmatprep.subr.mxu0 %v12939_v11  ;;  %4163 = vmatprep.subr.mxu1 %v12940_v60  ;;  %v12976_v11 = vld [vmem:[#allocation55_spill] sm:$0xff]  ;;  %v12977_v60 = vld [vmem:[#allocation58_spill] sm:$0xff] }
 0x7f3   :  { %4093 = vmatpush1.msra.mxu0 %v12941_v9  ;;  %4164 = vmatpush1.msra.mxu1 %v12942_v63  ;;  %v12978_v9 = vld [vmem:[#allocation57_spill] sm:$0xff]  ;;  %v12979_v63 = vld [vmem:[#allocation60_spill] sm:$0xff] }
 0x7f4   :  { %4094 = vmatprep.subr.mxu0 %v12943_v22  ;;  %4165 = vmatprep.subr.mxu1 %v12944_v28  ;;  %v12980_v22 = vld [vmem:[#allocation59_spill] sm:$0xff]  ;;  %v12981_v28 = vld [vmem:[#allocation62_spill] sm:$0xff] }
 0x7f5   :  { %4095 = vmatpush1.msra.mxu0 %v12945_v33  ;;  %4166 = vmatpush1.msra.mxu1 %v12946_v16  ;;  %v12982_v33 = vld [vmem:[#allocation61_spill] sm:$0xff]  ;;  %v12983_v16 = vld [vmem:[#allocation64_spill] sm:$0xff] }
 0x7f6   :  { %4096 = vmatprep.subr.mxu0 %v12947_v26  ;;  %4167 = vmatprep.subr.mxu1 %v12948_v18  ;;  %v12984_v26 = vld [vmem:[#allocation63_spill] sm:$0xff]  ;;  %v12985_v18 = vld [vmem:[#allocation66_spill] sm:$0xff] }
 0x7f7   :  { %4097 = vmatpush1.msra.mxu0 %v12949_v24  ;;  %4168 = vmatpush1.msra.mxu1 %v12950_v29  ;;  %v12986_v24 = vld [vmem:[#allocation65_spill] sm:$0xff]  ;;  %v12987_v29 = vld [vmem:[#allocation68_spill] sm:$0xff] }
 0x7f8   :  { %4098 = vmatprep.subr.mxu0 %v12951_v30  ;;  %4169 = vmatprep.subr.mxu1 %v12952_v32  ;;  %v12988_v30 = vld [vmem:[#allocation67_spill] sm:$0xff]  ;;  %v12989_v32 = vld [vmem:[#allocation70_spill] sm:$0xff] }
 0x7f9   :  { %4099 = vmatpush1.msra.mxu0 %v12953_v34  ;;  %4170 = vmatpush1.msra.mxu1 %v12954_v35  ;;  %v12990_v34 = vld [vmem:[#allocation69_spill] sm:$0xff]  ;;  %v12991_v35 = vld [vmem:[#allocation72_spill] sm:$0xff] }
 0x7fa   :  { %4100 = vmatprep.subr.mxu0 %v12955_v36  ;;  %4171 = vmatprep.subr.mxu1 %v12956_v37  ;;  %v12992_v36 = vld [vmem:[#allocation71_spill] sm:$0xff]  ;;  %v12993_v37 = vld [vmem:[#allocation74_spill] sm:$0xff] }
 0x7fb   :  { %4101 = vmatpush1.msra.mxu0 %v12957_v62  ;;  %4172 = vmatpush1.msra.mxu1 %v12958_v10  ;;  %v12994_v62 = vld [vmem:[#allocation73_spill] sm:$0xff]  ;;  %v12995_v10 = vld [vmem:[#allocation76_spill] sm:$0xff] }
 0x7fc   :  { %4102 = vmatprep.subr.mxu0 %v12959_v42  ;;  %4173 = vmatprep.subr.mxu1 %v12960_v57  ;;  %v12996_v42 = vld [vmem:[#allocation75_spill] sm:$0xff]  ;;  %v12997_v57 = vld [vmem:[#allocation78_spill] sm:$0xff] }
 0x7fd   :  { %4103 = vmatpush1.msra.mxu0 %v12961_v1  ;;  %4174 = vmatpush1.msra.mxu1 %v12962_v23  ;;  %v12998_v1 = vld [vmem:[#allocation77_spill] sm:$0xff]  ;;  %v12999_v23 = vld [vmem:[#allocation80_spill] sm:$0xff] }
 0x7fe   :  { %4104 = vmatprep.subr.mxu0 %v12963_v4  ;;  %4175 = vmatprep.subr.mxu1 %v12964_v51  ;;  %v13000_v4 = vld [vmem:[#allocation79_spill] sm:$0xff]  ;;  %v13001_v51 = vld [vmem:[#allocation82_spill] sm:$0xff] }
 0x7ff   :  { %4105 = vmatpush1.msra.mxu0 %v12965_v56  ;;  %4176 = vmatpush1.msra.mxu1 %v12966_v61  ;;  %v13002_v56 = vld [vmem:[#allocation81_spill] sm:$0xff]  ;;  %v13003_v61 = vld [vmem:[#allocation84_spill] sm:$0xff] }
 0x800   :  { %4106 = vmatprep.subr.mxu0 %v12967_v50  ;;  %4177 = vmatprep.subr.mxu1 %v12968_v59  ;;  %v13004_v50 = vld [vmem:[#allocation83_spill] sm:$0xff] }
 0x801   :  { %4107 = vmatpush1.msra.mxu0 %v12969_v55  ;;  %4178 = vmatpush1.msra.mxu1 %v12970_v52 }
 0x802   :  { %4108 = vmatprep.subr.mxu0 %v12971_v48  ;;  %4179 = vmatprep.subr.mxu1 %v12972_v46 }
 0x803   :  { %4109 = vmatpush1.msra.mxu0 %v12973_v6  ;;  %4180 = vmatpush1.msra.mxu1 %v12974_v3 }
 0x804   :  { %4110 = vmatprep.subr.mxu0 %v12975_v7  ;;  %4181 = vmatprep.subr.mxu1 %v12976_v11 }
 0x805   :  { %4111 = vmatpush1.msra.mxu0 %v12977_v60  ;;  %4182 = vmatpush1.msra.mxu1 %v12978_v9 }
 0x806   :  { %4112 = vmatprep.subr.mxu0 %v12979_v63  ;;  %4183 = vmatprep.subr.mxu1 %v12980_v22 }
 0x807   :  { %4113 = vmatpush1.msra.mxu0 %v12981_v28  ;;  %4184 = vmatpush1.msra.mxu1 %v12982_v33 }
 0x808   :  { %4114 = vmatprep.subr.mxu0 %v12983_v16  ;;  %4185 = vmatprep.subr.mxu1 %v12984_v26 }
 0x809   :  { %4115 = vmatpush1.msra.mxu0 %v12985_v18  ;;  %4186 = vmatpush1.msra.mxu1 %v12986_v24 }
 0x80a   :  { %4116 = vmatprep.subr.mxu0 %v12987_v29  ;;  %4187 = vmatprep.subr.mxu1 %v12988_v30 }
 0x80b   :  { %4117 = vmatpush1.msra.mxu0 %v12989_v32  ;;  %4188 = vmatpush1.msra.mxu1 %v12990_v34 }
 0x80c   :  { %4118 = vmatprep.subr.mxu0 %v12991_v35  ;;  %4189 = vmatprep.subr.mxu1 %v12992_v36 }
 0x80d   :  { %4119 = vmatpush1.msra.mxu0 %v12993_v37  ;;  %4190 = vmatpush1.msra.mxu1 %v12994_v62 }
 0x80e   :  { %4120 = vmatprep.subr.mxu0 %v12995_v10  ;;  %4191 = vmatprep.subr.mxu1 %v12996_v42 }
 0x80f   :  { %4121 = vmatpush1.msra.mxu0 %v12997_v57  ;;  %4192 = vmatpush1.msra.mxu1 %v12998_v1 }
 0x810   :  { %4122 = vmatprep.subr.mxu0 %v12999_v23  ;;  %4193 = vmatprep.subr.mxu1 %v13000_v4 }
 0x811   :  { %4123 = vmatpush1.msra.mxu0 %v13001_v51  ;;  %4156 = vmatprep.mubr.f32.mxu0 %v12056_v31 }
 0x812   :  { %4194 = vmatpush1.msra.mxu1 %v13002_v56  ;;  %4227 = vmatprep.mubr.f32.mxu1 %v12056_v31 }
 0x813   :  { %4237 = vmatprep.subr.mxu0 %v13003_v61  ;;  %4308 = vmatprep.subr.mxu1 %v13004_v50 }
 0x86e   :  { %v3658_v59 = vpop.f32.mrf.mxu0  ;;  %v3729_v55 = vpop.f32.mrf.mxu1 }
 0x870   :  { %v3660_v52 = vpop.f32.mrf.mxu0  ;;  %v3731_v46 = vpop.f32.mrf.mxu1 }
 0x890   :  { %v3803_v48 = vpop.f32.mrf.mxu0  ;;  %v3874_v11 = vpop.f32.mrf.mxu1 }
 0x891   :  { %v3804_v6 = vadd.f32 %v3803_v48, %v3658_v59  ;;  %v3875_v26 = vadd.f32 %v3874_v11, %v3729_v55 }
 0x892   :  { %v3805_v3 = vpop.f32.mrf.mxu0  ;;  %v3876_v28 = vpop.f32.mrf.mxu1 }
 0x893   :  { %v3879_v7 = vadd.f32 %v3804_v6, %v6919_v47  ;;  %v3806_v60 = vadd.f32 %v3805_v3, %v3660_v52  ;;  %v3877_v33 = vadd.f32 %v3876_v28, %v3731_v46  ;;  %v3881_v29 = vadd.f32 %v3875_v26, %v6934_v20  ;;  %v13013_v28 = vld [vmem:[#allocation90_spill] sm:$0xff]  ;;  %v13014_v26 = vld [vmem:[#allocation91_spill] sm:$0xff] }
 0x895   :  { %v4558_v9 = vmul.f32 -1.442695, %v3879_v7  ;;  %v3880_v63 = vadd.f32 %v3806_v60, %v6923_v53  ;;  %v3882_v16 = vadd.f32 %v3877_v33, %v6929_v54 }
 0x897   :  { %4831 = vpow2.f32 %v4558_v9  ;;  %v4559_v22 = vmul.f32 -1.442695, %v3880_v63  ;;  %v4560_v18 = vmul.f32 -1.442695, %v3882_v16 }
 0x899   :  { %4833 = vpow2.f32 %v4559_v22 }
 0x89a   :  { %4835 = vpow2.f32 %v4560_v18  ;;  %v13015_v18 = vld [vmem:[#allocation92_spill] sm:$0xff] }
 0x8a4   :  { %v4832_v24 = vpop.eup %4831 }
 0x8a5   :  { %v3886_v30 = vadd.f32 1.0, %v4832_v24 }
 0x8a6   :  { %v4834_v32 = vpop.eup %4833 }
 0x8a7   :  { %4837 = vrcp.f32 %v3886_v30  ;;  %v3892_v34 = vadd.f32 1.0, %v4834_v32  ;;  %v4836_v37 = vpop.eup %4835  ;;  %v13016_v30 = vld [vmem:[#allocation93_spill] sm:$0xff]  ;;  %v13017_v32 = vld [vmem:[#allocation94_spill] sm:$0xff] }
 0x8a8   :  { %4839 = vtanh.f32 %v3881_v29  ;;  %v3899_v59 = vadd.f32 1.0, %v4836_v37  ;;  %v13022_v37 = vld [vmem:[#allocation99_spill] sm:$0xff] }
 0x8a9   :  { %4841 = vrcp.f32 %v3892_v34  ;;  %v13019_v34 = vld [vmem:[#allocation96_spill] sm:$0xff] }
 0x8b1   :  { %v3973_v35 = vpop.f32.mrf.mxu0  ;;  %v4044_v57 = vpop.f32.mrf.mxu1 }
 0x8b2   :  { %v4053_v36 = vrot.slane %v3973_v35, 2  ;;  %v4055_v6 = vrot.slane %v4044_v57, 2  ;;  %v13020_v35 = vld [vmem:[#allocation97_spill] sm:$0xff] }
 0x8b3   :  { %v3975_v62 = vpop.f32.mrf.mxu0  ;;  %v4046_v52 = vpop.f32.mrf.mxu1  ;;  %v13028_v57 = vld [vmem:[#allocation105_spill] sm:$0xff] }
 0x8b4   :  { %v4838_v10 = vpop.eup %4837  ;;  %v4061_v42 = vadd.f32 %v4053_v36, %v12571_v45  ;;  %v4054_v1 = vrot.slane %v3975_v62, 2  ;;  %v4056_v46 = vrot.slane %v4046_v52, 2  ;;  %v13021_v36 = vld [vmem:[#allocation98_spill] sm:$0xff]  ;;  %v13023_v62 = vld [vmem:[#allocation100_spill] sm:$0xff]  ;;  %v13038_v52 = vld [vmem:[#allocation115_spill] sm:$0xff] }
 0x8b5   :  { %v4840_v23 = vpop.eup %4839 }
 0x8b6   :  { %v4842_v4 = vpop.eup %4841  ;;  %v4561_v51 = vmul.f32 -1.442695, %v4061_v42  ;;  %v4062_v56 = vadd.f32 %v4054_v1, %v12716_v5  ;;  %v3903_v61 = vmul.f32 %v4840_v23, %v4838_v10  ;;  %v4064_v45 = vadd.f32 %v4056_v46, %v12573_v2  ;;  %v13005_v2 = vld [vmem:[#allocation86_spill] sm:$0xff]  ;;  %v13026_v10 = vld [vmem:[#allocation103_spill] sm:$0xff]  ;;  %v13027_v42 = vld [vmem:[#allocation104_spill] sm:$0xff] }
 0x8b7   :  { %v3902_v50 = vmul.f32 %v4842_v4, %v10609_v39  ;;  %v4063_v5 = vadd.f32 %v4055_v6, %v12574_v49  ;;  %v13006_v49 = vld [vmem:[#allocation85_spill] sm:$0xff]  ;;  %v13029_v1 = vld [vmem:[#allocation106_spill] sm:$0xff]  ;;  %v13030_v23 = vld [vmem:[#allocation107_spill] sm:$0xff] }
 0x8b8   :  { %4843 = vpow2.f32 %v4561_v51  ;;  %v4562_v55 = vmul.f32 -1.442695, %v4062_v56  ;;  %v4563_v3 = vmul.f32 -1.442695, %v4064_v45  ;;  %v13031_v4 = vld [vmem:[#allocation108_spill] sm:$0xff]  ;;  %v13032_v51 = vld [vmem:[#allocation109_spill] sm:$0xff] }
 0x8b9   :  { %v11139_v48 = vadd.f32 %v3903_v61, %v3902_v50  ;;  %v13033_v56 = vld [vmem:[#allocation110_spill] sm:$0xff]  ;;  %v13034_v61 = vld [vmem:[#allocation111_spill] sm:$0xff]  ;;  %v13035_v50 = vld [vmem:[#allocation112_spill] sm:$0xff] }
 0x8ba   :  { %4845 = vpow2.f32 %v4562_v55  ;;  %v13037_v55 = vld [vmem:[#allocation114_spill] sm:$0xff]  ;;  %v13039_v46 = vld [vmem:[#allocation116_spill] sm:$0xff]  ;;  %v13040_v45 = vld [vmem:[#allocation117_spill] sm:$0xff] }
 0x8bb   :  { %4847 = vrcp.f32 %v3899_v59  ;;  %v13036_v59 = vld [vmem:[#allocation113_spill] sm:$0xff]  ;;  %v13041_v6 = vld [vmem:[#allocation118_spill] sm:$0xff] }
 0x8bc   :  { %4849 = vtanh.f32 %v11139_v48 }
 0x8bd   :  { %4851 = vpow2.f32 %v4563_v3  ;;  %v13042_v3 = vld [vmem:[#allocation119_spill] sm:$0xff] }
 0x8c5   :  { %v4844_v7 = vpop.eup %4843 }
 0x8c6   :  { %v4068_v11 = vadd.f32 1.0, %v4844_v7  ;;  %v13043_v7 = vld [vmem:[#allocation120_spill] sm:$0xff] }
 0x8c7   :  { %v4846_v39 = vpop.eup %4845 }
 0x8c8   :  { %v4848_v60 = vpop.eup %4847  ;;  %4853 = vrcp.f32 %v4068_v11  ;;  %v4074_v9 = vadd.f32 1.0, %v4846_v39  ;;  %v13045_v11 = vld [vmem:[#allocation122_spill] sm:$0xff] }
 0x8c9   :  { %v4850_v63 = vpop.eup %4849  ;;  %4855 = vtanh.f32 %v4063_v5  ;;  %v13044_v5 = vld [vmem:[#allocation121_spill] sm:$0xff] }
 0x8ca   :  { %4857 = vrcp.f32 %v4074_v9  ;;  %v3906_v22 = vmul.f32 %v4850_v63, %v4848_v60  ;;  %v13046_v60 = vld [vmem:[#allocation123_spill] sm:$0xff]  ;;  %v13047_v9 = vld [vmem:[#allocation124_spill] sm:$0xff] }
 0x8cc   :  { %4157 = vmatmul.mubr.f32.vlgmr.msra.gmra.mxu0 %v3906_v22  ;;  %4228 = vmatmul.mubr.f32.vlgmr.msra.gmra.mxu1 %v3906_v22  ;;  %v13048_v22 = vld [vmem:[#allocation125_spill] sm:$0xff] }
 0x8cd   :  { %4238 = vmatpush1.msra.mxu0 %v10617_v19  ;;  %4309 = vmatpush1.msra.mxu1 %v10623_v43  ;;  %v13007_v19 = vld [vmem:[#allocation87_spill] sm:$0xff]  ;;  %v13008_v43 = vld [vmem:[#allocation88_spill] sm:$0xff] }
 0x8ce   :  { %4239 = vmatprep.subr.mxu0 %v10629_v15  ;;  %4310 = vmatprep.subr.mxu1 %v10635_v58  ;;  %v4852_v15 = vpop.eup %4851  ;;  %v13009_v58 = vld [vmem:[#allocation89_spill] sm:$0xff] }
 0x8cf   :  { %4240 = vmatpush1.msra.mxu0 %v10641_v17  ;;  %4311 = vmatpush1.msra.mxu1 %v10647_v13  ;;  %v13010_v17 = vld [vmem:[#allocation154_spill] sm:$0xff]  ;;  %v4081_v16 = vadd.f32 1.0, %v4852_v15  ;;  %v4419_v15 = vld [vmem:[%s11292_s7 + $0x60] sm:$0xff] }
 0x8d0   :  { %4241 = vmatprep.subr.mxu0 %v10653_v41  ;;  %4312 = vmatprep.subr.mxu1 %v10659_v40  ;;  %v13011_v41 = vld [vmem:[#allocation155_spill] sm:$0xff]  ;;  %v13012_v40 = vld [vmem:[#allocation153_spill] sm:$0xff] }
 0x8d1   :  { %4242 = vmatpush1.msra.mxu0 %v10665_v38  ;;  %4313 = vmatpush1.msra.mxu1 %v10671_v25  ;;  %v4085_v25 = vrot.slane %v10771_v21, 6  ;;  %v13018_v21 = vld [vmem:[#allocation95_spill] sm:$0xff]  ;;  %4859 = vrcp.f32 %v4081_v16 }
 0x8d2   :  { %4243 = vmatprep.subr.mxu0 %v13005_v2  ;;  %4314 = vmatprep.subr.mxu1 %v13006_v49  ;;  %v13049_v2 = vld [vmem:[#allocation126_spill] sm:$0xff]  ;;  %v13050_v49 = vld [vmem:[#allocation127_spill] sm:$0xff] }
 0x8d3   :  { %4244 = vmatpush1.msra.mxu0 %v13007_v19  ;;  %4315 = vmatpush1.msra.mxu1 %v13008_v43  ;;  %v4409_v16 = vld [vmem:[%s11292_s7 + $0x10] sm:$0xff] }
 0x8d4   :  { %4245 = vmatprep.subr.mxu0 %v13009_v58  ;;  %4316 = vmatprep.subr.mxu1 %v13010_v17  ;;  %v4418_v58 = vld [vmem:[%s11292_s7 + $0x58] sm:$0xff]  ;;  %v4417_v17 = vld [vmem:[%s11292_s7 + $0x50] sm:$0xff] }
 0x8d5   :  { %v4854_v13 = vpop.eup %4853  ;;  %4246 = vmatpush1.msra.mxu0 %v13011_v41  ;;  %4317 = vmatpush1.msra.mxu1 %v13012_v40  ;;  %v4415_v41 = vld [vmem:[%s11292_s7 + $0x40] sm:$0xff]  ;;  %v4414_v40 = vld [vmem:[%s11292_s7 + $0x38] sm:$0xff] }
 0x8d6   :  { %v4856_v38 = vpop.eup %4855  ;;  %4247 = vmatprep.subr.mxu0 %v13013_v28  ;;  %4318 = vmatprep.subr.mxu1 %v10732_v8  ;;  %v4411_v28 = vld [vmem:[%s11292_s7 + $0x20] sm:$0xff] }
 0x8d7   :  { %v4858_v33 = vpop.eup %4857  ;;  %4248 = vmatpush1.msra.mxu0 %v13014_v26  ;;  %4319 = vmatpush1.msra.mxu1 %v13015_v18  ;;  %v4088_v24 = vmul.f32 %v4856_v38, %v4854_v13  ;;  %v4416_v13 = vld [vmem:[%s11292_s7 + $0x48] sm:$0xff]  ;;  %v4413_v38 = vld [vmem:[%s11292_s7 + $0x30] sm:$0xff]  ;;  %v4407_v18 = vld [vmem:[%s11292_s7] sm:$0xff] }
 0x8d8   :  { %v4087_v29 = vmul.f32 %v4858_v33, %v4085_v25  ;;  %4249 = vmatprep.subr.mxu0 %v10750_v14  ;;  %4320 = vmatprep.subr.mxu1 %v10756_v44  ;;  %v13024_v44 = vld [vmem:[#allocation101_spill] sm:$0xff]  ;;  %v13025_v14 = vld [vmem:[#allocation102_spill] sm:$0xff]  ;;  %v4410_v33 = vld [vmem:[%s11292_s7 + $0x18] sm:$0xff] }
 0x8d9   :  { %4250 = vmatpush1.msra.mxu0 %v13016_v30  ;;  %4321 = vmatpush1.msra.mxu1 %v13017_v32  ;;  %v4412_v25 = vld [vmem:[%s11292_s7 + $0x28] sm:$0xff] }
 0x8da   :  { %4251 = vmatprep.subr.mxu0 %v13018_v21  ;;  %4322 = vmatprep.subr.mxu1 %v13019_v34  ;;  %v4089_v8 = vadd.f32 %v4088_v24, %v4087_v29  ;;  %v4408_v26 = vld [vmem:[%s11292_s7 + $0x8] sm:$0xff] }
 0x8db   :  { %4252 = vmatpush1.msra.mxu0 %v13020_v35  ;;  %4323 = vmatpush1.msra.mxu1 %v13021_v36 }
 0x8dc   :  { %4253 = vmatprep.subr.mxu0 %v13022_v37  ;;  %4324 = vmatprep.subr.mxu1 %v13023_v62  ;;  %4861 = vtanh.f32 %v4089_v8 }
 0x8dd   :  { %4254 = vmatpush1.msra.mxu0 %v13024_v44  ;;  %4325 = vmatpush1.msra.mxu1 %v13025_v14 }
 0x8de   :  { %4255 = vmatprep.subr.mxu0 %v13026_v10  ;;  %4326 = vmatprep.subr.mxu1 %v13027_v42  ;;  %v4860_v39 = vpop.eup %4859 }
 0x8df   :  { %4256 = vmatpush1.msra.mxu0 %v13028_v57  ;;  %4327 = vmatpush1.msra.mxu1 %v13029_v1 }
 0x8e0   :  { %4257 = vmatprep.subr.mxu0 %v13030_v23  ;;  %4328 = vmatprep.subr.mxu1 %v13031_v4 }
 0x8e1   :  { %4258 = vmatpush1.msra.mxu0 %v13032_v51  ;;  %4329 = vmatpush1.msra.mxu1 %v13033_v56 }
 0x8e2   :  { %4259 = vmatprep.subr.mxu0 %v13034_v61  ;;  %4330 = vmatprep.subr.mxu1 %v13035_v50 }
 0x8e3   :  { %4260 = vmatpush1.msra.mxu0 %v13036_v59  ;;  %4331 = vmatpush1.msra.mxu1 %v13037_v55 }
 0x8e4   :  { %4261 = vmatprep.subr.mxu0 %v13038_v52  ;;  %4332 = vmatprep.subr.mxu1 %v13039_v46 }
 0x8e5   :  { %4262 = vmatpush1.msra.mxu0 %v13040_v45  ;;  %4333 = vmatpush1.msra.mxu1 %v13041_v6 }
 0x8e6   :  { %4263 = vmatprep.subr.mxu0 %v13042_v3  ;;  %4334 = vmatprep.subr.mxu1 %v13043_v7  ;;  %v4567_v3 = vld [vmem:[%s11293_s8] ss:$0 sm:$0xff] }
 0x8e7   :  { %4264 = vmatpush1.msra.mxu0 %v13044_v5  ;;  %4335 = vmatpush1.msra.mxu1 %v13045_v11 }
 0x8e8   :  { %4265 = vmatprep.subr.mxu0 %v13046_v60  ;;  %4336 = vmatprep.subr.mxu1 %v13047_v9 }
 0x8e9   :  { %v4862_v63 = vpop.eup %4861  ;;  %4266 = vmatpush1.msra.mxu0 %v13048_v22  ;;  %4337 = vmatpush1.msra.mxu1 %v13049_v2 }
 0x8ea   :  { %4267 = vmatprep.subr.mxu0 %v10969_v0  ;;  %4338 = vmatprep.subr.mxu1 %v13050_v49  ;;  %v4091_v19 = vmul.f32 %v4862_v63, %v4860_v39  ;;  %v4422_v0 = vld [vmem:[%s11292_s7 + $0x78] sm:$0xff] }
 0x8eb   :  { %4268 = vmatpush1.msra.mxu0 %v10981_v12  ;;  %4301 = vmatprep.mubr.f32.mxu0 %v12056_v31  ;;  %v4421_v12 = vld [vmem:[%s11292_s7 + $0x70] sm:$0xff] }
 0x8ec   :  { %4339 = vmatpush1.msra.mxu1 %v10987_v27  ;;  %4372 = vmatprep.mubr.f32.mxu1 %v12056_v31  ;;  %v4235_v43 = vrot.slane %v4091_v19, 6  ;;  %v4420_v27 = vld [vmem:[%s11292_s7 + $0x68] sm:$0xff] }
 0x8ed   :  { %4585 = vmatprep.subr.mxu0 %v12056_v31 }
 0x8ee   :  { %4302 = vmatmul.mubr.f32.vlgmr.msra.gmra.mxu0 %v4235_v43  ;;  %4373 = vmatmul.mubr.f32.vlgmr.msra.gmra.mxu1 %v4235_v43 }
 0x8ef   :  { %4586 = vmatpush3.msra.mxu0 %v4422_v0  ;;  %4617 = vmatprep.mubr.msk.f32.mxu0 %vm5478_vm1, %v12056_v31 }
 0x8f0   :  { %4587 = vmatprep.subr.mxu0 %v12056_v31 }
 0x8f1   :  { %4588 = vmatpush3.msra.mxu0 %v4421_v12 }
 0x8f2   :  { %4589 = vmatprep.subr.mxu0 %v12056_v31 }
 0x8f3   :  { %4590 = vmatpush3.msra.mxu0 %v4420_v27 }
 0x8f4   :  { %4591 = vmatprep.subr.mxu0 %v12056_v31 }
 0x8f5   :  { %4592 = vmatpush3.msra.mxu0 %v4419_v15 }
 0x8f6   :  { %4593 = vmatprep.subr.mxu0 %v12056_v31 }
 0x8f7   :  { %4594 = vmatpush3.msra.mxu0 %v4418_v58 }
 0x8f8   :  { %4595 = vmatprep.subr.mxu0 %v12056_v31 }
 0x8f9   :  { %4596 = vmatpush3.msra.mxu0 %v4417_v17 }
 0x8fa   :  { %4597 = vmatprep.subr.mxu0 %v12056_v31 }
 0x8fb   :  { %4598 = vmatpush3.msra.mxu0 %v4416_v13 }
 0x8fc   :  { %4599 = vmatprep.subr.mxu0 %v12056_v31 }
 0x8fd   :  { %4600 = vmatpush3.msra.mxu0 %v4415_v41 }
 0x8fe   :  { %4601 = vmatprep.subr.mxu0 %v12056_v31 }
 0x8ff   :  { %4602 = vmatpush3.msra.mxu0 %v4414_v40 }
 0x900   :  { %4603 = vmatprep.subr.mxu0 %v12056_v31 }
 0x901   :  { %4604 = vmatpush3.msra.mxu0 %v4413_v38 }
 0x902   :  { %4605 = vmatprep.subr.mxu0 %v12056_v31 }
 0x903   :  { %4606 = vmatpush3.msra.mxu0 %v4412_v25 }
 0x904   :  { %4607 = vmatprep.subr.mxu0 %v12056_v31 }
 0x905   :  { %4608 = vmatpush3.msra.mxu0 %v4411_v28 }
 0x906   :  { %4609 = vmatprep.subr.mxu0 %v12056_v31 }
 0x907   :  { %4610 = vmatpush3.msra.mxu0 %v4410_v33 }
 0x908   :  { %4611 = vmatprep.subr.mxu0 %v12056_v31 }
 0x909   :  { %4612 = vmatpush3.msra.mxu0 %v4409_v16 }
 0x90a   :  { %4613 = vmatprep.subr.mxu0 %v12056_v31 }
 0x90b   :  { %4614 = vmatpush3.msra.mxu0 %v4408_v26 }
 0x90c   :  { %4615 = vmatprep.subr.mxu0 %v12056_v31 }
 0x90d   :  { %4616 = vmatpush3.msra.mxu0 %v4407_v18 }
 0x98c   :  { %v4158_v24 = vpop.f32.mrf.mxu0  ;;  %v4229_v29 = vpop.f32.mrf.mxu1 }
 0x98e   :  { %v4160_v30 = vpop.f32.mrf.mxu0  ;;  %v4231_v21 = vpop.f32.mrf.mxu1 }
 0x9ae   :  { %v4303_v32 = vpop.f32.mrf.mxu0  ;;  %v4374_v36 = vpop.f32.mrf.mxu1 }
 0x9af   :  { %v4304_v34 = vadd.f32 %v4303_v32, %v4158_v24  ;;  %v4375_v57 = vadd.f32 %v4374_v36, %v4229_v29 }
 0x9b0   :  { %v4305_v8 = vpop.f32.mrf.mxu0  ;;  %v4376_v10 = vpop.f32.mrf.mxu1 }
 0x9b1   :  { %v4379_v35 = vadd.f32 %v4304_v34, %v6919_v47  ;;  %v4306_v37 = vadd.f32 %v4305_v8, %v4160_v30  ;;  %v4377_v31 = vadd.f32 %v4376_v10, %v4231_v21  ;;  %v4381_v4 = vadd.f32 %v4375_v57, %v6934_v20 }
 0x9b3   :  { %v4564_v62 = vmul.f32 -1.442695, %v4379_v35  ;;  %v4380_v44 = vadd.f32 %v4306_v37, %v6923_v53  ;;  %v4382_v42 = vadd.f32 %v4377_v31, %v6929_v54 }
 0x9b5   :  { %4863 = vpow2.f32 %v4564_v62  ;;  %v4565_v14 = vmul.f32 -1.442695, %v4380_v44  ;;  %v4566_v1 = vmul.f32 -1.442695, %v4382_v42 }
 0x9b7   :  { %4865 = vpow2.f32 %v4565_v14 }
 0x9b8   :  { %4867 = vpow2.f32 %v4566_v1 }
 0x9c2   :  { %v4864_v23 = vpop.eup %4863 }
 0x9c3   :  { %v4386_v51 = vadd.f32 1.0, %v4864_v23 }
 0x9c4   :  { %v4866_v56 = vpop.eup %4865 }
 0x9c5   :  { %4869 = vrcp.f32 %v4386_v51  ;;  %v4392_v47 = vadd.f32 1.0, %v4866_v56  ;;  %v4868_v53 = vpop.eup %4867 }
 0x9c6   :  { %4871 = vtanh.f32 %v4381_v4  ;;  %v4399_v55 = vadd.f32 1.0, %v4868_v53 }
 0x9c7   :  { %4873 = vrcp.f32 %v4392_v47 }
 0x9c8   :  { %4875 = vrcp.f32 %v4399_v55 }
 0x9d2   :  { %v4870_v61 = vpop.eup %4869 }
 0x9d3   :  { %v4872_v50 = vpop.eup %4871 }
 0x9d4   :  { %v4874_v59 = vpop.eup %4873  ;;  %v4403_v52 = vmul.f32 %v4872_v50, %v4870_v61 }
 0x9d5   :  { %v4402_v54 = vmul.f32 %v4874_v59, %v11139_v48  ;;  %v4876_v45 = vpop.eup %4875 }
 0x9d7   :  { %v4404_v46 = vadd.f32 %v4403_v52, %v4402_v54 }
 0x9d9   :  { %4877 = vtanh.f32 %v4404_v46 }
 0x9e6   :  { %v4878_v20 = vpop.eup %4877 }
 0x9e7   :  { %v4406_v6 = vmul.f32 %v4878_v20, %v4876_v45 }
 0x9e9   :  { %4618 = vmatmul.mubr.f32.vlgmr.msra.gmra.mxu0 %v4406_v6 }
 0xaa9   :  { %v4496_v7 = vpop.f32.mrf.mxu0 }
 0xaaa   :  { %v4497_v5 = vadd.f32 %v4567_v3, %v4496_v7 }
 0xaab   :  { %v4619_v11 = vpop.f32.mrf.mxu0 }
 0xaac   :  { %4500 = vst [vmem:[#allocation2] sm:$0x3] %v4497_v5 }
 0xaad   :  { %5466 = shalt.err (!%p5463_p4)
}
 0xaae   :  { %4510 = dma.vmem_to_hbm [thread:$0]  %s4508_s20, 32, %s11294_s9, [#allocation3]  }
 0xaaf   :  { %5475 = dma.done.wait [#allocation3], 32  }
 0xab0   :  { %5476 = vsyncadd [#allocation3], 4294967264 }
 0xab1   :  { %4514 = vsyncpa [#allocation3], 1 }

</bundles_post_ra>
